<compile_context>
chip_gen: v5e
topology: v5e:2x2
jax: 0.10.0
libtpu: 0.0.40
codegen_flags: <defaults>
</compile_context>

<pallas_src>
import functools

import numpy as np

import jax
import jax.numpy as jnp
from jax.experimental import pallas as pl
from jax.experimental.pallas import tpu as pltpu  # noqa: F401  (TPU backend)


# ----------------------------------------------------------------------------
# Host-side constant builders (static shapes -> baked constants under jit)
# ----------------------------------------------------------------------------
@functools.lru_cache(maxsize=None)
def _conv_masks_np(n, h, w):
    """(9, 1, M) 0/1 masks: tap (ky,kx) is valid at pixel (h,w) of each image."""
    m = n * h * w
    flat = np.arange(m)
    hh = (flat // w) % h
    ww = flat % w
    out = np.zeros((9, 1, m), np.float32)
    t = 0
    for ky in (-1, 0, 1):
        for kx in (-1, 0, 1):
            valid = (hh + ky >= 0) & (hh + ky < h) & (ww + kx >= 0) & (ww + kx < w)
            out[t, 0, :] = valid.astype(np.float32)
            t += 1
    return out


@functools.lru_cache(maxsize=None)
def _pool_select_np(n, h, w):
    """(M, M/4) 0/1 selection matrix: picks the top-left ("anchor") pixel of
    every 2x2 window, mapping flat (n,h,w) -> flat (n,h/2,w/2)."""
    m = n * h * w
    h2, w2 = h // 2, w // 2
    m4 = n * h2 * w2
    col = np.arange(m4)
    ni = col // (h2 * w2)
    hi = (col // w2) % h2
    wi = col % w2
    src = (ni * h + 2 * hi) * w + 2 * wi
    s = np.zeros((m, m4), np.float32)
    s[src, col] = 1.0
    return s


@functools.lru_cache(maxsize=None)
def _upsample_select_np(n, h, w):
    """(4, Ml, Mh) 0/1 scatter matrices for ConvTranspose2d(k=2, s=2):
    tap t = dy*2 + dx sends low-res pixel (n,h,w) to high-res (n,2h+dy,2w+dx)."""
    ml = n * h * w
    mh = n * (2 * h) * (2 * w)
    row = np.arange(ml)
    ni = row // (h * w)
    hi = (row // w) % h
    wi = row % w
    u = np.zeros((4, ml, mh), np.float32)
    for t, (dy, dx) in enumerate(((0, 0), (0, 1), (1, 0), (1, 1))):
        dst = (ni * (2 * h) + 2 * hi + dy) * (2 * w) + 2 * wi + dx
        u[t, row, dst] = 1.0
    return u


# ----------------------------------------------------------------------------
# In-kernel helpers
# ----------------------------------------------------------------------------
def _shift_lanes(x, s):
    """y[:, m] = x[:, m + s], zero-filled outside [0, M)."""
    if s == 0:
        return x
    c, m = x.shape
    if s > 0:
        return jnp.concatenate([x[:, s:], jnp.zeros((c, s), x.dtype)], axis=1)
    return jnp.concatenate([jnp.zeros((c, -s), x.dtype), x[:, : m + s]], axis=1)


def _conv3x3_bn_relu(x, w_ref, b_ref, mask_ref, width):
    """Fused Conv2d(k=3, pad=1, bias=False) + folded-BatchNorm + ReLU.

    x        : (Cin, M) f32 activation (M = N*H*W, flat (n, h, w) order)
    w_ref    : (9, Cout, Cin) bf16 weights, BN scale folded in, tap-major
    b_ref    : (Cout, 1) f32 folded BN shift
    mask_ref : (9, 1, M) f32 border-validity masks
    returns  : (Cout, M) f32
    """
    cin = x.shape[0]
    acc = None
    t = 0
    for ky in (-1, 0, 1):
        for kx in (-1, 0, 1):
            if ky == 0 and kx == 0:
                tap = x
            else:
                tap = _shift_lanes(x, ky * width + kx) * mask_ref[t]
            w_tap = w_ref[t]                       # (Cout, Cin)
            if cin == 1:
                # degenerate K=1 contraction -> plain broadcasted multiply (VPU)
                part = w_tap.astype(jnp.float32) * tap
            else:
                part = jnp.dot(w_tap, tap.astype(jnp.bfloat16),
                               preferred_element_type=jnp.float32)
            acc = part if acc is None else acc + part
            t += 1
    return jnp.maximum(acc + b_ref[...], 0.0)


# ----------------------------------------------------------------------------
# Pallas kernels (one per UNet stage)
# ----------------------------------------------------------------------------
def _encoder_kernel(x_ref, w1_ref, b1_ref, w2_ref, b2_ref, mask_ref, pool_ref,
                    skip_ref, down_ref, *, width):
    """DoubleConv + 2x2 max-pool.  Emits the skip tensor and the pooled tensor."""
    x = x_ref[...].astype(jnp.float32)
    h1 = _conv3x3_bn_relu(x, w1_ref, b1_ref, mask_ref, width)
    h2 = _conv3x3_bn_relu(h1, w2_ref, b2_ref, mask_ref, width)
    skip_ref[...] = h2
    # 2x2 window max: combine the 4 window elements via lane shifts (values are
    # post-ReLU >= 0 and anchored windows never cross a border), then select the
    # anchor pixels with an exact 0/1 matrix on the MXU.
    q = jnp.maximum(jnp.maximum(h2, _shift_lanes(h2, 1)),
                    jnp.maximum(_shift_lanes(h2, width),
                                _shift_lanes(h2, width + 1)))
    down_ref[...] = jnp.dot(q, pool_ref[...], preferred_element_type=jnp.float32)


def _double_conv_kernel(x_ref, w1_ref, b1_ref, w2_ref, b2_ref, mask_ref,
                        out_ref, *, width):
    """Bottleneck DoubleConv."""
    x = x_ref[...].astype(jnp.float32)
    h1 = _conv3x3_bn_relu(x, w1_ref, b1_ref, mask_ref, width)
    out_ref[...] = _conv3x3_bn_relu(h1, w2_ref, b2_ref, mask_ref, width)


def _decoder_kernel(x_ref, skip_ref, wt_ref, bt_ref, up_ref, w1_ref, b1_ref,
                    w2_ref, b2_ref, mask_ref, *rest, width, final):
    """ConvTranspose2d(k=2,s=2) + channel concat with skip + DoubleConv
    (+ optionally the final 1x1 conv, fused into the last decoder stage)."""
    if final:
        wf_ref, bf_ref, out_ref = rest
    else:
        (out_ref,) = rest

    x = x_ref[...].astype(jnp.bfloat16)            # (2f, M_low)
    up = None
    for t in range(4):
        u_t = jnp.dot(wt_ref[t], x, preferred_element_type=jnp.float32)   # (f, M_low)
        scat = jnp.dot(u_t, up_ref[t], preferred_element_type=jnp.float32)  # (f, M_high)
        up = scat if up is None else up + scat
    up = up + bt_ref[...]                          # transposed-conv bias

    # torch.cat((skip, x), dim=1): skip channels first.
    xin = jnp.concatenate([skip_ref[...], up], axis=0)      # (2f, M_high)
    h1 = _conv3x3_bn_relu(xin, w1_ref, b1_ref, mask_ref, width)
    h2 = _conv3x3_bn_relu(h1, w2_ref, b2_ref, mask_ref, width)

    if final:
        out_ref[...] = (jnp.dot(wf_ref[...], h2.astype(jnp.bfloat16),
                                preferred_element_type=jnp.float32)
                        + bf_ref[...])
    else:
        out_ref[...] = h2


# ----------------------------------------------------------------------------
# Stage wrappers (grid-less pallas_call, whole arrays resident in VMEM)
# ----------------------------------------------------------------------------
def _encoder_block(x2d, blk, n, h, w):
    w1, b1, w2, b2 = blk
    c1 = w1.shape[1]
    m = n * h * w
    masks = jnp.asarray(_conv_masks_np(n, h, w))
    pool = jnp.asarray(_pool_select_np(n, h, w))
    skip, down = pl.pallas_call(
        functools.partial(_encoder_kernel, width=w),
        out_shape=(jax.ShapeDtypeStruct((c1, m), jnp.float32),
                   jax.ShapeDtypeStruct((c1, m // 4), jnp.float32)),
    )(x2d, w1, b1, w2, b2, masks, pool)
    return skip, down


def _double_conv_block(x2d, blk, n, h, w):
    w1, b1, w2, b2 = blk
    c1 = w1.shape[1]
    m = n * h * w
    masks = jnp.asarray(_conv_masks_np(n, h, w))
    return pl.pallas_call(
        functools.partial(_double_conv_kernel, width=w),
        out_shape=jax.ShapeDtypeStruct((c1, m), jnp.float32),
    )(x2d, w1, b1, w2, b2, masks)


def _decoder_block(x2d, skip2d, blk, n, h_low, w_low, final_params=None):
    wt, bt, w1, b1, w2, b2 = blk
    f = wt.shape[1]
    h, w = 2 * h_low, 2 * w_low
    m = n * h * w
    masks = jnp.asarray(_conv_masks_np(n, h, w))
    up_sel = jnp.asarray(_upsample_select_np(n, h_low, w_low))
    args = [x2d, skip2d, wt, bt, up_sel, w1, b1, w2, b2, masks]
    if final_params is None:
        kern = functools.partial(_decoder_kernel, width=w, final=False)
        out_shape = jax.ShapeDtypeStruct((f, m), jnp.float32)
    else:
        wf, bf = final_params
        args += [wf, bf]
        kern = functools.partial(_decoder_kernel, width=w, final=True)
        out_shape = jax.ShapeDtypeStruct((wf.shape[0], m), jnp.float32)
    return pl.pallas_call(kern, out_shape=out_shape)(*args)


# ----------------------------------------------------------------------------
# Parameter init (deterministic, synthetic) -- BN folded into conv weights
# ----------------------------------------------------------------------------
def _init_bn(keys, c):
    gamma = jax.random.uniform(keys[0], (c,), jnp.float32, 0.5, 1.5)
    beta = 0.1 * jax.random.normal(keys[1], (c,), jnp.float32)
    mean = 0.1 * jax.random.normal(keys[2], (c,), jnp.float32)
    var = jax.random.uniform(keys[3], (c,), jnp.float32, 0.5, 1.5)
    scale = gamma / jnp.sqrt(var + 1e-5)
    shift = beta - mean * scale
    return scale, shift


def _conv_bn_params(key, cin, cout):
    ks = jax.random.split(key, 5)
    wconv = 0.1 * jax.random.normal(ks[0], (cout, cin, 3, 3), jnp.float32)
    scale, shift = _init_bn(ks[1:5], cout)
    wfold = wconv * scale[:, None, None, None]               # BN scale -> weights
    # (Cout, Cin, 3, 3) -> (ky, kx, Cout, Cin) -> (9, Cout, Cin), tap-major
    w9 = jnp.transpose(wfold, (2, 3, 0, 1)).reshape(9, cout, cin)
    return w9.astype(jnp.bfloat16), shift.reshape(cout, 1).astype(jnp.float32)


def _double_conv_params(key, cin, cout):
    k1, k2 = jax.random.split(key)
    w1, b1 = _conv_bn_params(k1, cin, cout)
    w2, b2 = _conv_bn_params(k2, cout, cout)
    return (w1, b1, w2, b2)


def init_unet(key, in_channels=1, out_channels=1, features=(8, 16)):
    keys = iter(jax.random.split(key, 64))
    enc = []
    cin = in_channels
    for f in features:
        enc.append(_double_conv_params(next(keys), cin, f))
        cin = f
    bottleneck = _double_conv_params(next(keys), features[-1], features[-1] * 2)
    dec = []
    for f in reversed(features):
        wT = 0.1 * jax.random.normal(next(keys), (f * 2, f, 2, 2), jnp.float32)
        bT = 0.1 * jax.random.normal(next(keys), (f,), jnp.float32)
        # (Cin, Cout, 2, 2) -> (dy, dx, Cout, Cin) -> (4, Cout, Cin), tap-major
        wt4 = jnp.transpose(wT, (2, 3, 1, 0)).reshape(4, f, 2 * f).astype(jnp.bfloat16)
        bt = bT.reshape(f, 1).astype(jnp.float32)
        w1, b1, w2, b2 = _double_conv_params(next(keys), f * 2, f)
        dec.append((wt4, bt, w1, b1, w2, b2))
    wf = 0.1 * jax.random.normal(next(keys), (out_channels, features[0], 1, 1),
                                 jnp.float32)
    bf = 0.1 * jax.random.normal(next(keys), (out_channels,), jnp.float32)
    final = (wf.reshape(out_channels, features[0]).astype(jnp.bfloat16),
             bf.reshape(out_channels, 1).astype(jnp.float32))
    return dict(enc=enc, bottleneck=bottleneck, dec=dec, final=final)


# ----------------------------------------------------------------------------
# Forward pass (NCHW in / NCHW out, matching the PyTorch module)
# ----------------------------------------------------------------------------
def unet_forward(params, x_nchw):
    n, cin, h, w = x_nchw.shape
    assert h % (2 ** len(params["enc"])) == 0 and w % (2 ** len(params["enc"])) == 0

    # NCHW -> (C, N*H*W): channels on sublanes, flat pixels on lanes.
    x = jnp.transpose(x_nchw, (1, 0, 2, 3)).reshape(cin, n * h * w)

    skips = []
    ch, cw = h, w
    for blk in params["enc"]:
        skip, x = _encoder_block(x, blk, n, ch, cw)
        skips.append((skip, ch, cw))
        ch, cw = ch // 2, cw // 2

    x = _double_conv_block(x, params["bottleneck"], n, ch, cw)

    n_dec = len(params["dec"])
    for i, blk in enumerate(params["dec"]):
        skip, sh, sw = skips[-1 - i]
        fin = params["final"] if i == n_dec - 1 else None
        x = _decoder_block(x, skip, blk, n, ch, cw, final_params=fin)
        ch, cw = sh, sw

    cout = params["final"][0].shape[0]
    y = x.reshape(cout, n, h, w)
    return jnp.transpose(y, (1, 0, 2, 3))          # -> NCHW


# ----------------------------------------------------------------------------
if __name__ == "__main__":
    key = jax.random.PRNGKey(0)
    k_params, k_x = jax.random.split(key)

    # small UNet: in_channels=1, out_channels=1, features=(8, 16)
    params = init_unet(k_params, in_channels=1, out_channels=1, features=(8, 16))

    # NCHW input, matching the PyTorch module convention
    x = jax.random.normal(k_x, (2, 1, 16, 16), jnp.float32)

    fwd = jax.jit(unet_forward)
    out = jax.block_until_ready(fwd(params, x))
    assert out.shape == (2, 1, 16, 16), out.shape
    print("KERNEL_OK")
</pallas_src>

<mosaic_0001>
module attributes {stable_mosaic.version = 11 : i64} {
  func.func @_encoder_kernel(%arg0: memref<1x512xf32, #tpu.memory_space<vmem>>, %arg1: memref<9x8x1xbf16, #tpu.memory_space<vmem>>, %arg2: memref<8x1xf32, #tpu.memory_space<vmem>>, %arg3: memref<9x8x8xbf16, #tpu.memory_space<vmem>>, %arg4: memref<8x1xf32, #tpu.memory_space<vmem>>, %arg5: memref<9x1x512xf32, #tpu.memory_space<vmem>>, %arg6: memref<512x128xf32, #tpu.memory_space<vmem>>, %arg7: memref<8x512xf32, #tpu.memory_space<vmem>>, %arg8: memref<8x128xf32, #tpu.memory_space<vmem>>) attributes {dimension_semantics = [], scalar_prefetch = 0 : i64, scratch_operands = 0 : i64, tpu.core_type = #tpu.core_type<tc>} {
    %c0 = arith.constant 0 : index
    %c0_0 = arith.constant 0 : index
    %0 = vector.load %arg0[%c0, %c0_0] : memref<1x512xf32, #tpu.memory_space<vmem>>, vector<1x512xf32>
    %cst = arith.constant 0.000000e+00 : f32
    %1 = vector.broadcast %cst : f32 to vector<1x17xf32>
    %2 = vector.extract_strided_slice %0 {offsets = [0, 0], sizes = [1, 495], strides = [1, 1]} : vector<1x512xf32> to vector<1x495xf32>
    %3 = tpu.concatenate %1, %2 in 1 : vector<1x17xf32>, vector<1x495xf32> -> vector<1x512xf32>
    %c0_1 = arith.constant 0 : index
    %c0_2 = arith.constant 0 : index
    %c0_3 = arith.constant 0 : index
    %4 = vector.load %arg5[%c0_1, %c0_2, %c0_3] : memref<9x1x512xf32, #tpu.memory_space<vmem>>, vector<1x1x512xf32>
    %5 = vector.shape_cast %4 : vector<1x1x512xf32> to vector<1x512xf32>
    %6 = arith.mulf %3, %5 : vector<1x512xf32>
    %c0_4 = arith.constant 0 : index
    %c0_5 = arith.constant 0 : index
    %c0_6 = arith.constant 0 : index
    %7 = vector.load %arg1[%c0_4, %c0_5, %c0_6] : memref<9x8x1xbf16, #tpu.memory_space<vmem>>, vector<1x8x1xbf16>
    %8 = vector.shape_cast %7 : vector<1x8x1xbf16> to vector<8x1xbf16>
    %9 = arith.extf %8 : vector<8x1xbf16> to vector<8x1xf32>
    %10 = vector.broadcast %9 : vector<8x1xf32> to vector<8x512xf32>
    %11 = vector.broadcast %6 : vector<1x512xf32> to vector<8x512xf32>
    %12 = arith.mulf %10, %11 : vector<8x512xf32>
    %cst_7 = arith.constant 0.000000e+00 : f32
    %13 = vector.broadcast %cst_7 : f32 to vector<1x16xf32>
    %14 = vector.extract_strided_slice %0 {offsets = [0, 0], sizes = [1, 496], strides = [1, 1]} : vector<1x512xf32> to vector<1x496xf32>
    %15 = tpu.concatenate %13, %14 in 1 : vector<1x16xf32>, vector<1x496xf32> -> vector<1x512xf32>
    %c1 = arith.constant 1 : index
    %c0_8 = arith.constant 0 : index
    %c0_9 = arith.constant 0 : index
    %16 = vector.load %arg5[%c1, %c0_8, %c0_9] : memref<9x1x512xf32, #tpu.memory_space<vmem>>, vector<1x1x512xf32>
    %17 = vector.shape_cast %16 : vector<1x1x512xf32> to vector<1x512xf32>
    %18 = arith.mulf %15, %17 : vector<1x512xf32>
    %c1_10 = arith.constant 1 : index
    %c0_11 = arith.constant 0 : index
    %c0_12 = arith.constant 0 : index
    %19 = vector.load %arg1[%c1_10, %c0_11, %c0_12] : memref<9x8x1xbf16, #tpu.memory_space<vmem>>, vector<1x8x1xbf16>
    %20 = vector.shape_cast %19 : vector<1x8x1xbf16> to vector<8x1xbf16>
    %21 = arith.extf %20 : vector<8x1xbf16> to vector<8x1xf32>
    %22 = vector.broadcast %21 : vector<8x1xf32> to vector<8x512xf32>
    %23 = vector.broadcast %18 : vector<1x512xf32> to vector<8x512xf32>
    %24 = arith.mulf %22, %23 : vector<8x512xf32>
    %25 = arith.addf %12, %24 : vector<8x512xf32>
    %cst_13 = arith.constant 0.000000e+00 : f32
    %26 = vector.broadcast %cst_13 : f32 to vector<1x15xf32>
    %27 = vector.extract_strided_slice %0 {offsets = [0, 0], sizes = [1, 497], strides = [1, 1]} : vector<1x512xf32> to vector<1x497xf32>
    %28 = tpu.concatenate %26, %27 in 1 : vector<1x15xf32>, vector<1x497xf32> -> vector<1x512xf32>
    %c2 = arith.constant 2 : index
    %c0_14 = arith.constant 0 : index
    %c0_15 = arith.constant 0 : index
    %29 = vector.load %arg5[%c2, %c0_14, %c0_15] : memref<9x1x512xf32, #tpu.memory_space<vmem>>, vector<1x1x512xf32>
    %30 = vector.shape_cast %29 : vector<1x1x512xf32> to vector<1x512xf32>
    %31 = arith.mulf %28, %30 : vector<1x512xf32>
    %c2_16 = arith.constant 2 : index
    %c0_17 = arith.constant 0 : index
    %c0_18 = arith.constant 0 : index
    %32 = vector.load %arg1[%c2_16, %c0_17, %c0_18] : memref<9x8x1xbf16, #tpu.memory_space<vmem>>, vector<1x8x1xbf16>
    %33 = vector.shape_cast %32 : vector<1x8x1xbf16> to vector<8x1xbf16>
    %34 = arith.extf %33 : vector<8x1xbf16> to vector<8x1xf32>
    %35 = vector.broadcast %34 : vector<8x1xf32> to vector<8x512xf32>
    %36 = vector.broadcast %31 : vector<1x512xf32> to vector<8x512xf32>
    %37 = arith.mulf %35, %36 : vector<8x512xf32>
    %38 = arith.addf %25, %37 : vector<8x512xf32>
    %cst_19 = arith.constant 0.000000e+00 : f32
    %39 = vector.broadcast %cst_19 : f32 to vector<1x1xf32>
    %40 = vector.extract_strided_slice %0 {offsets = [0, 0], sizes = [1, 511], strides = [1, 1]} : vector<1x512xf32> to vector<1x511xf32>
    %41 = tpu.concatenate %39, %40 in 1 : vector<1x1xf32>, vector<1x511xf32> -> vector<1x512xf32>
    %c3 = arith.constant 3 : index
    %c0_20 = arith.constant 0 : index
    %c0_21 = arith.constant 0 : index
    %42 = vector.load %arg5[%c3, %c0_20, %c0_21] : memref<9x1x512xf32, #tpu.memory_space<vmem>>, vector<1x1x512xf32>
    %43 = vector.shape_cast %42 : vector<1x1x512xf32> to vector<1x512xf32>
    %44 = arith.mulf %41, %43 : vector<1x512xf32>
    %c3_22 = arith.constant 3 : index
    %c0_23 = arith.constant 0 : index
    %c0_24 = arith.constant 0 : index
    %45 = vector.load %arg1[%c3_22, %c0_23, %c0_24] : memref<9x8x1xbf16, #tpu.memory_space<vmem>>, vector<1x8x1xbf16>
    %46 = vector.shape_cast %45 : vector<1x8x1xbf16> to vector<8x1xbf16>
    %47 = arith.extf %46 : vector<8x1xbf16> to vector<8x1xf32>
    %48 = vector.broadcast %47 : vector<8x1xf32> to vector<8x512xf32>
    %49 = vector.broadcast %44 : vector<1x512xf32> to vector<8x512xf32>
    %50 = arith.mulf %48, %49 : vector<8x512xf32>
    %51 = arith.addf %38, %50 : vector<8x512xf32>
    %c4 = arith.constant 4 : index
    %c0_25 = arith.constant 0 : index
    %c0_26 = arith.constant 0 : index
    %52 = vector.load %arg1[%c4, %c0_25, %c0_26] : memref<9x8x1xbf16, #tpu.memory_space<vmem>>, vector<1x8x1xbf16>
    %53 = vector.shape_cast %52 : vector<1x8x1xbf16> to vector<8x1xbf16>
    %54 = arith.extf %53 : vector<8x1xbf16> to vector<8x1xf32>
    %55 = vector.broadcast %54 : vector<8x1xf32> to vector<8x512xf32>
    %56 = vector.broadcast %0 : vector<1x512xf32> to vector<8x512xf32>
    %57 = arith.mulf %55, %56 : vector<8x512xf32>
    %58 = arith.addf %51, %57 : vector<8x512xf32>
    %59 = vector.extract_strided_slice %0 {offsets = [0, 1], sizes = [1, 511], strides = [1, 1]} : vector<1x512xf32> to vector<1x511xf32>
    %cst_27 = arith.constant 0.000000e+00 : f32
    %60 = vector.broadcast %cst_27 : f32 to vector<1x1xf32>
    %61 = tpu.concatenate %59, %60 in 1 : vector<1x511xf32>, vector<1x1xf32> -> vector<1x512xf32>
    %c5 = arith.constant 5 : index
    %c0_28 = arith.constant 0 : index
    %c0_29 = arith.constant 0 : index
    %62 = vector.load %arg5[%c5, %c0_28, %c0_29] : memref<9x1x512xf32, #tpu.memory_space<vmem>>, vector<1x1x512xf32>
    %63 = vector.shape_cast %62 : vector<1x1x512xf32> to vector<1x512xf32>
    %64 = arith.mulf %61, %63 : vector<1x512xf32>
    %c5_30 = arith.constant 5 : index
    %c0_31 = arith.constant 0 : index
    %c0_32 = arith.constant 0 : index
    %65 = vector.load %arg1[%c5_30, %c0_31, %c0_32] : memref<9x8x1xbf16, #tpu.memory_space<vmem>>, vector<1x8x1xbf16>
    %66 = vector.shape_cast %65 : vector<1x8x1xbf16> to vector<8x1xbf16>
    %67 = arith.extf %66 : vector<8x1xbf16> to vector<8x1xf32>
    %68 = vector.broadcast %67 : vector<8x1xf32> to vector<8x512xf32>
    %69 = vector.broadcast %64 : vector<1x512xf32> to vector<8x512xf32>
    %70 = arith.mulf %68, %69 : vector<8x512xf32>
    %71 = arith.addf %58, %70 : vector<8x512xf32>
    %72 = vector.extract_strided_slice %0 {offsets = [0, 15], sizes = [1, 497], strides = [1, 1]} : vector<1x512xf32> to vector<1x497xf32>
    %cst_33 = arith.constant 0.000000e+00 : f32
    %73 = vector.broadcast %cst_33 : f32 to vector<1x15xf32>
    %74 = tpu.concatenate %72, %73 in 1 : vector<1x497xf32>, vector<1x15xf32> -> vector<1x512xf32>
    %c6 = arith.constant 6 : index
    %c0_34 = arith.constant 0 : index
    %c0_35 = arith.constant 0 : index
    %75 = vector.load %arg5[%c6, %c0_34, %c0_35] : memref<9x1x512xf32, #tpu.memory_space<vmem>>, vector<1x1x512xf32>
    %76 = vector.shape_cast %75 : vector<1x1x512xf32> to vector<1x512xf32>
    %77 = arith.mulf %74, %76 : vector<1x512xf32>
    %c6_36 = arith.constant 6 : index
    %c0_37 = arith.constant 0 : index
    %c0_38 = arith.constant 0 : index
    %78 = vector.load %arg1[%c6_36, %c0_37, %c0_38] : memref<9x8x1xbf16, #tpu.memory_space<vmem>>, vector<1x8x1xbf16>
    %79 = vector.shape_cast %78 : vector<1x8x1xbf16> to vector<8x1xbf16>
    %80 = arith.extf %79 : vector<8x1xbf16> to vector<8x1xf32>
    %81 = vector.broadcast %80 : vector<8x1xf32> to vector<8x512xf32>
    %82 = vector.broadcast %77 : vector<1x512xf32> to vector<8x512xf32>
    %83 = arith.mulf %81, %82 : vector<8x512xf32>
    %84 = arith.addf %71, %83 : vector<8x512xf32>
    %85 = vector.extract_strided_slice %0 {offsets = [0, 16], sizes = [1, 496], strides = [1, 1]} : vector<1x512xf32> to vector<1x496xf32>
    %cst_39 = arith.constant 0.000000e+00 : f32
    %86 = vector.broadcast %cst_39 : f32 to vector<1x16xf32>
    %87 = tpu.concatenate %85, %86 in 1 : vector<1x496xf32>, vector<1x16xf32> -> vector<1x512xf32>
    %c7 = arith.constant 7 : index
    %c0_40 = arith.constant 0 : index
    %c0_41 = arith.constant 0 : index
    %88 = vector.load %arg5[%c7, %c0_40, %c0_41] : memref<9x1x512xf32, #tpu.memory_space<vmem>>, vector<1x1x512xf32>
    %89 = vector.shape_cast %88 : vector<1x1x512xf32> to vector<1x512xf32>
    %90 = arith.mulf %87, %89 : vector<1x512xf32>
    %c7_42 = arith.constant 7 : index
    %c0_43 = arith.constant 0 : index
    %c0_44 = arith.constant 0 : index
    %91 = vector.load %arg1[%c7_42, %c0_43, %c0_44] : memref<9x8x1xbf16, #tpu.memory_space<vmem>>, vector<1x8x1xbf16>
    %92 = vector.shape_cast %91 : vector<1x8x1xbf16> to vector<8x1xbf16>
    %93 = arith.extf %92 : vector<8x1xbf16> to vector<8x1xf32>
    %94 = vector.broadcast %93 : vector<8x1xf32> to vector<8x512xf32>
    %95 = vector.broadcast %90 : vector<1x512xf32> to vector<8x512xf32>
    %96 = arith.mulf %94, %95 : vector<8x512xf32>
    %97 = arith.addf %84, %96 : vector<8x512xf32>
    %98 = vector.extract_strided_slice %0 {offsets = [0, 17], sizes = [1, 495], strides = [1, 1]} : vector<1x512xf32> to vector<1x495xf32>
    %cst_45 = arith.constant 0.000000e+00 : f32
    %99 = vector.broadcast %cst_45 : f32 to vector<1x17xf32>
    %100 = tpu.concatenate %98, %99 in 1 : vector<1x495xf32>, vector<1x17xf32> -> vector<1x512xf32>
    %c8 = arith.constant 8 : index
    %c0_46 = arith.constant 0 : index
    %c0_47 = arith.constant 0 : index
    %101 = vector.load %arg5[%c8, %c0_46, %c0_47] : memref<9x1x512xf32, #tpu.memory_space<vmem>>, vector<1x1x512xf32>
    %102 = vector.shape_cast %101 : vector<1x1x512xf32> to vector<1x512xf32>
    %103 = arith.mulf %100, %102 : vector<1x512xf32>
    %c8_48 = arith.constant 8 : index
    %c0_49 = arith.constant 0 : index
    %c0_50 = arith.constant 0 : index
    %104 = vector.load %arg1[%c8_48, %c0_49, %c0_50] : memref<9x8x1xbf16, #tpu.memory_space<vmem>>, vector<1x8x1xbf16>
    %105 = vector.shape_cast %104 : vector<1x8x1xbf16> to vector<8x1xbf16>
    %106 = arith.extf %105 : vector<8x1xbf16> to vector<8x1xf32>
    %107 = vector.broadcast %106 : vector<8x1xf32> to vector<8x512xf32>
    %108 = vector.broadcast %103 : vector<1x512xf32> to vector<8x512xf32>
    %109 = arith.mulf %107, %108 : vector<8x512xf32>
    %110 = arith.addf %97, %109 : vector<8x512xf32>
    %c0_51 = arith.constant 0 : index
    %c0_52 = arith.constant 0 : index
    %111 = vector.load %arg2[%c0_51, %c0_52] : memref<8x1xf32, #tpu.memory_space<vmem>>, vector<8x1xf32>
    %112 = vector.broadcast %111 : vector<8x1xf32> to vector<8x512xf32>
    %113 = arith.addf %110, %112 : vector<8x512xf32>
    %cst_53 = arith.constant 0.000000e+00 : f32
    %114 = vector.broadcast %cst_53 : f32 to vector<8x512xf32>
    %115 = arith.maximumf %113, %114 : vector<8x512xf32>
    %cst_54 = arith.constant 0.000000e+00 : f32
    %116 = vector.broadcast %cst_54 : f32 to vector<8x17xf32>
    %117 = vector.extract_strided_slice %115 {offsets = [0, 0], sizes = [8, 495], strides = [1, 1]} : vector<8x512xf32> to vector<8x495xf32>
    %118 = tpu.concatenate %116, %117 in 1 : vector<8x17xf32>, vector<8x495xf32> -> vector<8x512xf32>
    %c0_55 = arith.constant 0 : index
    %c0_56 = arith.constant 0 : index
    %c0_57 = arith.constant 0 : index
    %119 = vector.load %arg5[%c0_55, %c0_56, %c0_57] : memref<9x1x512xf32, #tpu.memory_space<vmem>>, vector<1x1x512xf32>
    %120 = vector.shape_cast %119 : vector<1x1x512xf32> to vector<1x512xf32>
    %121 = vector.broadcast %120 : vector<1x512xf32> to vector<8x512xf32>
    %122 = arith.mulf %118, %121 : vector<8x512xf32>
    %c0_58 = arith.constant 0 : index
    %c0_59 = arith.constant 0 : index
    %c0_60 = arith.constant 0 : index
    %123 = vector.load %arg3[%c0_58, %c0_59, %c0_60] : memref<9x8x8xbf16, #tpu.memory_space<vmem>>, vector<1x8x8xbf16>
    %124 = vector.shape_cast %123 : vector<1x8x8xbf16> to vector<8x8xbf16>
    %125 = arith.truncf %122 : vector<8x512xf32> to vector<8x512xbf16>
    %cst_61 = arith.constant dense<0.000000e+00> : vector<8x512xf32>
    %126 = tpu.matmul %124, %125, %cst_61 {dimension_numbers = #tpu.dot_dimension_numbers<[1], [0], [0], [1], [0, 0, 1, 1], [], []>} : vector<8x8xbf16>, vector<8x512xbf16>, vector<8x512xf32> -> vector<8x512xf32>
    %cst_62 = arith.constant 0.000000e+00 : f32
    %127 = vector.broadcast %cst_62 : f32 to vector<8x16xf32>
    %128 = vector.extract_strided_slice %115 {offsets = [0, 0], sizes = [8, 496], strides = [1, 1]} : vector<8x512xf32> to vector<8x496xf32>
    %129 = tpu.concatenate %127, %128 in 1 : vector<8x16xf32>, vector<8x496xf32> -> vector<8x512xf32>
    %c1_63 = arith.constant 1 : index
    %c0_64 = arith.constant 0 : index
    %c0_65 = arith.constant 0 : index
    %130 = vector.load %arg5[%c1_63, %c0_64, %c0_65] : memref<9x1x512xf32, #tpu.memory_space<vmem>>, vector<1x1x512xf32>
    %131 = vector.shape_cast %130 : vector<1x1x512xf32> to vector<1x512xf32>
    %132 = vector.broadcast %131 : vector<1x512xf32> to vector<8x512xf32>
    %133 = arith.mulf %129, %132 : vector<8x512xf32>
    %c1_66 = arith.constant 1 : index
    %c0_67 = arith.constant 0 : index
    %c0_68 = arith.constant 0 : index
    %134 = vector.load %arg3[%c1_66, %c0_67, %c0_68] : memref<9x8x8xbf16, #tpu.memory_space<vmem>>, vector<1x8x8xbf16>
    %135 = vector.shape_cast %134 : vector<1x8x8xbf16> to vector<8x8xbf16>
    %136 = arith.truncf %133 : vector<8x512xf32> to vector<8x512xbf16>
    %cst_69 = arith.constant dense<0.000000e+00> : vector<8x512xf32>
    %137 = tpu.matmul %135, %136, %cst_69 {dimension_numbers = #tpu.dot_dimension_numbers<[1], [0], [0], [1], [0, 0, 1, 1], [], []>} : vector<8x8xbf16>, vector<8x512xbf16>, vector<8x512xf32> -> vector<8x512xf32>
    %138 = arith.addf %126, %137 : vector<8x512xf32>
    %cst_70 = arith.constant 0.000000e+00 : f32
    %139 = vector.broadcast %cst_70 : f32 to vector<8x15xf32>
    %140 = vector.extract_strided_slice %115 {offsets = [0, 0], sizes = [8, 497], strides = [1, 1]} : vector<8x512xf32> to vector<8x497xf32>
    %141 = tpu.concatenate %139, %140 in 1 : vector<8x15xf32>, vector<8x497xf32> -> vector<8x512xf32>
    %c2_71 = arith.constant 2 : index
    %c0_72 = arith.constant 0 : index
    %c0_73 = arith.constant 0 : index
    %142 = vector.load %arg5[%c2_71, %c0_72, %c0_73] : memref<9x1x512xf32, #tpu.memory_space<vmem>>, vector<1x1x512xf32>
    %143 = vector.shape_cast %142 : vector<1x1x512xf32> to vector<1x512xf32>
    %144 = vector.broadcast %143 : vector<1x512xf32> to vector<8x512xf32>
    %145 = arith.mulf %141, %144 : vector<8x512xf32>
    %c2_74 = arith.constant 2 : index
    %c0_75 = arith.constant 0 : index
    %c0_76 = arith.constant 0 : index
    %146 = vector.load %arg3[%c2_74, %c0_75, %c0_76] : memref<9x8x8xbf16, #tpu.memory_space<vmem>>, vector<1x8x8xbf16>
    %147 = vector.shape_cast %146 : vector<1x8x8xbf16> to vector<8x8xbf16>
    %148 = arith.truncf %145 : vector<8x512xf32> to vector<8x512xbf16>
    %cst_77 = arith.constant dense<0.000000e+00> : vector<8x512xf32>
    %149 = tpu.matmul %147, %148, %cst_77 {dimension_numbers = #tpu.dot_dimension_numbers<[1], [0], [0], [1], [0, 0, 1, 1], [], []>} : vector<8x8xbf16>, vector<8x512xbf16>, vector<8x512xf32> -> vector<8x512xf32>
    %150 = arith.addf %138, %149 : vector<8x512xf32>
    %cst_78 = arith.constant 0.000000e+00 : f32
    %151 = vector.broadcast %cst_78 : f32 to vector<8x1xf32>
    %152 = vector.extract_strided_slice %115 {offsets = [0, 0], sizes = [8, 511], strides = [1, 1]} : vector<8x512xf32> to vector<8x511xf32>
    %153 = tpu.concatenate %151, %152 in 1 : vector<8x1xf32>, vector<8x511xf32> -> vector<8x512xf32>
    %c3_79 = arith.constant 3 : index
    %c0_80 = arith.constant 0 : index
    %c0_81 = arith.constant 0 : index
    %154 = vector.load %arg5[%c3_79, %c0_80, %c0_81] : memref<9x1x512xf32, #tpu.memory_space<vmem>>, vector<1x1x512xf32>
    %155 = vector.shape_cast %154 : vector<1x1x512xf32> to vector<1x512xf32>
    %156 = vector.broadcast %155 : vector<1x512xf32> to vector<8x512xf32>
    %157 = arith.mulf %153, %156 : vector<8x512xf32>
    %c3_82 = arith.constant 3 : index
    %c0_83 = arith.constant 0 : index
    %c0_84 = arith.constant 0 : index
    %158 = vector.load %arg3[%c3_82, %c0_83, %c0_84] : memref<9x8x8xbf16, #tpu.memory_space<vmem>>, vector<1x8x8xbf16>
    %159 = vector.shape_cast %158 : vector<1x8x8xbf16> to vector<8x8xbf16>
    %160 = arith.truncf %157 : vector<8x512xf32> to vector<8x512xbf16>
    %cst_85 = arith.constant dense<0.000000e+00> : vector<8x512xf32>
    %161 = tpu.matmul %159, %160, %cst_85 {dimension_numbers = #tpu.dot_dimension_numbers<[1], [0], [0], [1], [0, 0, 1, 1], [], []>} : vector<8x8xbf16>, vector<8x512xbf16>, vector<8x512xf32> -> vector<8x512xf32>
    %162 = arith.addf %150, %161 : vector<8x512xf32>
    %c4_86 = arith.constant 4 : index
    %c0_87 = arith.constant 0 : index
    %c0_88 = arith.constant 0 : index
    %163 = vector.load %arg3[%c4_86, %c0_87, %c0_88] : memref<9x8x8xbf16, #tpu.memory_space<vmem>>, vector<1x8x8xbf16>
    %164 = vector.shape_cast %163 : vector<1x8x8xbf16> to vector<8x8xbf16>
    %165 = arith.truncf %115 : vector<8x512xf32> to vector<8x512xbf16>
    %cst_89 = arith.constant dense<0.000000e+00> : vector<8x512xf32>
    %166 = tpu.matmul %164, %165, %cst_89 {dimension_numbers = #tpu.dot_dimension_numbers<[1], [0], [0], [1], [0, 0, 1, 1], [], []>} : vector<8x8xbf16>, vector<8x512xbf16>, vector<8x512xf32> -> vector<8x512xf32>
    %167 = arith.addf %162, %166 : vector<8x512xf32>
    %168 = vector.extract_strided_slice %115 {offsets = [0, 1], sizes = [8, 511], strides = [1, 1]} : vector<8x512xf32> to vector<8x511xf32>
    %cst_90 = arith.constant 0.000000e+00 : f32
    %169 = vector.broadcast %cst_90 : f32 to vector<8x1xf32>
    %170 = tpu.concatenate %168, %169 in 1 : vector<8x511xf32>, vector<8x1xf32> -> vector<8x512xf32>
    %c5_91 = arith.constant 5 : index
    %c0_92 = arith.constant 0 : index
    %c0_93 = arith.constant 0 : index
    %171 = vector.load %arg5[%c5_91, %c0_92, %c0_93] : memref<9x1x512xf32, #tpu.memory_space<vmem>>, vector<1x1x512xf32>
    %172 = vector.shape_cast %171 : vector<1x1x512xf32> to vector<1x512xf32>
    %173 = vector.broadcast %172 : vector<1x512xf32> to vector<8x512xf32>
    %174 = arith.mulf %170, %173 : vector<8x512xf32>
    %c5_94 = arith.constant 5 : index
    %c0_95 = arith.constant 0 : index
    %c0_96 = arith.constant 0 : index
    %175 = vector.load %arg3[%c5_94, %c0_95, %c0_96] : memref<9x8x8xbf16, #tpu.memory_space<vmem>>, vector<1x8x8xbf16>
    %176 = vector.shape_cast %175 : vector<1x8x8xbf16> to vector<8x8xbf16>
    %177 = arith.truncf %174 : vector<8x512xf32> to vector<8x512xbf16>
    %cst_97 = arith.constant dense<0.000000e+00> : vector<8x512xf32>
    %178 = tpu.matmul %176, %177, %cst_97 {dimension_numbers = #tpu.dot_dimension_numbers<[1], [0], [0], [1], [0, 0, 1, 1], [], []>} : vector<8x8xbf16>, vector<8x512xbf16>, vector<8x512xf32> -> vector<8x512xf32>
    %179 = arith.addf %167, %178 : vector<8x512xf32>
    %180 = vector.extract_strided_slice %115 {offsets = [0, 15], sizes = [8, 497], strides = [1, 1]} : vector<8x512xf32> to vector<8x497xf32>
    %cst_98 = arith.constant 0.000000e+00 : f32
    %181 = vector.broadcast %cst_98 : f32 to vector<8x15xf32>
    %182 = tpu.concatenate %180, %181 in 1 : vector<8x497xf32>, vector<8x15xf32> -> vector<8x512xf32>
    %c6_99 = arith.constant 6 : index
    %c0_100 = arith.constant 0 : index
    %c0_101 = arith.constant 0 : index
    %183 = vector.load %arg5[%c6_99, %c0_100, %c0_101] : memref<9x1x512xf32, #tpu.memory_space<vmem>>, vector<1x1x512xf32>
    %184 = vector.shape_cast %183 : vector<1x1x512xf32> to vector<1x512xf32>
    %185 = vector.broadcast %184 : vector<1x512xf32> to vector<8x512xf32>
    %186 = arith.mulf %182, %185 : vector<8x512xf32>
    %c6_102 = arith.constant 6 : index
    %c0_103 = arith.constant 0 : index
    %c0_104 = arith.constant 0 : index
    %187 = vector.load %arg3[%c6_102, %c0_103, %c0_104] : memref<9x8x8xbf16, #tpu.memory_space<vmem>>, vector<1x8x8xbf16>
    %188 = vector.shape_cast %187 : vector<1x8x8xbf16> to vector<8x8xbf16>
    %189 = arith.truncf %186 : vector<8x512xf32> to vector<8x512xbf16>
    %cst_105 = arith.constant dense<0.000000e+00> : vector<8x512xf32>
    %190 = tpu.matmul %188, %189, %cst_105 {dimension_numbers = #tpu.dot_dimension_numbers<[1], [0], [0], [1], [0, 0, 1, 1], [], []>} : vector<8x8xbf16>, vector<8x512xbf16>, vector<8x512xf32> -> vector<8x512xf32>
    %191 = arith.addf %179, %190 : vector<8x512xf32>
    %192 = vector.extract_strided_slice %115 {offsets = [0, 16], sizes = [8, 496], strides = [1, 1]} : vector<8x512xf32> to vector<8x496xf32>
    %cst_106 = arith.constant 0.000000e+00 : f32
    %193 = vector.broadcast %cst_106 : f32 to vector<8x16xf32>
    %194 = tpu.concatenate %192, %193 in 1 : vector<8x496xf32>, vector<8x16xf32> -> vector<8x512xf32>
    %c7_107 = arith.constant 7 : index
    %c0_108 = arith.constant 0 : index
    %c0_109 = arith.constant 0 : index
    %195 = vector.load %arg5[%c7_107, %c0_108, %c0_109] : memref<9x1x512xf32, #tpu.memory_space<vmem>>, vector<1x1x512xf32>
    %196 = vector.shape_cast %195 : vector<1x1x512xf32> to vector<1x512xf32>
    %197 = vector.broadcast %196 : vector<1x512xf32> to vector<8x512xf32>
    %198 = arith.mulf %194, %197 : vector<8x512xf32>
    %c7_110 = arith.constant 7 : index
    %c0_111 = arith.constant 0 : index
    %c0_112 = arith.constant 0 : index
    %199 = vector.load %arg3[%c7_110, %c0_111, %c0_112] : memref<9x8x8xbf16, #tpu.memory_space<vmem>>, vector<1x8x8xbf16>
    %200 = vector.shape_cast %199 : vector<1x8x8xbf16> to vector<8x8xbf16>
    %201 = arith.truncf %198 : vector<8x512xf32> to vector<8x512xbf16>
    %cst_113 = arith.constant dense<0.000000e+00> : vector<8x512xf32>
    %202 = tpu.matmul %200, %201, %cst_113 {dimension_numbers = #tpu.dot_dimension_numbers<[1], [0], [0], [1], [0, 0, 1, 1], [], []>} : vector<8x8xbf16>, vector<8x512xbf16>, vector<8x512xf32> -> vector<8x512xf32>
    %203 = arith.addf %191, %202 : vector<8x512xf32>
    %204 = vector.extract_strided_slice %115 {offsets = [0, 17], sizes = [8, 495], strides = [1, 1]} : vector<8x512xf32> to vector<8x495xf32>
    %cst_114 = arith.constant 0.000000e+00 : f32
    %205 = vector.broadcast %cst_114 : f32 to vector<8x17xf32>
    %206 = tpu.concatenate %204, %205 in 1 : vector<8x495xf32>, vector<8x17xf32> -> vector<8x512xf32>
    %c8_115 = arith.constant 8 : index
    %c0_116 = arith.constant 0 : index
    %c0_117 = arith.constant 0 : index
    %207 = vector.load %arg5[%c8_115, %c0_116, %c0_117] : memref<9x1x512xf32, #tpu.memory_space<vmem>>, vector<1x1x512xf32>
    %208 = vector.shape_cast %207 : vector<1x1x512xf32> to vector<1x512xf32>
    %209 = vector.broadcast %208 : vector<1x512xf32> to vector<8x512xf32>
    %210 = arith.mulf %206, %209 : vector<8x512xf32>
    %c8_118 = arith.constant 8 : index
    %c0_119 = arith.constant 0 : index
    %c0_120 = arith.constant 0 : index
    %211 = vector.load %arg3[%c8_118, %c0_119, %c0_120] : memref<9x8x8xbf16, #tpu.memory_space<vmem>>, vector<1x8x8xbf16>
    %212 = vector.shape_cast %211 : vector<1x8x8xbf16> to vector<8x8xbf16>
    %213 = arith.truncf %210 : vector<8x512xf32> to vector<8x512xbf16>
    %cst_121 = arith.constant dense<0.000000e+00> : vector<8x512xf32>
    %214 = tpu.matmul %212, %213, %cst_121 {dimension_numbers = #tpu.dot_dimension_numbers<[1], [0], [0], [1], [0, 0, 1, 1], [], []>} : vector<8x8xbf16>, vector<8x512xbf16>, vector<8x512xf32> -> vector<8x512xf32>
    %215 = arith.addf %203, %214 : vector<8x512xf32>
    %c0_122 = arith.constant 0 : index
    %c0_123 = arith.constant 0 : index
    %216 = vector.load %arg4[%c0_122, %c0_123] : memref<8x1xf32, #tpu.memory_space<vmem>>, vector<8x1xf32>
    %217 = vector.broadcast %216 : vector<8x1xf32> to vector<8x512xf32>
    %218 = arith.addf %215, %217 : vector<8x512xf32>
    %cst_124 = arith.constant 0.000000e+00 : f32
    %219 = vector.broadcast %cst_124 : f32 to vector<8x512xf32>
    %220 = arith.maximumf %218, %219 : vector<8x512xf32>
    %c0_125 = arith.constant 0 : index
    %c0_126 = arith.constant 0 : index
    %221 = vector.load %arg7[%c0_125, %c0_126] : memref<8x512xf32, #tpu.memory_space<vmem>>, vector<8x512xf32>
    tpu.vector_store %arg7[%c0_125, %c0_126], %220 {strides = array<i32>} : memref<8x512xf32, #tpu.memory_space<vmem>>, vector<8x512xf32>,
    %222 = vector.extract_strided_slice %220 {offsets = [0, 1], sizes = [8, 511], strides = [1, 1]} : vector<8x512xf32> to vector<8x511xf32>
    %cst_127 = arith.constant 0.000000e+00 : f32
    %223 = vector.broadcast %cst_127 : f32 to vector<8x1xf32>
    %224 = tpu.concatenate %222, %223 in 1 : vector<8x511xf32>, vector<8x1xf32> -> vector<8x512xf32>
    %225 = arith.maximumf %220, %224 : vector<8x512xf32>
    %226 = vector.extract_strided_slice %220 {offsets = [0, 16], sizes = [8, 496], strides = [1, 1]} : vector<8x512xf32> to vector<8x496xf32>
    %cst_128 = arith.constant 0.000000e+00 : f32
    %227 = vector.broadcast %cst_128 : f32 to vector<8x16xf32>
    %228 = tpu.concatenate %226, %227 in 1 : vector<8x496xf32>, vector<8x16xf32> -> vector<8x512xf32>
    %229 = vector.extract_strided_slice %220 {offsets = [0, 17], sizes = [8, 495], strides = [1, 1]} : vector<8x512xf32> to vector<8x495xf32>
    %cst_129 = arith.constant 0.000000e+00 : f32
    %230 = vector.broadcast %cst_129 : f32 to vector<8x17xf32>
    %231 = tpu.concatenate %229, %230 in 1 : vector<8x495xf32>, vector<8x17xf32> -> vector<8x512xf32>
    %232 = arith.maximumf %228, %231 : vector<8x512xf32>
    %233 = arith.maximumf %225, %232 : vector<8x512xf32>
    %c0_130 = arith.constant 0 : index
    %c0_131 = arith.constant 0 : index
    %234 = vector.load %arg6[%c0_130, %c0_131] : memref<512x128xf32, #tpu.memory_space<vmem>>, vector<512x128xf32>
    %cst_132 = arith.constant dense<0.000000e+00> : vector<8x128xf32>
    %235 = tpu.matmul %233, %234, %cst_132 {dimension_numbers = #tpu.dot_dimension_numbers<[1], [0], [0], [1], [0, 0, 1, 1], [], []>} : vector<8x512xf32>, vector<512x128xf32>, vector<8x128xf32> -> vector<8x128xf32>
    %c0_133 = arith.constant 0 : index
    %c0_134 = arith.constant 0 : index
    %236 = vector.load %arg8[%c0_133, %c0_134] : memref<8x128xf32, #tpu.memory_space<vmem>>, vector<8x128xf32>
    tpu.vector_store %arg8[%c0_133, %c0_134], %235 {strides = array<i32>} : memref<8x128xf32, #tpu.memory_space<vmem>>, vector<8x128xf32>,
    return
  }
}

module attributes {stable_mosaic.version = 11 : i64} {
  func.func @_encoder_kernel(%arg0: memref<8x128xf32, #tpu.memory_space<vmem>>, %arg1: memref<9x16x8xbf16, #tpu.memory_space<vmem>>, %arg2: memref<16x1xf32, #tpu.memory_space<vmem>>, %arg3: memref<9x16x16xbf16, #tpu.memory_space<vmem>>, %arg4: memref<16x1xf32, #tpu.memory_space<vmem>>, %arg5: memref<9x1x128xf32, #tpu.memory_space<vmem>>, %arg6: memref<128x32xf32, #tpu.memory_space<vmem>>, %arg7: memref<16x128xf32, #tpu.memory_space<vmem>>, %arg8: memref<16x32xf32, #tpu.memory_space<vmem>>) attributes {dimension_semantics = [], scalar_prefetch = 0 : i64, scratch_operands = 0 : i64, tpu.core_type = #tpu.core_type<tc>} {
    %c0 = arith.constant 0 : index
    %c0_0 = arith.constant 0 : index
    %0 = vector.load %arg0[%c0, %c0_0] : memref<8x128xf32, #tpu.memory_space<vmem>>, vector<8x128xf32>
    %cst = arith.constant 0.000000e+00 : f32
    %1 = vector.broadcast %cst : f32 to vector<8x9xf32>
    %2 = vector.extract_strided_slice %0 {offsets = [0, 0], sizes = [8, 119], strides = [1, 1]} : vector<8x128xf32> to vector<8x119xf32>
    %3 = tpu.concatenate %1, %2 in 1 : vector<8x9xf32>, vector<8x119xf32> -> vector<8x128xf32>
    %c0_1 = arith.constant 0 : index
    %c0_2 = arith.constant 0 : index
    %c0_3 = arith.constant 0 : index
    %4 = vector.load %arg5[%c0_1, %c0_2, %c0_3] : memref<9x1x128xf32, #tpu.memory_space<vmem>>, vector<1x1x128xf32>
    %5 = vector.shape_cast %4 : vector<1x1x128xf32> to vector<1x128xf32>
    %6 = vector.broadcast %5 : vector<1x128xf32> to vector<8x128xf32>
    %7 = arith.mulf %3, %6 : vector<8x128xf32>
    %c0_4 = arith.constant 0 : index
    %c0_5 = arith.constant 0 : index
    %c0_6 = arith.constant 0 : index
    %8 = vector.load %arg1[%c0_4, %c0_5, %c0_6] : memref<9x16x8xbf16, #tpu.memory_space<vmem>>, vector<1x16x8xbf16>
    %9 = vector.shape_cast %8 : vector<1x16x8xbf16> to vector<16x8xbf16>
    %10 = arith.truncf %7 : vector<8x128xf32> to vector<8x128xbf16>
    %cst_7 = arith.constant dense<0.000000e+00> : vector<16x128xf32>
    %11 = tpu.matmul %9, %10, %cst_7 {dimension_numbers = #tpu.dot_dimension_numbers<[1], [0], [0], [1], [0, 0, 1, 1], [], []>} : vector<16x8xbf16>, vector<8x128xbf16>, vector<16x128xf32> -> vector<16x128xf32>
    %cst_8 = arith.constant 0.000000e+00 : f32
    %12 = vector.broadcast %cst_8 : f32 to vector<8x8xf32>
    %13 = vector.extract_strided_slice %0 {offsets = [0, 0], sizes = [8, 120], strides = [1, 1]} : vector<8x128xf32> to vector<8x120xf32>
    %14 = tpu.concatenate %12, %13 in 1 : vector<8x8xf32>, vector<8x120xf32> -> vector<8x128xf32>
    %c1 = arith.constant 1 : index
    %c0_9 = arith.constant 0 : index
    %c0_10 = arith.constant 0 : index
    %15 = vector.load %arg5[%c1, %c0_9, %c0_10] : memref<9x1x128xf32, #tpu.memory_space<vmem>>, vector<1x1x128xf32>
    %16 = vector.shape_cast %15 : vector<1x1x128xf32> to vector<1x128xf32>
    %17 = vector.broadcast %16 : vector<1x128xf32> to vector<8x128xf32>
    %18 = arith.mulf %14, %17 : vector<8x128xf32>
    %c1_11 = arith.constant 1 : index
    %c0_12 = arith.constant 0 : index
    %c0_13 = arith.constant 0 : index
    %19 = vector.load %arg1[%c1_11, %c0_12, %c0_13] : memref<9x16x8xbf16, #tpu.memory_space<vmem>>, vector<1x16x8xbf16>
    %20 = vector.shape_cast %19 : vector<1x16x8xbf16> to vector<16x8xbf16>
    %21 = arith.truncf %18 : vector<8x128xf32> to vector<8x128xbf16>
    %cst_14 = arith.constant dense<0.000000e+00> : vector<16x128xf32>
    %22 = tpu.matmul %20, %21, %cst_14 {dimension_numbers = #tpu.dot_dimension_numbers<[1], [0], [0], [1], [0, 0, 1, 1], [], []>} : vector<16x8xbf16>, vector<8x128xbf16>, vector<16x128xf32> -> vector<16x128xf32>
    %23 = arith.addf %11, %22 : vector<16x128xf32>
    %cst_15 = arith.constant 0.000000e+00 : f32
    %24 = vector.broadcast %cst_15 : f32 to vector<8x7xf32>
    %25 = vector.extract_strided_slice %0 {offsets = [0, 0], sizes = [8, 121], strides = [1, 1]} : vector<8x128xf32> to vector<8x121xf32>
    %26 = tpu.concatenate %24, %25 in 1 : vector<8x7xf32>, vector<8x121xf32> -> vector<8x128xf32>
    %c2 = arith.constant 2 : index
    %c0_16 = arith.constant 0 : index
    %c0_17 = arith.constant 0 : index
    %27 = vector.load %arg5[%c2, %c0_16, %c0_17] : memref<9x1x128xf32, #tpu.memory_space<vmem>>, vector<1x1x128xf32>
    %28 = vector.shape_cast %27 : vector<1x1x128xf32> to vector<1x128xf32>
    %29 = vector.broadcast %28 : vector<1x128xf32> to vector<8x128xf32>
    %30 = arith.mulf %26, %29 : vector<8x128xf32>
    %c2_18 = arith.constant 2 : index
    %c0_19 = arith.constant 0 : index
    %c0_20 = arith.constant 0 : index
    %31 = vector.load %arg1[%c2_18, %c0_19, %c0_20] : memref<9x16x8xbf16, #tpu.memory_space<vmem>>, vector<1x16x8xbf16>
    %32 = vector.shape_cast %31 : vector<1x16x8xbf16> to vector<16x8xbf16>
    %33 = arith.truncf %30 : vector<8x128xf32> to vector<8x128xbf16>
    %cst_21 = arith.constant dense<0.000000e+00> : vector<16x128xf32>
    %34 = tpu.matmul %32, %33, %cst_21 {dimension_numbers = #tpu.dot_dimension_numbers<[1], [0], [0], [1], [0, 0, 1, 1], [], []>} : vector<16x8xbf16>, vector<8x128xbf16>, vector<16x128xf32> -> vector<16x128xf32>
    %35 = arith.addf %23, %34 : vector<16x128xf32>
    %cst_22 = arith.constant 0.000000e+00 : f32
    %36 = vector.broadcast %cst_22 : f32 to vector<8x1xf32>
    %37 = vector.extract_strided_slice %0 {offsets = [0, 0], sizes = [8, 127], strides = [1, 1]} : vector<8x128xf32> to vector<8x127xf32>
    %38 = tpu.concatenate %36, %37 in 1 : vector<8x1xf32>, vector<8x127xf32> -> vector<8x128xf32>
    %c3 = arith.constant 3 : index
    %c0_23 = arith.constant 0 : index
    %c0_24 = arith.constant 0 : index
    %39 = vector.load %arg5[%c3, %c0_23, %c0_24] : memref<9x1x128xf32, #tpu.memory_space<vmem>>, vector<1x1x128xf32>
    %40 = vector.shape_cast %39 : vector<1x1x128xf32> to vector<1x128xf32>
    %41 = vector.broadcast %40 : vector<1x128xf32> to vector<8x128xf32>
    %42 = arith.mulf %38, %41 : vector<8x128xf32>
    %c3_25 = arith.constant 3 : index
    %c0_26 = arith.constant 0 : index
    %c0_27 = arith.constant 0 : index
    %43 = vector.load %arg1[%c3_25, %c0_26, %c0_27] : memref<9x16x8xbf16, #tpu.memory_space<vmem>>, vector<1x16x8xbf16>
    %44 = vector.shape_cast %43 : vector<1x16x8xbf16> to vector<16x8xbf16>
    %45 = arith.truncf %42 : vector<8x128xf32> to vector<8x128xbf16>
    %cst_28 = arith.constant dense<0.000000e+00> : vector<16x128xf32>
    %46 = tpu.matmul %44, %45, %cst_28 {dimension_numbers = #tpu.dot_dimension_numbers<[1], [0], [0], [1], [0, 0, 1, 1], [], []>} : vector<16x8xbf16>, vector<8x128xbf16>, vector<16x128xf32> -> vector<16x128xf32>
    %47 = arith.addf %35, %46 : vector<16x128xf32>
    %c4 = arith.constant 4 : index
    %c0_29 = arith.constant 0 : index
    %c0_30 = arith.constant 0 : index
    %48 = vector.load %arg1[%c4, %c0_29, %c0_30] : memref<9x16x8xbf16, #tpu.memory_space<vmem>>, vector<1x16x8xbf16>
    %49 = vector.shape_cast %48 : vector<1x16x8xbf16> to vector<16x8xbf16>
    %50 = arith.truncf %0 : vector<8x128xf32> to vector<8x128xbf16>
    %cst_31 = arith.constant dense<0.000000e+00> : vector<16x128xf32>
    %51 = tpu.matmul %49, %50, %cst_31 {dimension_numbers = #tpu.dot_dimension_numbers<[1], [0], [0], [1], [0, 0, 1, 1], [], []>} : vector<16x8xbf16>, vector<8x128xbf16>, vector<16x128xf32> -> vector<16x128xf32>
    %52 = arith.addf %47, %51 : vector<16x128xf32>
    %53 = vector.extract_strided_slice %0 {offsets = [0, 1], sizes = [8, 127], strides = [1, 1]} : vector<8x128xf32> to vector<8x127xf32>
    %cst_32 = arith.constant 0.000000e+00 : f32
    %54 = vector.broadcast %cst_32 : f32 to vector<8x1xf32>
    %55 = tpu.concatenate %53, %54 in 1 : vector<8x127xf32>, vector<8x1xf32> -> vector<8x128xf32>
    %c5 = arith.constant 5 : index
    %c0_33 = arith.constant 0 : index
    %c0_34 = arith.constant 0 : index
    %56 = vector.load %arg5[%c5, %c0_33, %c0_34] : memref<9x1x128xf32, #tpu.memory_space<vmem>>, vector<1x1x128xf32>
    %57 = vector.shape_cast %56 : vector<1x1x128xf32> to vector<1x128xf32>
    %58 = vector.broadcast %57 : vector<1x128xf32> to vector<8x128xf32>
    %59 = arith.mulf %55, %58 : vector<8x128xf32>
    %c5_35 = arith.constant 5 : index
    %c0_36 = arith.constant 0 : index
    %c0_37 = arith.constant 0 : index
    %60 = vector.load %arg1[%c5_35, %c0_36, %c0_37] : memref<9x16x8xbf16, #tpu.memory_space<vmem>>, vector<1x16x8xbf16>
    %61 = vector.shape_cast %60 : vector<1x16x8xbf16> to vector<16x8xbf16>
    %62 = arith.truncf %59 : vector<8x128xf32> to vector<8x128xbf16>
    %cst_38 = arith.constant dense<0.000000e+00> : vector<16x128xf32>
    %63 = tpu.matmul %61, %62, %cst_38 {dimension_numbers = #tpu.dot_dimension_numbers<[1], [0], [0], [1], [0, 0, 1, 1], [], []>} : vector<16x8xbf16>, vector<8x128xbf16>, vector<16x128xf32> -> vector<16x128xf32>
    %64 = arith.addf %52, %63 : vector<16x128xf32>
    %65 = vector.extract_strided_slice %0 {offsets = [0, 7], sizes = [8, 121], strides = [1, 1]} : vector<8x128xf32> to vector<8x121xf32>
    %cst_39 = arith.constant 0.000000e+00 : f32
    %66 = vector.broadcast %cst_39 : f32 to vector<8x7xf32>
    %67 = tpu.concatenate %65, %66 in 1 : vector<8x121xf32>, vector<8x7xf32> -> vector<8x128xf32>
    %c6 = arith.constant 6 : index
    %c0_40 = arith.constant 0 : index
    %c0_41 = arith.constant 0 : index
    %68 = vector.load %arg5[%c6, %c0_40, %c0_41] : memref<9x1x128xf32, #tpu.memory_space<vmem>>, vector<1x1x128xf32>
    %69 = vector.shape_cast %68 : vector<1x1x128xf32> to vector<1x128xf32>
    %70 = vector.broadcast %69 : vector<1x128xf32> to vector<8x128xf32>
    %71 = arith.mulf %67, %70 : vector<8x128xf32>
    %c6_42 = arith.constant 6 : index
    %c0_43 = arith.constant 0 : index
    %c0_44 = arith.constant 0 : index
    %72 = vector.load %arg1[%c6_42, %c0_43, %c0_44] : memref<9x16x8xbf16, #tpu.memory_space<vmem>>, vector<1x16x8xbf16>
    %73 = vector.shape_cast %72 : vector<1x16x8xbf16> to vector<16x8xbf16>
    %74 = arith.truncf %71 : vector<8x128xf32> to vector<8x128xbf16>
    %cst_45 = arith.constant dense<0.000000e+00> : vector<16x128xf32>
    %75 = tpu.matmul %73, %74, %cst_45 {dimension_numbers = #tpu.dot_dimension_numbers<[1], [0], [0], [1], [0, 0, 1, 1], [], []>} : vector<16x8xbf16>, vector<8x128xbf16>, vector<16x128xf32> -> vector<16x128xf32>
    %76 = arith.addf %64, %75 : vector<16x128xf32>
    %77 = vector.extract_strided_slice %0 {offsets = [0, 8], sizes = [8, 120], strides = [1, 1]} : vector<8x128xf32> to vector<8x120xf32>
    %cst_46 = arith.constant 0.000000e+00 : f32
    %78 = vector.broadcast %cst_46 : f32 to vector<8x8xf32>
    %79 = tpu.concatenate %77, %78 in 1 : vector<8x120xf32>, vector<8x8xf32> -> vector<8x128xf32>
    %c7 = arith.constant 7 : index
    %c0_47 = arith.constant 0 : index
    %c0_48 = arith.constant 0 : index
    %80 = vector.load %arg5[%c7, %c0_47, %c0_48] : memref<9x1x128xf32, #tpu.memory_space<vmem>>, vector<1x1x128xf32>
    %81 = vector.shape_cast %80 : vector<1x1x128xf32> to vector<1x128xf32>
    %82 = vector.broadcast %81 : vector<1x128xf32> to vector<8x128xf32>
    %83 = arith.mulf %79, %82 : vector<8x128xf32>
    %c7_49 = arith.constant 7 : index
    %c0_50 = arith.constant 0 : index
    %c0_51 = arith.constant 0 : index
    %84 = vector.load %arg1[%c7_49, %c0_50, %c0_51] : memref<9x16x8xbf16, #tpu.memory_space<vmem>>, vector<1x16x8xbf16>
    %85 = vector.shape_cast %84 : vector<1x16x8xbf16> to vector<16x8xbf16>
    %86 = arith.truncf %83 : vector<8x128xf32> to vector<8x128xbf16>
    %cst_52 = arith.constant dense<0.000000e+00> : vector<16x128xf32>
    %87 = tpu.matmul %85, %86, %cst_52 {dimension_numbers = #tpu.dot_dimension_numbers<[1], [0], [0], [1], [0, 0, 1, 1], [], []>} : vector<16x8xbf16>, vector<8x128xbf16>, vector<16x128xf32> -> vector<16x128xf32>
    %88 = arith.addf %76, %87 : vector<16x128xf32>
    %89 = vector.extract_strided_slice %0 {offsets = [0, 9], sizes = [8, 119], strides = [1, 1]} : vector<8x128xf32> to vector<8x119xf32>
    %cst_53 = arith.constant 0.000000e+00 : f32
    %90 = vector.broadcast %cst_53 : f32 to vector<8x9xf32>
    %91 = tpu.concatenate %89, %90 in 1 : vector<8x119xf32>, vector<8x9xf32> -> vector<8x128xf32>
    %c8 = arith.constant 8 : index
    %c0_54 = arith.constant 0 : index
    %c0_55 = arith.constant 0 : index
    %92 = vector.load %arg5[%c8, %c0_54, %c0_55] : memref<9x1x128xf32, #tpu.memory_space<vmem>>, vector<1x1x128xf32>
    %93 = vector.shape_cast %92 : vector<1x1x128xf32> to vector<1x128xf32>
    %94 = vector.broadcast %93 : vector<1x128xf32> to vector<8x128xf32>
    %95 = arith.mulf %91, %94 : vector<8x128xf32>
    %c8_56 = arith.constant 8 : index
    %c0_57 = arith.constant 0 : index
    %c0_58 = arith.constant 0 : index
    %96 = vector.load %arg1[%c8_56, %c0_57, %c0_58] : memref<9x16x8xbf16, #tpu.memory_space<vmem>>, vector<1x16x8xbf16>
    %97 = vector.shape_cast %96 : vector<1x16x8xbf16> to vector<16x8xbf16>
    %98 = arith.truncf %95 : vector<8x128xf32> to vector<8x128xbf16>
    %cst_59 = arith.constant dense<0.000000e+00> : vector<16x128xf32>
    %99 = tpu.matmul %97, %98, %cst_59 {dimension_numbers = #tpu.dot_dimension_numbers<[1], [0], [0], [1], [0, 0, 1, 1], [], []>} : vector<16x8xbf16>, vector<8x128xbf16>, vector<16x128xf32> -> vector<16x128xf32>
    %100 = arith.addf %88, %99 : vector<16x128xf32>
    %c0_60 = arith.constant 0 : index
    %c0_61 = arith.constant 0 : index
    %101 = vector.load %arg2[%c0_60, %c0_61] : memref<16x1xf32, #tpu.memory_space<vmem>>, vector<16x1xf32>
    %102 = vector.broadcast %101 : vector<16x1xf32> to vector<16x128xf32>
    %103 = arith.addf %100, %102 : vector<16x128xf32>
    %cst_62 = arith.constant 0.000000e+00 : f32
    %104 = vector.broadcast %cst_62 : f32 to vector<16x128xf32>
    %105 = arith.maximumf %103, %104 : vector<16x128xf32>
    %cst_63 = arith.constant 0.000000e+00 : f32
    %106 = vector.broadcast %cst_63 : f32 to vector<16x9xf32>
    %107 = vector.extract_strided_slice %105 {offsets = [0, 0], sizes = [16, 119], strides = [1, 1]} : vector<16x128xf32> to vector<16x119xf32>
    %108 = tpu.concatenate %106, %107 in 1 : vector<16x9xf32>, vector<16x119xf32> -> vector<16x128xf32>
    %c0_64 = arith.constant 0 : index
    %c0_65 = arith.constant 0 : index
    %c0_66 = arith.constant 0 : index
    %109 = vector.load %arg5[%c0_64, %c0_65, %c0_66] : memref<9x1x128xf32, #tpu.memory_space<vmem>>, vector<1x1x128xf32>
    %110 = vector.shape_cast %109 : vector<1x1x128xf32> to vector<1x128xf32>
    %111 = vector.broadcast %110 : vector<1x128xf32> to vector<16x128xf32>
    %112 = arith.mulf %108, %111 : vector<16x128xf32>
    %c0_67 = arith.constant 0 : index
    %c0_68 = arith.constant 0 : index
    %c0_69 = arith.constant 0 : index
    %113 = vector.load %arg3[%c0_67, %c0_68, %c0_69] : memref<9x16x16xbf16, #tpu.memory_space<vmem>>, vector<1x16x16xbf16>
    %114 = vector.shape_cast %113 : vector<1x16x16xbf16> to vector<16x16xbf16>
    %115 = arith.truncf %112 : vector<16x128xf32> to vector<16x128xbf16>
    %cst_70 = arith.constant dense<0.000000e+00> : vector<16x128xf32>
    %116 = tpu.matmul %114, %115, %cst_70 {dimension_numbers = #tpu.dot_dimension_numbers<[1], [0], [0], [1], [0, 0, 1, 1], [], []>} : vector<16x16xbf16>, vector<16x128xbf16>, vector<16x128xf32> -> vector<16x128xf32>
    %cst_71 = arith.constant 0.000000e+00 : f32
    %117 = vector.broadcast %cst_71 : f32 to vector<16x8xf32>
    %118 = vector.extract_strided_slice %105 {offsets = [0, 0], sizes = [16, 120], strides = [1, 1]} : vector<16x128xf32> to vector<16x120xf32>
    %119 = tpu.concatenate %117, %118 in 1 : vector<16x8xf32>, vector<16x120xf32> -> vector<16x128xf32>
    %c1_72 = arith.constant 1 : index
    %c0_73 = arith.constant 0 : index
    %c0_74 = arith.constant 0 : index
    %120 = vector.load %arg5[%c1_72, %c0_73, %c0_74] : memref<9x1x128xf32, #tpu.memory_space<vmem>>, vector<1x1x128xf32>
    %121 = vector.shape_cast %120 : vector<1x1x128xf32> to vector<1x128xf32>
    %122 = vector.broadcast %121 : vector<1x128xf32> to vector<16x128xf32>
    %123 = arith.mulf %119, %122 : vector<16x128xf32>
    %c1_75 = arith.constant 1 : index
    %c0_76 = arith.constant 0 : index
    %c0_77 = arith.constant 0 : index
    %124 = vector.load %arg3[%c1_75, %c0_76, %c0_77] : memref<9x16x16xbf16, #tpu.memory_space<vmem>>, vector<1x16x16xbf16>
    %125 = vector.shape_cast %124 : vector<1x16x16xbf16> to vector<16x16xbf16>
    %126 = arith.truncf %123 : vector<16x128xf32> to vector<16x128xbf16>
    %cst_78 = arith.constant dense<0.000000e+00> : vector<16x128xf32>
    %127 = tpu.matmul %125, %126, %cst_78 {dimension_numbers = #tpu.dot_dimension_numbers<[1], [0], [0], [1], [0, 0, 1, 1], [], []>} : vector<16x16xbf16>, vector<16x128xbf16>, vector<16x128xf32> -> vector<16x128xf32>
    %128 = arith.addf %116, %127 : vector<16x128xf32>
    %cst_79 = arith.constant 0.000000e+00 : f32
    %129 = vector.broadcast %cst_79 : f32 to vector<16x7xf32>
    %130 = vector.extract_strided_slice %105 {offsets = [0, 0], sizes = [16, 121], strides = [1, 1]} : vector<16x128xf32> to vector<16x121xf32>
    %131 = tpu.concatenate %129, %130 in 1 : vector<16x7xf32>, vector<16x121xf32> -> vector<16x128xf32>
    %c2_80 = arith.constant 2 : index
    %c0_81 = arith.constant 0 : index
    %c0_82 = arith.constant 0 : index
    %132 = vector.load %arg5[%c2_80, %c0_81, %c0_82] : memref<9x1x128xf32, #tpu.memory_space<vmem>>, vector<1x1x128xf32>
    %133 = vector.shape_cast %132 : vector<1x1x128xf32> to vector<1x128xf32>
    %134 = vector.broadcast %133 : vector<1x128xf32> to vector<16x128xf32>
    %135 = arith.mulf %131, %134 : vector<16x128xf32>
    %c2_83 = arith.constant 2 : index
    %c0_84 = arith.constant 0 : index
    %c0_85 = arith.constant 0 : index
    %136 = vector.load %arg3[%c2_83, %c0_84, %c0_85] : memref<9x16x16xbf16, #tpu.memory_space<vmem>>, vector<1x16x16xbf16>
    %137 = vector.shape_cast %136 : vector<1x16x16xbf16> to vector<16x16xbf16>
    %138 = arith.truncf %135 : vector<16x128xf32> to vector<16x128xbf16>
    %cst_86 = arith.constant dense<0.000000e+00> : vector<16x128xf32>
    %139 = tpu.matmul %137, %138, %cst_86 {dimension_numbers = #tpu.dot_dimension_numbers<[1], [0], [0], [1], [0, 0, 1, 1], [], []>} : vector<16x16xbf16>, vector<16x128xbf16>, vector<16x128xf32> -> vector<16x128xf32>
    %140 = arith.addf %128, %139 : vector<16x128xf32>
    %cst_87 = arith.constant 0.000000e+00 : f32
    %141 = vector.broadcast %cst_87 : f32 to vector<16x1xf32>
    %142 = vector.extract_strided_slice %105 {offsets = [0, 0], sizes = [16, 127], strides = [1, 1]} : vector<16x128xf32> to vector<16x127xf32>
    %143 = tpu.concatenate %141, %142 in 1 : vector<16x1xf32>, vector<16x127xf32> -> vector<16x128xf32>
    %c3_88 = arith.constant 3 : index
    %c0_89 = arith.constant 0 : index
    %c0_90 = arith.constant 0 : index
    %144 = vector.load %arg5[%c3_88, %c0_89, %c0_90] : memref<9x1x128xf32, #tpu.memory_space<vmem>>, vector<1x1x128xf32>
    %145 = vector.shape_cast %144 : vector<1x1x128xf32> to vector<1x128xf32>
    %146 = vector.broadcast %145 : vector<1x128xf32> to vector<16x128xf32>
    %147 = arith.mulf %143, %146 : vector<16x128xf32>
    %c3_91 = arith.constant 3 : index
    %c0_92 = arith.constant 0 : index
    %c0_93 = arith.constant 0 : index
    %148 = vector.load %arg3[%c3_91, %c0_92, %c0_93] : memref<9x16x16xbf16, #tpu.memory_space<vmem>>, vector<1x16x16xbf16>
    %149 = vector.shape_cast %148 : vector<1x16x16xbf16> to vector<16x16xbf16>
    %150 = arith.truncf %147 : vector<16x128xf32> to vector<16x128xbf16>
    %cst_94 = arith.constant dense<0.000000e+00> : vector<16x128xf32>
    %151 = tpu.matmul %149, %150, %cst_94 {dimension_numbers = #tpu.dot_dimension_numbers<[1], [0], [0], [1], [0, 0, 1, 1], [], []>} : vector<16x16xbf16>, vector<16x128xbf16>, vector<16x128xf32> -> vector<16x128xf32>
    %152 = arith.addf %140, %151 : vector<16x128xf32>
    %c4_95 = arith.constant 4 : index
    %c0_96 = arith.constant 0 : index
    %c0_97 = arith.constant 0 : index
    %153 = vector.load %arg3[%c4_95, %c0_96, %c0_97] : memref<9x16x16xbf16, #tpu.memory_space<vmem>>, vector<1x16x16xbf16>
    %154 = vector.shape_cast %153 : vector<1x16x16xbf16> to vector<16x16xbf16>
    %155 = arith.truncf %105 : vector<16x128xf32> to vector<16x128xbf16>
    %cst_98 = arith.constant dense<0.000000e+00> : vector<16x128xf32>
    %156 = tpu.matmul %154, %155, %cst_98 {dimension_numbers = #tpu.dot_dimension_numbers<[1], [0], [0], [1], [0, 0, 1, 1], [], []>} : vector<16x16xbf16>, vector<16x128xbf16>, vector<16x128xf32> -> vector<16x128xf32>
    %157 = arith.addf %152, %156 : vector<16x128xf32>
    %158 = vector.extract_strided_slice %105 {offsets = [0, 1], sizes = [16, 127], strides = [1, 1]} : vector<16x128xf32> to vector<16x127xf32>
    %cst_99 = arith.constant 0.000000e+00 : f32
    %159 = vector.broadcast %cst_99 : f32 to vector<16x1xf32>
    %160 = tpu.concatenate %158, %159 in 1 : vector<16x127xf32>, vector<16x1xf32> -> vector<16x128xf32>
    %c5_100 = arith.constant 5 : index
    %c0_101 = arith.constant 0 : index
    %c0_102 = arith.constant 0 : index
    %161 = vector.load %arg5[%c5_100, %c0_101, %c0_102] : memref<9x1x128xf32, #tpu.memory_space<vmem>>, vector<1x1x128xf32>
    %162 = vector.shape_cast %161 : vector<1x1x128xf32> to vector<1x128xf32>
    %163 = vector.broadcast %162 : vector<1x128xf32> to vector<16x128xf32>
    %164 = arith.mulf %160, %163 : vector<16x128xf32>
    %c5_103 = arith.constant 5 : index
    %c0_104 = arith.constant 0 : index
    %c0_105 = arith.constant 0 : index
    %165 = vector.load %arg3[%c5_103, %c0_104, %c0_105] : memref<9x16x16xbf16, #tpu.memory_space<vmem>>, vector<1x16x16xbf16>
    %166 = vector.shape_cast %165 : vector<1x16x16xbf16> to vector<16x16xbf16>
    %167 = arith.truncf %164 : vector<16x128xf32> to vector<16x128xbf16>
    %cst_106 = arith.constant dense<0.000000e+00> : vector<16x128xf32>
    %168 = tpu.matmul %166, %167, %cst_106 {dimension_numbers = #tpu.dot_dimension_numbers<[1], [0], [0], [1], [0, 0, 1, 1], [], []>} : vector<16x16xbf16>, vector<16x128xbf16>, vector<16x128xf32> -> vector<16x128xf32>
    %169 = arith.addf %157, %168 : vector<16x128xf32>
    %170 = vector.extract_strided_slice %105 {offsets = [0, 7], sizes = [16, 121], strides = [1, 1]} : vector<16x128xf32> to vector<16x121xf32>
    %cst_107 = arith.constant 0.000000e+00 : f32
    %171 = vector.broadcast %cst_107 : f32 to vector<16x7xf32>
    %172 = tpu.concatenate %170, %171 in 1 : vector<16x121xf32>, vector<16x7xf32> -> vector<16x128xf32>
    %c6_108 = arith.constant 6 : index
    %c0_109 = arith.constant 0 : index
    %c0_110 = arith.constant 0 : index
    %173 = vector.load %arg5[%c6_108, %c0_109, %c0_110] : memref<9x1x128xf32, #tpu.memory_space<vmem>>, vector<1x1x128xf32>
    %174 = vector.shape_cast %173 : vector<1x1x128xf32> to vector<1x128xf32>
    %175 = vector.broadcast %174 : vector<1x128xf32> to vector<16x128xf32>
    %176 = arith.mulf %172, %175 : vector<16x128xf32>
    %c6_111 = arith.constant 6 : index
    %c0_112 = arith.constant 0 : index
    %c0_113 = arith.constant 0 : index
    %177 = vector.load %arg3[%c6_111, %c0_112, %c0_113] : memref<9x16x16xbf16, #tpu.memory_space<vmem>>, vector<1x16x16xbf16>
    %178 = vector.shape_cast %177 : vector<1x16x16xbf16> to vector<16x16xbf16>
    %179 = arith.truncf %176 : vector<16x128xf32> to vector<16x128xbf16>
    %cst_114 = arith.constant dense<0.000000e+00> : vector<16x128xf32>
    %180 = tpu.matmul %178, %179, %cst_114 {dimension_numbers = #tpu.dot_dimension_numbers<[1], [0], [0], [1], [0, 0, 1, 1], [], []>} : vector<16x16xbf16>, vector<16x128xbf16>, vector<16x128xf32> -> vector<16x128xf32>
    %181 = arith.addf %169, %180 : vector<16x128xf32>
    %182 = vector.extract_strided_slice %105 {offsets = [0, 8], sizes = [16, 120], strides = [1, 1]} : vector<16x128xf32> to vector<16x120xf32>
    %cst_115 = arith.constant 0.000000e+00 : f32
    %183 = vector.broadcast %cst_115 : f32 to vector<16x8xf32>
    %184 = tpu.concatenate %182, %183 in 1 : vector<16x120xf32>, vector<16x8xf32> -> vector<16x128xf32>
    %c7_116 = arith.constant 7 : index
    %c0_117 = arith.constant 0 : index
    %c0_118 = arith.constant 0 : index
    %185 = vector.load %arg5[%c7_116, %c0_117, %c0_118] : memref<9x1x128xf32, #tpu.memory_space<vmem>>, vector<1x1x128xf32>
    %186 = vector.shape_cast %185 : vector<1x1x128xf32> to vector<1x128xf32>
    %187 = vector.broadcast %186 : vector<1x128xf32> to vector<16x128xf32>
    %188 = arith.mulf %184, %187 : vector<16x128xf32>
    %c7_119 = arith.constant 7 : index
    %c0_120 = arith.constant 0 : index
    %c0_121 = arith.constant 0 : index
    %189 = vector.load %arg3[%c7_119, %c0_120, %c0_121] : memref<9x16x16xbf16, #tpu.memory_space<vmem>>, vector<1x16x16xbf16>
    %190 = vector.shape_cast %189 : vector<1x16x16xbf16> to vector<16x16xbf16>
    %191 = arith.truncf %188 : vector<16x128xf32> to vector<16x128xbf16>
    %cst_122 = arith.constant dense<0.000000e+00> : vector<16x128xf32>
    %192 = tpu.matmul %190, %191, %cst_122 {dimension_numbers = #tpu.dot_dimension_numbers<[1], [0], [0], [1], [0, 0, 1, 1], [], []>} : vector<16x16xbf16>, vector<16x128xbf16>, vector<16x128xf32> -> vector<16x128xf32>
    %193 = arith.addf %181, %192 : vector<16x128xf32>
    %194 = vector.extract_strided_slice %105 {offsets = [0, 9], sizes = [16, 119], strides = [1, 1]} : vector<16x128xf32> to vector<16x119xf32>
    %cst_123 = arith.constant 0.000000e+00 : f32
    %195 = vector.broadcast %cst_123 : f32 to vector<16x9xf32>
    %196 = tpu.concatenate %194, %195 in 1 : vector<16x119xf32>, vector<16x9xf32> -> vector<16x128xf32>
    %c8_124 = arith.constant 8 : index
    %c0_125 = arith.constant 0 : index
    %c0_126 = arith.constant 0 : index
    %197 = vector.load %arg5[%c8_124, %c0_125, %c0_126] : memref<9x1x128xf32, #tpu.memory_space<vmem>>, vector<1x1x128xf32>
    %198 = vector.shape_cast %197 : vector<1x1x128xf32> to vector<1x128xf32>
    %199 = vector.broadcast %198 : vector<1x128xf32> to vector<16x128xf32>
    %200 = arith.mulf %196, %199 : vector<16x128xf32>
    %c8_127 = arith.constant 8 : index
    %c0_128 = arith.constant 0 : index
    %c0_129 = arith.constant 0 : index
    %201 = vector.load %arg3[%c8_127, %c0_128, %c0_129] : memref<9x16x16xbf16, #tpu.memory_space<vmem>>, vector<1x16x16xbf16>
    %202 = vector.shape_cast %201 : vector<1x16x16xbf16> to vector<16x16xbf16>
    %203 = arith.truncf %200 : vector<16x128xf32> to vector<16x128xbf16>
    %cst_130 = arith.constant dense<0.000000e+00> : vector<16x128xf32>
    %204 = tpu.matmul %202, %203, %cst_130 {dimension_numbers = #tpu.dot_dimension_numbers<[1], [0], [0], [1], [0, 0, 1, 1], [], []>} : vector<16x16xbf16>, vector<16x128xbf16>, vector<16x128xf32> -> vector<16x128xf32>
    %205 = arith.addf %193, %204 : vector<16x128xf32>
    %c0_131 = arith.constant 0 : index
    %c0_132 = arith.constant 0 : index
    %206 = vector.load %arg4[%c0_131, %c0_132] : memref<16x1xf32, #tpu.memory_space<vmem>>, vector<16x1xf32>
    %207 = vector.broadcast %206 : vector<16x1xf32> to vector<16x128xf32>
    %208 = arith.addf %205, %207 : vector<16x128xf32>
    %cst_133 = arith.constant 0.000000e+00 : f32
    %209 = vector.broadcast %cst_133 : f32 to vector<16x128xf32>
    %210 = arith.maximumf %208, %209 : vector<16x128xf32>
    %c0_134 = arith.constant 0 : index
    %c0_135 = arith.constant 0 : index
    %211 = vector.load %arg7[%c0_134, %c0_135] : memref<16x128xf32, #tpu.memory_space<vmem>>, vector<16x128xf32>
    tpu.vector_store %arg7[%c0_134, %c0_135], %210 {strides = array<i32>} : memref<16x128xf32, #tpu.memory_space<vmem>>, vector<16x128xf32>,
    %212 = vector.extract_strided_slice %210 {offsets = [0, 1], sizes = [16, 127], strides = [1, 1]} : vector<16x128xf32> to vector<16x127xf32>
    %cst_136 = arith.constant 0.000000e+00 : f32
    %213 = vector.broadcast %cst_136 : f32 to vector<16x1xf32>
    %214 = tpu.concatenate %212, %213 in 1 : vector<16x127xf32>, vector<16x1xf32> -> vector<16x128xf32>
    %215 = arith.maximumf %210, %214 : vector<16x128xf32>
    %216 = vector.extract_strided_slice %210 {offsets = [0, 8], sizes = [16, 120], strides = [1, 1]} : vector<16x128xf32> to vector<16x120xf32>
    %cst_137 = arith.constant 0.000000e+00 : f32
    %217 = vector.broadcast %cst_137 : f32 to vector<16x8xf32>
    %218 = tpu.concatenate %216, %217 in 1 : vector<16x120xf32>, vector<16x8xf32> -> vector<16x128xf32>
    %219 = vector.extract_strided_slice %210 {offsets = [0, 9], sizes = [16, 119], strides = [1, 1]} : vector<16x128xf32> to vector<16x119xf32>
    %cst_138 = arith.constant 0.000000e+00 : f32
    %220 = vector.broadcast %cst_138 : f32 to vector<16x9xf32>
    %221 = tpu.concatenate %219, %220 in 1 : vector<16x119xf32>, vector<16x9xf32> -> vector<16x128xf32>
    %222 = arith.maximumf %218, %221 : vector<16x128xf32>
    %223 = arith.maximumf %215, %222 : vector<16x128xf32>
    %c0_139 = arith.constant 0 : index
    %c0_140 = arith.constant 0 : index
    %224 = vector.load %arg6[%c0_139, %c0_140] : memref<128x32xf32, #tpu.memory_space<vmem>>, vector<128x32xf32>
    %cst_141 = arith.constant dense<0.000000e+00> : vector<16x32xf32>
    %225 = tpu.matmul %223, %224, %cst_141 {dimension_numbers = #tpu.dot_dimension_numbers<[1], [0], [0], [1], [0, 0, 1, 1], [], []>} : vector<16x128xf32>, vector<128x32xf32>, vector<16x32xf32> -> vector<16x32xf32>
    %c0_142 = arith.constant 0 : index
    %c0_143 = arith.constant 0 : index
    %226 = vector.load %arg8[%c0_142, %c0_143] : memref<16x32xf32, #tpu.memory_space<vmem>>, vector<16x32xf32>
    tpu.vector_store %arg8[%c0_142, %c0_143], %225 {strides = array<i32>} : memref<16x32xf32, #tpu.memory_space<vmem>>, vector<16x32xf32>,
    return
  }
}

module attributes {stable_mosaic.version = 11 : i64} {
  func.func @_double_conv_kernel(%arg0: memref<16x32xf32, #tpu.memory_space<vmem>>, %arg1: memref<9x32x16xbf16, #tpu.memory_space<vmem>>, %arg2: memref<32x1xf32, #tpu.memory_space<vmem>>, %arg3: memref<9x32x32xbf16, #tpu.memory_space<vmem>>, %arg4: memref<32x1xf32, #tpu.memory_space<vmem>>, %arg5: memref<9x1x32xf32, #tpu.memory_space<vmem>>, %arg6: memref<32x32xf32, #tpu.memory_space<vmem>>) attributes {dimension_semantics = [], scalar_prefetch = 0 : i64, scratch_operands = 0 : i64, tpu.core_type = #tpu.core_type<tc>} {
    %c0 = arith.constant 0 : index
    %c0_0 = arith.constant 0 : index
    %0 = vector.load %arg0[%c0, %c0_0] : memref<16x32xf32, #tpu.memory_space<vmem>>, vector<16x32xf32>
    %cst = arith.constant 0.000000e+00 : f32
    %1 = vector.broadcast %cst : f32 to vector<16x5xf32>
    %2 = vector.extract_strided_slice %0 {offsets = [0, 0], sizes = [16, 27], strides = [1, 1]} : vector<16x32xf32> to vector<16x27xf32>
    %3 = tpu.concatenate %1, %2 in 1 : vector<16x5xf32>, vector<16x27xf32> -> vector<16x32xf32>
    %c0_1 = arith.constant 0 : index
    %c0_2 = arith.constant 0 : index
    %c0_3 = arith.constant 0 : index
    %4 = vector.load %arg5[%c0_1, %c0_2, %c0_3] : memref<9x1x32xf32, #tpu.memory_space<vmem>>, vector<1x1x32xf32>
    %5 = vector.shape_cast %4 : vector<1x1x32xf32> to vector<1x32xf32>
    %6 = vector.broadcast %5 : vector<1x32xf32> to vector<16x32xf32>
    %7 = arith.mulf %3, %6 : vector<16x32xf32>
    %c0_4 = arith.constant 0 : index
    %c0_5 = arith.constant 0 : index
    %c0_6 = arith.constant 0 : index
    %8 = vector.load %arg1[%c0_4, %c0_5, %c0_6] : memref<9x32x16xbf16, #tpu.memory_space<vmem>>, vector<1x32x16xbf16>
    %9 = vector.shape_cast %8 : vector<1x32x16xbf16> to vector<32x16xbf16>
    %10 = arith.truncf %7 : vector<16x32xf32> to vector<16x32xbf16>
    %cst_7 = arith.constant dense<0.000000e+00> : vector<32x32xf32>
    %11 = tpu.matmul %9, %10, %cst_7 {dimension_numbers = #tpu.dot_dimension_numbers<[1], [0], [0], [1], [0, 0, 1, 1], [], []>} : vector<32x16xbf16>, vector<16x32xbf16>, vector<32x32xf32> -> vector<32x32xf32>
    %cst_8 = arith.constant 0.000000e+00 : f32
    %12 = vector.broadcast %cst_8 : f32 to vector<16x4xf32>
    %13 = vector.extract_strided_slice %0 {offsets = [0, 0], sizes = [16, 28], strides = [1, 1]} : vector<16x32xf32> to vector<16x28xf32>
    %14 = tpu.concatenate %12, %13 in 1 : vector<16x4xf32>, vector<16x28xf32> -> vector<16x32xf32>
    %c1 = arith.constant 1 : index
    %c0_9 = arith.constant 0 : index
    %c0_10 = arith.constant 0 : index
    %15 = vector.load %arg5[%c1, %c0_9, %c0_10] : memref<9x1x32xf32, #tpu.memory_space<vmem>>, vector<1x1x32xf32>
    %16 = vector.shape_cast %15 : vector<1x1x32xf32> to vector<1x32xf32>
    %17 = vector.broadcast %16 : vector<1x32xf32> to vector<16x32xf32>
    %18 = arith.mulf %14, %17 : vector<16x32xf32>
    %c1_11 = arith.constant 1 : index
    %c0_12 = arith.constant 0 : index
    %c0_13 = arith.constant 0 : index
    %19 = vector.load %arg1[%c1_11, %c0_12, %c0_13] : memref<9x32x16xbf16, #tpu.memory_space<vmem>>, vector<1x32x16xbf16>
    %20 = vector.shape_cast %19 : vector<1x32x16xbf16> to vector<32x16xbf16>
    %21 = arith.truncf %18 : vector<16x32xf32> to vector<16x32xbf16>
    %cst_14 = arith.constant dense<0.000000e+00> : vector<32x32xf32>
    %22 = tpu.matmul %20, %21, %cst_14 {dimension_numbers = #tpu.dot_dimension_numbers<[1], [0], [0], [1], [0, 0, 1, 1], [], []>} : vector<32x16xbf16>, vector<16x32xbf16>, vector<32x32xf32> -> vector<32x32xf32>
    %23 = arith.addf %11, %22 : vector<32x32xf32>
    %cst_15 = arith.constant 0.000000e+00 : f32
    %24 = vector.broadcast %cst_15 : f32 to vector<16x3xf32>
    %25 = vector.extract_strided_slice %0 {offsets = [0, 0], sizes = [16, 29], strides = [1, 1]} : vector<16x32xf32> to vector<16x29xf32>
    %26 = tpu.concatenate %24, %25 in 1 : vector<16x3xf32>, vector<16x29xf32> -> vector<16x32xf32>
    %c2 = arith.constant 2 : index
    %c0_16 = arith.constant 0 : index
    %c0_17 = arith.constant 0 : index
    %27 = vector.load %arg5[%c2, %c0_16, %c0_17] : memref<9x1x32xf32, #tpu.memory_space<vmem>>, vector<1x1x32xf32>
    %28 = vector.shape_cast %27 : vector<1x1x32xf32> to vector<1x32xf32>
    %29 = vector.broadcast %28 : vector<1x32xf32> to vector<16x32xf32>
    %30 = arith.mulf %26, %29 : vector<16x32xf32>
    %c2_18 = arith.constant 2 : index
    %c0_19 = arith.constant 0 : index
    %c0_20 = arith.constant 0 : index
    %31 = vector.load %arg1[%c2_18, %c0_19, %c0_20] : memref<9x32x16xbf16, #tpu.memory_space<vmem>>, vector<1x32x16xbf16>
    %32 = vector.shape_cast %31 : vector<1x32x16xbf16> to vector<32x16xbf16>
    %33 = arith.truncf %30 : vector<16x32xf32> to vector<16x32xbf16>
    %cst_21 = arith.constant dense<0.000000e+00> : vector<32x32xf32>
    %34 = tpu.matmul %32, %33, %cst_21 {dimension_numbers = #tpu.dot_dimension_numbers<[1], [0], [0], [1], [0, 0, 1, 1], [], []>} : vector<32x16xbf16>, vector<16x32xbf16>, vector<32x32xf32> -> vector<32x32xf32>
    %35 = arith.addf %23, %34 : vector<32x32xf32>
    %cst_22 = arith.constant 0.000000e+00 : f32
    %36 = vector.broadcast %cst_22 : f32 to vector<16x1xf32>
    %37 = vector.extract_strided_slice %0 {offsets = [0, 0], sizes = [16, 31], strides = [1, 1]} : vector<16x32xf32> to vector<16x31xf32>
    %38 = tpu.concatenate %36, %37 in 1 : vector<16x1xf32>, vector<16x31xf32> -> vector<16x32xf32>
    %c3 = arith.constant 3 : index
    %c0_23 = arith.constant 0 : index
    %c0_24 = arith.constant 0 : index
    %39 = vector.load %arg5[%c3, %c0_23, %c0_24] : memref<9x1x32xf32, #tpu.memory_space<vmem>>, vector<1x1x32xf32>
    %40 = vector.shape_cast %39 : vector<1x1x32xf32> to vector<1x32xf32>
    %41 = vector.broadcast %40 : vector<1x32xf32> to vector<16x32xf32>
    %42 = arith.mulf %38, %41 : vector<16x32xf32>
    %c3_25 = arith.constant 3 : index
    %c0_26 = arith.constant 0 : index
    %c0_27 = arith.constant 0 : index
    %43 = vector.load %arg1[%c3_25, %c0_26, %c0_27] : memref<9x32x16xbf16, #tpu.memory_space<vmem>>, vector<1x32x16xbf16>
    %44 = vector.shape_cast %43 : vector<1x32x16xbf16> to vector<32x16xbf16>
    %45 = arith.truncf %42 : vector<16x32xf32> to vector<16x32xbf16>
    %cst_28 = arith.constant dense<0.000000e+00> : vector<32x32xf32>
    %46 = tpu.matmul %44, %45, %cst_28 {dimension_numbers = #tpu.dot_dimension_numbers<[1], [0], [0], [1], [0, 0, 1, 1], [], []>} : vector<32x16xbf16>, vector<16x32xbf16>, vector<32x32xf32> -> vector<32x32xf32>
    %47 = arith.addf %35, %46 : vector<32x32xf32>
    %c4 = arith.constant 4 : index
    %c0_29 = arith.constant 0 : index
    %c0_30 = arith.constant 0 : index
    %48 = vector.load %arg1[%c4, %c0_29, %c0_30] : memref<9x32x16xbf16, #tpu.memory_space<vmem>>, vector<1x32x16xbf16>
    %49 = vector.shape_cast %48 : vector<1x32x16xbf16> to vector<32x16xbf16>
    %50 = arith.truncf %0 : vector<16x32xf32> to vector<16x32xbf16>
    %cst_31 = arith.constant dense<0.000000e+00> : vector<32x32xf32>
    %51 = tpu.matmul %49, %50, %cst_31 {dimension_numbers = #tpu.dot_dimension_numbers<[1], [0], [0], [1], [0, 0, 1, 1], [], []>} : vector<32x16xbf16>, vector<16x32xbf16>, vector<32x32xf32> -> vector<32x32xf32>
    %52 = arith.addf %47, %51 : vector<32x32xf32>
    %53 = vector.extract_strided_slice %0 {offsets = [0, 1], sizes = [16, 31], strides = [1, 1]} : vector<16x32xf32> to vector<16x31xf32>
    %cst_32 = arith.constant 0.000000e+00 : f32
    %54 = vector.broadcast %cst_32 : f32 to vector<16x1xf32>
    %55 = tpu.concatenate %53, %54 in 1 : vector<16x31xf32>, vector<16x1xf32> -> vector<16x32xf32>
    %c5 = arith.constant 5 : index
    %c0_33 = arith.constant 0 : index
    %c0_34 = arith.constant 0 : index
    %56 = vector.load %arg5[%c5, %c0_33, %c0_34] : memref<9x1x32xf32, #tpu.memory_space<vmem>>, vector<1x1x32xf32>
    %57 = vector.shape_cast %56 : vector<1x1x32xf32> to vector<1x32xf32>
    %58 = vector.broadcast %57 : vector<1x32xf32> to vector<16x32xf32>
    %59 = arith.mulf %55, %58 : vector<16x32xf32>
    %c5_35 = arith.constant 5 : index
    %c0_36 = arith.constant 0 : index
    %c0_37 = arith.constant 0 : index
    %60 = vector.load %arg1[%c5_35, %c0_36, %c0_37] : memref<9x32x16xbf16, #tpu.memory_space<vmem>>, vector<1x32x16xbf16>
    %61 = vector.shape_cast %60 : vector<1x32x16xbf16> to vector<32x16xbf16>
    %62 = arith.truncf %59 : vector<16x32xf32> to vector<16x32xbf16>
    %cst_38 = arith.constant dense<0.000000e+00> : vector<32x32xf32>
    %63 = tpu.matmul %61, %62, %cst_38 {dimension_numbers = #tpu.dot_dimension_numbers<[1], [0], [0], [1], [0, 0, 1, 1], [], []>} : vector<32x16xbf16>, vector<16x32xbf16>, vector<32x32xf32> -> vector<32x32xf32>
    %64 = arith.addf %52, %63 : vector<32x32xf32>
    %65 = vector.extract_strided_slice %0 {offsets = [0, 3], sizes = [16, 29], strides = [1, 1]} : vector<16x32xf32> to vector<16x29xf32>
    %cst_39 = arith.constant 0.000000e+00 : f32
    %66 = vector.broadcast %cst_39 : f32 to vector<16x3xf32>
    %67 = tpu.concatenate %65, %66 in 1 : vector<16x29xf32>, vector<16x3xf32> -> vector<16x32xf32>
    %c6 = arith.constant 6 : index
    %c0_40 = arith.constant 0 : index
    %c0_41 = arith.constant 0 : index
    %68 = vector.load %arg5[%c6, %c0_40, %c0_41] : memref<9x1x32xf32, #tpu.memory_space<vmem>>, vector<1x1x32xf32>
    %69 = vector.shape_cast %68 : vector<1x1x32xf32> to vector<1x32xf32>
    %70 = vector.broadcast %69 : vector<1x32xf32> to vector<16x32xf32>
    %71 = arith.mulf %67, %70 : vector<16x32xf32>
    %c6_42 = arith.constant 6 : index
    %c0_43 = arith.constant 0 : index
    %c0_44 = arith.constant 0 : index
    %72 = vector.load %arg1[%c6_42, %c0_43, %c0_44] : memref<9x32x16xbf16, #tpu.memory_space<vmem>>, vector<1x32x16xbf16>
    %73 = vector.shape_cast %72 : vector<1x32x16xbf16> to vector<32x16xbf16>
    %74 = arith.truncf %71 : vector<16x32xf32> to vector<16x32xbf16>
    %cst_45 = arith.constant dense<0.000000e+00> : vector<32x32xf32>
    %75 = tpu.matmul %73, %74, %cst_45 {dimension_numbers = #tpu.dot_dimension_numbers<[1], [0], [0], [1], [0, 0, 1, 1], [], []>} : vector<32x16xbf16>, vector<16x32xbf16>, vector<32x32xf32> -> vector<32x32xf32>
    %76 = arith.addf %64, %75 : vector<32x32xf32>
    %77 = vector.extract_strided_slice %0 {offsets = [0, 4], sizes = [16, 28], strides = [1, 1]} : vector<16x32xf32> to vector<16x28xf32>
    %cst_46 = arith.constant 0.000000e+00 : f32
    %78 = vector.broadcast %cst_46 : f32 to vector<16x4xf32>
    %79 = tpu.concatenate %77, %78 in 1 : vector<16x28xf32>, vector<16x4xf32> -> vector<16x32xf32>
    %c7 = arith.constant 7 : index
    %c0_47 = arith.constant 0 : index
    %c0_48 = arith.constant 0 : index
    %80 = vector.load %arg5[%c7, %c0_47, %c0_48] : memref<9x1x32xf32, #tpu.memory_space<vmem>>, vector<1x1x32xf32>
    %81 = vector.shape_cast %80 : vector<1x1x32xf32> to vector<1x32xf32>
    %82 = vector.broadcast %81 : vector<1x32xf32> to vector<16x32xf32>
    %83 = arith.mulf %79, %82 : vector<16x32xf32>
    %c7_49 = arith.constant 7 : index
    %c0_50 = arith.constant 0 : index
    %c0_51 = arith.constant 0 : index
    %84 = vector.load %arg1[%c7_49, %c0_50, %c0_51] : memref<9x32x16xbf16, #tpu.memory_space<vmem>>, vector<1x32x16xbf16>
    %85 = vector.shape_cast %84 : vector<1x32x16xbf16> to vector<32x16xbf16>
    %86 = arith.truncf %83 : vector<16x32xf32> to vector<16x32xbf16>
    %cst_52 = arith.constant dense<0.000000e+00> : vector<32x32xf32>
    %87 = tpu.matmul %85, %86, %cst_52 {dimension_numbers = #tpu.dot_dimension_numbers<[1], [0], [0], [1], [0, 0, 1, 1], [], []>} : vector<32x16xbf16>, vector<16x32xbf16>, vector<32x32xf32> -> vector<32x32xf32>
    %88 = arith.addf %76, %87 : vector<32x32xf32>
    %89 = vector.extract_strided_slice %0 {offsets = [0, 5], sizes = [16, 27], strides = [1, 1]} : vector<16x32xf32> to vector<16x27xf32>
    %cst_53 = arith.constant 0.000000e+00 : f32
    %90 = vector.broadcast %cst_53 : f32 to vector<16x5xf32>
    %91 = tpu.concatenate %89, %90 in 1 : vector<16x27xf32>, vector<16x5xf32> -> vector<16x32xf32>
    %c8 = arith.constant 8 : index
    %c0_54 = arith.constant 0 : index
    %c0_55 = arith.constant 0 : index
    %92 = vector.load %arg5[%c8, %c0_54, %c0_55] : memref<9x1x32xf32, #tpu.memory_space<vmem>>, vector<1x1x32xf32>
    %93 = vector.shape_cast %92 : vector<1x1x32xf32> to vector<1x32xf32>
    %94 = vector.broadcast %93 : vector<1x32xf32> to vector<16x32xf32>
    %95 = arith.mulf %91, %94 : vector<16x32xf32>
    %c8_56 = arith.constant 8 : index
    %c0_57 = arith.constant 0 : index
    %c0_58 = arith.constant 0 : index
    %96 = vector.load %arg1[%c8_56, %c0_57, %c0_58] : memref<9x32x16xbf16, #tpu.memory_space<vmem>>, vector<1x32x16xbf16>
    %97 = vector.shape_cast %96 : vector<1x32x16xbf16> to vector<32x16xbf16>
    %98 = arith.truncf %95 : vector<16x32xf32> to vector<16x32xbf16>
    %cst_59 = arith.constant dense<0.000000e+00> : vector<32x32xf32>
    %99 = tpu.matmul %97, %98, %cst_59 {dimension_numbers = #tpu.dot_dimension_numbers<[1], [0], [0], [1], [0, 0, 1, 1], [], []>} : vector<32x16xbf16>, vector<16x32xbf16>, vector<32x32xf32> -> vector<32x32xf32>
    %100 = arith.addf %88, %99 : vector<32x32xf32>
    %c0_60 = arith.constant 0 : index
    %c0_61 = arith.constant 0 : index
    %101 = vector.load %arg2[%c0_60, %c0_61] : memref<32x1xf32, #tpu.memory_space<vmem>>, vector<32x1xf32>
    %102 = vector.broadcast %101 : vector<32x1xf32> to vector<32x32xf32>
    %103 = arith.addf %100, %102 : vector<32x32xf32>
    %cst_62 = arith.constant 0.000000e+00 : f32
    %104 = vector.broadcast %cst_62 : f32 to vector<32x32xf32>
    %105 = arith.maximumf %103, %104 : vector<32x32xf32>
    %cst_63 = arith.constant 0.000000e+00 : f32
    %106 = vector.broadcast %cst_63 : f32 to vector<32x5xf32>
    %107 = vector.extract_strided_slice %105 {offsets = [0, 0], sizes = [32, 27], strides = [1, 1]} : vector<32x32xf32> to vector<32x27xf32>
    %108 = tpu.concatenate %106, %107 in 1 : vector<32x5xf32>, vector<32x27xf32> -> vector<32x32xf32>
    %c0_64 = arith.constant 0 : index
    %c0_65 = arith.constant 0 : index
    %c0_66 = arith.constant 0 : index
    %109 = vector.load %arg5[%c0_64, %c0_65, %c0_66] : memref<9x1x32xf32, #tpu.memory_space<vmem>>, vector<1x1x32xf32>
    %110 = vector.shape_cast %109 : vector<1x1x32xf32> to vector<1x32xf32>
    %111 = vector.broadcast %110 : vector<1x32xf32> to vector<32x32xf32>
    %112 = arith.mulf %108, %111 : vector<32x32xf32>
    %c0_67 = arith.constant 0 : index
    %c0_68 = arith.constant 0 : index
    %c0_69 = arith.constant 0 : index
    %113 = vector.load %arg3[%c0_67, %c0_68, %c0_69] : memref<9x32x32xbf16, #tpu.memory_space<vmem>>, vector<1x32x32xbf16>
    %114 = vector.shape_cast %113 : vector<1x32x32xbf16> to vector<32x32xbf16>
    %115 = arith.truncf %112 : vector<32x32xf32> to vector<32x32xbf16>
    %cst_70 = arith.constant dense<0.000000e+00> : vector<32x32xf32>
    %116 = tpu.matmul %114, %115, %cst_70 {dimension_numbers = #tpu.dot_dimension_numbers<[1], [0], [0], [1], [0, 0, 1, 1], [], []>} : vector<32x32xbf16>, vector<32x32xbf16>, vector<32x32xf32> -> vector<32x32xf32>
    %cst_71 = arith.constant 0.000000e+00 : f32
    %117 = vector.broadcast %cst_71 : f32 to vector<32x4xf32>
    %118 = vector.extract_strided_slice %105 {offsets = [0, 0], sizes = [32, 28], strides = [1, 1]} : vector<32x32xf32> to vector<32x28xf32>
    %119 = tpu.concatenate %117, %118 in 1 : vector<32x4xf32>, vector<32x28xf32> -> vector<32x32xf32>
    %c1_72 = arith.constant 1 : index
    %c0_73 = arith.constant 0 : index
    %c0_74 = arith.constant 0 : index
    %120 = vector.load %arg5[%c1_72, %c0_73, %c0_74] : memref<9x1x32xf32, #tpu.memory_space<vmem>>, vector<1x1x32xf32>
    %121 = vector.shape_cast %120 : vector<1x1x32xf32> to vector<1x32xf32>
    %122 = vector.broadcast %121 : vector<1x32xf32> to vector<32x32xf32>
    %123 = arith.mulf %119, %122 : vector<32x32xf32>
    %c1_75 = arith.constant 1 : index
    %c0_76 = arith.constant 0 : index
    %c0_77 = arith.constant 0 : index
    %124 = vector.load %arg3[%c1_75, %c0_76, %c0_77] : memref<9x32x32xbf16, #tpu.memory_space<vmem>>, vector<1x32x32xbf16>
    %125 = vector.shape_cast %124 : vector<1x32x32xbf16> to vector<32x32xbf16>
    %126 = arith.truncf %123 : vector<32x32xf32> to vector<32x32xbf16>
    %cst_78 = arith.constant dense<0.000000e+00> : vector<32x32xf32>
    %127 = tpu.matmul %125, %126, %cst_78 {dimension_numbers = #tpu.dot_dimension_numbers<[1], [0], [0], [1], [0, 0, 1, 1], [], []>} : vector<32x32xbf16>, vector<32x32xbf16>, vector<32x32xf32> -> vector<32x32xf32>
    %128 = arith.addf %116, %127 : vector<32x32xf32>
    %cst_79 = arith.constant 0.000000e+00 : f32
    %129 = vector.broadcast %cst_79 : f32 to vector<32x3xf32>
    %130 = vector.extract_strided_slice %105 {offsets = [0, 0], sizes = [32, 29], strides = [1, 1]} : vector<32x32xf32> to vector<32x29xf32>
    %131 = tpu.concatenate %129, %130 in 1 : vector<32x3xf32>, vector<32x29xf32> -> vector<32x32xf32>
    %c2_80 = arith.constant 2 : index
    %c0_81 = arith.constant 0 : index
    %c0_82 = arith.constant 0 : index
    %132 = vector.load %arg5[%c2_80, %c0_81, %c0_82] : memref<9x1x32xf32, #tpu.memory_space<vmem>>, vector<1x1x32xf32>
    %133 = vector.shape_cast %132 : vector<1x1x32xf32> to vector<1x32xf32>
    %134 = vector.broadcast %133 : vector<1x32xf32> to vector<32x32xf32>
    %135 = arith.mulf %131, %134 : vector<32x32xf32>
    %c2_83 = arith.constant 2 : index
    %c0_84 = arith.constant 0 : index
    %c0_85 = arith.constant 0 : index
    %136 = vector.load %arg3[%c2_83, %c0_84, %c0_85] : memref<9x32x32xbf16, #tpu.memory_space<vmem>>, vector<1x32x32xbf16>
    %137 = vector.shape_cast %136 : vector<1x32x32xbf16> to vector<32x32xbf16>
    %138 = arith.truncf %135 : vector<32x32xf32> to vector<32x32xbf16>
    %cst_86 = arith.constant dense<0.000000e+00> : vector<32x32xf32>
    %139 = tpu.matmul %137, %138, %cst_86 {dimension_numbers = #tpu.dot_dimension_numbers<[1], [0], [0], [1], [0, 0, 1, 1], [], []>} : vector<32x32xbf16>, vector<32x32xbf16>, vector<32x32xf32> -> vector<32x32xf32>
    %140 = arith.addf %128, %139 : vector<32x32xf32>
    %cst_87 = arith.constant 0.000000e+00 : f32
    %141 = vector.broadcast %cst_87 : f32 to vector<32x1xf32>
    %142 = vector.extract_strided_slice %105 {offsets = [0, 0], sizes = [32, 31], strides = [1, 1]} : vector<32x32xf32> to vector<32x31xf32>
    %143 = tpu.concatenate %141, %142 in 1 : vector<32x1xf32>, vector<32x31xf32> -> vector<32x32xf32>
    %c3_88 = arith.constant 3 : index
    %c0_89 = arith.constant 0 : index
    %c0_90 = arith.constant 0 : index
    %144 = vector.load %arg5[%c3_88, %c0_89, %c0_90] : memref<9x1x32xf32, #tpu.memory_space<vmem>>, vector<1x1x32xf32>
    %145 = vector.shape_cast %144 : vector<1x1x32xf32> to vector<1x32xf32>
    %146 = vector.broadcast %145 : vector<1x32xf32> to vector<32x32xf32>
    %147 = arith.mulf %143, %146 : vector<32x32xf32>
    %c3_91 = arith.constant 3 : index
    %c0_92 = arith.constant 0 : index
    %c0_93 = arith.constant 0 : index
    %148 = vector.load %arg3[%c3_91, %c0_92, %c0_93] : memref<9x32x32xbf16, #tpu.memory_space<vmem>>, vector<1x32x32xbf16>
    %149 = vector.shape_cast %148 : vector<1x32x32xbf16> to vector<32x32xbf16>
    %150 = arith.truncf %147 : vector<32x32xf32> to vector<32x32xbf16>
    %cst_94 = arith.constant dense<0.000000e+00> : vector<32x32xf32>
    %151 = tpu.matmul %149, %150, %cst_94 {dimension_numbers = #tpu.dot_dimension_numbers<[1], [0], [0], [1], [0, 0, 1, 1], [], []>} : vector<32x32xbf16>, vector<32x32xbf16>, vector<32x32xf32> -> vector<32x32xf32>
    %152 = arith.addf %140, %151 : vector<32x32xf32>
    %c4_95 = arith.constant 4 : index
    %c0_96 = arith.constant 0 : index
    %c0_97 = arith.constant 0 : index
    %153 = vector.load %arg3[%c4_95, %c0_96, %c0_97] : memref<9x32x32xbf16, #tpu.memory_space<vmem>>, vector<1x32x32xbf16>
    %154 = vector.shape_cast %153 : vector<1x32x32xbf16> to vector<32x32xbf16>
    %155 = arith.truncf %105 : vector<32x32xf32> to vector<32x32xbf16>
    %cst_98 = arith.constant dense<0.000000e+00> : vector<32x32xf32>
    %156 = tpu.matmul %154, %155, %cst_98 {dimension_numbers = #tpu.dot_dimension_numbers<[1], [0], [0], [1], [0, 0, 1, 1], [], []>} : vector<32x32xbf16>, vector<32x32xbf16>, vector<32x32xf32> -> vector<32x32xf32>
    %157 = arith.addf %152, %156 : vector<32x32xf32>
    %158 = vector.extract_strided_slice %105 {offsets = [0, 1], sizes = [32, 31], strides = [1, 1]} : vector<32x32xf32> to vector<32x31xf32>
    %cst_99 = arith.constant 0.000000e+00 : f32
    %159 = vector.broadcast %cst_99 : f32 to vector<32x1xf32>
    %160 = tpu.concatenate %158, %159 in 1 : vector<32x31xf32>, vector<32x1xf32> -> vector<32x32xf32>
    %c5_100 = arith.constant 5 : index
    %c0_101 = arith.constant 0 : index
    %c0_102 = arith.constant 0 : index
    %161 = vector.load %arg5[%c5_100, %c0_101, %c0_102] : memref<9x1x32xf32, #tpu.memory_space<vmem>>, vector<1x1x32xf32>
    %162 = vector.shape_cast %161 : vector<1x1x32xf32> to vector<1x32xf32>
    %163 = vector.broadcast %162 : vector<1x32xf32> to vector<32x32xf32>
    %164 = arith.mulf %160, %163 : vector<32x32xf32>
    %c5_103 = arith.constant 5 : index
    %c0_104 = arith.constant 0 : index
    %c0_105 = arith.constant 0 : index
    %165 = vector.load %arg3[%c5_103, %c0_104, %c0_105] : memref<9x32x32xbf16, #tpu.memory_space<vmem>>, vector<1x32x32xbf16>
    %166 = vector.shape_cast %165 : vector<1x32x32xbf16> to vector<32x32xbf16>
    %167 = arith.truncf %164 : vector<32x32xf32> to vector<32x32xbf16>
    %cst_106 = arith.constant dense<0.000000e+00> : vector<32x32xf32>
    %168 = tpu.matmul %166, %167, %cst_106 {dimension_numbers = #tpu.dot_dimension_numbers<[1], [0], [0], [1], [0, 0, 1, 1], [], []>} : vector<32x32xbf16>, vector<32x32xbf16>, vector<32x32xf32> -> vector<32x32xf32>
    %169 = arith.addf %157, %168 : vector<32x32xf32>
    %170 = vector.extract_strided_slice %105 {offsets = [0, 3], sizes = [32, 29], strides = [1, 1]} : vector<32x32xf32> to vector<32x29xf32>
    %cst_107 = arith.constant 0.000000e+00 : f32
    %171 = vector.broadcast %cst_107 : f32 to vector<32x3xf32>
    %172 = tpu.concatenate %170, %171 in 1 : vector<32x29xf32>, vector<32x3xf32> -> vector<32x32xf32>
    %c6_108 = arith.constant 6 : index
    %c0_109 = arith.constant 0 : index
    %c0_110 = arith.constant 0 : index
    %173 = vector.load %arg5[%c6_108, %c0_109, %c0_110] : memref<9x1x32xf32, #tpu.memory_space<vmem>>, vector<1x1x32xf32>
    %174 = vector.shape_cast %173 : vector<1x1x32xf32> to vector<1x32xf32>
    %175 = vector.broadcast %174 : vector<1x32xf32> to vector<32x32xf32>
    %176 = arith.mulf %172, %175 : vector<32x32xf32>
    %c6_111 = arith.constant 6 : index
    %c0_112 = arith.constant 0 : index
    %c0_113 = arith.constant 0 : index
    %177 = vector.load %arg3[%c6_111, %c0_112, %c0_113] : memref<9x32x32xbf16, #tpu.memory_space<vmem>>, vector<1x32x32xbf16>
    %178 = vector.shape_cast %177 : vector<1x32x32xbf16> to vector<32x32xbf16>
    %179 = arith.truncf %176 : vector<32x32xf32> to vector<32x32xbf16>
    %cst_114 = arith.constant dense<0.000000e+00> : vector<32x32xf32>
    %180 = tpu.matmul %178, %179, %cst_114 {dimension_numbers = #tpu.dot_dimension_numbers<[1], [0], [0], [1], [0, 0, 1, 1], [], []>} : vector<32x32xbf16>, vector<32x32xbf16>, vector<32x32xf32> -> vector<32x32xf32>
    %181 = arith.addf %169, %180 : vector<32x32xf32>
    %182 = vector.extract_strided_slice %105 {offsets = [0, 4], sizes = [32, 28], strides = [1, 1]} : vector<32x32xf32> to vector<32x28xf32>
    %cst_115 = arith.constant 0.000000e+00 : f32
    %183 = vector.broadcast %cst_115 : f32 to vector<32x4xf32>
    %184 = tpu.concatenate %182, %183 in 1 : vector<32x28xf32>, vector<32x4xf32> -> vector<32x32xf32>
    %c7_116 = arith.constant 7 : index
    %c0_117 = arith.constant 0 : index
    %c0_118 = arith.constant 0 : index
    %185 = vector.load %arg5[%c7_116, %c0_117, %c0_118] : memref<9x1x32xf32, #tpu.memory_space<vmem>>, vector<1x1x32xf32>
    %186 = vector.shape_cast %185 : vector<1x1x32xf32> to vector<1x32xf32>
    %187 = vector.broadcast %186 : vector<1x32xf32> to vector<32x32xf32>
    %188 = arith.mulf %184, %187 : vector<32x32xf32>
    %c7_119 = arith.constant 7 : index
    %c0_120 = arith.constant 0 : index
    %c0_121 = arith.constant 0 : index
    %189 = vector.load %arg3[%c7_119, %c0_120, %c0_121] : memref<9x32x32xbf16, #tpu.memory_space<vmem>>, vector<1x32x32xbf16>
    %190 = vector.shape_cast %189 : vector<1x32x32xbf16> to vector<32x32xbf16>
    %191 = arith.truncf %188 : vector<32x32xf32> to vector<32x32xbf16>
    %cst_122 = arith.constant dense<0.000000e+00> : vector<32x32xf32>
    %192 = tpu.matmul %190, %191, %cst_122 {dimension_numbers = #tpu.dot_dimension_numbers<[1], [0], [0], [1], [0, 0, 1, 1], [], []>} : vector<32x32xbf16>, vector<32x32xbf16>, vector<32x32xf32> -> vector<32x32xf32>
    %193 = arith.addf %181, %192 : vector<32x32xf32>
    %194 = vector.extract_strided_slice %105 {offsets = [0, 5], sizes = [32, 27], strides = [1, 1]} : vector<32x32xf32> to vector<32x27xf32>
    %cst_123 = arith.constant 0.000000e+00 : f32
    %195 = vector.broadcast %cst_123 : f32 to vector<32x5xf32>
    %196 = tpu.concatenate %194, %195 in 1 : vector<32x27xf32>, vector<32x5xf32> -> vector<32x32xf32>
    %c8_124 = arith.constant 8 : index
    %c0_125 = arith.constant 0 : index
    %c0_126 = arith.constant 0 : index
    %197 = vector.load %arg5[%c8_124, %c0_125, %c0_126] : memref<9x1x32xf32, #tpu.memory_space<vmem>>, vector<1x1x32xf32>
    %198 = vector.shape_cast %197 : vector<1x1x32xf32> to vector<1x32xf32>
    %199 = vector.broadcast %198 : vector<1x32xf32> to vector<32x32xf32>
    %200 = arith.mulf %196, %199 : vector<32x32xf32>
    %c8_127 = arith.constant 8 : index
    %c0_128 = arith.constant 0 : index
    %c0_129 = arith.constant 0 : index
    %201 = vector.load %arg3[%c8_127, %c0_128, %c0_129] : memref<9x32x32xbf16, #tpu.memory_space<vmem>>, vector<1x32x32xbf16>
    %202 = vector.shape_cast %201 : vector<1x32x32xbf16> to vector<32x32xbf16>
    %203 = arith.truncf %200 : vector<32x32xf32> to vector<32x32xbf16>
    %cst_130 = arith.constant dense<0.000000e+00> : vector<32x32xf32>
    %204 = tpu.matmul %202, %203, %cst_130 {dimension_numbers = #tpu.dot_dimension_numbers<[1], [0], [0], [1], [0, 0, 1, 1], [], []>} : vector<32x32xbf16>, vector<32x32xbf16>, vector<32x32xf32> -> vector<32x32xf32>
    %205 = arith.addf %193, %204 : vector<32x32xf32>
    %c0_131 = arith.constant 0 : index
    %c0_132 = arith.constant 0 : index
    %206 = vector.load %arg4[%c0_131, %c0_132] : memref<32x1xf32, #tpu.memory_space<vmem>>, vector<32x1xf32>
    %207 = vector.broadcast %206 : vector<32x1xf32> to vector<32x32xf32>
    %208 = arith.addf %205, %207 : vector<32x32xf32>
    %cst_133 = arith.constant 0.000000e+00 : f32
    %209 = vector.broadcast %cst_133 : f32 to vector<32x32xf32>
    %210 = arith.maximumf %208, %209 : vector<32x32xf32>
    %c0_134 = arith.constant 0 : index
    %c0_135 = arith.constant 0 : index
    %211 = vector.load %arg6[%c0_134, %c0_135] : memref<32x32xf32, #tpu.memory_space<vmem>>, vector<32x32xf32>
    tpu.vector_store %arg6[%c0_134, %c0_135], %210 {strides = array<i32>} : memref<32x32xf32, #tpu.memory_space<vmem>>, vector<32x32xf32>,
    return
  }
}

module attributes {stable_mosaic.version = 11 : i64} {
  func.func @_decoder_kernel(%arg0: memref<32x32xf32, #tpu.memory_space<vmem>>, %arg1: memref<16x128xf32, #tpu.memory_space<vmem>>, %arg2: memref<4x16x32xbf16, #tpu.memory_space<vmem>>, %arg3: memref<16x1xf32, #tpu.memory_space<vmem>>, %arg4: memref<4x32x128xf32, #tpu.memory_space<vmem>>, %arg5: memref<9x16x32xbf16, #tpu.memory_space<vmem>>, %arg6: memref<16x1xf32, #tpu.memory_space<vmem>>, %arg7: memref<9x16x16xbf16, #tpu.memory_space<vmem>>, %arg8: memref<16x1xf32, #tpu.memory_space<vmem>>, %arg9: memref<9x1x128xf32, #tpu.memory_space<vmem>>, %arg10: memref<16x128xf32, #tpu.memory_space<vmem>>) attributes {dimension_semantics = [], scalar_prefetch = 0 : i64, scratch_operands = 0 : i64, tpu.core_type = #tpu.core_type<tc>} {
    %c0 = arith.constant 0 : index
    %c0_0 = arith.constant 0 : index
    %0 = vector.load %arg0[%c0, %c0_0] : memref<32x32xf32, #tpu.memory_space<vmem>>, vector<32x32xf32>
    %1 = arith.truncf %0 : vector<32x32xf32> to vector<32x32xbf16>
    %c0_1 = arith.constant 0 : index
    %c0_2 = arith.constant 0 : index
    %c0_3 = arith.constant 0 : index
    %2 = vector.load %arg2[%c0_1, %c0_2, %c0_3] : memref<4x16x32xbf16, #tpu.memory_space<vmem>>, vector<1x16x32xbf16>
    %3 = vector.shape_cast %2 : vector<1x16x32xbf16> to vector<16x32xbf16>
    %cst = arith.constant dense<0.000000e+00> : vector<16x32xf32>
    %4 = tpu.matmul %3, %1, %cst {dimension_numbers = #tpu.dot_dimension_numbers<[1], [0], [0], [1], [0, 0, 1, 1], [], []>} : vector<16x32xbf16>, vector<32x32xbf16>, vector<16x32xf32> -> vector<16x32xf32>
    %c0_4 = arith.constant 0 : index
    %c0_5 = arith.constant 0 : index
    %c0_6 = arith.constant 0 : index
    %5 = vector.load %arg4[%c0_4, %c0_5, %c0_6] : memref<4x32x128xf32, #tpu.memory_space<vmem>>, vector<1x32x128xf32>
    %6 = vector.shape_cast %5 : vector<1x32x128xf32> to vector<32x128xf32>
    %cst_7 = arith.constant dense<0.000000e+00> : vector<16x128xf32>
    %7 = tpu.matmul %4, %6, %cst_7 {dimension_numbers = #tpu.dot_dimension_numbers<[1], [0], [0], [1], [0, 0, 1, 1], [], []>} : vector<16x32xf32>, vector<32x128xf32>, vector<16x128xf32> -> vector<16x128xf32>
    %c1 = arith.constant 1 : index
    %c0_8 = arith.constant 0 : index
    %c0_9 = arith.constant 0 : index
    %8 = vector.load %arg2[%c1, %c0_8, %c0_9] : memref<4x16x32xbf16, #tpu.memory_space<vmem>>, vector<1x16x32xbf16>
    %9 = vector.shape_cast %8 : vector<1x16x32xbf16> to vector<16x32xbf16>
    %cst_10 = arith.constant dense<0.000000e+00> : vector<16x32xf32>
    %10 = tpu.matmul %9, %1, %cst_10 {dimension_numbers = #tpu.dot_dimension_numbers<[1], [0], [0], [1], [0, 0, 1, 1], [], []>} : vector<16x32xbf16>, vector<32x32xbf16>, vector<16x32xf32> -> vector<16x32xf32>
    %c1_11 = arith.constant 1 : index
    %c0_12 = arith.constant 0 : index
    %c0_13 = arith.constant 0 : index
    %11 = vector.load %arg4[%c1_11, %c0_12, %c0_13] : memref<4x32x128xf32, #tpu.memory_space<vmem>>, vector<1x32x128xf32>
    %12 = vector.shape_cast %11 : vector<1x32x128xf32> to vector<32x128xf32>
    %cst_14 = arith.constant dense<0.000000e+00> : vector<16x128xf32>
    %13 = tpu.matmul %10, %12, %cst_14 {dimension_numbers = #tpu.dot_dimension_numbers<[1], [0], [0], [1], [0, 0, 1, 1], [], []>} : vector<16x32xf32>, vector<32x128xf32>, vector<16x128xf32> -> vector<16x128xf32>
    %14 = arith.addf %7, %13 : vector<16x128xf32>
    %c2 = arith.constant 2 : index
    %c0_15 = arith.constant 0 : index
    %c0_16 = arith.constant 0 : index
    %15 = vector.load %arg2[%c2, %c0_15, %c0_16] : memref<4x16x32xbf16, #tpu.memory_space<vmem>>, vector<1x16x32xbf16>
    %16 = vector.shape_cast %15 : vector<1x16x32xbf16> to vector<16x32xbf16>
    %cst_17 = arith.constant dense<0.000000e+00> : vector<16x32xf32>
    %17 = tpu.matmul %16, %1, %cst_17 {dimension_numbers = #tpu.dot_dimension_numbers<[1], [0], [0], [1], [0, 0, 1, 1], [], []>} : vector<16x32xbf16>, vector<32x32xbf16>, vector<16x32xf32> -> vector<16x32xf32>
    %c2_18 = arith.constant 2 : index
    %c0_19 = arith.constant 0 : index
    %c0_20 = arith.constant 0 : index
    %18 = vector.load %arg4[%c2_18, %c0_19, %c0_20] : memref<4x32x128xf32, #tpu.memory_space<vmem>>, vector<1x32x128xf32>
    %19 = vector.shape_cast %18 : vector<1x32x128xf32> to vector<32x128xf32>
    %cst_21 = arith.constant dense<0.000000e+00> : vector<16x128xf32>
    %20 = tpu.matmul %17, %19, %cst_21 {dimension_numbers = #tpu.dot_dimension_numbers<[1], [0], [0], [1], [0, 0, 1, 1], [], []>} : vector<16x32xf32>, vector<32x128xf32>, vector<16x128xf32> -> vector<16x128xf32>
    %21 = arith.addf %14, %20 : vector<16x128xf32>
    %c3 = arith.constant 3 : index
    %c0_22 = arith.constant 0 : index
    %c0_23 = arith.constant 0 : index
    %22 = vector.load %arg2[%c3, %c0_22, %c0_23] : memref<4x16x32xbf16, #tpu.memory_space<vmem>>, vector<1x16x32xbf16>
    %23 = vector.shape_cast %22 : vector<1x16x32xbf16> to vector<16x32xbf16>
    %cst_24 = arith.constant dense<0.000000e+00> : vector<16x32xf32>
    %24 = tpu.matmul %23, %1, %cst_24 {dimension_numbers = #tpu.dot_dimension_numbers<[1], [0], [0], [1], [0, 0, 1, 1], [], []>} : vector<16x32xbf16>, vector<32x32xbf16>, vector<16x32xf32> -> vector<16x32xf32>
    %c3_25 = arith.constant 3 : index
    %c0_26 = arith.constant 0 : index
    %c0_27 = arith.constant 0 : index
    %25 = vector.load %arg4[%c3_25, %c0_26, %c0_27] : memref<4x32x128xf32, #tpu.memory_space<vmem>>, vector<1x32x128xf32>
    %26 = vector.shape_cast %25 : vector<1x32x128xf32> to vector<32x128xf32>
    %cst_28 = arith.constant dense<0.000000e+00> : vector<16x128xf32>
    %27 = tpu.matmul %24, %26, %cst_28 {dimension_numbers = #tpu.dot_dimension_numbers<[1], [0], [0], [1], [0, 0, 1, 1], [], []>} : vector<16x32xf32>, vector<32x128xf32>, vector<16x128xf32> -> vector<16x128xf32>
    %28 = arith.addf %21, %27 : vector<16x128xf32>
    %c0_29 = arith.constant 0 : index
    %c0_30 = arith.constant 0 : index
    %29 = vector.load %arg3[%c0_29, %c0_30] : memref<16x1xf32, #tpu.memory_space<vmem>>, vector<16x1xf32>
    %30 = vector.broadcast %29 : vector<16x1xf32> to vector<16x128xf32>
    %31 = arith.addf %28, %30 : vector<16x128xf32>
    %c0_31 = arith.constant 0 : index
    %c0_32 = arith.constant 0 : index
    %32 = vector.load %arg1[%c0_31, %c0_32] : memref<16x128xf32, #tpu.memory_space<vmem>>, vector<16x128xf32>
    %33 = tpu.concatenate %32, %31 in 0 : vector<16x128xf32>, vector<16x128xf32> -> vector<32x128xf32>
    %cst_33 = arith.constant 0.000000e+00 : f32
    %34 = vector.broadcast %cst_33 : f32 to vector<32x9xf32>
    %35 = vector.extract_strided_slice %33 {offsets = [0, 0], sizes = [32, 119], strides = [1, 1]} : vector<32x128xf32> to vector<32x119xf32>
    %36 = tpu.concatenate %34, %35 in 1 : vector<32x9xf32>, vector<32x119xf32> -> vector<32x128xf32>
    %c0_34 = arith.constant 0 : index
    %c0_35 = arith.constant 0 : index
    %c0_36 = arith.constant 0 : index
    %37 = vector.load %arg9[%c0_34, %c0_35, %c0_36] : memref<9x1x128xf32, #tpu.memory_space<vmem>>, vector<1x1x128xf32>
    %38 = vector.shape_cast %37 : vector<1x1x128xf32> to vector<1x128xf32>
    %39 = vector.broadcast %38 : vector<1x128xf32> to vector<32x128xf32>
    %40 = arith.mulf %36, %39 : vector<32x128xf32>
    %c0_37 = arith.constant 0 : index
    %c0_38 = arith.constant 0 : index
    %c0_39 = arith.constant 0 : index
    %41 = vector.load %arg5[%c0_37, %c0_38, %c0_39] : memref<9x16x32xbf16, #tpu.memory_space<vmem>>, vector<1x16x32xbf16>
    %42 = vector.shape_cast %41 : vector<1x16x32xbf16> to vector<16x32xbf16>
    %43 = arith.truncf %40 : vector<32x128xf32> to vector<32x128xbf16>
    %cst_40 = arith.constant dense<0.000000e+00> : vector<16x128xf32>
    %44 = tpu.matmul %42, %43, %cst_40 {dimension_numbers = #tpu.dot_dimension_numbers<[1], [0], [0], [1], [0, 0, 1, 1], [], []>} : vector<16x32xbf16>, vector<32x128xbf16>, vector<16x128xf32> -> vector<16x128xf32>
    %cst_41 = arith.constant 0.000000e+00 : f32
    %45 = vector.broadcast %cst_41 : f32 to vector<32x8xf32>
    %46 = vector.extract_strided_slice %33 {offsets = [0, 0], sizes = [32, 120], strides = [1, 1]} : vector<32x128xf32> to vector<32x120xf32>
    %47 = tpu.concatenate %45, %46 in 1 : vector<32x8xf32>, vector<32x120xf32> -> vector<32x128xf32>
    %c1_42 = arith.constant 1 : index
    %c0_43 = arith.constant 0 : index
    %c0_44 = arith.constant 0 : index
    %48 = vector.load %arg9[%c1_42, %c0_43, %c0_44] : memref<9x1x128xf32, #tpu.memory_space<vmem>>, vector<1x1x128xf32>
    %49 = vector.shape_cast %48 : vector<1x1x128xf32> to vector<1x128xf32>
    %50 = vector.broadcast %49 : vector<1x128xf32> to vector<32x128xf32>
    %51 = arith.mulf %47, %50 : vector<32x128xf32>
    %c1_45 = arith.constant 1 : index
    %c0_46 = arith.constant 0 : index
    %c0_47 = arith.constant 0 : index
    %52 = vector.load %arg5[%c1_45, %c0_46, %c0_47] : memref<9x16x32xbf16, #tpu.memory_space<vmem>>, vector<1x16x32xbf16>
    %53 = vector.shape_cast %52 : vector<1x16x32xbf16> to vector<16x32xbf16>
    %54 = arith.truncf %51 : vector<32x128xf32> to vector<32x128xbf16>
    %cst_48 = arith.constant dense<0.000000e+00> : vector<16x128xf32>
    %55 = tpu.matmul %53, %54, %cst_48 {dimension_numbers = #tpu.dot_dimension_numbers<[1], [0], [0], [1], [0, 0, 1, 1], [], []>} : vector<16x32xbf16>, vector<32x128xbf16>, vector<16x128xf32> -> vector<16x128xf32>
    %56 = arith.addf %44, %55 : vector<16x128xf32>
    %cst_49 = arith.constant 0.000000e+00 : f32
    %57 = vector.broadcast %cst_49 : f32 to vector<32x7xf32>
    %58 = vector.extract_strided_slice %33 {offsets = [0, 0], sizes = [32, 121], strides = [1, 1]} : vector<32x128xf32> to vector<32x121xf32>
    %59 = tpu.concatenate %57, %58 in 1 : vector<32x7xf32>, vector<32x121xf32> -> vector<32x128xf32>
    %c2_50 = arith.constant 2 : index
    %c0_51 = arith.constant 0 : index
    %c0_52 = arith.constant 0 : index
    %60 = vector.load %arg9[%c2_50, %c0_51, %c0_52] : memref<9x1x128xf32, #tpu.memory_space<vmem>>, vector<1x1x128xf32>
    %61 = vector.shape_cast %60 : vector<1x1x128xf32> to vector<1x128xf32>
    %62 = vector.broadcast %61 : vector<1x128xf32> to vector<32x128xf32>
    %63 = arith.mulf %59, %62 : vector<32x128xf32>
    %c2_53 = arith.constant 2 : index
    %c0_54 = arith.constant 0 : index
    %c0_55 = arith.constant 0 : index
    %64 = vector.load %arg5[%c2_53, %c0_54, %c0_55] : memref<9x16x32xbf16, #tpu.memory_space<vmem>>, vector<1x16x32xbf16>
    %65 = vector.shape_cast %64 : vector<1x16x32xbf16> to vector<16x32xbf16>
    %66 = arith.truncf %63 : vector<32x128xf32> to vector<32x128xbf16>
    %cst_56 = arith.constant dense<0.000000e+00> : vector<16x128xf32>
    %67 = tpu.matmul %65, %66, %cst_56 {dimension_numbers = #tpu.dot_dimension_numbers<[1], [0], [0], [1], [0, 0, 1, 1], [], []>} : vector<16x32xbf16>, vector<32x128xbf16>, vector<16x128xf32> -> vector<16x128xf32>
    %68 = arith.addf %56, %67 : vector<16x128xf32>
    %cst_57 = arith.constant 0.000000e+00 : f32
    %69 = vector.broadcast %cst_57 : f32 to vector<32x1xf32>
    %70 = vector.extract_strided_slice %33 {offsets = [0, 0], sizes = [32, 127], strides = [1, 1]} : vector<32x128xf32> to vector<32x127xf32>
    %71 = tpu.concatenate %69, %70 in 1 : vector<32x1xf32>, vector<32x127xf32> -> vector<32x128xf32>
    %c3_58 = arith.constant 3 : index
    %c0_59 = arith.constant 0 : index
    %c0_60 = arith.constant 0 : index
    %72 = vector.load %arg9[%c3_58, %c0_59, %c0_60] : memref<9x1x128xf32, #tpu.memory_space<vmem>>, vector<1x1x128xf32>
    %73 = vector.shape_cast %72 : vector<1x1x128xf32> to vector<1x128xf32>
    %74 = vector.broadcast %73 : vector<1x128xf32> to vector<32x128xf32>
    %75 = arith.mulf %71, %74 : vector<32x128xf32>
    %c3_61 = arith.constant 3 : index
    %c0_62 = arith.constant 0 : index
    %c0_63 = arith.constant 0 : index
    %76 = vector.load %arg5[%c3_61, %c0_62, %c0_63] : memref<9x16x32xbf16, #tpu.memory_space<vmem>>, vector<1x16x32xbf16>
    %77 = vector.shape_cast %76 : vector<1x16x32xbf16> to vector<16x32xbf16>
    %78 = arith.truncf %75 : vector<32x128xf32> to vector<32x128xbf16>
    %cst_64 = arith.constant dense<0.000000e+00> : vector<16x128xf32>
    %79 = tpu.matmul %77, %78, %cst_64 {dimension_numbers = #tpu.dot_dimension_numbers<[1], [0], [0], [1], [0, 0, 1, 1], [], []>} : vector<16x32xbf16>, vector<32x128xbf16>, vector<16x128xf32> -> vector<16x128xf32>
    %80 = arith.addf %68, %79 : vector<16x128xf32>
    %c4 = arith.constant 4 : index
    %c0_65 = arith.constant 0 : index
    %c0_66 = arith.constant 0 : index
    %81 = vector.load %arg5[%c4, %c0_65, %c0_66] : memref<9x16x32xbf16, #tpu.memory_space<vmem>>, vector<1x16x32xbf16>
    %82 = vector.shape_cast %81 : vector<1x16x32xbf16> to vector<16x32xbf16>
    %83 = arith.truncf %33 : vector<32x128xf32> to vector<32x128xbf16>
    %cst_67 = arith.constant dense<0.000000e+00> : vector<16x128xf32>
    %84 = tpu.matmul %82, %83, %cst_67 {dimension_numbers = #tpu.dot_dimension_numbers<[1], [0], [0], [1], [0, 0, 1, 1], [], []>} : vector<16x32xbf16>, vector<32x128xbf16>, vector<16x128xf32> -> vector<16x128xf32>
    %85 = arith.addf %80, %84 : vector<16x128xf32>
    %86 = vector.extract_strided_slice %33 {offsets = [0, 1], sizes = [32, 127], strides = [1, 1]} : vector<32x128xf32> to vector<32x127xf32>
    %cst_68 = arith.constant 0.000000e+00 : f32
    %87 = vector.broadcast %cst_68 : f32 to vector<32x1xf32>
    %88 = tpu.concatenate %86, %87 in 1 : vector<32x127xf32>, vector<32x1xf32> -> vector<32x128xf32>
    %c5 = arith.constant 5 : index
    %c0_69 = arith.constant 0 : index
    %c0_70 = arith.constant 0 : index
    %89 = vector.load %arg9[%c5, %c0_69, %c0_70] : memref<9x1x128xf32, #tpu.memory_space<vmem>>, vector<1x1x128xf32>
    %90 = vector.shape_cast %89 : vector<1x1x128xf32> to vector<1x128xf32>
    %91 = vector.broadcast %90 : vector<1x128xf32> to vector<32x128xf32>
    %92 = arith.mulf %88, %91 : vector<32x128xf32>
    %c5_71 = arith.constant 5 : index
    %c0_72 = arith.constant 0 : index
    %c0_73 = arith.constant 0 : index
    %93 = vector.load %arg5[%c5_71, %c0_72, %c0_73] : memref<9x16x32xbf16, #tpu.memory_space<vmem>>, vector<1x16x32xbf16>
    %94 = vector.shape_cast %93 : vector<1x16x32xbf16> to vector<16x32xbf16>
    %95 = arith.truncf %92 : vector<32x128xf32> to vector<32x128xbf16>
    %cst_74 = arith.constant dense<0.000000e+00> : vector<16x128xf32>
    %96 = tpu.matmul %94, %95, %cst_74 {dimension_numbers = #tpu.dot_dimension_numbers<[1], [0], [0], [1], [0, 0, 1, 1], [], []>} : vector<16x32xbf16>, vector<32x128xbf16>, vector<16x128xf32> -> vector<16x128xf32>
    %97 = arith.addf %85, %96 : vector<16x128xf32>
    %98 = vector.extract_strided_slice %33 {offsets = [0, 7], sizes = [32, 121], strides = [1, 1]} : vector<32x128xf32> to vector<32x121xf32>
    %cst_75 = arith.constant 0.000000e+00 : f32
    %99 = vector.broadcast %cst_75 : f32 to vector<32x7xf32>
    %100 = tpu.concatenate %98, %99 in 1 : vector<32x121xf32>, vector<32x7xf32> -> vector<32x128xf32>
    %c6 = arith.constant 6 : index
    %c0_76 = arith.constant 0 : index
    %c0_77 = arith.constant 0 : index
    %101 = vector.load %arg9[%c6, %c0_76, %c0_77] : memref<9x1x128xf32, #tpu.memory_space<vmem>>, vector<1x1x128xf32>
    %102 = vector.shape_cast %101 : vector<1x1x128xf32> to vector<1x128xf32>
    %103 = vector.broadcast %102 : vector<1x128xf32> to vector<32x128xf32>
    %104 = arith.mulf %100, %103 : vector<32x128xf32>
    %c6_78 = arith.constant 6 : index
    %c0_79 = arith.constant 0 : index
    %c0_80 = arith.constant 0 : index
    %105 = vector.load %arg5[%c6_78, %c0_79, %c0_80] : memref<9x16x32xbf16, #tpu.memory_space<vmem>>, vector<1x16x32xbf16>
    %106 = vector.shape_cast %105 : vector<1x16x32xbf16> to vector<16x32xbf16>
    %107 = arith.truncf %104 : vector<32x128xf32> to vector<32x128xbf16>
    %cst_81 = arith.constant dense<0.000000e+00> : vector<16x128xf32>
    %108 = tpu.matmul %106, %107, %cst_81 {dimension_numbers = #tpu.dot_dimension_numbers<[1], [0], [0], [1], [0, 0, 1, 1], [], []>} : vector<16x32xbf16>, vector<32x128xbf16>, vector<16x128xf32> -> vector<16x128xf32>
    %109 = arith.addf %97, %108 : vector<16x128xf32>
    %110 = vector.extract_strided_slice %33 {offsets = [0, 8], sizes = [32, 120], strides = [1, 1]} : vector<32x128xf32> to vector<32x120xf32>
    %cst_82 = arith.constant 0.000000e+00 : f32
    %111 = vector.broadcast %cst_82 : f32 to vector<32x8xf32>
    %112 = tpu.concatenate %110, %111 in 1 : vector<32x120xf32>, vector<32x8xf32> -> vector<32x128xf32>
    %c7 = arith.constant 7 : index
    %c0_83 = arith.constant 0 : index
    %c0_84 = arith.constant 0 : index
    %113 = vector.load %arg9[%c7, %c0_83, %c0_84] : memref<9x1x128xf32, #tpu.memory_space<vmem>>, vector<1x1x128xf32>
    %114 = vector.shape_cast %113 : vector<1x1x128xf32> to vector<1x128xf32>
    %115 = vector.broadcast %114 : vector<1x128xf32> to vector<32x128xf32>
    %116 = arith.mulf %112, %115 : vector<32x128xf32>
    %c7_85 = arith.constant 7 : index
    %c0_86 = arith.constant 0 : index
    %c0_87 = arith.constant 0 : index
    %117 = vector.load %arg5[%c7_85, %c0_86, %c0_87] : memref<9x16x32xbf16, #tpu.memory_space<vmem>>, vector<1x16x32xbf16>
    %118 = vector.shape_cast %117 : vector<1x16x32xbf16> to vector<16x32xbf16>
    %119 = arith.truncf %116 : vector<32x128xf32> to vector<32x128xbf16>
    %cst_88 = arith.constant dense<0.000000e+00> : vector<16x128xf32>
    %120 = tpu.matmul %118, %119, %cst_88 {dimension_numbers = #tpu.dot_dimension_numbers<[1], [0], [0], [1], [0, 0, 1, 1], [], []>} : vector<16x32xbf16>, vector<32x128xbf16>, vector<16x128xf32> -> vector<16x128xf32>
    %121 = arith.addf %109, %120 : vector<16x128xf32>
    %122 = vector.extract_strided_slice %33 {offsets = [0, 9], sizes = [32, 119], strides = [1, 1]} : vector<32x128xf32> to vector<32x119xf32>
    %cst_89 = arith.constant 0.000000e+00 : f32
    %123 = vector.broadcast %cst_89 : f32 to vector<32x9xf32>
    %124 = tpu.concatenate %122, %123 in 1 : vector<32x119xf32>, vector<32x9xf32> -> vector<32x128xf32>
    %c8 = arith.constant 8 : index
    %c0_90 = arith.constant 0 : index
    %c0_91 = arith.constant 0 : index
    %125 = vector.load %arg9[%c8, %c0_90, %c0_91] : memref<9x1x128xf32, #tpu.memory_space<vmem>>, vector<1x1x128xf32>
    %126 = vector.shape_cast %125 : vector<1x1x128xf32> to vector<1x128xf32>
    %127 = vector.broadcast %126 : vector<1x128xf32> to vector<32x128xf32>
    %128 = arith.mulf %124, %127 : vector<32x128xf32>
    %c8_92 = arith.constant 8 : index
    %c0_93 = arith.constant 0 : index
    %c0_94 = arith.constant 0 : index
    %129 = vector.load %arg5[%c8_92, %c0_93, %c0_94] : memref<9x16x32xbf16, #tpu.memory_space<vmem>>, vector<1x16x32xbf16>
    %130 = vector.shape_cast %129 : vector<1x16x32xbf16> to vector<16x32xbf16>
    %131 = arith.truncf %128 : vector<32x128xf32> to vector<32x128xbf16>
    %cst_95 = arith.constant dense<0.000000e+00> : vector<16x128xf32>
    %132 = tpu.matmul %130, %131, %cst_95 {dimension_numbers = #tpu.dot_dimension_numbers<[1], [0], [0], [1], [0, 0, 1, 1], [], []>} : vector<16x32xbf16>, vector<32x128xbf16>, vector<16x128xf32> -> vector<16x128xf32>
    %133 = arith.addf %121, %132 : vector<16x128xf32>
    %c0_96 = arith.constant 0 : index
    %c0_97 = arith.constant 0 : index
    %134 = vector.load %arg6[%c0_96, %c0_97] : memref<16x1xf32, #tpu.memory_space<vmem>>, vector<16x1xf32>
    %135 = vector.broadcast %134 : vector<16x1xf32> to vector<16x128xf32>
    %136 = arith.addf %133, %135 : vector<16x128xf32>
    %cst_98 = arith.constant 0.000000e+00 : f32
    %137 = vector.broadcast %cst_98 : f32 to vector<16x128xf32>
    %138 = arith.maximumf %136, %137 : vector<16x128xf32>
    %cst_99 = arith.constant 0.000000e+00 : f32
    %139 = vector.broadcast %cst_99 : f32 to vector<16x9xf32>
    %140 = vector.extract_strided_slice %138 {offsets = [0, 0], sizes = [16, 119], strides = [1, 1]} : vector<16x128xf32> to vector<16x119xf32>
    %141 = tpu.concatenate %139, %140 in 1 : vector<16x9xf32>, vector<16x119xf32> -> vector<16x128xf32>
    %c0_100 = arith.constant 0 : index
    %c0_101 = arith.constant 0 : index
    %c0_102 = arith.constant 0 : index
    %142 = vector.load %arg9[%c0_100, %c0_101, %c0_102] : memref<9x1x128xf32, #tpu.memory_space<vmem>>, vector<1x1x128xf32>
    %143 = vector.shape_cast %142 : vector<1x1x128xf32> to vector<1x128xf32>
    %144 = vector.broadcast %143 : vector<1x128xf32> to vector<16x128xf32>
    %145 = arith.mulf %141, %144 : vector<16x128xf32>
    %c0_103 = arith.constant 0 : index
    %c0_104 = arith.constant 0 : index
    %c0_105 = arith.constant 0 : index
    %146 = vector.load %arg7[%c0_103, %c0_104, %c0_105] : memref<9x16x16xbf16, #tpu.memory_space<vmem>>, vector<1x16x16xbf16>
    %147 = vector.shape_cast %146 : vector<1x16x16xbf16> to vector<16x16xbf16>
    %148 = arith.truncf %145 : vector<16x128xf32> to vector<16x128xbf16>
    %cst_106 = arith.constant dense<0.000000e+00> : vector<16x128xf32>
    %149 = tpu.matmul %147, %148, %cst_106 {dimension_numbers = #tpu.dot_dimension_numbers<[1], [0], [0], [1], [0, 0, 1, 1], [], []>} : vector<16x16xbf16>, vector<16x128xbf16>, vector<16x128xf32> -> vector<16x128xf32>
    %cst_107 = arith.constant 0.000000e+00 : f32
    %150 = vector.broadcast %cst_107 : f32 to vector<16x8xf32>
    %151 = vector.extract_strided_slice %138 {offsets = [0, 0], sizes = [16, 120], strides = [1, 1]} : vector<16x128xf32> to vector<16x120xf32>
    %152 = tpu.concatenate %150, %151 in 1 : vector<16x8xf32>, vector<16x120xf32> -> vector<16x128xf32>
    %c1_108 = arith.constant 1 : index
    %c0_109 = arith.constant 0 : index
    %c0_110 = arith.constant 0 : index
    %153 = vector.load %arg9[%c1_108, %c0_109, %c0_110] : memref<9x1x128xf32, #tpu.memory_space<vmem>>, vector<1x1x128xf32>
    %154 = vector.shape_cast %153 : vector<1x1x128xf32> to vector<1x128xf32>
    %155 = vector.broadcast %154 : vector<1x128xf32> to vector<16x128xf32>
    %156 = arith.mulf %152, %155 : vector<16x128xf32>
    %c1_111 = arith.constant 1 : index
    %c0_112 = arith.constant 0 : index
    %c0_113 = arith.constant 0 : index
    %157 = vector.load %arg7[%c1_111, %c0_112, %c0_113] : memref<9x16x16xbf16, #tpu.memory_space<vmem>>, vector<1x16x16xbf16>
    %158 = vector.shape_cast %157 : vector<1x16x16xbf16> to vector<16x16xbf16>
    %159 = arith.truncf %156 : vector<16x128xf32> to vector<16x128xbf16>
    %cst_114 = arith.constant dense<0.000000e+00> : vector<16x128xf32>
    %160 = tpu.matmul %158, %159, %cst_114 {dimension_numbers = #tpu.dot_dimension_numbers<[1], [0], [0], [1], [0, 0, 1, 1], [], []>} : vector<16x16xbf16>, vector<16x128xbf16>, vector<16x128xf32> -> vector<16x128xf32>
    %161 = arith.addf %149, %160 : vector<16x128xf32>
    %cst_115 = arith.constant 0.000000e+00 : f32
    %162 = vector.broadcast %cst_115 : f32 to vector<16x7xf32>
    %163 = vector.extract_strided_slice %138 {offsets = [0, 0], sizes = [16, 121], strides = [1, 1]} : vector<16x128xf32> to vector<16x121xf32>
    %164 = tpu.concatenate %162, %163 in 1 : vector<16x7xf32>, vector<16x121xf32> -> vector<16x128xf32>
    %c2_116 = arith.constant 2 : index
    %c0_117 = arith.constant 0 : index
    %c0_118 = arith.constant 0 : index
    %165 = vector.load %arg9[%c2_116, %c0_117, %c0_118] : memref<9x1x128xf32, #tpu.memory_space<vmem>>, vector<1x1x128xf32>
    %166 = vector.shape_cast %165 : vector<1x1x128xf32> to vector<1x128xf32>
    %167 = vector.broadcast %166 : vector<1x128xf32> to vector<16x128xf32>
    %168 = arith.mulf %164, %167 : vector<16x128xf32>
    %c2_119 = arith.constant 2 : index
    %c0_120 = arith.constant 0 : index
    %c0_121 = arith.constant 0 : index
    %169 = vector.load %arg7[%c2_119, %c0_120, %c0_121] : memref<9x16x16xbf16, #tpu.memory_space<vmem>>, vector<1x16x16xbf16>
    %170 = vector.shape_cast %169 : vector<1x16x16xbf16> to vector<16x16xbf16>
    %171 = arith.truncf %168 : vector<16x128xf32> to vector<16x128xbf16>
    %cst_122 = arith.constant dense<0.000000e+00> : vector<16x128xf32>
    %172 = tpu.matmul %170, %171, %cst_122 {dimension_numbers = #tpu.dot_dimension_numbers<[1], [0], [0], [1], [0, 0, 1, 1], [], []>} : vector<16x16xbf16>, vector<16x128xbf16>, vector<16x128xf32> -> vector<16x128xf32>
    %173 = arith.addf %161, %172 : vector<16x128xf32>
    %cst_123 = arith.constant 0.000000e+00 : f32
    %174 = vector.broadcast %cst_123 : f32 to vector<16x1xf32>
    %175 = vector.extract_strided_slice %138 {offsets = [0, 0], sizes = [16, 127], strides = [1, 1]} : vector<16x128xf32> to vector<16x127xf32>
    %176 = tpu.concatenate %174, %175 in 1 : vector<16x1xf32>, vector<16x127xf32> -> vector<16x128xf32>
    %c3_124 = arith.constant 3 : index
    %c0_125 = arith.constant 0 : index
    %c0_126 = arith.constant 0 : index
    %177 = vector.load %arg9[%c3_124, %c0_125, %c0_126] : memref<9x1x128xf32, #tpu.memory_space<vmem>>, vector<1x1x128xf32>
    %178 = vector.shape_cast %177 : vector<1x1x128xf32> to vector<1x128xf32>
    %179 = vector.broadcast %178 : vector<1x128xf32> to vector<16x128xf32>
    %180 = arith.mulf %176, %179 : vector<16x128xf32>
    %c3_127 = arith.constant 3 : index
    %c0_128 = arith.constant 0 : index
    %c0_129 = arith.constant 0 : index
    %181 = vector.load %arg7[%c3_127, %c0_128, %c0_129] : memref<9x16x16xbf16, #tpu.memory_space<vmem>>, vector<1x16x16xbf16>
    %182 = vector.shape_cast %181 : vector<1x16x16xbf16> to vector<16x16xbf16>
    %183 = arith.truncf %180 : vector<16x128xf32> to vector<16x128xbf16>
    %cst_130 = arith.constant dense<0.000000e+00> : vector<16x128xf32>
    %184 = tpu.matmul %182, %183, %cst_130 {dimension_numbers = #tpu.dot_dimension_numbers<[1], [0], [0], [1], [0, 0, 1, 1], [], []>} : vector<16x16xbf16>, vector<16x128xbf16>, vector<16x128xf32> -> vector<16x128xf32>
    %185 = arith.addf %173, %184 : vector<16x128xf32>
    %c4_131 = arith.constant 4 : index
    %c0_132 = arith.constant 0 : index
    %c0_133 = arith.constant 0 : index
    %186 = vector.load %arg7[%c4_131, %c0_132, %c0_133] : memref<9x16x16xbf16, #tpu.memory_space<vmem>>, vector<1x16x16xbf16>
    %187 = vector.shape_cast %186 : vector<1x16x16xbf16> to vector<16x16xbf16>
    %188 = arith.truncf %138 : vector<16x128xf32> to vector<16x128xbf16>
    %cst_134 = arith.constant dense<0.000000e+00> : vector<16x128xf32>
    %189 = tpu.matmul %187, %188, %cst_134 {dimension_numbers = #tpu.dot_dimension_numbers<[1], [0], [0], [1], [0, 0, 1, 1], [], []>} : vector<16x16xbf16>, vector<16x128xbf16>, vector<16x128xf32> -> vector<16x128xf32>
    %190 = arith.addf %185, %189 : vector<16x128xf32>
    %191 = vector.extract_strided_slice %138 {offsets = [0, 1], sizes = [16, 127], strides = [1, 1]} : vector<16x128xf32> to vector<16x127xf32>
    %cst_135 = arith.constant 0.000000e+00 : f32
    %192 = vector.broadcast %cst_135 : f32 to vector<16x1xf32>
    %193 = tpu.concatenate %191, %192 in 1 : vector<16x127xf32>, vector<16x1xf32> -> vector<16x128xf32>
    %c5_136 = arith.constant 5 : index
    %c0_137 = arith.constant 0 : index
    %c0_138 = arith.constant 0 : index
    %194 = vector.load %arg9[%c5_136, %c0_137, %c0_138] : memref<9x1x128xf32, #tpu.memory_space<vmem>>, vector<1x1x128xf32>
    %195 = vector.shape_cast %194 : vector<1x1x128xf32> to vector<1x128xf32>
    %196 = vector.broadcast %195 : vector<1x128xf32> to vector<16x128xf32>
    %197 = arith.mulf %193, %196 : vector<16x128xf32>
    %c5_139 = arith.constant 5 : index
    %c0_140 = arith.constant 0 : index
    %c0_141 = arith.constant 0 : index
    %198 = vector.load %arg7[%c5_139, %c0_140, %c0_141] : memref<9x16x16xbf16, #tpu.memory_space<vmem>>, vector<1x16x16xbf16>
    %199 = vector.shape_cast %198 : vector<1x16x16xbf16> to vector<16x16xbf16>
    %200 = arith.truncf %197 : vector<16x128xf32> to vector<16x128xbf16>
    %cst_142 = arith.constant dense<0.000000e+00> : vector<16x128xf32>
    %201 = tpu.matmul %199, %200, %cst_142 {dimension_numbers = #tpu.dot_dimension_numbers<[1], [0], [0], [1], [0, 0, 1, 1], [], []>} : vector<16x16xbf16>, vector<16x128xbf16>, vector<16x128xf32> -> vector<16x128xf32>
    %202 = arith.addf %190, %201 : vector<16x128xf32>
    %203 = vector.extract_strided_slice %138 {offsets = [0, 7], sizes = [16, 121], strides = [1, 1]} : vector<16x128xf32> to vector<16x121xf32>
    %cst_143 = arith.constant 0.000000e+00 : f32
    %204 = vector.broadcast %cst_143 : f32 to vector<16x7xf32>
    %205 = tpu.concatenate %203, %204 in 1 : vector<16x121xf32>, vector<16x7xf32> -> vector<16x128xf32>
    %c6_144 = arith.constant 6 : index
    %c0_145 = arith.constant 0 : index
    %c0_146 = arith.constant 0 : index
    %206 = vector.load %arg9[%c6_144, %c0_145, %c0_146] : memref<9x1x128xf32, #tpu.memory_space<vmem>>, vector<1x1x128xf32>
    %207 = vector.shape_cast %206 : vector<1x1x128xf32> to vector<1x128xf32>
    %208 = vector.broadcast %207 : vector<1x128xf32> to vector<16x128xf32>
    %209 = arith.mulf %205, %208 : vector<16x128xf32>
    %c6_147 = arith.constant 6 : index
    %c0_148 = arith.constant 0 : index
    %c0_149 = arith.constant 0 : index
    %210 = vector.load %arg7[%c6_147, %c0_148, %c0_149] : memref<9x16x16xbf16, #tpu.memory_space<vmem>>, vector<1x16x16xbf16>
    %211 = vector.shape_cast %210 : vector<1x16x16xbf16> to vector<16x16xbf16>
    %212 = arith.truncf %209 : vector<16x128xf32> to vector<16x128xbf16>
    %cst_150 = arith.constant dense<0.000000e+00> : vector<16x128xf32>
    %213 = tpu.matmul %211, %212, %cst_150 {dimension_numbers = #tpu.dot_dimension_numbers<[1], [0], [0], [1], [0, 0, 1, 1], [], []>} : vector<16x16xbf16>, vector<16x128xbf16>, vector<16x128xf32> -> vector<16x128xf32>
    %214 = arith.addf %202, %213 : vector<16x128xf32>
    %215 = vector.extract_strided_slice %138 {offsets = [0, 8], sizes = [16, 120], strides = [1, 1]} : vector<16x128xf32> to vector<16x120xf32>
    %cst_151 = arith.constant 0.000000e+00 : f32
    %216 = vector.broadcast %cst_151 : f32 to vector<16x8xf32>
    %217 = tpu.concatenate %215, %216 in 1 : vector<16x120xf32>, vector<16x8xf32> -> vector<16x128xf32>
    %c7_152 = arith.constant 7 : index
    %c0_153 = arith.constant 0 : index
    %c0_154 = arith.constant 0 : index
    %218 = vector.load %arg9[%c7_152, %c0_153, %c0_154] : memref<9x1x128xf32, #tpu.memory_space<vmem>>, vector<1x1x128xf32>
    %219 = vector.shape_cast %218 : vector<1x1x128xf32> to vector<1x128xf32>
    %220 = vector.broadcast %219 : vector<1x128xf32> to vector<16x128xf32>
    %221 = arith.mulf %217, %220 : vector<16x128xf32>
    %c7_155 = arith.constant 7 : index
    %c0_156 = arith.constant 0 : index
    %c0_157 = arith.constant 0 : index
    %222 = vector.load %arg7[%c7_155, %c0_156, %c0_157] : memref<9x16x16xbf16, #tpu.memory_space<vmem>>, vector<1x16x16xbf16>
    %223 = vector.shape_cast %222 : vector<1x16x16xbf16> to vector<16x16xbf16>
    %224 = arith.truncf %221 : vector<16x128xf32> to vector<16x128xbf16>
    %cst_158 = arith.constant dense<0.000000e+00> : vector<16x128xf32>
    %225 = tpu.matmul %223, %224, %cst_158 {dimension_numbers = #tpu.dot_dimension_numbers<[1], [0], [0], [1], [0, 0, 1, 1], [], []>} : vector<16x16xbf16>, vector<16x128xbf16>, vector<16x128xf32> -> vector<16x128xf32>
    %226 = arith.addf %214, %225 : vector<16x128xf32>
    %227 = vector.extract_strided_slice %138 {offsets = [0, 9], sizes = [16, 119], strides = [1, 1]} : vector<16x128xf32> to vector<16x119xf32>
    %cst_159 = arith.constant 0.000000e+00 : f32
    %228 = vector.broadcast %cst_159 : f32 to vector<16x9xf32>
    %229 = tpu.concatenate %227, %228 in 1 : vector<16x119xf32>, vector<16x9xf32> -> vector<16x128xf32>
    %c8_160 = arith.constant 8 : index
    %c0_161 = arith.constant 0 : index
    %c0_162 = arith.constant 0 : index
    %230 = vector.load %arg9[%c8_160, %c0_161, %c0_162] : memref<9x1x128xf32, #tpu.memory_space<vmem>>, vector<1x1x128xf32>
    %231 = vector.shape_cast %230 : vector<1x1x128xf32> to vector<1x128xf32>
    %232 = vector.broadcast %231 : vector<1x128xf32> to vector<16x128xf32>
    %233 = arith.mulf %229, %232 : vector<16x128xf32>
    %c8_163 = arith.constant 8 : index
    %c0_164 = arith.constant 0 : index
    %c0_165 = arith.constant 0 : index
    %234 = vector.load %arg7[%c8_163, %c0_164, %c0_165] : memref<9x16x16xbf16, #tpu.memory_space<vmem>>, vector<1x16x16xbf16>
    %235 = vector.shape_cast %234 : vector<1x16x16xbf16> to vector<16x16xbf16>
    %236 = arith.truncf %233 : vector<16x128xf32> to vector<16x128xbf16>
    %cst_166 = arith.constant dense<0.000000e+00> : vector<16x128xf32>
    %237 = tpu.matmul %235, %236, %cst_166 {dimension_numbers = #tpu.dot_dimension_numbers<[1], [0], [0], [1], [0, 0, 1, 1], [], []>} : vector<16x16xbf16>, vector<16x128xbf16>, vector<16x128xf32> -> vector<16x128xf32>
    %238 = arith.addf %226, %237 : vector<16x128xf32>
    %c0_167 = arith.constant 0 : index
    %c0_168 = arith.constant 0 : index
    %239 = vector.load %arg8[%c0_167, %c0_168] : memref<16x1xf32, #tpu.memory_space<vmem>>, vector<16x1xf32>
    %240 = vector.broadcast %239 : vector<16x1xf32> to vector<16x128xf32>
    %241 = arith.addf %238, %240 : vector<16x128xf32>
    %cst_169 = arith.constant 0.000000e+00 : f32
    %242 = vector.broadcast %cst_169 : f32 to vector<16x128xf32>
    %243 = arith.maximumf %241, %242 : vector<16x128xf32>
    %c0_170 = arith.constant 0 : index
    %c0_171 = arith.constant 0 : index
    %244 = vector.load %arg10[%c0_170, %c0_171] : memref<16x128xf32, #tpu.memory_space<vmem>>, vector<16x128xf32>
    tpu.vector_store %arg10[%c0_170, %c0_171], %243 {strides = array<i32>} : memref<16x128xf32, #tpu.memory_space<vmem>>, vector<16x128xf32>,
    return
  }
}

module attributes {stable_mosaic.version = 11 : i64} {
  func.func @_decoder_kernel(%arg0: memref<16x128xf32, #tpu.memory_space<vmem>>, %arg1: memref<8x512xf32, #tpu.memory_space<vmem>>, %arg2: memref<4x8x16xbf16, #tpu.memory_space<vmem>>, %arg3: memref<8x1xf32, #tpu.memory_space<vmem>>, %arg4: memref<4x128x512xf32, #tpu.memory_space<vmem>>, %arg5: memref<9x8x16xbf16, #tpu.memory_space<vmem>>, %arg6: memref<8x1xf32, #tpu.memory_space<vmem>>, %arg7: memref<9x8x8xbf16, #tpu.memory_space<vmem>>, %arg8: memref<8x1xf32, #tpu.memory_space<vmem>>, %arg9: memref<9x1x512xf32, #tpu.memory_space<vmem>>, %arg10: memref<1x8xbf16, #tpu.memory_space<vmem>>, %arg11: memref<1x1xf32, #tpu.memory_space<vmem>>, %arg12: memref<1x512xf32, #tpu.memory_space<vmem>>) attributes {dimension_semantics = [], scalar_prefetch = 0 : i64, scratch_operands = 0 : i64, tpu.core_type = #tpu.core_type<tc>} {
    %c0 = arith.constant 0 : index
    %c0_0 = arith.constant 0 : index
    %0 = vector.load %arg0[%c0, %c0_0] : memref<16x128xf32, #tpu.memory_space<vmem>>, vector<16x128xf32>
    %1 = arith.truncf %0 : vector<16x128xf32> to vector<16x128xbf16>
    %c0_1 = arith.constant 0 : index
    %c0_2 = arith.constant 0 : index
    %c0_3 = arith.constant 0 : index
    %2 = vector.load %arg2[%c0_1, %c0_2, %c0_3] : memref<4x8x16xbf16, #tpu.memory_space<vmem>>, vector<1x8x16xbf16>
    %3 = vector.shape_cast %2 : vector<1x8x16xbf16> to vector<8x16xbf16>
    %cst = arith.constant dense<0.000000e+00> : vector<8x128xf32>
    %4 = tpu.matmul %3, %1, %cst {dimension_numbers = #tpu.dot_dimension_numbers<[1], [0], [0], [1], [0, 0, 1, 1], [], []>} : vector<8x16xbf16>, vector<16x128xbf16>, vector<8x128xf32> -> vector<8x128xf32>
    %c0_4 = arith.constant 0 : index
    %c0_5 = arith.constant 0 : index
    %c0_6 = arith.constant 0 : index
    %5 = vector.load %arg4[%c0_4, %c0_5, %c0_6] : memref<4x128x512xf32, #tpu.memory_space<vmem>>, vector<1x128x512xf32>
    %6 = vector.shape_cast %5 : vector<1x128x512xf32> to vector<128x512xf32>
    %cst_7 = arith.constant dense<0.000000e+00> : vector<8x512xf32>
    %7 = tpu.matmul %4, %6, %cst_7 {dimension_numbers = #tpu.dot_dimension_numbers<[1], [0], [0], [1], [0, 0, 1, 1], [], []>} : vector<8x128xf32>, vector<128x512xf32>, vector<8x512xf32> -> vector<8x512xf32>
    %c1 = arith.constant 1 : index
    %c0_8 = arith.constant 0 : index
    %c0_9 = arith.constant 0 : index
    %8 = vector.load %arg2[%c1, %c0_8, %c0_9] : memref<4x8x16xbf16, #tpu.memory_space<vmem>>, vector<1x8x16xbf16>
    %9 = vector.shape_cast %8 : vector<1x8x16xbf16> to vector<8x16xbf16>
    %cst_10 = arith.constant dense<0.000000e+00> : vector<8x128xf32>
    %10 = tpu.matmul %9, %1, %cst_10 {dimension_numbers = #tpu.dot_dimension_numbers<[1], [0], [0], [1], [0, 0, 1, 1], [], []>} : vector<8x16xbf16>, vector<16x128xbf16>, vector<8x128xf32> -> vector<8x128xf32>
    %c1_11 = arith.constant 1 : index
    %c0_12 = arith.constant 0 : index
    %c0_13 = arith.constant 0 : index
    %11 = vector.load %arg4[%c1_11, %c0_12, %c0_13] : memref<4x128x512xf32, #tpu.memory_space<vmem>>, vector<1x128x512xf32>
    %12 = vector.shape_cast %11 : vector<1x128x512xf32> to vector<128x512xf32>
    %cst_14 = arith.constant dense<0.000000e+00> : vector<8x512xf32>
    %13 = tpu.matmul %10, %12, %cst_14 {dimension_numbers = #tpu.dot_dimension_numbers<[1], [0], [0], [1], [0, 0, 1, 1], [], []>} : vector<8x128xf32>, vector<128x512xf32>, vector<8x512xf32> -> vector<8x512xf32>
    %14 = arith.addf %7, %13 : vector<8x512xf32>
    %c2 = arith.constant 2 : index
    %c0_15 = arith.constant 0 : index
    %c0_16 = arith.constant 0 : index
    %15 = vector.load %arg2[%c2, %c0_15, %c0_16] : memref<4x8x16xbf16, #tpu.memory_space<vmem>>, vector<1x8x16xbf16>
    %16 = vector.shape_cast %15 : vector<1x8x16xbf16> to vector<8x16xbf16>
    %cst_17 = arith.constant dense<0.000000e+00> : vector<8x128xf32>
    %17 = tpu.matmul %16, %1, %cst_17 {dimension_numbers = #tpu.dot_dimension_numbers<[1], [0], [0], [1], [0, 0, 1, 1], [], []>} : vector<8x16xbf16>, vector<16x128xbf16>, vector<8x128xf32> -> vector<8x128xf32>
    %c2_18 = arith.constant 2 : index
    %c0_19 = arith.constant 0 : index
    %c0_20 = arith.constant 0 : index
    %18 = vector.load %arg4[%c2_18, %c0_19, %c0_20] : memref<4x128x512xf32, #tpu.memory_space<vmem>>, vector<1x128x512xf32>
    %19 = vector.shape_cast %18 : vector<1x128x512xf32> to vector<128x512xf32>
    %cst_21 = arith.constant dense<0.000000e+00> : vector<8x512xf32>
    %20 = tpu.matmul %17, %19, %cst_21 {dimension_numbers = #tpu.dot_dimension_numbers<[1], [0], [0], [1], [0, 0, 1, 1], [], []>} : vector<8x128xf32>, vector<128x512xf32>, vector<8x512xf32> -> vector<8x512xf32>
    %21 = arith.addf %14, %20 : vector<8x512xf32>
    %c3 = arith.constant 3 : index
    %c0_22 = arith.constant 0 : index
    %c0_23 = arith.constant 0 : index
    %22 = vector.load %arg2[%c3, %c0_22, %c0_23] : memref<4x8x16xbf16, #tpu.memory_space<vmem>>, vector<1x8x16xbf16>
    %23 = vector.shape_cast %22 : vector<1x8x16xbf16> to vector<8x16xbf16>
    %cst_24 = arith.constant dense<0.000000e+00> : vector<8x128xf32>
    %24 = tpu.matmul %23, %1, %cst_24 {dimension_numbers = #tpu.dot_dimension_numbers<[1], [0], [0], [1], [0, 0, 1, 1], [], []>} : vector<8x16xbf16>, vector<16x128xbf16>, vector<8x128xf32> -> vector<8x128xf32>
    %c3_25 = arith.constant 3 : index
    %c0_26 = arith.constant 0 : index
    %c0_27 = arith.constant 0 : index
    %25 = vector.load %arg4[%c3_25, %c0_26, %c0_27] : memref<4x128x512xf32, #tpu.memory_space<vmem>>, vector<1x128x512xf32>
    %26 = vector.shape_cast %25 : vector<1x128x512xf32> to vector<128x512xf32>
    %cst_28 = arith.constant dense<0.000000e+00> : vector<8x512xf32>
    %27 = tpu.matmul %24, %26, %cst_28 {dimension_numbers = #tpu.dot_dimension_numbers<[1], [0], [0], [1], [0, 0, 1, 1], [], []>} : vector<8x128xf32>, vector<128x512xf32>, vector<8x512xf32> -> vector<8x512xf32>
    %28 = arith.addf %21, %27 : vector<8x512xf32>
    %c0_29 = arith.constant 0 : index
    %c0_30 = arith.constant 0 : index
    %29 = vector.load %arg3[%c0_29, %c0_30] : memref<8x1xf32, #tpu.memory_space<vmem>>, vector<8x1xf32>
    %30 = vector.broadcast %29 : vector<8x1xf32> to vector<8x512xf32>
    %31 = arith.addf %28, %30 : vector<8x512xf32>
    %c0_31 = arith.constant 0 : index
    %c0_32 = arith.constant 0 : index
    %32 = vector.load %arg1[%c0_31, %c0_32] : memref<8x512xf32, #tpu.memory_space<vmem>>, vector<8x512xf32>
    %33 = tpu.concatenate %32, %31 in 0 : vector<8x512xf32>, vector<8x512xf32> -> vector<16x512xf32>
    %cst_33 = arith.constant 0.000000e+00 : f32
    %34 = vector.broadcast %cst_33 : f32 to vector<16x17xf32>
    %35 = vector.extract_strided_slice %33 {offsets = [0, 0], sizes = [16, 495], strides = [1, 1]} : vector<16x512xf32> to vector<16x495xf32>
    %36 = tpu.concatenate %34, %35 in 1 : vector<16x17xf32>, vector<16x495xf32> -> vector<16x512xf32>
    %c0_34 = arith.constant 0 : index
    %c0_35 = arith.constant 0 : index
    %c0_36 = arith.constant 0 : index
    %37 = vector.load %arg9[%c0_34, %c0_35, %c0_36] : memref<9x1x512xf32, #tpu.memory_space<vmem>>, vector<1x1x512xf32>
    %38 = vector.shape_cast %37 : vector<1x1x512xf32> to vector<1x512xf32>
    %39 = vector.broadcast %38 : vector<1x512xf32> to vector<16x512xf32>
    %40 = arith.mulf %36, %39 : vector<16x512xf32>
    %c0_37 = arith.constant 0 : index
    %c0_38 = arith.constant 0 : index
    %c0_39 = arith.constant 0 : index
    %41 = vector.load %arg5[%c0_37, %c0_38, %c0_39] : memref<9x8x16xbf16, #tpu.memory_space<vmem>>, vector<1x8x16xbf16>
    %42 = vector.shape_cast %41 : vector<1x8x16xbf16> to vector<8x16xbf16>
    %43 = arith.truncf %40 : vector<16x512xf32> to vector<16x512xbf16>
    %cst_40 = arith.constant dense<0.000000e+00> : vector<8x512xf32>
    %44 = tpu.matmul %42, %43, %cst_40 {dimension_numbers = #tpu.dot_dimension_numbers<[1], [0], [0], [1], [0, 0, 1, 1], [], []>} : vector<8x16xbf16>, vector<16x512xbf16>, vector<8x512xf32> -> vector<8x512xf32>
    %cst_41 = arith.constant 0.000000e+00 : f32
    %45 = vector.broadcast %cst_41 : f32 to vector<16x16xf32>
    %46 = vector.extract_strided_slice %33 {offsets = [0, 0], sizes = [16, 496], strides = [1, 1]} : vector<16x512xf32> to vector<16x496xf32>
    %47 = tpu.concatenate %45, %46 in 1 : vector<16x16xf32>, vector<16x496xf32> -> vector<16x512xf32>
    %c1_42 = arith.constant 1 : index
    %c0_43 = arith.constant 0 : index
    %c0_44 = arith.constant 0 : index
    %48 = vector.load %arg9[%c1_42, %c0_43, %c0_44] : memref<9x1x512xf32, #tpu.memory_space<vmem>>, vector<1x1x512xf32>
    %49 = vector.shape_cast %48 : vector<1x1x512xf32> to vector<1x512xf32>
    %50 = vector.broadcast %49 : vector<1x512xf32> to vector<16x512xf32>
    %51 = arith.mulf %47, %50 : vector<16x512xf32>
    %c1_45 = arith.constant 1 : index
    %c0_46 = arith.constant 0 : index
    %c0_47 = arith.constant 0 : index
    %52 = vector.load %arg5[%c1_45, %c0_46, %c0_47] : memref<9x8x16xbf16, #tpu.memory_space<vmem>>, vector<1x8x16xbf16>
    %53 = vector.shape_cast %52 : vector<1x8x16xbf16> to vector<8x16xbf16>
    %54 = arith.truncf %51 : vector<16x512xf32> to vector<16x512xbf16>
    %cst_48 = arith.constant dense<0.000000e+00> : vector<8x512xf32>
    %55 = tpu.matmul %53, %54, %cst_48 {dimension_numbers = #tpu.dot_dimension_numbers<[1], [0], [0], [1], [0, 0, 1, 1], [], []>} : vector<8x16xbf16>, vector<16x512xbf16>, vector<8x512xf32> -> vector<8x512xf32>
    %56 = arith.addf %44, %55 : vector<8x512xf32>
    %cst_49 = arith.constant 0.000000e+00 : f32
    %57 = vector.broadcast %cst_49 : f32 to vector<16x15xf32>
    %58 = vector.extract_strided_slice %33 {offsets = [0, 0], sizes = [16, 497], strides = [1, 1]} : vector<16x512xf32> to vector<16x497xf32>
    %59 = tpu.concatenate %57, %58 in 1 : vector<16x15xf32>, vector<16x497xf32> -> vector<16x512xf32>
    %c2_50 = arith.constant 2 : index
    %c0_51 = arith.constant 0 : index
    %c0_52 = arith.constant 0 : index
    %60 = vector.load %arg9[%c2_50, %c0_51, %c0_52] : memref<9x1x512xf32, #tpu.memory_space<vmem>>, vector<1x1x512xf32>
    %61 = vector.shape_cast %60 : vector<1x1x512xf32> to vector<1x512xf32>
    %62 = vector.broadcast %61 : vector<1x512xf32> to vector<16x512xf32>
    %63 = arith.mulf %59, %62 : vector<16x512xf32>
    %c2_53 = arith.constant 2 : index
    %c0_54 = arith.constant 0 : index
    %c0_55 = arith.constant 0 : index
    %64 = vector.load %arg5[%c2_53, %c0_54, %c0_55] : memref<9x8x16xbf16, #tpu.memory_space<vmem>>, vector<1x8x16xbf16>
    %65 = vector.shape_cast %64 : vector<1x8x16xbf16> to vector<8x16xbf16>
    %66 = arith.truncf %63 : vector<16x512xf32> to vector<16x512xbf16>
    %cst_56 = arith.constant dense<0.000000e+00> : vector<8x512xf32>
    %67 = tpu.matmul %65, %66, %cst_56 {dimension_numbers = #tpu.dot_dimension_numbers<[1], [0], [0], [1], [0, 0, 1, 1], [], []>} : vector<8x16xbf16>, vector<16x512xbf16>, vector<8x512xf32> -> vector<8x512xf32>
    %68 = arith.addf %56, %67 : vector<8x512xf32>
    %cst_57 = arith.constant 0.000000e+00 : f32
    %69 = vector.broadcast %cst_57 : f32 to vector<16x1xf32>
    %70 = vector.extract_strided_slice %33 {offsets = [0, 0], sizes = [16, 511], strides = [1, 1]} : vector<16x512xf32> to vector<16x511xf32>
    %71 = tpu.concatenate %69, %70 in 1 : vector<16x1xf32>, vector<16x511xf32> -> vector<16x512xf32>
    %c3_58 = arith.constant 3 : index
    %c0_59 = arith.constant 0 : index
    %c0_60 = arith.constant 0 : index
    %72 = vector.load %arg9[%c3_58, %c0_59, %c0_60] : memref<9x1x512xf32, #tpu.memory_space<vmem>>, vector<1x1x512xf32>
    %73 = vector.shape_cast %72 : vector<1x1x512xf32> to vector<1x512xf32>
    %74 = vector.broadcast %73 : vector<1x512xf32> to vector<16x512xf32>
    %75 = arith.mulf %71, %74 : vector<16x512xf32>
    %c3_61 = arith.constant 3 : index
    %c0_62 = arith.constant 0 : index
    %c0_63 = arith.constant 0 : index
    %76 = vector.load %arg5[%c3_61, %c0_62, %c0_63] : memref<9x8x16xbf16, #tpu.memory_space<vmem>>, vector<1x8x16xbf16>
    %77 = vector.shape_cast %76 : vector<1x8x16xbf16> to vector<8x16xbf16>
    %78 = arith.truncf %75 : vector<16x512xf32> to vector<16x512xbf16>
    %cst_64 = arith.constant dense<0.000000e+00> : vector<8x512xf32>
    %79 = tpu.matmul %77, %78, %cst_64 {dimension_numbers = #tpu.dot_dimension_numbers<[1], [0], [0], [1], [0, 0, 1, 1], [], []>} : vector<8x16xbf16>, vector<16x512xbf16>, vector<8x512xf32> -> vector<8x512xf32>
    %80 = arith.addf %68, %79 : vector<8x512xf32>
    %c4 = arith.constant 4 : index
    %c0_65 = arith.constant 0 : index
    %c0_66 = arith.constant 0 : index
    %81 = vector.load %arg5[%c4, %c0_65, %c0_66] : memref<9x8x16xbf16, #tpu.memory_space<vmem>>, vector<1x8x16xbf16>
    %82 = vector.shape_cast %81 : vector<1x8x16xbf16> to vector<8x16xbf16>
    %83 = arith.truncf %33 : vector<16x512xf32> to vector<16x512xbf16>
    %cst_67 = arith.constant dense<0.000000e+00> : vector<8x512xf32>
    %84 = tpu.matmul %82, %83, %cst_67 {dimension_numbers = #tpu.dot_dimension_numbers<[1], [0], [0], [1], [0, 0, 1, 1], [], []>} : vector<8x16xbf16>, vector<16x512xbf16>, vector<8x512xf32> -> vector<8x512xf32>
    %85 = arith.addf %80, %84 : vector<8x512xf32>
    %86 = vector.extract_strided_slice %33 {offsets = [0, 1], sizes = [16, 511], strides = [1, 1]} : vector<16x512xf32> to vector<16x511xf32>
    %cst_68 = arith.constant 0.000000e+00 : f32
    %87 = vector.broadcast %cst_68 : f32 to vector<16x1xf32>
    %88 = tpu.concatenate %86, %87 in 1 : vector<16x511xf32>, vector<16x1xf32> -> vector<16x512xf32>
    %c5 = arith.constant 5 : index
    %c0_69 = arith.constant 0 : index
    %c0_70 = arith.constant 0 : index
    %89 = vector.load %arg9[%c5, %c0_69, %c0_70] : memref<9x1x512xf32, #tpu.memory_space<vmem>>, vector<1x1x512xf32>
    %90 = vector.shape_cast %89 : vector<1x1x512xf32> to vector<1x512xf32>
    %91 = vector.broadcast %90 : vector<1x512xf32> to vector<16x512xf32>
    %92 = arith.mulf %88, %91 : vector<16x512xf32>
    %c5_71 = arith.constant 5 : index
    %c0_72 = arith.constant 0 : index
    %c0_73 = arith.constant 0 : index
    %93 = vector.load %arg5[%c5_71, %c0_72, %c0_73] : memref<9x8x16xbf16, #tpu.memory_space<vmem>>, vector<1x8x16xbf16>
    %94 = vector.shape_cast %93 : vector<1x8x16xbf16> to vector<8x16xbf16>
    %95 = arith.truncf %92 : vector<16x512xf32> to vector<16x512xbf16>
    %cst_74 = arith.constant dense<0.000000e+00> : vector<8x512xf32>
    %96 = tpu.matmul %94, %95, %cst_74 {dimension_numbers = #tpu.dot_dimension_numbers<[1], [0], [0], [1], [0, 0, 1, 1], [], []>} : vector<8x16xbf16>, vector<16x512xbf16>, vector<8x512xf32> -> vector<8x512xf32>
    %97 = arith.addf %85, %96 : vector<8x512xf32>
    %98 = vector.extract_strided_slice %33 {offsets = [0, 15], sizes = [16, 497], strides = [1, 1]} : vector<16x512xf32> to vector<16x497xf32>
    %cst_75 = arith.constant 0.000000e+00 : f32
    %99 = vector.broadcast %cst_75 : f32 to vector<16x15xf32>
    %100 = tpu.concatenate %98, %99 in 1 : vector<16x497xf32>, vector<16x15xf32> -> vector<16x512xf32>
    %c6 = arith.constant 6 : index
    %c0_76 = arith.constant 0 : index
    %c0_77 = arith.constant 0 : index
    %101 = vector.load %arg9[%c6, %c0_76, %c0_77] : memref<9x1x512xf32, #tpu.memory_space<vmem>>, vector<1x1x512xf32>
    %102 = vector.shape_cast %101 : vector<1x1x512xf32> to vector<1x512xf32>
    %103 = vector.broadcast %102 : vector<1x512xf32> to vector<16x512xf32>
    %104 = arith.mulf %100, %103 : vector<16x512xf32>
    %c6_78 = arith.constant 6 : index
    %c0_79 = arith.constant 0 : index
    %c0_80 = arith.constant 0 : index
    %105 = vector.load %arg5[%c6_78, %c0_79, %c0_80] : memref<9x8x16xbf16, #tpu.memory_space<vmem>>, vector<1x8x16xbf16>
    %106 = vector.shape_cast %105 : vector<1x8x16xbf16> to vector<8x16xbf16>
    %107 = arith.truncf %104 : vector<16x512xf32> to vector<16x512xbf16>
    %cst_81 = arith.constant dense<0.000000e+00> : vector<8x512xf32>
    %108 = tpu.matmul %106, %107, %cst_81 {dimension_numbers = #tpu.dot_dimension_numbers<[1], [0], [0], [1], [0, 0, 1, 1], [], []>} : vector<8x16xbf16>, vector<16x512xbf16>, vector<8x512xf32> -> vector<8x512xf32>
    %109 = arith.addf %97, %108 : vector<8x512xf32>
    %110 = vector.extract_strided_slice %33 {offsets = [0, 16], sizes = [16, 496], strides = [1, 1]} : vector<16x512xf32> to vector<16x496xf32>
    %cst_82 = arith.constant 0.000000e+00 : f32
    %111 = vector.broadcast %cst_82 : f32 to vector<16x16xf32>
    %112 = tpu.concatenate %110, %111 in 1 : vector<16x496xf32>, vector<16x16xf32> -> vector<16x512xf32>
    %c7 = arith.constant 7 : index
    %c0_83 = arith.constant 0 : index
    %c0_84 = arith.constant 0 : index
    %113 = vector.load %arg9[%c7, %c0_83, %c0_84] : memref<9x1x512xf32, #tpu.memory_space<vmem>>, vector<1x1x512xf32>
    %114 = vector.shape_cast %113 : vector<1x1x512xf32> to vector<1x512xf32>
    %115 = vector.broadcast %114 : vector<1x512xf32> to vector<16x512xf32>
    %116 = arith.mulf %112, %115 : vector<16x512xf32>
    %c7_85 = arith.constant 7 : index
    %c0_86 = arith.constant 0 : index
    %c0_87 = arith.constant 0 : index
    %117 = vector.load %arg5[%c7_85, %c0_86, %c0_87] : memref<9x8x16xbf16, #tpu.memory_space<vmem>>, vector<1x8x16xbf16>
    %118 = vector.shape_cast %117 : vector<1x8x16xbf16> to vector<8x16xbf16>
    %119 = arith.truncf %116 : vector<16x512xf32> to vector<16x512xbf16>
    %cst_88 = arith.constant dense<0.000000e+00> : vector<8x512xf32>
    %120 = tpu.matmul %118, %119, %cst_88 {dimension_numbers = #tpu.dot_dimension_numbers<[1], [0], [0], [1], [0, 0, 1, 1], [], []>} : vector<8x16xbf16>, vector<16x512xbf16>, vector<8x512xf32> -> vector<8x512xf32>
    %121 = arith.addf %109, %120 : vector<8x512xf32>
    %122 = vector.extract_strided_slice %33 {offsets = [0, 17], sizes = [16, 495], strides = [1, 1]} : vector<16x512xf32> to vector<16x495xf32>
    %cst_89 = arith.constant 0.000000e+00 : f32
    %123 = vector.broadcast %cst_89 : f32 to vector<16x17xf32>
    %124 = tpu.concatenate %122, %123 in 1 : vector<16x495xf32>, vector<16x17xf32> -> vector<16x512xf32>
    %c8 = arith.constant 8 : index
    %c0_90 = arith.constant 0 : index
    %c0_91 = arith.constant 0 : index
    %125 = vector.load %arg9[%c8, %c0_90, %c0_91] : memref<9x1x512xf32, #tpu.memory_space<vmem>>, vector<1x1x512xf32>
    %126 = vector.shape_cast %125 : vector<1x1x512xf32> to vector<1x512xf32>
    %127 = vector.broadcast %126 : vector<1x512xf32> to vector<16x512xf32>
    %128 = arith.mulf %124, %127 : vector<16x512xf32>
    %c8_92 = arith.constant 8 : index
    %c0_93 = arith.constant 0 : index
    %c0_94 = arith.constant 0 : index
    %129 = vector.load %arg5[%c8_92, %c0_93, %c0_94] : memref<9x8x16xbf16, #tpu.memory_space<vmem>>, vector<1x8x16xbf16>
    %130 = vector.shape_cast %129 : vector<1x8x16xbf16> to vector<8x16xbf16>
    %131 = arith.truncf %128 : vector<16x512xf32> to vector<16x512xbf16>
    %cst_95 = arith.constant dense<0.000000e+00> : vector<8x512xf32>
    %132 = tpu.matmul %130, %131, %cst_95 {dimension_numbers = #tpu.dot_dimension_numbers<[1], [0], [0], [1], [0, 0, 1, 1], [], []>} : vector<8x16xbf16>, vector<16x512xbf16>, vector<8x512xf32> -> vector<8x512xf32>
    %133 = arith.addf %121, %132 : vector<8x512xf32>
    %c0_96 = arith.constant 0 : index
    %c0_97 = arith.constant 0 : index
    %134 = vector.load %arg6[%c0_96, %c0_97] : memref<8x1xf32, #tpu.memory_space<vmem>>, vector<8x1xf32>
    %135 = vector.broadcast %134 : vector<8x1xf32> to vector<8x512xf32>
    %136 = arith.addf %133, %135 : vector<8x512xf32>
    %cst_98 = arith.constant 0.000000e+00 : f32
    %137 = vector.broadcast %cst_98 : f32 to vector<8x512xf32>
    %138 = arith.maximumf %136, %137 : vector<8x512xf32>
    %cst_99 = arith.constant 0.000000e+00 : f32
    %139 = vector.broadcast %cst_99 : f32 to vector<8x17xf32>
    %140 = vector.extract_strided_slice %138 {offsets = [0, 0], sizes = [8, 495], strides = [1, 1]} : vector<8x512xf32> to vector<8x495xf32>
    %141 = tpu.concatenate %139, %140 in 1 : vector<8x17xf32>, vector<8x495xf32> -> vector<8x512xf32>
    %c0_100 = arith.constant 0 : index
    %c0_101 = arith.constant 0 : index
    %c0_102 = arith.constant 0 : index
    %142 = vector.load %arg9[%c0_100, %c0_101, %c0_102] : memref<9x1x512xf32, #tpu.memory_space<vmem>>, vector<1x1x512xf32>
    %143 = vector.shape_cast %142 : vector<1x1x512xf32> to vector<1x512xf32>
    %144 = vector.broadcast %143 : vector<1x512xf32> to vector<8x512xf32>
    %145 = arith.mulf %141, %144 : vector<8x512xf32>
    %c0_103 = arith.constant 0 : index
    %c0_104 = arith.constant 0 : index
    %c0_105 = arith.constant 0 : index
    %146 = vector.load %arg7[%c0_103, %c0_104, %c0_105] : memref<9x8x8xbf16, #tpu.memory_space<vmem>>, vector<1x8x8xbf16>
    %147 = vector.shape_cast %146 : vector<1x8x8xbf16> to vector<8x8xbf16>
    %148 = arith.truncf %145 : vector<8x512xf32> to vector<8x512xbf16>
    %cst_106 = arith.constant dense<0.000000e+00> : vector<8x512xf32>
    %149 = tpu.matmul %147, %148, %cst_106 {dimension_numbers = #tpu.dot_dimension_numbers<[1], [0], [0], [1], [0, 0, 1, 1], [], []>} : vector<8x8xbf16>, vector<8x512xbf16>, vector<8x512xf32> -> vector<8x512xf32>
    %cst_107 = arith.constant 0.000000e+00 : f32
    %150 = vector.broadcast %cst_107 : f32 to vector<8x16xf32>
    %151 = vector.extract_strided_slice %138 {offsets = [0, 0], sizes = [8, 496], strides = [1, 1]} : vector<8x512xf32> to vector<8x496xf32>
    %152 = tpu.concatenate %150, %151 in 1 : vector<8x16xf32>, vector<8x496xf32> -> vector<8x512xf32>
    %c1_108 = arith.constant 1 : index
    %c0_109 = arith.constant 0 : index
    %c0_110 = arith.constant 0 : index
    %153 = vector.load %arg9[%c1_108, %c0_109, %c0_110] : memref<9x1x512xf32, #tpu.memory_space<vmem>>, vector<1x1x512xf32>
    %154 = vector.shape_cast %153 : vector<1x1x512xf32> to vector<1x512xf32>
    %155 = vector.broadcast %154 : vector<1x512xf32> to vector<8x512xf32>
    %156 = arith.mulf %152, %155 : vector<8x512xf32>
    %c1_111 = arith.constant 1 : index
    %c0_112 = arith.constant 0 : index
    %c0_113 = arith.constant 0 : index
    %157 = vector.load %arg7[%c1_111, %c0_112, %c0_113] : memref<9x8x8xbf16, #tpu.memory_space<vmem>>, vector<1x8x8xbf16>
    %158 = vector.shape_cast %157 : vector<1x8x8xbf16> to vector<8x8xbf16>
    %159 = arith.truncf %156 : vector<8x512xf32> to vector<8x512xbf16>
    %cst_114 = arith.constant dense<0.000000e+00> : vector<8x512xf32>
    %160 = tpu.matmul %158, %159, %cst_114 {dimension_numbers = #tpu.dot_dimension_numbers<[1], [0], [0], [1], [0, 0, 1, 1], [], []>} : vector<8x8xbf16>, vector<8x512xbf16>, vector<8x512xf32> -> vector<8x512xf32>
    %161 = arith.addf %149, %160 : vector<8x512xf32>
    %cst_115 = arith.constant 0.000000e+00 : f32
    %162 = vector.broadcast %cst_115 : f32 to vector<8x15xf32>
    %163 = vector.extract_strided_slice %138 {offsets = [0, 0], sizes = [8, 497], strides = [1, 1]} : vector<8x512xf32> to vector<8x497xf32>
    %164 = tpu.concatenate %162, %163 in 1 : vector<8x15xf32>, vector<8x497xf32> -> vector<8x512xf32>
    %c2_116 = arith.constant 2 : index
    %c0_117 = arith.constant 0 : index
    %c0_118 = arith.constant 0 : index
    %165 = vector.load %arg9[%c2_116, %c0_117, %c0_118] : memref<9x1x512xf32, #tpu.memory_space<vmem>>, vector<1x1x512xf32>
    %166 = vector.shape_cast %165 : vector<1x1x512xf32> to vector<1x512xf32>
    %167 = vector.broadcast %166 : vector<1x512xf32> to vector<8x512xf32>
    %168 = arith.mulf %164, %167 : vector<8x512xf32>
    %c2_119 = arith.constant 2 : index
    %c0_120 = arith.constant 0 : index
    %c0_121 = arith.constant 0 : index
    %169 = vector.load %arg7[%c2_119, %c0_120, %c0_121] : memref<9x8x8xbf16, #tpu.memory_space<vmem>>, vector<1x8x8xbf16>
    %170 = vector.shape_cast %169 : vector<1x8x8xbf16> to vector<8x8xbf16>
    %171 = arith.truncf %168 : vector<8x512xf32> to vector<8x512xbf16>
    %cst_122 = arith.constant dense<0.000000e+00> : vector<8x512xf32>
    %172 = tpu.matmul %170, %171, %cst_122 {dimension_numbers = #tpu.dot_dimension_numbers<[1], [0], [0], [1], [0, 0, 1, 1], [], []>} : vector<8x8xbf16>, vector<8x512xbf16>, vector<8x512xf32> -> vector<8x512xf32>
    %173 = arith.addf %161, %172 : vector<8x512xf32>
    %cst_123 = arith.constant 0.000000e+00 : f32
    %174 = vector.broadcast %cst_123 : f32 to vector<8x1xf32>
    %175 = vector.extract_strided_slice %138 {offsets = [0, 0], sizes = [8, 511], strides = [1, 1]} : vector<8x512xf32> to vector<8x511xf32>
    %176 = tpu.concatenate %174, %175 in 1 : vector<8x1xf32>, vector<8x511xf32> -> vector<8x512xf32>
    %c3_124 = arith.constant 3 : index
    %c0_125 = arith.constant 0 : index
    %c0_126 = arith.constant 0 : index
    %177 = vector.load %arg9[%c3_124, %c0_125, %c0_126] : memref<9x1x512xf32, #tpu.memory_space<vmem>>, vector<1x1x512xf32>
    %178 = vector.shape_cast %177 : vector<1x1x512xf32> to vector<1x512xf32>
    %179 = vector.broadcast %178 : vector<1x512xf32> to vector<8x512xf32>
    %180 = arith.mulf %176, %179 : vector<8x512xf32>
    %c3_127 = arith.constant 3 : index
    %c0_128 = arith.constant 0 : index
    %c0_129 = arith.constant 0 : index
    %181 = vector.load %arg7[%c3_127, %c0_128, %c0_129] : memref<9x8x8xbf16, #tpu.memory_space<vmem>>, vector<1x8x8xbf16>
    %182 = vector.shape_cast %181 : vector<1x8x8xbf16> to vector<8x8xbf16>
    %183 = arith.truncf %180 : vector<8x512xf32> to vector<8x512xbf16>
    %cst_130 = arith.constant dense<0.000000e+00> : vector<8x512xf32>
    %184 = tpu.matmul %182, %183, %cst_130 {dimension_numbers = #tpu.dot_dimension_numbers<[1], [0], [0], [1], [0, 0, 1, 1], [], []>} : vector<8x8xbf16>, vector<8x512xbf16>, vector<8x512xf32> -> vector<8x512xf32>
    %185 = arith.addf %173, %184 : vector<8x512xf32>
    %c4_131 = arith.constant 4 : index
    %c0_132 = arith.constant 0 : index
    %c0_133 = arith.constant 0 : index
    %186 = vector.load %arg7[%c4_131, %c0_132, %c0_133] : memref<9x8x8xbf16, #tpu.memory_space<vmem>>, vector<1x8x8xbf16>
    %187 = vector.shape_cast %186 : vector<1x8x8xbf16> to vector<8x8xbf16>
    %188 = arith.truncf %138 : vector<8x512xf32> to vector<8x512xbf16>
    %cst_134 = arith.constant dense<0.000000e+00> : vector<8x512xf32>
    %189 = tpu.matmul %187, %188, %cst_134 {dimension_numbers = #tpu.dot_dimension_numbers<[1], [0], [0], [1], [0, 0, 1, 1], [], []>} : vector<8x8xbf16>, vector<8x512xbf16>, vector<8x512xf32> -> vector<8x512xf32>
    %190 = arith.addf %185, %189 : vector<8x512xf32>
    %191 = vector.extract_strided_slice %138 {offsets = [0, 1], sizes = [8, 511], strides = [1, 1]} : vector<8x512xf32> to vector<8x511xf32>
    %cst_135 = arith.constant 0.000000e+00 : f32
    %192 = vector.broadcast %cst_135 : f32 to vector<8x1xf32>
    %193 = tpu.concatenate %191, %192 in 1 : vector<8x511xf32>, vector<8x1xf32> -> vector<8x512xf32>
    %c5_136 = arith.constant 5 : index
    %c0_137 = arith.constant 0 : index
    %c0_138 = arith.constant 0 : index
    %194 = vector.load %arg9[%c5_136, %c0_137, %c0_138] : memref<9x1x512xf32, #tpu.memory_space<vmem>>, vector<1x1x512xf32>
    %195 = vector.shape_cast %194 : vector<1x1x512xf32> to vector<1x512xf32>
    %196 = vector.broadcast %195 : vector<1x512xf32> to vector<8x512xf32>
    %197 = arith.mulf %193, %196 : vector<8x512xf32>
    %c5_139 = arith.constant 5 : index
    %c0_140 = arith.constant 0 : index
    %c0_141 = arith.constant 0 : index
    %198 = vector.load %arg7[%c5_139, %c0_140, %c0_141] : memref<9x8x8xbf16, #tpu.memory_space<vmem>>, vector<1x8x8xbf16>
    %199 = vector.shape_cast %198 : vector<1x8x8xbf16> to vector<8x8xbf16>
    %200 = arith.truncf %197 : vector<8x512xf32> to vector<8x512xbf16>
    %cst_142 = arith.constant dense<0.000000e+00> : vector<8x512xf32>
    %201 = tpu.matmul %199, %200, %cst_142 {dimension_numbers = #tpu.dot_dimension_numbers<[1], [0], [0], [1], [0, 0, 1, 1], [], []>} : vector<8x8xbf16>, vector<8x512xbf16>, vector<8x512xf32> -> vector<8x512xf32>
    %202 = arith.addf %190, %201 : vector<8x512xf32>
    %203 = vector.extract_strided_slice %138 {offsets = [0, 15], sizes = [8, 497], strides = [1, 1]} : vector<8x512xf32> to vector<8x497xf32>
    %cst_143 = arith.constant 0.000000e+00 : f32
    %204 = vector.broadcast %cst_143 : f32 to vector<8x15xf32>
    %205 = tpu.concatenate %203, %204 in 1 : vector<8x497xf32>, vector<8x15xf32> -> vector<8x512xf32>
    %c6_144 = arith.constant 6 : index
    %c0_145 = arith.constant 0 : index
    %c0_146 = arith.constant 0 : index
    %206 = vector.load %arg9[%c6_144, %c0_145, %c0_146] : memref<9x1x512xf32, #tpu.memory_space<vmem>>, vector<1x1x512xf32>
    %207 = vector.shape_cast %206 : vector<1x1x512xf32> to vector<1x512xf32>
    %208 = vector.broadcast %207 : vector<1x512xf32> to vector<8x512xf32>
    %209 = arith.mulf %205, %208 : vector<8x512xf32>
    %c6_147 = arith.constant 6 : index
    %c0_148 = arith.constant 0 : index
    %c0_149 = arith.constant 0 : index
    %210 = vector.load %arg7[%c6_147, %c0_148, %c0_149] : memref<9x8x8xbf16, #tpu.memory_space<vmem>>, vector<1x8x8xbf16>
    %211 = vector.shape_cast %210 : vector<1x8x8xbf16> to vector<8x8xbf16>
    %212 = arith.truncf %209 : vector<8x512xf32> to vector<8x512xbf16>
    %cst_150 = arith.constant dense<0.000000e+00> : vector<8x512xf32>
    %213 = tpu.matmul %211, %212, %cst_150 {dimension_numbers = #tpu.dot_dimension_numbers<[1], [0], [0], [1], [0, 0, 1, 1], [], []>} : vector<8x8xbf16>, vector<8x512xbf16>, vector<8x512xf32> -> vector<8x512xf32>
    %214 = arith.addf %202, %213 : vector<8x512xf32>
    %215 = vector.extract_strided_slice %138 {offsets = [0, 16], sizes = [8, 496], strides = [1, 1]} : vector<8x512xf32> to vector<8x496xf32>
    %cst_151 = arith.constant 0.000000e+00 : f32
    %216 = vector.broadcast %cst_151 : f32 to vector<8x16xf32>
    %217 = tpu.concatenate %215, %216 in 1 : vector<8x496xf32>, vector<8x16xf32> -> vector<8x512xf32>
    %c7_152 = arith.constant 7 : index
    %c0_153 = arith.constant 0 : index
    %c0_154 = arith.constant 0 : index
    %218 = vector.load %arg9[%c7_152, %c0_153, %c0_154] : memref<9x1x512xf32, #tpu.memory_space<vmem>>, vector<1x1x512xf32>
    %219 = vector.shape_cast %218 : vector<1x1x512xf32> to vector<1x512xf32>
    %220 = vector.broadcast %219 : vector<1x512xf32> to vector<8x512xf32>
    %221 = arith.mulf %217, %220 : vector<8x512xf32>
    %c7_155 = arith.constant 7 : index
    %c0_156 = arith.constant 0 : index
    %c0_157 = arith.constant 0 : index
    %222 = vector.load %arg7[%c7_155, %c0_156, %c0_157] : memref<9x8x8xbf16, #tpu.memory_space<vmem>>, vector<1x8x8xbf16>
    %223 = vector.shape_cast %222 : vector<1x8x8xbf16> to vector<8x8xbf16>
    %224 = arith.truncf %221 : vector<8x512xf32> to vector<8x512xbf16>
    %cst_158 = arith.constant dense<0.000000e+00> : vector<8x512xf32>
    %225 = tpu.matmul %223, %224, %cst_158 {dimension_numbers = #tpu.dot_dimension_numbers<[1], [0], [0], [1], [0, 0, 1, 1], [], []>} : vector<8x8xbf16>, vector<8x512xbf16>, vector<8x512xf32> -> vector<8x512xf32>
    %226 = arith.addf %214, %225 : vector<8x512xf32>
    %227 = vector.extract_strided_slice %138 {offsets = [0, 17], sizes = [8, 495], strides = [1, 1]} : vector<8x512xf32> to vector<8x495xf32>
    %cst_159 = arith.constant 0.000000e+00 : f32
    %228 = vector.broadcast %cst_159 : f32 to vector<8x17xf32>
    %229 = tpu.concatenate %227, %228 in 1 : vector<8x495xf32>, vector<8x17xf32> -> vector<8x512xf32>
    %c8_160 = arith.constant 8 : index
    %c0_161 = arith.constant 0 : index
    %c0_162 = arith.constant 0 : index
    %230 = vector.load %arg9[%c8_160, %c0_161, %c0_162] : memref<9x1x512xf32, #tpu.memory_space<vmem>>, vector<1x1x512xf32>
    %231 = vector.shape_cast %230 : vector<1x1x512xf32> to vector<1x512xf32>
    %232 = vector.broadcast %231 : vector<1x512xf32> to vector<8x512xf32>
    %233 = arith.mulf %229, %232 : vector<8x512xf32>
    %c8_163 = arith.constant 8 : index
    %c0_164 = arith.constant 0 : index
    %c0_165 = arith.constant 0 : index
    %234 = vector.load %arg7[%c8_163, %c0_164, %c0_165] : memref<9x8x8xbf16, #tpu.memory_space<vmem>>, vector<1x8x8xbf16>
    %235 = vector.shape_cast %234 : vector<1x8x8xbf16> to vector<8x8xbf16>
    %236 = arith.truncf %233 : vector<8x512xf32> to vector<8x512xbf16>
    %cst_166 = arith.constant dense<0.000000e+00> : vector<8x512xf32>
    %237 = tpu.matmul %235, %236, %cst_166 {dimension_numbers = #tpu.dot_dimension_numbers<[1], [0], [0], [1], [0, 0, 1, 1], [], []>} : vector<8x8xbf16>, vector<8x512xbf16>, vector<8x512xf32> -> vector<8x512xf32>
    %238 = arith.addf %226, %237 : vector<8x512xf32>
    %c0_167 = arith.constant 0 : index
    %c0_168 = arith.constant 0 : index
    %239 = vector.load %arg8[%c0_167, %c0_168] : memref<8x1xf32, #tpu.memory_space<vmem>>, vector<8x1xf32>
    %240 = vector.broadcast %239 : vector<8x1xf32> to vector<8x512xf32>
    %241 = arith.addf %238, %240 : vector<8x512xf32>
    %cst_169 = arith.constant 0.000000e+00 : f32
    %242 = vector.broadcast %cst_169 : f32 to vector<8x512xf32>
    %243 = arith.maximumf %241, %242 : vector<8x512xf32>
    %c0_170 = arith.constant 0 : index
    %c0_171 = arith.constant 0 : index
    %244 = vector.load %arg10[%c0_170, %c0_171] : memref<1x8xbf16, #tpu.memory_space<vmem>>, vector<1x8xbf16>
    %245 = arith.truncf %243 : vector<8x512xf32> to vector<8x512xbf16>
    %cst_172 = arith.constant dense<0.000000e+00> : vector<1x512xf32>
    %246 = tpu.matmul %244, %245, %cst_172 {dimension_numbers = #tpu.dot_dimension_numbers<[1], [0], [0], [1], [0, 0, 1, 1], [], []>} : vector<1x8xbf16>, vector<8x512xbf16>, vector<1x512xf32> -> vector<1x512xf32>
    %c0_173 = arith.constant 0 : index
    %c0_174 = arith.constant 0 : index
    %247 = vector.load %arg11[%c0_173, %c0_174] : memref<1x1xf32, #tpu.memory_space<vmem>>, vector<1x1xf32>
    %248 = vector.broadcast %247 : vector<1x1xf32> to vector<1x512xf32>
    %249 = arith.addf %246, %248 : vector<1x512xf32>
    %c0_175 = arith.constant 0 : index
    %c0_176 = arith.constant 0 : index
    %250 = vector.load %arg12[%c0_175, %c0_176] : memref<1x512xf32, #tpu.memory_space<vmem>>, vector<1x512xf32>
    tpu.vector_store %arg12[%c0_175, %c0_176], %249 {strides = array<i32>} : memref<1x512xf32, #tpu.memory_space<vmem>>, vector<1x512xf32>,
    return
  }
}

</mosaic_0001>

<bundles_post_ra>
// kernel: unet_forward.6
= control target key start
LH: loop header
LB: loop body
LE: loop exit
PB: predicated region body
PF: predicated region fallthrough
CT: control target
= control target key end

     0   :  { %14 = vsyncpa [#allocation3], 0  ;;  %s1368_s0 = inlined_call_operand.vmem [shape: f32[8,128], index: 0, kind: input, shape index: {}]   ;;  %s1369_s1 = inlined_call_operand.vmem [shape: bf16[9,16,8], index: 1, kind: input, shape index: {}]   ;;  %s1370_s2 = inlined_call_operand.vmem [shape: f32[16,1], index: 2, kind: input, shape index: {}]   ;;  %s1371_s3 = inlined_call_operand.hbm [shape: bf16[9,16,16], index: 3, kind: input, shape index: {}]   ;;  %s1372_s4 = inlined_call_operand.vmem [shape: f32[16,1], index: 4, kind: input, shape index: {}]   ;;  %s1373_s5 = inlined_call_operand.vmem [shape: f32[9,1,128], index: 5, kind: input, shape index: {}]   ;;  %s1374_s6 = inlined_call_operand.hbm [shape: f32[128,32], index: 6, kind: input, shape index: {}]   ;;  %s1375_s7 = inlined_call_operand.vmem [shape: f32[16,128], index: 7, kind: output, shape index: {0}]   ;;  %s1376_s8 = inlined_call_operand.vmem [shape: f32[16,32], index: 8, kind: output, shape index: {1}]  }
   0x1   :  { %s26_s29 = sshll.u32 %s1371_s3, 4  ;;  %s27_s29 = int_to_ptr.hbm [resolvable:$true] %s26_s29 }
   0x2   :  { %15 = vsyncpa [#allocation5], 0  ;;  %s1086_s30 = smov [#allocation2]   ;;  %s43_s12 = sshll.u32 %s1374_s6, 4  ;;  %s44_s12 = int_to_ptr.hbm [resolvable:$true] %s43_s12 }
   0x3   :  { %s28_s9 = sshll.u32 %s1086_s30, 4  ;;  %s1087_s13 = smov 64   ;;  %s29_s9 = int_to_ptr.vmem [resolvable:$true] %s28_s9 }
   0x4   :  { %s1088_s14 = smov 4   ;;  %s1089_s15 = smov [#allocation4]  }
   0x5   :  { %34 = dma.hbm_to_vmem [thread:$0]  %s27_s29, 1152, %s29_s9, [#allocation3], %s1087_s13, %s1087_s13, %s1088_s14  }
   0x6   :  { %s45_s16 = sshll.u32 %s1089_s15, 4  ;;  %s1090_s17 = smov 128   ;;  %s46_s16 = int_to_ptr.vmem [resolvable:$true] %s45_s16 }
   0x7   :  { %s1091_s18 = smov 8  }
   0x8   :  { %51 = dma.hbm_to_vmem [thread:$0]  %s44_s12, 2048, %s46_s16, [#allocation5], %s1090_s17, %s1090_s17, %s1091_s18  }
   0x9   :  { %1082 = dma.done.wait [#allocation3], 1152  }
   0xa   :  { %1083 = vsyncadd [#allocation3], 4294966144 }
   0xb   :  { %1084 = dma.done.wait [#allocation5], 2048  }
   0xc   :  { %1085 = vsyncadd [#allocation5], 4294965248  ;;  %v1155_v0 = vld [vmem:[%s1368_s0] sm:$0xff]  ;;  %s1092_s6 = smov 1   ;;  %s1093_s20 = smov 7   ;;  %vm302_vm0 = vcmask 990208  }
   0xd   :  { %184 = vrot.lane.b32.xlu1 %v1155_v0, %s1092_s6  ;;  %142 = vrot.lane.b32.xlu0 %v1155_v0, %s1093_s20  ;;  %s1094_s21 = smov 121   ;;  %s1095_s22 = smov 9   ;;  %v1176_v1 = vld [vmem:[%s1373_s5 + $0x6] ss:$0 sm:$0xff]  ;;  %vm344_vm1 = vcmask 982016   ;;  %vm99_vm2 = vcmask 1043456   ;;  %v229_v33 = vpack.c.bf16 %v1155_v0, %v1155_v0 }
   0xe   :  { %299 = vrot.lane.b32.xlu2 %v1155_v0, %s1094_s21  ;;  %s1096_s0 = smov 120   ;;  %s1097_s23 = smov 127   ;;  %v992_v8 = vld [vmem:[%s1369_s1 + $0x30] sm:$0xff]  ;;  %v1187_v9 = vld [vmem:[%s1373_s5 + $0x7] ss:$0 sm:$0xff]  ;;  %vm187_vm3 = vcmask 7168  }
   0xf   :  { %s1098_s24 = smov 119   ;;  %v1193_v11 = vld [vmem:[%s1373_s5 + $0x3] ss:$0 sm:$0xff]  ;;  %vm145_vm4 = vcmask 56320   ;;  %v1198_v12 = vld [vmem:[%s1373_s5 + $0x2] ss:$0 sm:$0xff] }
  0x10   :  { %vm79_vm5 = vcmask 64512   ;;  %v1209_v23 = vld [vmem:[%s1373_s5] ss:$0 sm:$0xff]  ;;  %vm66_vm6 = vcmask 72704   ;;  %v1215_v25 = vld [vmem:[%s1373_s5 + $0x1] ss:$0 sm:$0xff] }
  0x11   :  { %v988_v26 = vld [vmem:[%s1369_s1 + $0x10] sm:$0xff]  ;;  %v987_v38 = vld [vmem:[%s1369_s1 + $0x8] sm:$0xff]  ;;  %v986_v39 = vld [vmem:[%s1369_s1] sm:$0xff]  ;;  %v239_v41 = vsel %vm99_vm2, %v229_v33, 0  ;;  %vm260_vm7 = vcmask 1039360   ;;  %vm386_vm8 = vcmask 973824  }
  0x12   :  { %v1238_v40 = vld [vmem:[%s1373_s5 + $0x5] ss:$0 sm:$0xff]  ;;  %v1246_v44 = vld [vmem:[%s1373_s5 + $0x8] ss:$0 sm:$0xff]  ;;  %v1099_v53 = vmov 0   ;;  %v989_v56 = vld [vmem:[%s1369_s1 + $0x18] sm:$0xff] }
  0x13   :  { %v426_v51 = vld [vmem:[%s1370_s2 + $0x8] sm:$0xff]  ;;  %v425_v52 = vld [vmem:[%s1370_s2] sm:$0xff]  ;;  %1019 = vset.pattern.permute.xlu0 %v1099_v53  ;;  %1018 = vset.pattern.permute.xlu2 %v1099_v53  ;;  %v993_v61 = vld [vmem:[%s1369_s1 + $0x38] sm:$0xff]  ;;  %vm475_vm9 = vcmask 130048   ;;  %vm860_vm10 = vcmask 261120  }
  0x14   :  { %1020 = vset.pattern.permute.xlu1 %v1099_v53  ;;  %v990_v59 = vld [vmem:[%s1369_s1 + $0x20] sm:$0xff]  ;;  %v991_v60 = vld [vmem:[%s1369_s1 + $0x28] sm:$0xff] }
  0x15   :  { %63 = vrot.lane.b32.xlu1 %v1155_v0, %s1095_s22  ;;  %76 = vrot.lane.b32.xlu0 %v1155_v0, %s1091_s18  ;;  %v994_v62 = vld [vmem:[%s1369_s1 + $0x40] sm:$0xff] }
  0x16   :  { %341 = vrot.lane.b32.xlu2 %v1155_v0, %s1096_s0 }
  0x1d   :  { %257 = vrot.lane.b32.xlu0 %v1155_v0, %s1097_s23  ;;  %383 = vrot.lane.b32.xlu1 %v1155_v0, %s1098_s24 }
  0x1e   :  { %429 = vperm.xlu2 %1018, %v425_v52  }
  0x25   :  { %434 = vperm.xlu0 %1019, %v426_v51  }
  0x68   :  { %v300_v2 = vpop.permute.xlu2 %299 }
  0x69   :  { %v303_v3 = vsel %vm302_vm0, %v300_v2, 0.0 }
  0x6a   :  { %v309_v4 = vmul.f32 %v1176_v1, %v303_v3 }
  0x6c   :  { %v313_v5 = vpack.c.bf16 %v309_v4, %v309_v4 }
  0x6e   :  { %v323_v7 = vsel %vm99_vm2, %v313_v5, 0 }
  0x6f   :  { %332 = vmatpush.bf16.msra.mxu2 %v323_v7 }
  0x70   :  { %v342_v6 = vpop.permute.xlu2 %341 }
  0x71   :  { %v345_v10 = vsel %vm344_vm1, %v342_v6, 0.0 }
  0x72   :  { %924 = vmatmul.msk.bf16.vlgmr.msra.gmra.mxu2 %vm79_vm5, %v992_v8  ;;  %v351_v15 = vmul.f32 %v1187_v9, %v345_v10 }
  0x74   :  { %v355_v22 = vpack.c.bf16 %v351_v15, %v351_v15 }
  0x76   :  { %v365_v30 = vsel %vm99_vm2, %v355_v22, 0 }
  0x7f   :  { %v185_v13 = vpop.permute.xlu1 %184  ;;  %v143_v14 = vpop.permute.xlu0 %142 }
  0x80   :  { %v188_v16 = vsel %vm187_vm3, 0.0, %v185_v13  ;;  %v146_v17 = vsel %vm145_vm4, 0.0, %v143_v14 }
  0x81   :  { %v194_v18 = vmul.f32 %v1193_v11, %v188_v16  ;;  %v152_v19 = vmul.f32 %v1198_v12, %v146_v17 }
  0x83   :  { %v198_v20 = vpack.c.bf16 %v194_v18, %v194_v18  ;;  %v156_v21 = vpack.c.bf16 %v152_v19, %v152_v19 }
  0x85   :  { %v166_v24 = vsel %vm99_vm2, %v156_v21, 0  ;;  %v208_v27 = vsel %vm99_vm2, %v198_v20, 0 }
  0x86   :  { %175 = vmatpush.bf16.msra.mxu3 %v166_v24 }
  0x87   :  { %v64_v28 = vpop.permute.xlu1 %63  ;;  %v77_v29 = vpop.permute.xlu0 %76 }
  0x88   :  { %v67_v31 = vsel %vm66_vm6, 0.0, %v64_v28  ;;  %v80_v32 = vsel %vm79_vm5, 0.0, %v77_v29 }
  0x89   :  { %v72_v34 = vmul.f32 %v1209_v23, %v67_v31  ;;  %v86_v35 = vmul.f32 %v1215_v25, %v80_v32  ;;  %893 = vmatmul.msk.bf16.vlgmr.msra.gmra.mxu3 %vm79_vm5, %v988_v26  ;;  %v430_v31 = vpop.permute.xlu2 %429 }
  0x8a   :  { %217 = vmatpush.bf16.msrb.mxu3 %v208_v27 }
  0x8b   :  { %v90_v36 = vpack.c.bf16 %v86_v35, %v86_v35  ;;  %v75_v37 = vpack.c.bf16 %v72_v34, %v72_v34 }
  0x8d   :  { %v101_v42 = vsel %vm99_vm2, %v90_v36, 0  ;;  %v126_v43 = vsel %vm99_vm2, %v75_v37, 0 }
  0x8e   :  { %374 = vmatpush.bf16.msra.mxu3 %v365_v30  ;;  %110 = vmatpush.bf16.msra.mxu0 %v101_v42 }
  0x8f   :  { %135 = vmatpush.bf16.msra.mxu1 %v126_v43  ;;  %v258_v45 = vpop.permute.xlu0 %257  ;;  %v384_v46 = vpop.permute.xlu1 %383 }
  0x90   :  { %v261_v47 = vsel %vm260_vm7, %v258_v45, 0.0  ;;  %v387_v48 = vsel %vm386_vm8, %v384_v46, 0.0 }
  0x91   :  { %880 = vmatmul.msk.bf16.vlgmr.msra.gmra.mxu0 %vm79_vm5, %v987_v38  ;;  %v267_v49 = vmul.f32 %v1238_v40, %v261_v47  ;;  %v393_v50 = vmul.f32 %v1246_v44, %v387_v48  ;;  %v771_v48 = vld [vmem:[%s1372_s4] sm:$0xff] }
  0x92   :  { %248 = vmatpush.bf16.msrb.mxu0 %v239_v41  ;;  %885 = vmatmul.msk.bf16.vlgmr.msra.gmra.mxu1 %vm79_vm5, %v986_v39 }
  0x93   :  { %v271_v54 = vpack.c.bf16 %v267_v49, %v267_v49  ;;  %v397_v55 = vpack.c.bf16 %v393_v50, %v393_v50 }
  0x95   :  { %v281_v57 = vsel %vm99_vm2, %v271_v54, 0  ;;  %v407_v58 = vsel %vm99_vm2, %v397_v55, 0 }
  0x96   :  { %290 = vmatpush.bf16.msrb.mxu1 %v281_v57  ;;  %416 = vmatpush.bf16.msra.mxu0 %v407_v58 }
  0x97   :  { %v435_v42 = vpop.permute.xlu0 %434 }
  0x99   :  { %901 = vmatmul.msk.bf16.vlgmr.msrb.gmra.mxu3 %vm79_vm5, %v989_v56 }
  0xa1   :  { %908 = vmatmul.msk.bf16.vlgmr.msrb.gmra.mxu0 %vm79_vm5, %v990_v59  ;;  %v996_v59 = vld [vmem:[#allocation2 + $0x8] sm:$0xff] }
  0xa2   :  { %916 = vmatmul.msk.bf16.vlgmr.msrb.gmra.mxu1 %vm79_vm5, %v991_v60 }
  0xa9   :  { %932 = vmatmul.msk.bf16.vlgmr.msra.gmra.mxu3 %vm79_vm5, %v993_v61 }
  0xb1   :  { %940 = vmatmul.msk.bf16.vlgmr.msra.gmra.mxu0 %vm79_vm5, %v994_v62 }
  0xf5   :  { %v334_v19 = vpop.f32.mrf.mxu2 }
  0xfd   :  { %v336_v34 = vpop.f32.mrf.mxu2 }
 0x10c   :  { %v177_v63 = vpop.f32.mrf.mxu3 }
 0x10e   :  { %v112_v0 = vpop.f32.mrf.mxu0 }
 0x10f   :  { %v137_v2 = vpop.f32.mrf.mxu1 }
 0x110   :  { %v138_v5 = vadd.f32 %v137_v2, %v112_v0 }
 0x112   :  { %v182_v8 = vadd.f32 %v177_v63, %v138_v5 }
 0x114   :  { %v179_v3 = vpop.f32.mrf.mxu3 }
 0x116   :  { %v114_v4 = vpop.f32.mrf.mxu0 }
 0x117   :  { %v139_v6 = vpop.f32.mrf.mxu1 }
 0x118   :  { %v140_v14 = vadd.f32 %v139_v6, %v114_v4 }
 0x11a   :  { %v183_v18 = vadd.f32 %v179_v3, %v140_v14 }
 0x11c   :  { %v219_v7 = vpop.f32.mrf.mxu3 }
 0x11d   :  { %v224_v13 = vadd.f32 %v219_v7, %v182_v8 }
 0x11e   :  { %v250_v10 = vpop.f32.mrf.mxu0 }
 0x11f   :  { %v292_v15 = vpop.f32.mrf.mxu1  ;;  %v255_v16 = vadd.f32 %v250_v10, %v224_v13  ;;  %v995_v10 = vld [vmem:[#allocation2] sm:$0xff]  ;;  %v998_v13 = vld [vmem:[#allocation2 + $0x18] sm:$0xff] }
 0x121   :  { %v297_v21 = vadd.f32 %v292_v15, %v255_v16 }
 0x123   :  { %v339_v24 = vadd.f32 %v334_v19, %v297_v21  ;;  %v997_v21 = vld [vmem:[#allocation2 + $0x10] sm:$0xff] }
 0x124   :  { %v221_v17 = vpop.f32.mrf.mxu3 }
 0x125   :  { %v225_v22 = vadd.f32 %v221_v17, %v183_v18 }
 0x126   :  { %v252_v20 = vpop.f32.mrf.mxu0 }
 0x127   :  { %v256_v26 = vadd.f32 %v252_v20, %v225_v22  ;;  %v294_v27 = vpop.f32.mrf.mxu1  ;;  %v999_v22 = vld [vmem:[#allocation2 + $0x20] sm:$0xff] }
 0x129   :  { %v298_v32 = vadd.f32 %v294_v27, %v256_v26 }
 0x12b   :  { %v340_v36 = vadd.f32 %v336_v34, %v298_v32 }
 0x12c   :  { %v376_v28 = vpop.f32.mrf.mxu3 }
 0x12d   :  { %v381_v29 = vadd.f32 %v376_v28, %v339_v24 }
 0x12e   :  { %v418_v30 = vpop.f32.mrf.mxu0 }
 0x12f   :  { %v423_v33 = vadd.f32 %v418_v30, %v381_v29 }
 0x131   :  { %v437_v35 = vadd.f32 %v430_v31, %v423_v33 }
 0x133   :  { %v439_v37 = vmax.f32 %v437_v35, 0.0 }
 0x134   :  { %v378_v38 = vpop.f32.mrf.mxu3 }
 0x135   :  { %v382_v39 = vadd.f32 %v378_v38, %v340_v36  ;;  %515 = vrot.lane.b32.xlu0 %v439_v37, %s1093_s20  ;;  %456 = vrot.lane.b32.xlu1 %v439_v37, %s1091_s18  ;;  %v1000_v36 = vld [vmem:[#allocation2 + $0x28] sm:$0xff] }
 0x136   :  { %v420_v41 = vpop.f32.mrf.mxu0 }
 0x137   :  { %v424_v43 = vadd.f32 %v420_v41, %v382_v39 }
 0x139   :  { %v438_v45 = vadd.f32 %v435_v42, %v424_v43 }
 0x13b   :  { %v440_v46 = vmax.f32 %v438_v45, 0.0  ;;  %v1001_v45 = vld [vmem:[#allocation2 + $0x30] sm:$0xff] }
 0x13d   :  { %443 = vrot.lane.b32.xlu1 %v439_v37, %s1095_s22  ;;  %555 = vrot.lane.b32.xlu0 %v440_v46, %s1092_s6  ;;  %v594_v47 = vpack.c.bf16 %v440_v46, %v439_v37 }
 0x13e   :  { %458 = vrot.lane.b32.xlu2 %v440_v46, %s1091_s18 }
 0x145   :  { %657 = vrot.lane.b32.xlu0 %v439_v37, %s1094_s21  ;;  %517 = vrot.lane.b32.xlu1 %v440_v46, %s1093_s20 }
 0x146   :  { %445 = vrot.lane.b32.xlu2 %v440_v46, %s1095_s22 }
 0x14d   :  { %697 = vrot.lane.b32.xlu0 %v440_v46, %s1096_s0  ;;  %619 = vrot.lane.b32.xlu1 %v439_v37, %s1097_s23 }
 0x14e   :  { %553 = vrot.lane.b32.xlu2 %v439_v37, %s1092_s6 }
 0x155   :  { %775 = vperm.xlu0 %1019, %v771_v48   ;;  %659 = vrot.lane.b32.xlu1 %v440_v46, %s1094_s21 }
 0x156   :  { %621 = vrot.lane.b32.xlu2 %v440_v46, %s1097_s23 }
 0x15d   :  { %733 = vrot.lane.b32.xlu1 %v439_v37, %s1098_s24 }
 0x15e   :  { %695 = vrot.lane.b32.xlu2 %v439_v37, %s1096_s0  ;;  %v1002_v37 = vld [vmem:[#allocation2 + $0x38] sm:$0xff] }
 0x166   :  { %735 = vrot.lane.b32.xlu2 %v440_v46, %s1098_s24 }
 0x198   :  { %v459_v49 = vpop.permute.xlu2 %458 }
 0x199   :  { %v463_v51 = vsel %vm79_vm5, 0.0, %v459_v49 }
 0x19a   :  { %v465_v56 = vmul.f32 %v1215_v25, %v463_v51 }
 0x1a0   :  { %v446_v50 = vpop.permute.xlu2 %445 }
 0x1a1   :  { %v450_v60 = vsel %vm66_vm6, 0.0, %v446_v50 }
 0x1a2   :  { %v452_v3 = vmul.f32 %v1209_v23, %v450_v60 }
 0x1a7   :  { %v516_v52 = vpop.permute.xlu0 %515  ;;  %v457_v53 = vpop.permute.xlu1 %456 }
 0x1a8   :  { %v462_v54 = vsel %vm79_vm5, 0.0, %v457_v53  ;;  %v554_v55 = vpop.permute.xlu2 %553  ;;  %v521_v14 = vsel %vm145_vm4, 0.0, %v516_v52  ;;  %v1003_v52 = vld [vmem:[#allocation2 + $0x40] sm:$0xff] }
 0x1a9   :  { %v464_v57 = vmul.f32 %v1215_v25, %v462_v54  ;;  %v559_v61 = vsel %vm187_vm3, 0.0, %v554_v55 }
 0x1aa   :  { %v561_v25 = vmul.f32 %v1193_v11, %v559_v61 }
 0x1ab   :  { %v469_v58 = vpack.c.bf16 %v465_v56, %v464_v57 }
 0x1ad   :  { %486 = vmatpush.bf16.msra.mxu1 %v469_v58 }
 0x1af   :  { %v444_v62 = vpop.permute.xlu1 %443  ;;  %v556_v63 = vpop.permute.xlu0 %555 }
 0x1b0   :  { %v449_v0 = vsel %vm66_vm6, 0.0, %v444_v62  ;;  %v560_v2 = vsel %vm187_vm3, 0.0, %v556_v63  ;;  %945 = vmatmul.msk.bf16.vlgmr.msra.gmra.mxu1 %vm475_vm9, %v996_v59  ;;  %v622_v6 = vpop.permute.xlu2 %621 }
 0x1b1   :  { %610 = vmatpush.bf16.msrb.mxu1 %v594_v47  ;;  %v451_v4 = vmul.f32 %v1209_v23, %v449_v0  ;;  %v562_v5 = vmul.f32 %v1193_v11, %v560_v2  ;;  %v772_v11 = vld [vmem:[%s1372_s4 + $0x8] sm:$0xff]  ;;  %v523_v23 = vmul.f32 %v1198_v12, %v521_v14  ;;  %v626_v24 = vsel %vm260_vm7, %v622_v6, 0.0 }
 0x1b2   :  { %780 = vperm.xlu1 %1020, %v772_v11   ;;  %v832_v11 = vld [vmem:[#allocation4 + $0x58] sm:$0xff] }
 0x1b3   :  { %v566_v7 = vpack.c.bf16 %v562_v5, %v561_v25  ;;  %v455_v8 = vpack.c.bf16 %v452_v3, %v451_v4  ;;  %v836_v4 = vld [vmem:[#allocation4 + $0x78] sm:$0xff]  ;;  %v835_v5 = vld [vmem:[#allocation4 + $0x70] sm:$0xff] }
 0x1b5   :  { %508 = vmatpush.bf16.msrb.mxu2 %v455_v8  ;;  %582 = vmatpush.bf16.msrb.mxu0 %v566_v7  ;;  %v834_v7 = vld [vmem:[#allocation4 + $0x68] sm:$0xff] }
 0x1b7   :  { %v658_v15 = vpop.permute.xlu0 %657  ;;  %v518_v16 = vpop.permute.xlu1 %517 }
 0x1b8   :  { %v522_v17 = vsel %vm145_vm4, 0.0, %v518_v16  ;;  %950 = vmatmul.msk.bf16.vlgmr.msrb.gmra.mxu2 %vm475_vm9, %v995_v10  ;;  %960 = vmatmul.msk.bf16.vlgmr.msrb.gmra.mxu0 %vm475_vm9, %v998_v13  ;;  %v696_v20 = vpop.permute.xlu2 %695  ;;  %v663_v38 = vsel %vm302_vm0, %v658_v15, 0.0  ;;  %v833_v15 = vld [vmem:[#allocation4 + $0x60] sm:$0xff] }
 0x1b9   :  { %v524_v18 = vmul.f32 %v1198_v12, %v522_v17  ;;  %v701_v26 = vsel %vm344_vm1, %v696_v20, 0.0  ;;  %v628_v12 = vmul.f32 %v1238_v40, %v626_v24  ;;  %v665_v42 = vmul.f32 %v1176_v1, %v663_v38  ;;  %v831_v20 = vld [vmem:[#allocation4 + $0x50] sm:$0xff]  ;;  %v828_v38 = vld [vmem:[#allocation4 + $0x38] sm:$0xff] }
 0x1ba   :  { %v703_v31 = vmul.f32 %v1187_v9, %v701_v26 }
 0x1bb   :  { %v528_v19 = vpack.c.bf16 %v524_v18, %v523_v23 }
 0x1bd   :  { %544 = vmatpush.bf16.msrb.mxu3 %v528_v19 }
 0x1bf   :  { %v698_v27 = vpop.permute.xlu0 %697  ;;  %v620_v28 = vpop.permute.xlu1 %619 }
 0x1c0   :  { %v702_v29 = vsel %vm344_vm1, %v698_v27, 0.0  ;;  %v625_v30 = vsel %vm260_vm7, %v620_v28, 0.0  ;;  %955 = vmatmul.msk.bf16.vlgmr.msrb.gmra.mxu3 %vm475_vm9, %v997_v21  ;;  %965 = vmatmul.msk.bf16.vlgmr.msrb.gmra.mxu1 %vm475_vm9, %v999_v22 }
 0x1c1   :  { %v704_v32 = vmul.f32 %v1187_v9, %v702_v29  ;;  %v627_v33 = vmul.f32 %v1238_v40, %v625_v30  ;;  %v736_v40 = vpop.permute.xlu2 %735 }
 0x1c2   :  { %v740_v46 = vsel %vm386_vm8, %v736_v40, 0.0  ;;  %v823_v40 = vld [vmem:[#allocation4 + $0x10] sm:$0xff] }
 0x1c3   :  { %v708_v34 = vpack.c.bf16 %v704_v32, %v703_v31  ;;  %v632_v35 = vpack.c.bf16 %v628_v12, %v627_v33  ;;  %v742_v49 = vmul.f32 %v1246_v44, %v740_v46 }
 0x1c5   :  { %648 = vmatpush.bf16.msra.mxu2 %v632_v35  ;;  %724 = vmatpush.bf16.msra.mxu0 %v708_v34 }
 0x1c7   :  { %v660_v39 = vpop.permute.xlu1 %659  ;;  %v776_v21 = vpop.permute.xlu0 %775 }
 0x1c8   :  { %v664_v41 = vsel %vm302_vm0, %v660_v39, 0.0  ;;  %970 = vmatmul.msk.bf16.vlgmr.msra.gmra.mxu2 %vm475_vm9, %v1000_v36  ;;  %980 = vmatmul.msk.bf16.vlgmr.msra.gmra.mxu0 %vm475_vm9, %v1002_v37  ;;  %v830_v36 = vld [vmem:[#allocation4 + $0x48] sm:$0xff]  ;;  %v829_v37 = vld [vmem:[#allocation4 + $0x40] sm:$0xff]  ;;  %v827_v39 = vld [vmem:[#allocation4 + $0x30] sm:$0xff] }
 0x1c9   :  { %v666_v9 = vmul.f32 %v1176_v1, %v664_v41  ;;  %837 = vmatpush.msrb.mxu2 %v836_v4  ;;  %v826_v41 = vld [vmem:[#allocation4 + $0x28] sm:$0xff] }
 0x1cb   :  { %v670_v43 = vpack.c.bf16 %v666_v9, %v665_v42  ;;  %838 = vmatpush.msrb.mxu2 %v835_v5  ;;  %v825_v42 = vld [vmem:[#allocation4 + $0x20] sm:$0xff]  ;;  %v824_v9 = vld [vmem:[#allocation4 + $0x18] sm:$0xff] }
 0x1cd   :  { %686 = vmatpush.bf16.msra.mxu3 %v670_v43  ;;  %839 = vmatpush.msrb.mxu2 %v834_v7  ;;  %v822_v43 = vld [vmem:[#allocation4 + $0x8] sm:$0xff] }
 0x1cf   :  { %v734_v47 = vpop.permute.xlu1 %733  ;;  %840 = vmatpush.msrb.mxu2 %v833_v15 }
 0x1d0   :  { %v739_v48 = vsel %vm386_vm8, %v734_v47, 0.0  ;;  %975 = vmatmul.msk.bf16.vlgmr.msra.gmra.mxu3 %vm475_vm9, %v1001_v45  ;;  %v821_v45 = vld [vmem:[#allocation4] sm:$0xff] }
 0x1d1   :  { %v741_v50 = vmul.f32 %v1246_v44, %v739_v48  ;;  %841 = vmatpush.msrb.mxu2 %v832_v11 }
 0x1d3   :  { %v746_v51 = vpack.c.bf16 %v742_v49, %v741_v50  ;;  %842 = vmatpush.msrb.mxu2 %v831_v20 }
 0x1d5   :  { %762 = vmatpush.bf16.msra.mxu1 %v746_v51  ;;  %843 = vmatpush.msrb.mxu2 %v830_v36 }
 0x1d7   :  { %844 = vmatpush.msrb.mxu2 %v829_v37 }
 0x1d8   :  { %985 = vmatmul.msk.bf16.vlgmr.msra.gmra.mxu1 %vm475_vm9, %v1003_v52 }
 0x1d9   :  { %845 = vmatpush.msrb.mxu2 %v828_v38 }
 0x1db   :  { %846 = vmatpush.msrb.mxu2 %v827_v39 }
 0x1dd   :  { %847 = vmatpush.msrb.mxu2 %v826_v41 }
 0x1df   :  { %848 = vmatpush.msrb.mxu2 %v825_v42 }
 0x1e1   :  { %849 = vmatpush.msrb.mxu2 %v824_v9 }
 0x1e3   :  { %850 = vmatpush.msrb.mxu2 %v823_v40 }
 0x1e5   :  { %851 = vmatpush.msrb.mxu2 %v822_v43 }
 0x1e7   :  { %852 = vmatpush.msrb.mxu2 %v821_v45 }
 0x224   :  { %v781_v31 = vpop.permute.xlu1 %780 }
 0x22d   :  { %v488_v1 = vpop.f32.mrf.mxu1 }
 0x235   :  { %v490_v53 = vpop.f32.mrf.mxu1  ;;  %v584_v55 = vpop.f32.mrf.mxu0 }
 0x23b   :  { %v510_v54 = vpop.f32.mrf.mxu2 }
 0x23c   :  { %v511_v59 = vadd.f32 %v510_v54, %v488_v1 }
 0x23d   :  { %v612_v56 = vpop.f32.mrf.mxu1  ;;  %v586_v61 = vpop.f32.mrf.mxu0 }
 0x243   :  { %v512_v57 = vpop.f32.mrf.mxu2  ;;  %v546_v58 = vpop.f32.mrf.mxu3 }
 0x244   :  { %v551_v60 = vadd.f32 %v546_v58, %v511_v59  ;;  %v513_v44 = vadd.f32 %v512_v57, %v490_v53 }
 0x245   :  { %v614_v2 = vpop.f32.mrf.mxu1  ;;  %v726_v10 = vpop.f32.mrf.mxu0 }
 0x246   :  { %v589_v63 = vadd.f32 %v584_v55, %v551_v60 }
 0x248   :  { %v617_v3 = vadd.f32 %v612_v56, %v589_v63 }
 0x24b   :  { %v548_v62 = vpop.f32.mrf.mxu3  ;;  %v650_v0 = vpop.f32.mrf.mxu2 }
 0x24c   :  { %v552_v25 = vadd.f32 %v548_v62, %v513_v44  ;;  %v655_v6 = vadd.f32 %v650_v0, %v617_v3 }
 0x24d   :  { %v728_v29 = vpop.f32.mrf.mxu0 }
 0x24e   :  { %v590_v13 = vadd.f32 %v586_v61, %v552_v25 }
 0x250   :  { %v618_v18 = vadd.f32 %v614_v2, %v590_v13 }
 0x253   :  { %v688_v8 = vpop.f32.mrf.mxu3  ;;  %v652_v23 = vpop.f32.mrf.mxu2 }
 0x254   :  { %v693_v14 = vadd.f32 %v688_v8, %v655_v6  ;;  %v656_v22 = vadd.f32 %v652_v23, %v618_v18 }
 0x255   :  { %v764_v16 = vpop.f32.mrf.mxu1 }
 0x256   :  { %v731_v17 = vadd.f32 %v726_v10, %v693_v14 }
 0x258   :  { %v769_v19 = vadd.f32 %v764_v16, %v731_v17 }
 0x25a   :  { %v783_v24 = vadd.f32 %v776_v21, %v769_v19 }
 0x25b   :  { %v690_v26 = vpop.f32.mrf.mxu3 }
 0x25c   :  { %v785_v27 = vmax.f32 %v783_v24, 0.0  ;;  %v694_v28 = vadd.f32 %v690_v26, %v656_v22 }
 0x25d   :  { %v766_v12 = vpop.f32.mrf.mxu1 }
 0x25e   :  { %787 = vst [vmem:[%s1375_s7] sm:$0xff] %v785_v27  ;;  %v732_v30 = vadd.f32 %v728_v29, %v694_v28  ;;  %809 = vrot.lane.b32.xlu1 %v785_v27, %s1098_s24  ;;  %801 = vrot.lane.b32.xlu0 %v785_v27, %s1096_s0 }
 0x260   :  { %v770_v32 = vadd.f32 %v766_v12, %v732_v30 }
 0x262   :  { %v784_v33 = vadd.f32 %v781_v31, %v770_v32 }
 0x264   :  { %v786_v34 = vmax.f32 %v784_v33, 0.0 }
 0x266   :  { %788 = vst [vmem:[%s1375_s7 + $0x8] sm:$0xff] %v786_v34  ;;  %811 = vrot.lane.b32.xlu0 %v786_v34, %s1098_s24  ;;  %v1021_v35 = vpack.i.bf16 %v786_v34, %v785_v27 }
 0x268   :  { %1022 = vrot.lane.b32.xlu2 %v1021_v35, %s1097_s23 }
 0x270   :  { %803 = vrot.lane.b32.xlu2 %v786_v34, %s1096_s0 }
 0x2c2   :  { %v1023_v46 = vpop.permute.xlu2 %1022 }
 0x2c3   :  { %v1024_v47 = vunpack.i.l.bf16 %v1023_v46  ;;  %v1025_v54 = vunpack.i.h.bf16 %v1023_v46 }
 0x2c5   :  { %v797_v48 = vsel %vm260_vm7, %v1024_v47, 0.0  ;;  %v798_v57 = vsel %vm260_vm7, %v1025_v54, 0.0 }
 0x2c6   :  { %v799_v1 = vmax.f32 %v785_v27, %v797_v48  ;;  %v800_v62 = vmax.f32 %v786_v34, %v798_v57 }
 0x2ca   :  { %v804_v56 = vpop.permute.xlu2 %803 }
 0x2cb   :  { %v808_v59 = vsel %vm344_vm1, %v804_v56, 0.0 }
 0x2d0   :  { %v810_v49 = vpop.permute.xlu1 %809  ;;  %v802_v50 = vpop.permute.xlu0 %801 }
 0x2d1   :  { %v815_v51 = vsel %vm386_vm8, %v810_v49, 0.0  ;;  %v807_v52 = vsel %vm344_vm1, %v802_v50, 0.0 }
 0x2d2   :  { %v817_v53 = vmax.f32 %v807_v52, %v815_v51 }
 0x2d4   :  { %v819_v55 = vmax.f32 %v799_v1, %v817_v53 }
 0x2d6   :  { %853 = vmatmul.f32.vlgmr.msrb.gmra.mxu2 %v819_v55 }
 0x2d8   :  { %v812_v58 = vpop.permute.xlu0 %811 }
 0x2d9   :  { %v816_v60 = vsel %vm386_vm8, %v812_v58, 0.0 }
 0x2da   :  { %v818_v61 = vmax.f32 %v808_v59, %v816_v60 }
 0x2dc   :  { %v820_v63 = vmax.f32 %v800_v62, %v818_v61 }
 0x2de   :  { %856 = vmatmul.f32.gmra.mxu2 %v820_v63 }
 0x359   :  { %v854_v0 = vpop.f32.mrf.mxu2 }
 0x35a   :  { %861 = vst.msk [vmem:[%s1376_s8] sm:$0xff] %vm860_vm10, %v854_v0 }
 0x361   :  { %v857_v2 = vpop.f32.mrf.mxu2 }
 0x362   :  { %862 = vst.msk [vmem:[%s1376_s8 + $0x8] sm:$0xff] %vm860_vm10, %v857_v2 }
 0x363   :  { %871 = vsyncpa [#allocation3], 1 }
 0x364   :  { %872 = vsyncpa [#allocation5], 1 }

// kernel: unet_forward.7
= control target key start
LH: loop header
LB: loop body
LE: loop exit
PB: predicated region body
PF: predicated region fallthrough
CT: control target
= control target key end

     0   :  { %s1503_s23 = smov 5   ;;  %s1504_s24 = smov 4   ;;  %vm147_vm0 = vcmask 23552   ;;  %vm34_vm1 = vcmask 39936   ;;  %vm54_vm2 = vcmask 31744   ;;  %vm80_vm3 = vcmask 130048   ;;  %s1996_s0 = inlined_call_operand.vmem [shape: f32[16,32], index: 0, kind: input, shape index: {}]   ;;  %s1997_s5 = inlined_call_operand.vmem [shape: f32[9,1,32], index: 5, kind: input, shape index: {}]   ;;  %s1998_s1 = inlined_call_operand.vmem [shape: bf16[9,32,16], index: 1, kind: input, shape index: {}]   ;;  %s1999_s2 = inlined_call_operand.vmem [shape: f32[32,1], index: 2, kind: input, shape index: {}]   ;;  %s2000_s4 = inlined_call_operand.vmem [shape: f32[32,1], index: 4, kind: input, shape index: {}]   ;;  %s2001_s3 = inlined_call_operand.vmem [shape: bf16[9,32,32], index: 3, kind: input, shape index: {}]   ;;  %s2002_s6 = inlined_call_operand.vmem [shape: f32[32,32], index: 6, kind: output, shape index: {}]  }
   0x1   :  { %v1550_v0 = vld [vmem:[%s1996_s0] sm:$0xff]  ;;  %s1505_s25 = smov 3   ;;  %v1561_v1 = vld [vmem:[%s1996_s0 + $0x8] sm:$0xff]  ;;  %s1506_s28 = smov 1   ;;  %v1448_v28 = vld [vmem:[%s1998_s1 + $0x18] sm:$0xff]  ;;  %vm208_vm4 = vcmask 7168  }
   0x2   :  { %28 = vrot.lane.b32.xlu1 %v1550_v0, %s1503_s23  ;;  %48 = vrot.lane.b32.xlu0 %v1550_v0, %s1504_s24  ;;  %s1507_s29 = smov 125   ;;  %s1508_s0 = smov 124   ;;  %v1592_v6 = vld [vmem:[%s1997_s5 + $0x2] ss:$0 sm:$0xff]  ;;  %v1599_v9 = vld [vmem:[%s1997_s5] ss:$0 sm:$0xff]  ;;  %v268_v27 = vpack.c.bf16 %v1561_v1, %v1550_v0 }
   0x3   :  { %141 = vrot.lane.b32.xlu2 %v1550_v0, %s1505_s25  ;;  %s1509_s30 = smov 127   ;;  %s1510_s7 = smov 123   ;;  %v1604_v10 = vld [vmem:[%s1997_s5 + $0x1] ss:$0 sm:$0xff]  ;;  %v1447_v29 = vld [vmem:[%s1998_s1 + $0x10] sm:$0xff]  ;;  %v1446_v30 = vld [vmem:[%s1998_s1 + $0x8] sm:$0xff] }
   0x4   :  { %v1445_v31 = vld [vmem:[%s1998_s1] sm:$0xff]  ;;  %vm436_vm5 = vcmask 228352   ;;  %vm375_vm6 = vcmask 236544   ;;  %v1451_v57 = vld [vmem:[%s1998_s1 + $0x30] sm:$0xff]  ;;  %vm314_vm7 = vcmask 252928   ;;  %vm497_vm8 = vcmask 220160  }
   0x5   :  { %v1633_v32 = vld [vmem:[%s1997_s5 + $0x3] ss:$0 sm:$0xff]  ;;  %v1646_v39 = vld [vmem:[%s1997_s5 + $0x7] ss:$0 sm:$0xff]  ;;  %v1651_v40 = vld [vmem:[%s1997_s5 + $0x6] ss:$0 sm:$0xff] }
   0x6   :  { %v1449_v55 = vld [vmem:[%s1998_s1 + $0x20] sm:$0xff]  ;;  %vm651_vm9 = vcmask 261120  }
   0x7   :  { %v1453_v56 = vld [vmem:[%s1998_s1 + $0x40] sm:$0xff] }
   0x8   :  { %v1673_v58 = vld [vmem:[%s1997_s5 + $0x5] ss:$0 sm:$0xff] }
   0xa   :  { %30 = vrot.lane.b32.xlu1 %v1561_v1, %s1503_s23  ;;  %50 = vrot.lane.b32.xlu0 %v1561_v1, %s1504_s24 }
   0xb   :  { %143 = vrot.lane.b32.xlu2 %v1561_v1, %s1505_s25 }
  0x12   :  { %204 = vrot.lane.b32.xlu1 %v1561_v1, %s1506_s28  ;;  %202 = vrot.lane.b32.xlu0 %v1550_v0, %s1506_s28 }
  0x13   :  { %369 = vrot.lane.b32.xlu2 %v1550_v0, %s1507_s29 }
  0x1a   :  { %430 = vrot.lane.b32.xlu1 %v1550_v0, %s1508_s0  ;;  %371 = vrot.lane.b32.xlu0 %v1561_v1, %s1507_s29 }
  0x1b   :  { %432 = vrot.lane.b32.xlu2 %v1561_v1, %s1508_s0 }
  0x22   :  { %310 = vrot.lane.b32.xlu1 %v1561_v1, %s1509_s30  ;;  %308 = vrot.lane.b32.xlu0 %v1550_v0, %s1509_s30 }
  0x23   :  { %491 = vrot.lane.b32.xlu2 %v1550_v0, %s1510_s7 }
  0x2a   :  { %493 = vrot.lane.b32.xlu0 %v1561_v1, %s1510_s7 }
  0x5d   :  { %v142_v2 = vpop.permute.xlu2 %141 }
  0x5e   :  { %v148_v7 = vsel %vm147_vm0, 0.0, %v142_v2 }
  0x5f   :  { %v155_v13 = vmul.f32 %v1592_v6, %v148_v7 }
  0x65   :  { %v144_v5 = vpop.permute.xlu2 %143 }
  0x66   :  { %v149_v8 = vsel %vm147_vm0, 0.0, %v144_v5 }
  0x67   :  { %v156_v16 = vmul.f32 %v1592_v6, %v149_v8 }
  0x69   :  { %v162_v26 = vpack.c.bf16 %v156_v16, %v155_v13  ;;  %v1452_v16 = vld [vmem:[%s1998_s1 + $0x38] sm:$0xff] }
  0x6d   :  { %v370_v23 = vpop.permute.xlu2 %369 }
  0x6e   :  { %v376_v43 = vsel %vm375_vm6, %v370_v23, 0.0  ;;  %v1457_v23 = vld [vmem:[%s1998_s1 + $0x60] sm:$0xff] }
  0x6f   :  { %v383_v47 = vmul.f32 %v1651_v40, %v376_v43 }
  0x74   :  { %v29_v3 = vpop.permute.xlu1 %28  ;;  %v49_v4 = vpop.permute.xlu0 %48 }
  0x75   :  { %v35_v11 = vsel %vm34_vm1, 0.0, %v29_v3  ;;  %v55_v12 = vsel %vm54_vm2, 0.0, %v49_v4  ;;  %v433_v42 = vpop.permute.xlu2 %432  ;;  %v1685_v3 = vld [vmem:[%s1997_s5 + $0x8] ss:$0 sm:$0xff]  ;;  %v1455_v4 = vld [vmem:[%s1998_s1 + $0x50] sm:$0xff] }
  0x76   :  { %v41_v19 = vmul.f32 %v1599_v9, %v35_v11  ;;  %v62_v20 = vmul.f32 %v1604_v10, %v55_v12  ;;  %v438_v44 = vsel %vm436_vm5, %v433_v42, 0.0 }
  0x77   :  { %v445_v48 = vmul.f32 %v1646_v39, %v438_v44 }
  0x7c   :  { %v31_v14 = vpop.permute.xlu1 %30  ;;  %v51_v15 = vpop.permute.xlu0 %50 }
  0x7d   :  { %v36_v17 = vsel %vm34_vm1, 0.0, %v31_v14  ;;  %v56_v18 = vsel %vm54_vm2, 0.0, %v51_v15  ;;  %v492_v1 = vpop.permute.xlu2 %491  ;;  %v1450_v14 = vld [vmem:[%s1998_s1 + $0x28] sm:$0xff] }
  0x7e   :  { %v42_v21 = vmul.f32 %v1599_v9, %v36_v17  ;;  %v63_v22 = vmul.f32 %v1604_v10, %v56_v18  ;;  %v498_v5 = vsel %vm497_vm8, %v492_v1, 0.0  ;;  %v1454_v15 = vld [vmem:[%s1998_s1 + $0x48] sm:$0xff]  ;;  %v554_v17 = vld [vmem:[%s1999_s2 + $0x10] sm:$0xff]  ;;  %v552_v18 = vld [vmem:[%s1999_s2] sm:$0xff] }
  0x7f   :  { %v505_v7 = vmul.f32 %v1685_v3, %v498_v5 }
  0x80   :  { %v69_v24 = vpack.c.bf16 %v63_v22, %v62_v20  ;;  %v47_v25 = vpack.c.bf16 %v42_v21, %v41_v19  ;;  %v1511_v19 = vmov 0   ;;  %v555_v20 = vld [vmem:[%s1999_s2 + $0x18] sm:$0xff]  ;;  %v553_v22 = vld [vmem:[%s1999_s2 + $0x8] sm:$0xff] }
  0x81   :  { %1494 = vset.pattern.permute.xlu0 %v1511_v19  ;;  %1492 = vset.pattern.permute.xlu1 %v1511_v19  ;;  %v1456_v21 = vld [vmem:[%s1998_s1 + $0x58] sm:$0xff] }
  0x82   :  { %94 = vmatpush.bf16.msra.mxu0 %v69_v24  ;;  %1481 = vmatpush.bf16.msra.mxu2 %v69_v24  ;;  %v1461_v24 = vld [vmem:[%s1998_s1 + $0x80] sm:$0xff] }
  0x83   :  { %129 = vmatpush.bf16.msra.mxu1 %v47_v25  ;;  %1482 = vmatpush.bf16.msra.mxu3 %v47_v25  ;;  %v1459_v25 = vld [vmem:[%s1998_s1 + $0x70] sm:$0xff] }
  0x84   :  { %v205_v33 = vpop.permute.xlu1 %204  ;;  %v203_v34 = vpop.permute.xlu0 %202  ;;  %568 = vperm.xlu1 %1492, %v554_v17   ;;  %558 = vperm.xlu0 %1494, %v552_v18  }
  0x85   :  { %1208 = vmatmul.msk.bf16.vlgmr.msra.gmra.mxu2 %vm80_vm3, %v1448_v28  ;;  %1207 = vmatmul.msk.bf16.vlgmr.msra.gmra.mxu0 %vm80_vm3, %v1447_v29  ;;  %v210_v35 = vsel %vm208_vm4, 0.0, %v205_v33  ;;  %v209_v36 = vsel %vm208_vm4, 0.0, %v203_v34  ;;  %v1460_v28 = vld [vmem:[%s1998_s1 + $0x78] sm:$0xff] }
  0x86   :  { %186 = vmatpush.bf16.msrb.mxu2 %v162_v26  ;;  %292 = vmatpush.bf16.msrb.mxu0 %v268_v27  ;;  %v217_v37 = vmul.f32 %v1633_v32, %v210_v35  ;;  %v216_v38 = vmul.f32 %v1633_v32, %v209_v36  ;;  %v1458_v26 = vld [vmem:[%s1998_s1 + $0x68] sm:$0xff] }
  0x87   :  { %1218 = vmatmul.msk.bf16.vlgmr.msra.gmra.mxu3 %vm80_vm3, %v1446_v30  ;;  %1217 = vmatmul.msk.bf16.vlgmr.msra.gmra.mxu1 %vm80_vm3, %v1445_v31  ;;  %v1462_v27 = vld [vmem:[%s1998_s1 + $0x88] sm:$0xff] }
  0x88   :  { %v223_v41 = vpack.c.bf16 %v217_v37, %v216_v38  ;;  %1493 = vset.pattern.permute.xlu2 %v1511_v19 }
  0x89   :  { %573 = vperm.xlu2 %1493, %v555_v20  }
  0x8a   :  { %247 = vmatpush.bf16.msrb.mxu3 %v223_v41 }
  0x8c   :  { %v431_v45 = vpop.permute.xlu1 %430  ;;  %v372_v46 = vpop.permute.xlu0 %371  ;;  %563 = vperm.xlu1 %1492, %v553_v22  }
  0x8d   :  { %v437_v49 = vsel %vm436_vm5, %v431_v45, 0.0  ;;  %v377_v50 = vsel %vm375_vm6, %v372_v46, 0.0 }
  0x8e   :  { %v444_v51 = vmul.f32 %v1646_v39, %v437_v49  ;;  %v384_v52 = vmul.f32 %v1651_v40, %v377_v50 }
  0x90   :  { %v390_v53 = vpack.c.bf16 %v384_v52, %v383_v47  ;;  %v451_v54 = vpack.c.bf16 %v445_v48, %v444_v51 }
  0x92   :  { %414 = vmatpush.bf16.msra.mxu2 %v390_v53  ;;  %475 = vmatpush.bf16.msra.mxu3 %v451_v54 }
  0x94   :  { %v311_v59 = vpop.permute.xlu1 %310  ;;  %v309_v60 = vpop.permute.xlu0 %308 }
  0x95   :  { %1232 = vmatmul.msk.bf16.vlgmr.msrb.gmra.mxu2 %vm80_vm3, %v1449_v55  ;;  %1261 = vmatmul.msk.bf16.vlgmr.msrb.gmra.mxu0 %vm80_vm3, %v1453_v56  ;;  %v316_v61 = vsel %vm314_vm7, %v311_v59, 0.0  ;;  %v315_v62 = vsel %vm314_vm7, %v309_v60, 0.0 }
  0x96   :  { %v323_v63 = vmul.f32 %v1673_v58, %v316_v61  ;;  %v322_v0 = vmul.f32 %v1673_v58, %v315_v62 }
  0x97   :  { %1247 = vmatmul.msk.bf16.vlgmr.msrb.gmra.mxu3 %vm80_vm3, %v1451_v57 }
  0x98   :  { %v329_v2 = vpack.c.bf16 %v323_v63, %v322_v0 }
  0x9a   :  { %353 = vmatpush.bf16.msrb.mxu1 %v329_v2 }
  0x9c   :  { %v494_v8 = vpop.permute.xlu0 %493 }
  0x9d   :  { %1276 = vmatmul.msk.bf16.vlgmr.msrb.gmra.mxu1 %vm80_vm3, %v1455_v4  ;;  %v499_v11 = vsel %vm497_vm8, %v494_v8, 0.0 }
  0x9e   :  { %v506_v12 = vmul.f32 %v1685_v3, %v499_v11 }
  0xa0   :  { %v512_v13 = vpack.c.bf16 %v506_v12, %v505_v7 }
  0xa2   :  { %536 = vmatpush.bf16.msra.mxu0 %v512_v13 }
  0xa5   :  { %1233 = vmatmul.msk.bf16.gmra.mxu2 %vm80_vm3, %v1450_v14  ;;  %1262 = vmatmul.msk.bf16.gmra.mxu0 %vm80_vm3, %v1454_v15 }
  0xa7   :  { %1248 = vmatmul.msk.bf16.gmra.mxu3 %vm80_vm3, %v1452_v16 }
  0xad   :  { %1277 = vmatmul.msk.bf16.gmra.mxu1 %vm80_vm3, %v1456_v21 }
  0xb5   :  { %1291 = vmatmul.msk.bf16.vlgmr.msra.gmra.mxu2 %vm80_vm3, %v1457_v23  ;;  %1321 = vmatmul.msk.bf16.vlgmr.msra.gmra.mxu0 %vm80_vm3, %v1461_v24 }
  0xb7   :  { %1306 = vmatmul.msk.bf16.vlgmr.msra.gmra.mxu3 %vm80_vm3, %v1459_v25 }
  0xc5   :  { %1292 = vmatmul.msk.bf16.gmra.mxu2 %vm80_vm3, %v1458_v26  ;;  %1322 = vmatmul.msk.bf16.gmra.mxu0 %vm80_vm3, %v1462_v27 }
  0xc7   :  { %1307 = vmatmul.msk.bf16.gmra.mxu3 %vm80_vm3, %v1460_v28 }
  0xf6   :  { %v569_v5 = vpop.permute.xlu1 %568  ;;  %v559_v12 = vpop.permute.xlu0 %558 }
  0xfe   :  { %v564_v27 = vpop.permute.xlu1 %563 }
 0x102   :  { %v96_v29 = vpop.f32.mrf.mxu0 }
 0x104   :  { %v131_v42 = vpop.f32.mrf.mxu1 }
 0x105   :  { %v132_v48 = vadd.f32 %v131_v42, %v96_v29 }
 0x108   :  { %v101_v30 = vpop.f32.mrf.mxu2 }
 0x10a   :  { %v136_v31 = vpop.f32.mrf.mxu3  ;;  %v98_v33 = vpop.f32.mrf.mxu0 }
 0x10b   :  { %v137_v1 = vadd.f32 %v136_v31, %v101_v30 }
 0x10c   :  { %v133_v46 = vpop.f32.mrf.mxu1 }
 0x10d   :  { %v134_v55 = vadd.f32 %v133_v46, %v98_v33 }
 0x110   :  { %v103_v34 = vpop.f32.mrf.mxu2 }
 0x112   :  { %v138_v35 = vpop.f32.mrf.mxu3  ;;  %v294_v36 = vpop.f32.mrf.mxu0 }
 0x113   :  { %v139_v19 = vadd.f32 %v138_v35, %v103_v34 }
 0x118   :  { %v188_v37 = vpop.f32.mrf.mxu2 }
 0x119   :  { %v198_v50 = vadd.f32 %v188_v37, %v132_v48 }
 0x11a   :  { %v249_v38 = vpop.f32.mrf.mxu3  ;;  %v296_v41 = vpop.f32.mrf.mxu0 }
 0x11b   :  { %v355_v52 = vpop.f32.mrf.mxu1  ;;  %v259_v53 = vadd.f32 %v249_v38, %v198_v50 }
 0x11d   :  { %v304_v57 = vadd.f32 %v294_v36, %v259_v53 }
 0x11f   :  { %v365_v61 = vadd.f32 %v355_v52, %v304_v57  ;;  %v574_v52 = vpop.permute.xlu2 %573  ;;  %v1154_v57 = vld [vmem:[%s2000_s4] sm:$0xff] }
 0x120   :  { %v190_v43 = vpop.f32.mrf.mxu2 }
 0x121   :  { %v199_v59 = vadd.f32 %v190_v43, %v134_v55 }
 0x122   :  { %v251_v44 = vpop.f32.mrf.mxu3  ;;  %v299_v45 = vpop.f32.mrf.mxu0 }
 0x123   :  { %v260_v62 = vadd.f32 %v251_v44, %v199_v59  ;;  %v357_v63 = vpop.f32.mrf.mxu1 }
 0x125   :  { %v305_v7 = vadd.f32 %v296_v41, %v260_v62 }
 0x127   :  { %v366_v14 = vadd.f32 %v357_v63, %v305_v7 }
 0x128   :  { %v193_v47 = vpop.f32.mrf.mxu2 }
 0x129   :  { %v200_v8 = vadd.f32 %v193_v47, %v137_v1 }
 0x12a   :  { %v254_v49 = vpop.f32.mrf.mxu3  ;;  %v301_v51 = vpop.f32.mrf.mxu0 }
 0x12b   :  { %v261_v15 = vadd.f32 %v254_v49, %v200_v8  ;;  %v360_v23 = vpop.f32.mrf.mxu1 }
 0x12d   :  { %v306_v24 = vadd.f32 %v299_v45, %v261_v15 }
 0x12f   :  { %v367_v29 = vadd.f32 %v360_v23, %v306_v24 }
 0x130   :  { %v195_v54 = vpop.f32.mrf.mxu2 }
 0x131   :  { %v201_v25 = vadd.f32 %v195_v54, %v139_v19 }
 0x132   :  { %v256_v56 = vpop.f32.mrf.mxu3  ;;  %v538_v60 = vpop.f32.mrf.mxu0 }
 0x133   :  { %v262_v30 = vadd.f32 %v256_v56, %v201_v25  ;;  %v362_v42 = vpop.f32.mrf.mxu1  ;;  %v1155_v56 = vld [vmem:[%s2000_s4 + $0x8] sm:$0xff] }
 0x135   :  { %v307_v38 = vadd.f32 %v301_v51, %v262_v30 }
 0x137   :  { %v368_v44 = vadd.f32 %v362_v42, %v307_v38 }
 0x138   :  { %v416_v0 = vpop.f32.mrf.mxu2 }
 0x139   :  { %v426_v2 = vadd.f32 %v416_v0, %v365_v61  ;;  %v1157_v61 = vld [vmem:[%s2000_s4 + $0x18] sm:$0xff] }
 0x13a   :  { %v477_v4 = vpop.f32.mrf.mxu3  ;;  %v540_v17 = vpop.f32.mrf.mxu0 }
 0x13b   :  { %v487_v11 = vadd.f32 %v477_v4, %v426_v2 }
 0x13d   :  { %v548_v13 = vadd.f32 %v538_v60, %v487_v11  ;;  %v1156_v60 = vld [vmem:[%s2000_s4 + $0x10] sm:$0xff] }
 0x13f   :  { %v576_v16 = vadd.f32 %v559_v12, %v548_v13 }
 0x140   :  { %v418_v18 = vpop.f32.mrf.mxu2 }
 0x141   :  { %v1747_v20 = vmax.f32 %v576_v16, 0.0  ;;  %v427_v21 = vadd.f32 %v418_v18, %v366_v14 }
 0x142   :  { %v479_v22 = vpop.f32.mrf.mxu3  ;;  %v543_v37 = vpop.f32.mrf.mxu0 }
 0x143   :  { %v488_v26 = vadd.f32 %v479_v22, %v427_v21  ;;  %614 = vrot.lane.b32.xlu2 %v1747_v20, %s1504_s24 }
 0x145   :  { %v549_v28 = vadd.f32 %v540_v17, %v488_v26 }
 0x147   :  { %v577_v31 = vadd.f32 %v564_v27, %v549_v28  ;;  %v1463_v28 = vld [vmem:[%s2001_s3] sm:$0xff] }
 0x148   :  { %v421_v33 = vpop.f32.mrf.mxu2 }
 0x149   :  { %v1751_v36 = vmax.f32 %v577_v31, 0.0  ;;  %v428_v34 = vadd.f32 %v421_v33, %v367_v29 }
 0x14a   :  { %v482_v35 = vpop.f32.mrf.mxu3  ;;  %v545_v51 = vpop.f32.mrf.mxu0 }
 0x14b   :  { %v489_v41 = vadd.f32 %v482_v35, %v428_v34  ;;  %616 = vrot.lane.b32.xlu0 %v1751_v36, %s1504_s24 }
 0x14d   :  { %v550_v43 = vadd.f32 %v543_v37, %v489_v41  ;;  %v1465_v41 = vld [vmem:[%s2001_s3 + $0x10] sm:$0xff] }
 0x14f   :  { %v578_v45 = vadd.f32 %v569_v5, %v550_v43 }
 0x150   :  { %v423_v46 = vpop.f32.mrf.mxu2 }
 0x151   :  { %v1755_v47 = vmax.f32 %v578_v45, 0.0  ;;  %v429_v48 = vadd.f32 %v423_v46, %v368_v44  ;;  %v1464_v45 = vld [vmem:[%s2001_s3 + $0x8] sm:$0xff] }
 0x152   :  { %v484_v49 = vpop.f32.mrf.mxu3 }
 0x153   :  { %v490_v50 = vadd.f32 %v484_v49, %v429_v48  ;;  %590 = vrot.lane.b32.xlu0 %v1751_v36, %s1503_s23  ;;  %592 = vrot.lane.b32.xlu1 %v1755_v47, %s1503_s23 }
 0x154   :  { %618 = vrot.lane.b32.xlu2 %v1755_v47, %s1504_s24 }
 0x155   :  { %v551_v53 = vadd.f32 %v545_v51, %v490_v50  ;;  %v1466_v51 = vld [vmem:[%s2001_s3 + $0x18] sm:$0xff] }
 0x157   :  { %v579_v54 = vadd.f32 %v574_v52, %v551_v53 }
 0x159   :  { %v1763_v55 = vmax.f32 %v579_v54, 0.0 }
 0x15b   :  { %716 = vrot.lane.b32.xlu0 %v1755_v47, %s1505_s25  ;;  %620 = vrot.lane.b32.xlu1 %v1763_v55, %s1504_s24  ;;  %v850_v38 = vpack.c.bf16 %v1763_v55, %v1755_v47 }
 0x15c   :  { %588 = vrot.lane.b32.xlu2 %v1747_v20, %s1503_s23 }
 0x163   :  { %782 = vrot.lane.b32.xlu0 %v1755_v47, %s1506_s28  ;;  %712 = vrot.lane.b32.xlu1 %v1747_v20, %s1505_s25 }
 0x164   :  { %714 = vrot.lane.b32.xlu2 %v1751_v36, %s1505_s25 }
 0x16b   :  { %780 = vrot.lane.b32.xlu0 %v1751_v36, %s1506_s28  ;;  %894 = vrot.lane.b32.xlu1 %v1755_v47, %s1509_s30 }
 0x16c   :  { %594 = vrot.lane.b32.xlu2 %v1763_v55, %s1503_s23 }
 0x173   :  { %960 = vrot.lane.b32.xlu0 %v1755_v47, %s1507_s29  ;;  %718 = vrot.lane.b32.xlu1 %v1763_v55, %s1505_s25 }
 0x174   :  { %778 = vrot.lane.b32.xlu2 %v1747_v20, %s1506_s28 }
 0x17b   :  { %892 = vrot.lane.b32.xlu0 %v1751_v36, %s1509_s30  ;;  %784 = vrot.lane.b32.xlu1 %v1763_v55, %s1506_s28 }
 0x17c   :  { %890 = vrot.lane.b32.xlu2 %v1747_v20, %s1509_s30 }
 0x183   :  { %1026 = vrot.lane.b32.xlu0 %v1755_v47, %s1508_s0  ;;  %956 = vrot.lane.b32.xlu1 %v1747_v20, %s1507_s29 }
 0x184   :  { %958 = vrot.lane.b32.xlu2 %v1751_v36, %s1507_s29 }
 0x18b   :  { %1094 = vrot.lane.b32.xlu0 %v1763_v55, %s1510_s7  ;;  %1022 = vrot.lane.b32.xlu1 %v1747_v20, %s1508_s0 }
 0x18c   :  { %896 = vrot.lane.b32.xlu2 %v1763_v55, %s1509_s30 }
 0x193   :  { %1088 = vrot.lane.b32.xlu0 %v1747_v20, %s1510_s7  ;;  %962 = vrot.lane.b32.xlu1 %v1763_v55, %s1507_s29 }
 0x194   :  { %1092 = vrot.lane.b32.xlu2 %v1755_v47, %s1510_s7 }
 0x19b   :  { %1165 = vperm.xlu0 %1494, %v1155_v56   ;;  %1028 = vrot.lane.b32.xlu1 %v1763_v55, %s1508_s0 }
 0x19c   :  { %1024 = vrot.lane.b32.xlu2 %v1751_v36, %s1508_s0 }
 0x19d   :  { %v615_v59 = vpop.permute.xlu2 %614 }
 0x1a3   :  { %1090 = vrot.lane.b32.xlu1 %v1751_v36, %s1510_s7 }
 0x1a4   :  { %1160 = vperm.xlu2 %1493, %v1154_v57  }
 0x1ab   :  { %1170 = vperm.xlu1 %1492, %v1156_v60  }
 0x1ac   :  { %1175 = vperm.xlu2 %1493, %v1157_v61  }
 0x1ae   :  { %v619_v62 = vpop.permute.xlu2 %618 }
 0x1af   :  { %v628_v17 = vsel %vm54_vm2, 0.0, %v619_v62 }
 0x1b0   :  { %v632_v26 = vmul.f32 %v1604_v10, %v628_v17 }
 0x1b6   :  { %v589_v63 = vpop.permute.xlu2 %588 }
 0x1b7   :  { %v600_v14 = vsel %vm34_vm1, 0.0, %v589_v63 }
 0x1b8   :  { %v604_v18 = vmul.f32 %v1599_v9, %v600_v14 }
 0x1bd   :  { %v617_v0 = vpop.permute.xlu0 %616 }
 0x1be   :  { %v715_v1 = vpop.permute.xlu2 %714  ;;  %v627_v22 = vsel %vm54_vm2, 0.0, %v617_v0 }
 0x1bf   :  { %v631_v29 = vmul.f32 %v1604_v10, %v627_v22  ;;  %v725_v55 = vsel %vm147_vm0, 0.0, %v715_v1 }
 0x1c0   :  { %v729_v62 = vmul.f32 %v1592_v6, %v725_v55 }
 0x1c5   :  { %v591_v2 = vpop.permute.xlu0 %590  ;;  %v593_v4 = vpop.permute.xlu1 %592 }
 0x1c6   :  { %v602_v5 = vsel %vm34_vm1, 0.0, %v593_v4  ;;  %v595_v7 = vpop.permute.xlu2 %594  ;;  %v601_v8 = vsel %vm34_vm1, 0.0, %v591_v2 }
 0x1c7   :  { %v606_v11 = vmul.f32 %v1599_v9, %v602_v5  ;;  %v603_v12 = vsel %vm34_vm1, 0.0, %v595_v7  ;;  %v605_v15 = vmul.f32 %v1599_v9, %v601_v8 }
 0x1c8   :  { %v607_v13 = vmul.f32 %v1599_v9, %v603_v12  ;;  %v626_v9 = vsel %vm54_vm2, 0.0, %v615_v59 }
 0x1c9   :  { %v612_v23 = vpack.c.bf16 %v605_v15, %v604_v18  ;;  %v630_v31 = vmul.f32 %v1604_v10, %v626_v9 }
 0x1ca   :  { %v613_v16 = vpack.c.bf16 %v607_v13, %v606_v11  ;;  %v1467_v11 = vld [vmem:[%s2001_s3 + $0x20] sm:$0xff] }
 0x1cb   :  { %v639_v33 = vpack.c.bf16 %v631_v29, %v630_v31  ;;  %v1468_v29 = vld [vmem:[%s2001_s3 + $0x28] sm:$0xff] }
 0x1cc   :  { %699 = vmatpush.bf16.msrb.mxu2 %v613_v16 }
 0x1cd   :  { %v717_v19 = vpop.permute.xlu0 %716  ;;  %v621_v21 = vpop.permute.xlu1 %620 }
 0x1ce   :  { %v1841_v24 = vpop.permute.xlu2 %778  ;;  %v629_v25 = vsel %vm54_vm2, 0.0, %v621_v21  ;;  %v726_v46 = vsel %vm147_vm0, 0.0, %v717_v19  ;;  %v1473_v19 = vld [vmem:[%s2001_s3 + $0x50] sm:$0xff] }
 0x1cf   :  { %v633_v27 = vmul.f32 %v1604_v10, %v629_v25  ;;  %v849_v10 = vpack.c.bf16 %v1751_v36, %v1747_v20  ;;  %v730_v52 = vmul.f32 %v1592_v6, %v726_v46  ;;  %v790_v15 = vsel %vm208_vm4, 0.0, %v1841_v24  ;;  %v1469_v24 = vld [vmem:[%s2001_s3 + $0x30] sm:$0xff]  ;;  %v1471_v25 = vld [vmem:[%s2001_s3 + $0x40] sm:$0xff] }
 0x1d0   :  { %700 = vmatpush.bf16.msrb.mxu2 %v612_v23  ;;  %v794_v21 = vmul.f32 %v1633_v32, %v790_v15 }
 0x1d1   :  { %v640_v30 = vpack.c.bf16 %v633_v27, %v632_v26 }
 0x1d3   :  { %664 = vmatpush.bf16.msra.mxu1 %v640_v30  ;;  %1345 = vmatmul.msk.bf16.vlgmr.msrb.gmra.mxu2 %vm651_vm9, %v1463_v28 }
 0x1d5   :  { %v783_v34 = vpop.permute.xlu0 %782  ;;  %v713_v35 = vpop.permute.xlu1 %712 }
 0x1d6   :  { %v891_v37 = vpop.permute.xlu2 %890  ;;  %v724_v20 = vsel %vm147_vm0, 0.0, %v713_v35  ;;  %v792_v63 = vsel %vm208_vm4, 0.0, %v783_v34  ;;  %v1474_v34 = vld [vmem:[%s2001_s3 + $0x58] sm:$0xff] }
 0x1d7   :  { %665 = vmatpush.bf16.msra.mxu1 %v639_v33  ;;  %v728_v59 = vmul.f32 %v1592_v6, %v724_v20  ;;  %v902_v0 = vsel %vm314_vm7, %v891_v37, 0.0 }
 0x1d8   :  { %v906_v12 = vmul.f32 %v1673_v58, %v902_v0 }
 0x1d9   :  { %v737_v2 = vpack.c.bf16 %v729_v62, %v728_v59 }
 0x1da   :  { %1335 = vmatmul.msk.bf16.vlgmr.msra.gmra.mxu1 %vm651_vm9, %v1465_v41 }
 0x1db   :  { %873 = vmatpush.bf16.msrb.mxu1 %v850_v38 }
 0x1dd   :  { %v781_v42 = vpop.permute.xlu0 %780  ;;  %v895_v43 = vpop.permute.xlu1 %894 }
 0x1de   :  { %v1861_v44 = vpop.permute.xlu2 %958  ;;  %v904_v47 = vsel %vm314_vm7, %v895_v43, 0.0  ;;  %v791_v5 = vsel %vm208_vm4, 0.0, %v781_v42  ;;  %v1472_v42 = vld [vmem:[%s2001_s3 + $0x48] sm:$0xff] }
 0x1df   :  { %874 = vmatpush.bf16.msrb.mxu1 %v849_v10  ;;  %v908_v56 = vmul.f32 %v1673_v58, %v904_v47  ;;  %v795_v16 = vmul.f32 %v1633_v32, %v791_v5  ;;  %v1470_v10 = vld [vmem:[%s2001_s3 + $0x38] sm:$0xff]  ;;  %v969_v46 = vsel %vm375_vm6, %v1861_v44, 0.0  ;;  %v1475_v44 = vld [vmem:[%s2001_s3 + $0x60] sm:$0xff] }
 0x1e3   :  { %1346 = vmatmul.msk.bf16.gmra.mxu2 %vm651_vm9, %v1464_v45 }
 0x1e5   :  { %v1869_v48 = vpop.permute.xlu0 %960  ;;  %v719_v49 = vpop.permute.xlu1 %718 }
 0x1e6   :  { %v897_v36 = vpop.permute.xlu2 %896  ;;  %v727_v50 = vsel %vm147_vm0, 0.0, %v719_v49  ;;  %v970_v35 = vsel %vm375_vm6, %v1869_v48, 0.0  ;;  %v973_v49 = vmul.f32 %v1651_v40, %v969_v46 }
 0x1e7   :  { %v905_v53 = vsel %vm314_vm7, %v897_v36, 0.0  ;;  %v731_v54 = vmul.f32 %v1592_v6, %v727_v50  ;;  %v796_v6 = vmul.f32 %v1633_v32, %v792_v63  ;;  %v974_v43 = vmul.f32 %v1651_v40, %v970_v35 }
 0x1e8   :  { %v909_v57 = vmul.f32 %v1673_v58, %v905_v53 }
 0x1e9   :  { %v738_v60 = vpack.c.bf16 %v731_v54, %v730_v52 }
 0x1ea   :  { %v916_v61 = vpack.c.bf16 %v909_v57, %v908_v56  ;;  %1336 = vmatmul.msk.bf16.gmra.mxu1 %vm651_vm9, %v1466_v51 }
 0x1eb   :  { %761 = vmatpush.bf16.msrb.mxu3 %v738_v60 }
 0x1ec   :  { %939 = vmatpush.bf16.msra.mxu2 %v916_v61 }
 0x1ed   :  { %v893_v1 = vpop.permute.xlu0 %892  ;;  %v785_v4 = vpop.permute.xlu1 %784 }
 0x1ee   :  { %v903_v7 = vsel %vm314_vm7, %v893_v1, 0.0  ;;  %v793_v8 = vsel %vm208_vm4, 0.0, %v785_v4  ;;  %v1093_v26 = vpop.permute.xlu2 %1092 }
 0x1ef   :  { %v907_v13 = vmul.f32 %v1673_v58, %v903_v7  ;;  %v797_v14 = vmul.f32 %v1633_v32, %v793_v8  ;;  %762 = vmatpush.bf16.msrb.mxu3 %v737_v2  ;;  %v803_v58 = vpack.c.bf16 %v795_v16, %v794_v21  ;;  %v1102_v32 = vsel %vm497_vm8, %v1093_v26, 0.0  ;;  %v1477_v2 = vld [vmem:[%s2001_s3 + $0x70] sm:$0xff]  ;;  %v1476_v7 = vld [vmem:[%s2001_s3 + $0x68] sm:$0xff] }
 0x1f0   :  { %v1106_v30 = vmul.f32 %v1685_v3, %v1102_v32  ;;  %v1480_v8 = vld [vmem:[%s2001_s3 + $0x88] sm:$0xff] }
 0x1f1   :  { %v915_v17 = vpack.c.bf16 %v907_v13, %v906_v12  ;;  %v804_v18 = vpack.c.bf16 %v797_v14, %v796_v6 }
 0x1f2   :  { %1359 = vmatmul.msk.bf16.vlgmr.msrb.gmra.mxu3 %vm651_vm9, %v1467_v11 }
 0x1f3   :  { %827 = vmatpush.bf16.msrb.mxu0 %v804_v18  ;;  %940 = vmatpush.bf16.msra.mxu2 %v915_v17 }
 0x1f5   :  { %v1027_v22 = vpop.permute.xlu0 %1026  ;;  %v957_v23 = vpop.permute.xlu1 %956 }
 0x1f6   :  { %1401 = vmatmul.msk.bf16.vlgmr.msra.gmra.mxu2 %vm651_vm9, %v1473_v19  ;;  %v968_v38 = vsel %vm375_vm6, %v957_v23, 0.0  ;;  %v1036_v20 = vsel %vm436_vm5, %v1027_v22, 0.0  ;;  %v1025_v36 = vpop.permute.xlu2 %1024 }
 0x1f7   :  { %828 = vmatpush.bf16.msrb.mxu0 %v803_v58  ;;  %v972_v47 = vmul.f32 %v1651_v40, %v968_v38  ;;  %v1040_v54 = vmul.f32 %v1646_v39, %v1036_v20 }
 0x1f9   :  { %v981_v50 = vpack.c.bf16 %v973_v49, %v972_v47 }
 0x1fa   :  { %1373 = vmatmul.msk.bf16.vlgmr.msrb.gmra.mxu0 %vm651_vm9, %v1469_v24  ;;  %1387 = vmatmul.msk.bf16.vlgmr.msrb.gmra.mxu1 %vm651_vm9, %v1471_v25 }
 0x1fd   :  { %v1095_v27 = vpop.permute.xlu0 %1094  ;;  %v1023_v28 = vpop.permute.xlu1 %1022 }
 0x1fe   :  { %v1103_v9 = vsel %vm497_vm8, %v1095_v27, 0.0  ;;  %v1034_v52 = vsel %vm436_vm5, %v1023_v28, 0.0 }
 0x1ff   :  { %v1107_v31 = vmul.f32 %v1685_v3, %v1103_v9  ;;  %v1038_v56 = vmul.f32 %v1646_v39, %v1034_v52 }
 0x201   :  { %v1114_v33 = vpack.c.bf16 %v1107_v31, %v1106_v30 }
 0x202   :  { %1360 = vmatmul.msk.bf16.gmra.mxu3 %vm651_vm9, %v1468_v29 }
 0x203   :  { %1137 = vmatpush.bf16.msra.mxu1 %v1114_v33 }
 0x205   :  { %v963_v37 = vpop.permute.xlu1 %962  ;;  %v1089_v57 = vpop.permute.xlu0 %1088 }
 0x206   :  { %v971_v41 = vsel %vm375_vm6, %v963_v37, 0.0  ;;  %1402 = vmatmul.msk.bf16.gmra.mxu2 %vm651_vm9, %v1474_v34  ;;  %v1100_v61 = vsel %vm497_vm8, %v1089_v57, 0.0 }
 0x207   :  { %v975_v45 = vmul.f32 %v1651_v40, %v971_v41  ;;  %v1035_v40 = vsel %vm436_vm5, %v1025_v36, 0.0  ;;  %v1104_v1 = vmul.f32 %v1685_v3, %v1100_v61 }
 0x208   :  { %v1039_v60 = vmul.f32 %v1646_v39, %v1035_v40 }
 0x209   :  { %v982_v48 = vpack.c.bf16 %v975_v45, %v974_v43 }
 0x20a   :  { %1374 = vmatmul.msk.bf16.gmra.mxu0 %vm651_vm9, %v1470_v10  ;;  %1388 = vmatmul.msk.bf16.gmra.mxu1 %vm651_vm9, %v1472_v42  ;;  %v1047_v62 = vpack.c.bf16 %v1039_v60, %v1038_v56 }
 0x20b   :  { %1005 = vmatpush.bf16.msra.mxu3 %v982_v48 }
 0x20d   :  { %v1029_v51 = vpop.permute.xlu1 %1028 }
 0x20e   :  { %v1037_v53 = vsel %vm436_vm5, %v1029_v51, 0.0  ;;  %v1161_v51 = vpop.permute.xlu2 %1160 }
 0x20f   :  { %v1041_v55 = vmul.f32 %v1646_v39, %v1037_v53  ;;  %1006 = vmatpush.bf16.msra.mxu3 %v981_v50  ;;  %v1479_v39 = vld [vmem:[%s2001_s3 + $0x80] sm:$0xff] }
 0x211   :  { %v1048_v59 = vpack.c.bf16 %v1041_v55, %v1040_v54 }
 0x212   :  { %1415 = vmatmul.msk.bf16.vlgmr.msra.gmra.mxu3 %vm651_vm9, %v1475_v44 }
 0x213   :  { %1071 = vmatpush.bf16.msra.mxu0 %v1048_v59 }
 0x215   :  { %v1091_v63 = vpop.permute.xlu1 %1090 }
 0x216   :  { %v1101_v0 = vsel %vm497_vm8, %v1091_v63, 0.0 }
 0x217   :  { %v1105_v4 = vmul.f32 %v1685_v3, %v1101_v0  ;;  %1072 = vmatpush.bf16.msra.mxu0 %v1047_v62  ;;  %v1478_v3 = vld [vmem:[%s2001_s3 + $0x78] sm:$0xff] }
 0x219   :  { %v1113_v5 = vpack.c.bf16 %v1105_v4, %v1104_v1 }
 0x21a   :  { %1429 = vmatmul.msk.bf16.vlgmr.msra.gmra.mxu0 %vm651_vm9, %v1477_v2  ;;  %v1166_v2 = vpop.permute.xlu0 %1165 }
 0x21b   :  { %1138 = vmatpush.bf16.msra.mxu1 %v1113_v5 }
 0x21e   :  { %1443 = vmatmul.msk.bf16.vlgmr.msra.gmra.mxu1 %vm651_vm9, %v1479_v39 }
 0x222   :  { %1416 = vmatmul.msk.bf16.gmra.mxu3 %vm651_vm9, %v1476_v7 }
 0x22a   :  { %1430 = vmatmul.msk.bf16.gmra.mxu0 %vm651_vm9, %v1478_v3 }
 0x22e   :  { %1444 = vmatmul.msk.bf16.gmra.mxu1 %vm651_vm9, %v1480_v8 }
 0x256   :  { %v702_v12 = vpop.f32.mrf.mxu2 }
 0x257   :  { %v667_v11 = vpop.f32.mrf.mxu1 }
 0x258   :  { %v703_v25 = vadd.f32 %v702_v12, %v667_v11 }
 0x25e   :  { %v704_v14 = vpop.f32.mrf.mxu2 }
 0x25f   :  { %v669_v6 = vpop.f32.mrf.mxu1 }
 0x260   :  { %v705_v30 = vadd.f32 %v704_v14, %v669_v6  ;;  %v1171_v14 = vpop.permute.xlu1 %1170 }
 0x266   :  { %v707_v19 = vpop.f32.mrf.mxu2 }
 0x267   :  { %v672_v13 = vpop.f32.mrf.mxu1 }
 0x268   :  { %v708_v42 = vadd.f32 %v707_v19, %v672_v13 }
 0x26e   :  { %v709_v23 = vpop.f32.mrf.mxu2 }
 0x26f   :  { %v674_v15 = vpop.f32.mrf.mxu1 }
 0x270   :  { %v710_v53 = vadd.f32 %v709_v23, %v674_v15  ;;  %v1176_v23 = vpop.permute.xlu2 %1175 }
 0x275   :  { %v764_v16 = vpop.f32.mrf.mxu3 }
 0x276   :  { %v774_v32 = vadd.f32 %v764_v16, %v703_v25 }
 0x277   :  { %v830_v17 = vpop.f32.mrf.mxu0  ;;  %v876_v18 = vpop.f32.mrf.mxu1 }
 0x278   :  { %v840_v9 = vadd.f32 %v830_v17, %v774_v32 }
 0x279   :  { %v942_v28 = vpop.f32.mrf.mxu2 }
 0x27a   :  { %v886_v33 = vadd.f32 %v876_v18, %v840_v9 }
 0x27c   :  { %v952_v37 = vadd.f32 %v942_v28, %v886_v33 }
 0x27d   :  { %v766_v21 = vpop.f32.mrf.mxu3 }
 0x27e   :  { %v775_v34 = vadd.f32 %v766_v21, %v705_v30 }
 0x27f   :  { %v832_v58 = vpop.f32.mrf.mxu0  ;;  %v878_v22 = vpop.f32.mrf.mxu1 }
 0x280   :  { %v841_v38 = vadd.f32 %v832_v58, %v775_v34 }
 0x281   :  { %v944_v41 = vpop.f32.mrf.mxu2 }
 0x282   :  { %v887_v46 = vadd.f32 %v878_v22, %v841_v38 }
 0x284   :  { %v953_v20 = vadd.f32 %v944_v41, %v887_v46 }
 0x285   :  { %v769_v24 = vpop.f32.mrf.mxu3 }
 0x286   :  { %v776_v47 = vadd.f32 %v769_v24, %v708_v42 }
 0x287   :  { %v835_v26 = vpop.f32.mrf.mxu0  ;;  %v881_v27 = vpop.f32.mrf.mxu1 }
 0x288   :  { %v842_v36 = vadd.f32 %v835_v26, %v776_v47 }
 0x289   :  { %v947_v55 = vpop.f32.mrf.mxu2 }
 0x28a   :  { %v888_v56 = vadd.f32 %v881_v27, %v842_v36 }
 0x28c   :  { %v954_v62 = vadd.f32 %v947_v55, %v888_v56 }
 0x28d   :  { %v771_v29 = vpop.f32.mrf.mxu3 }
 0x28e   :  { %v777_v57 = vadd.f32 %v771_v29, %v710_v53 }
 0x28f   :  { %v837_v31 = vpop.f32.mrf.mxu0  ;;  %v883_v35 = vpop.f32.mrf.mxu1 }
 0x290   :  { %v843_v63 = vadd.f32 %v837_v31, %v777_v57 }
 0x291   :  { %v949_v8 = vpop.f32.mrf.mxu2 }
 0x292   :  { %v889_v7 = vadd.f32 %v883_v35, %v843_v63 }
 0x294   :  { %v955_v12 = vadd.f32 %v949_v8, %v889_v7 }
 0x295   :  { %v1008_v10 = vpop.f32.mrf.mxu3 }
 0x296   :  { %v1018_v43 = vadd.f32 %v1008_v10, %v952_v37 }
 0x297   :  { %v1074_v45 = vpop.f32.mrf.mxu0 }
 0x298   :  { %v1084_v48 = vadd.f32 %v1074_v45, %v1018_v43 }
 0x29b   :  { %v1140_v49 = vpop.f32.mrf.mxu1 }
 0x29c   :  { %v1150_v50 = vadd.f32 %v1140_v49, %v1084_v48 }
 0x29d   :  { %v1010_v52 = vpop.f32.mrf.mxu3 }
 0x29e   :  { %v1178_v44 = vadd.f32 %v1161_v51, %v1150_v50  ;;  %v1019_v54 = vadd.f32 %v1010_v52, %v953_v20 }
 0x29f   :  { %v1076_v40 = vpop.f32.mrf.mxu0 }
 0x2a0   :  { %v1182_v59 = vmax.f32 %v1178_v44, 0.0  ;;  %v1085_v60 = vadd.f32 %v1076_v40, %v1019_v54 }
 0x2a2   :  { %1186 = vst.msk [vmem:[%s2002_s6] sm:$0xff] %vm651_vm9, %v1182_v59 }
 0x2a3   :  { %v1142_v61 = vpop.f32.mrf.mxu1 }
 0x2a4   :  { %v1151_v0 = vadd.f32 %v1142_v61, %v1085_v60 }
 0x2a5   :  { %v1013_v1 = vpop.f32.mrf.mxu3 }
 0x2a6   :  { %v1179_v4 = vadd.f32 %v1166_v2, %v1151_v0  ;;  %v1020_v5 = vadd.f32 %v1013_v1, %v954_v62 }
 0x2a7   :  { %v1079_v39 = vpop.f32.mrf.mxu0 }
 0x2a8   :  { %v1183_v3 = vmax.f32 %v1179_v4, 0.0  ;;  %v1086_v11 = vadd.f32 %v1079_v39, %v1020_v5 }
 0x2aa   :  { %1187 = vst.msk [vmem:[%s2002_s6 + $0x8] sm:$0xff] %vm651_vm9, %v1183_v3 }
 0x2ab   :  { %v1145_v6 = vpop.f32.mrf.mxu1 }
 0x2ac   :  { %v1152_v13 = vadd.f32 %v1145_v6, %v1086_v11 }
 0x2ad   :  { %v1015_v15 = vpop.f32.mrf.mxu3 }
 0x2ae   :  { %v1180_v16 = vadd.f32 %v1171_v14, %v1152_v13  ;;  %v1021_v17 = vadd.f32 %v1015_v15, %v955_v12 }
 0x2af   :  { %v1081_v18 = vpop.f32.mrf.mxu0 }
 0x2b0   :  { %v1184_v19 = vmax.f32 %v1180_v16, 0.0  ;;  %v1087_v21 = vadd.f32 %v1081_v18, %v1021_v17 }
 0x2b2   :  { %1188 = vst.msk [vmem:[%s2002_s6 + $0x10] sm:$0xff] %vm651_vm9, %v1184_v19 }
 0x2b3   :  { %v1147_v58 = vpop.f32.mrf.mxu1 }
 0x2b4   :  { %v1153_v22 = vadd.f32 %v1147_v58, %v1087_v21 }
 0x2b6   :  { %v1181_v24 = vadd.f32 %v1176_v23, %v1153_v22 }
 0x2b8   :  { %v1185_v25 = vmax.f32 %v1181_v24, 0.0 }
 0x2ba   :  { %1189 = vst.msk [vmem:[%s2002_s6 + $0x18] sm:$0xff] %vm651_vm9, %v1185_v25 }

// kernel: unet_forward.5
= control target key start
LH: loop header
LB: loop body
LE: loop exit
PB: predicated region body
PF: predicated region fallthrough
CT: control target
= control target key end

     0   :  { %14 = vsyncpa [#allocation3], 0  ;;  %s1731_s30 = smov [#allocation2]   ;;  %s1732_s10 = smov 128   ;;  %s2507_s0 = inlined_call_operand.vmem [shape: f32[1,512], index: 0, kind: input, shape index: {}]   ;;  %s2508_s1 = inlined_call_operand.vmem [shape: bf16[9,8,1], index: 1, kind: input, shape index: {}]   ;;  %s2509_s2 = inlined_call_operand.vmem [shape: f32[8,1], index: 2, kind: input, shape index: {}]   ;;  %s2510_s3 = inlined_call_operand.vmem [shape: bf16[9,8,8], index: 3, kind: input, shape index: {}]   ;;  %s2511_s4 = inlined_call_operand.vmem [shape: f32[8,1], index: 4, kind: input, shape index: {}]   ;;  %s2512_s5 = inlined_call_operand.vmem [shape: f32[9,1,512], index: 5, kind: input, shape index: {}]   ;;  %s2513_s6 = inlined_call_operand.hbm [shape: f32[512,128], index: 6, kind: input, shape index: {}]   ;;  %s2514_s7 = inlined_call_operand.vmem [shape: f32[8,512], index: 7, kind: output, shape index: {0}]   ;;  %s2515_s8 = inlined_call_operand.vmem [shape: f32[8,128], index: 8, kind: output, shape index: {1}]  }
   0x1   :  { %s31_s29 = sshll.u32 %s2513_s6, 4  ;;  %s33_s9 = sshll.u32 %s1731_s30, 4  ;;  %s32_s29 = int_to_ptr.hbm [resolvable:$true] %s31_s29  ;;  %s34_s9 = int_to_ptr.vmem [resolvable:$true] %s33_s9 }
   0x2   :  { %s1733_s11 = smov 8  }
   0x3   :  { %39 = dma.hbm_to_vmem [thread:$0]  %s32_s29, 8192, %s34_s9, [#allocation3], %s1732_s10, %s1732_s10, %s1733_s11  }
   0x4   :  { %1729 = dma.done.wait [#allocation3], 8192  }
   0x5   :  { %1730 = vsyncadd [#allocation3], 4294959104  ;;  %v45_v0 = vld [vmem:[%s2507_s0] sm:$0xf]  ;;  %s1734_s14 = smov 17   ;;  %s1735_s6 = smov 16  }
   0x6   :  { %v1794_v1 = vperm.slane %v45_v0, 2  ;;  %v1796_v2 = vperm.slane %v45_v0, 0  ;;  %v1736_v3 = vmov 0   ;;  %v1804_v4 = vperm.slane %v45_v0, 3  ;;  %s1737_s0 = smov 15   ;;  %v82_v6 = vld [vmem:[%s2508_s1] sm:$0xff]  }
   0x7   :  { %1658 = vset.pattern.permute.xlu2 %v1736_v3  ;;  %1652 = vset.pattern.permute.xlu1 %v1736_v3  ;;  %v1806_v5 = vperm.slane %v45_v0, 1  ;;  %v1584_v7 = vld [vmem:[%s2508_s1 + $0x8] sm:$0xff]   ;;  %s1738_s19 = smov 1   ;;  %v83_v8 = vunpack.c.l.bf16 %v82_v6  ;;  %v131_v9 = vunpack.c.h.bf16 %v82_v6  ;;  %s1739_s20 = smov 127   ;;  %v1587_v14 = vld [vmem:[%s2508_s1 + $0x10] sm:$0xff]   ;;  %v1591_v18 = vld [vmem:[%s2508_s1 + $0x18] sm:$0xff]  }
   0x8   :  { %55 = vrot.lane.b32.xlu1 %v1794_v1, %s1734_s14  ;;  %97 = vrot.lane.b32.xlu2 %v1796_v2, %s1735_s6  ;;  %v183_v10 = vunpack.c.l.bf16 %v1584_v7  ;;  %v235_v11 = vunpack.c.h.bf16 %v1584_v7  ;;  %s1740_s23 = smov 113   ;;  %v255_v15 = vunpack.c.l.bf16 %v1587_v14  ;;  %v307_v16 = vunpack.c.h.bf16 %v1587_v14  ;;  %s1741_s24 = smov 112   ;;  %v1595_v22 = vld [vmem:[%s2508_s1 + $0x20] sm:$0xf]  ;;  %v1907_v42 = vld [vmem:[%s2512_s5 + $0x4] sm:$0xf] }
   0x9   :  { %51 = vrot.lane.b32.xlu0 %v1796_v2, %s1734_s14  ;;  %v1653_v12 = vpack.i.bf16 %v131_v9, %v83_v8  ;;  %s1742_s27 = smov 111   ;;  %v359_v19 = vunpack.c.l.bf16 %v1591_v18  ;;  %v411_v20 = vunpack.c.h.bf16 %v1591_v18  ;;  %v463_v23 = vunpack.c.l.bf16 %v1595_v22  ;;  %v481_v25 = vld [vmem:[%s2509_s2] sm:$0xff]  ;;  %v1917_v44 = vld [vmem:[%s2512_s5 + $0x8] sm:$0xf] }
   0xa   :  { %1664 = vset.pattern.permute.xlu0 %v1736_v3  ;;  %v1659_v13 = vpack.i.bf16 %v235_v11, %v183_v10  ;;  %v1665_v17 = vpack.i.bf16 %v307_v16, %v255_v15  ;;  %vm105_vm0 = vcmask 130048   ;;  %vm59_vm1 = vcmask 138240   ;;  %v1912_v43 = vld [vmem:[%s2512_s5] sm:$0xf] }
   0xb   :  { %v1670_v21 = vpack.i.bf16 %v411_v20, %v359_v19  ;;  %v117_v45 = vperm.slane %v1907_v42, 0  ;;  %vm157_vm2 = vcmask 121856   ;;  %v2526_v46 = vperm.slane %v1912_v43, 0 }
   0xc   :  { %v2529_v48 = vperm.slane %v1907_v42, 1  ;;  %v2525_v50 = vperm.slane %v1912_v43, 1  ;;  %v72_v51 = vperm.slane %v1912_v43, 2  ;;  %v2528_v53 = vperm.slane %v1917_v44, 0 }
   0xd   :  { %v119_v56 = vperm.slane %v1907_v42, 2  ;;  %vm281_vm3 = vcmask 1039360   ;;  %vm209_vm4 = vcmask 7168   ;;  %vm333_vm5 = vcmask 924672  }
   0xe   :  { %vm385_vm6 = vcmask 916480   ;;  %vm437_vm7 = vcmask 908288   ;;  %vm554_vm8 = vcmask 1043456   ;;  %vm550_vm9 = vcmask 64512  }
  0x10   :  { %57 = vrot.lane.b32.xlu1 %v1804_v4, %s1734_s14  ;;  %99 = vrot.lane.b32.xlu2 %v1806_v5, %s1735_s6 }
  0x11   :  { %53 = vrot.lane.b32.xlu0 %v1806_v5, %s1734_s14 }
  0x18   :  { %103 = vrot.lane.b32.xlu1 %v1804_v4, %s1735_s6  ;;  %149 = vrot.lane.b32.xlu2 %v1796_v2, %s1737_s0 }
  0x19   :  { %101 = vrot.lane.b32.xlu0 %v1794_v1, %s1735_s6 }
  0x20   :  { %153 = vrot.lane.b32.xlu1 %v1794_v1, %s1737_s0  ;;  %155 = vrot.lane.b32.xlu2 %v1804_v4, %s1737_s0 }
  0x21   :  { %151 = vrot.lane.b32.xlu0 %v1806_v5, %s1737_s0 }
  0x28   :  { %203 = vrot.lane.b32.xlu1 %v1806_v5, %s1738_s19  ;;  %205 = vrot.lane.b32.xlu2 %v1794_v1, %s1738_s19 }
  0x29   :  { %201 = vrot.lane.b32.xlu0 %v1796_v2, %s1738_s19 }
  0x30   :  { %1654 = vperm.xlu1 %1652, %v1653_v12   ;;  %1660 = vperm.xlu2 %1658, %v1659_v13  }
  0x31   :  { %207 = vrot.lane.b32.xlu0 %v1804_v4, %s1738_s19 }
  0x38   :  { %277 = vrot.lane.b32.xlu1 %v1794_v1, %s1739_s20  ;;  %279 = vrot.lane.b32.xlu2 %v1804_v4, %s1739_s20 }
  0x39   :  { %275 = vrot.lane.b32.xlu0 %v1806_v5, %s1739_s20 }
  0x40   :  { %329 = vrot.lane.b32.xlu1 %v1794_v1, %s1740_s23  ;;  %331 = vrot.lane.b32.xlu2 %v1804_v4, %s1740_s23 }
  0x41   :  { %327 = vrot.lane.b32.xlu0 %v1806_v5, %s1740_s23 }
  0x48   :  { %379 = vrot.lane.b32.xlu1 %v1806_v5, %s1741_s24  ;;  %381 = vrot.lane.b32.xlu2 %v1794_v1, %s1741_s24 }
  0x49   :  { %1666 = vperm.xlu0 %1664, %v1665_v17  }
  0x50   :  { %383 = vrot.lane.b32.xlu1 %v1804_v4, %s1741_s24  ;;  %431 = vrot.lane.b32.xlu2 %v1806_v5, %s1742_s27 }
  0x51   :  { %433 = vrot.lane.b32.xlu0 %v1794_v1, %s1742_s27 }
  0x58   :  { %435 = vrot.lane.b32.xlu1 %v1804_v4, %s1742_s27  ;;  %1671 = vperm.xlu2 %1658, %v1670_v21  }
  0x59   :  { %273 = vrot.lane.b32.xlu0 %v1796_v2, %s1739_s20 }
  0x60   :  { %466 = vperm.xlu1 %1652, %v463_v23   ;;  %325 = vrot.lane.b32.xlu2 %v1796_v2, %s1740_s23 }
  0x61   :  { %377 = vrot.lane.b32.xlu0 %v1796_v2, %s1741_s24 }
  0x62   :  { %v98_v24 = vpop.permute.xlu2 %97 }
  0x63   :  { %v113_v57 = vsel %vm105_vm0, 0.0, %v98_v24 }
  0x64   :  { %v125_v0 = vmul.f32 %v117_v45, %v113_v57  ;;  %v120_v57 = vperm.slane %v1907_v42, 3 }
  0x66   :  { %v137_v15 = vperm.slane %v125_v0, 0 }
  0x68   :  { %484 = vperm.xlu1 %1652, %v481_v25   ;;  %429 = vrot.lane.b32.xlu2 %v1796_v2, %s1742_s27 }
  0x6a   :  { %v100_v26 = vpop.permute.xlu2 %99 }
  0x6b   :  { %v106_v27 = vsel %vm105_vm0, %v98_v24, %v100_v26 }
  0x6c   :  { %v126_v3 = vmul.f32 %v2529_v48, %v106_v27 }
  0x6e   :  { %v138_v16 = vperm.slane %v126_v3, 0  ;;  %v2523_v3 = vperm.slane %v1917_v44, 2 }
  0x72   :  { %v1885_v28 = vpop.permute.xlu2 %149 }
  0x73   :  { %v165_v58 = vsel %vm157_vm2, 0.0, %v1885_v28 }
  0x74   :  { %v177_v6 = vmul.f32 %v2528_v53, %v165_v58  ;;  %v1984_v58 = vld [vmem:[%s2512_s5 + $0x14] sm:$0xf] }
  0x75   :  { %v293_v53 = vperm.slane %v1984_v58, 0 }
  0x76   :  { %v189_v17 = vperm.slane %v177_v6, 0 }
  0x7a   :  { %v56_v29 = vpop.permute.xlu1 %55  ;;  %v1887_v30 = vpop.permute.xlu2 %155 }
  0x7b   :  { %v52_v31 = vpop.permute.xlu0 %51 }
  0x7c   :  { %v67_v49 = vsel %vm59_vm1, 0.0, %v52_v31 }
  0x7d   :  { %v78_v61 = vmul.f32 %v2526_v46, %v67_v49 }
  0x7f   :  { %v89_v8 = vperm.slane %v78_v61, 0 }
  0x82   :  { %v58_v32 = vpop.permute.xlu1 %57  ;;  %v1889_v33 = vpop.permute.xlu2 %205 }
  0x83   :  { %v1892_v34 = vsel %vm59_vm1, %v56_v29, %v58_v32  ;;  %v54_v35 = vpop.permute.xlu0 %53 }
  0x84   :  { %v60_v54 = vsel %vm59_vm1, %v52_v31, %v54_v35  ;;  %v61_v55 = vsel %vm59_vm1, %v54_v35, %v56_v29 }
  0x85   :  { %v79_v62 = vmul.f32 %v2525_v50, %v60_v54  ;;  %v80_v63 = vmul.f32 %v72_v51, %v61_v55  ;;  %v2524_v55 = vperm.slane %v1912_v43, 3 }
  0x87   :  { %v90_v10 = vperm.slane %v79_v62, 0  ;;  %v91_v11 = vperm.slane %v80_v63, 0  ;;  %v2522_v62 = vperm.slane %v1917_v44, 3  ;;  %v2527_v63 = vperm.slane %v1917_v44, 1 }
  0x8a   :  { %v1894_v36 = vpop.permute.xlu1 %103  ;;  %v1896_v37 = vpop.permute.xlu2 %1660 }
  0x8b   :  { %v102_v38 = vpop.permute.xlu0 %101  ;;  %v1958_v19 = vunpack.i.l.bf16 %v1896_v37 }
  0x8c   :  { %v107_v59 = vsel %vm105_vm0, %v100_v26, %v102_v38  ;;  %v108_v61 = vsel %vm105_vm0, %v102_v38, %v1894_v36  ;;  %v2516_v36 = vperm.slane %v1984_v58, 3 }
  0x8d   :  { %v127_v7 = vmul.f32 %v119_v56, %v107_v59  ;;  %v193_v32 = vmul.f32 %v1958_v19, %v189_v17  ;;  %v1989_v59 = vld [vmem:[%s2512_s5 + $0xc] sm:$0xf] }
  0x8f   :  { %v139_v18 = vperm.slane %v127_v7, 0  ;;  %v81_v7 = vmul.f32 %v2524_v55, %v1892_v34  ;;  %v2019_v34 = vld [vmem:[%s2512_s5 + $0x18] sm:$0xf] }
  0x92   :  { %v1898_v39 = vpop.permute.xlu1 %153  ;;  %v1900_v40 = vpop.permute.xlu2 %279 }
  0x93   :  { %v1902_v41 = vpop.permute.xlu0 %151  ;;  %v160_v0 = vsel %vm157_vm2, %v1898_v39, %v1887_v30  ;;  %v128_v30 = vmul.f32 %v120_v57, %v108_v61 }
  0x94   :  { %v158_v38 = vsel %vm157_vm2, %v1885_v28, %v1902_v41  ;;  %v2518_v28 = vperm.slane %v1989_v59, 1 }
  0x9a   :  { %v1921_v47 = vpop.permute.xlu1 %203  ;;  %v1937_v60 = vpop.permute.xlu2 %331 }
  0x9b   :  { %v1927_v52 = vpop.permute.xlu0 %201  ;;  %v211_v17 = vsel %vm209_vm4, %v1921_v47, %v1889_v33 }
  0xa2   :  { %v1655_v9 = vpop.permute.xlu1 %1654  ;;  %v1966_v26 = vpop.permute.xlu2 %381 }
  0xa3   :  { %v1953_v12 = vunpack.i.h.bf16 %v1655_v9  ;;  %v1955_v13 = vunpack.i.l.bf16 %v1655_v9  ;;  %v208_v14 = vpop.permute.xlu0 %207 }
  0xa5   :  { %v93_v20 = vmul.f32 %v1955_v13, %v89_v8  ;;  %v94_v21 = vmul.f32 %v1955_v13, %v90_v10  ;;  %v95_v22 = vmul.f32 %v1955_v13, %v91_v11  ;;  %v141_v23 = vmul.f32 %v1953_v12, %v137_v15 }
  0xa6   :  { %v142_v24 = vmul.f32 %v1953_v12, %v138_v16  ;;  %v143_v25 = vmul.f32 %v1953_v12, %v139_v18  ;;  %v2520_v8 = vperm.slane %v1989_v59, 2  ;;  %v159_v10 = vsel %vm157_vm2, %v1902_v41, %v1898_v39 }
  0xa7   :  { %v145_v27 = vadd.f32 %v141_v23, %v93_v20  ;;  %v2519_v11 = vperm.slane %v1989_v59, 0  ;;  %v180_v16 = vmul.f32 %v2522_v62, %v160_v0  ;;  %v210_v39 = vsel %vm209_vm4, %v1927_v52, %v1921_v47 }
  0xa8   :  { %v1968_v29 = vadd.f32 %v142_v24, %v94_v21  ;;  %v1970_v31 = vadd.f32 %v143_v25, %v95_v22  ;;  %v217_v41 = vsel %vm209_vm4, 0.0, %v1927_v52  ;;  %v289_v18 = vsel %vm281_vm3, %v1900_v40, 0.0 }
  0xa9   :  { %v1977_v54 = vadd.f32 %v193_v32, %v145_v27  ;;  %v178_v20 = vmul.f32 %v2527_v63, %v158_v38  ;;  %v2521_v21 = vperm.slane %v1989_v59, 3  ;;  %v92_v22 = vperm.slane %v81_v7, 0 }
  0xaa   :  { %v1973_v35 = vpop.permute.xlu1 %277  ;;  %v1999_v6 = vpop.permute.xlu2 %431  ;;  %v179_v23 = vmul.f32 %v2523_v3, %v159_v10  ;;  %v2517_v24 = vperm.slane %v2019_v34, 3  ;;  %v212_v47 = vsel %vm209_vm4, %v1889_v33, %v208_v14  ;;  %v140_v25 = vperm.slane %v128_v30, 0 }
  0xab   :  { %v1975_v49 = vpop.permute.xlu0 %275  ;;  %v231_v52 = vmul.f32 %v2520_v8, %v211_v17  ;;  %v229_v27 = vmul.f32 %v2519_v11, %v217_v41  ;;  %v230_v32 = vmul.f32 %v2518_v28, %v210_v39  ;;  %v192_v61 = vperm.slane %v180_v16, 0 }
  0xac   :  { %v2053_v0 = vmul.f32 %v2516_v36, %v289_v18  ;;  %v341_v7 = vsel %vm333_vm5, %v1937_v60, 0.0  ;;  %v190_v38 = vperm.slane %v178_v20, 0  ;;  %v96_v33 = vmul.f32 %v1955_v13, %v92_v22 }
  0xad   :  { %v144_v14 = vmul.f32 %v1953_v12, %v140_v25  ;;  %v232_v30 = vmul.f32 %v2521_v21, %v212_v47  ;;  %v1663_v10 = vunpack.i.h.bf16 %v1896_v37  ;;  %v191_v17 = vperm.slane %v179_v23, 0  ;;  %v2072_v12 = vld [vmem:[%s2512_s5 + $0x1c] sm:$0xf] }
  0xae   :  { %v2530_v16 = vperm.slane %v1984_v58, 2  ;;  %v243_v41 = vperm.slane %v231_v52, 0  ;;  %v2067_v18 = vmul.f32 %v2517_v24, %v341_v7  ;;  %v241_v20 = vperm.slane %v229_v27, 0 }
  0xaf   :  { %v242_v36 = vperm.slane %v230_v32, 0  ;;  %v316_v37 = vperm.slane %v2053_v0, 0  ;;  %v294_v23 = vperm.slane %v1984_v58, 1  ;;  %v347_v47 = vperm.slane %v2019_v34, 2 }
  0xb0   :  { %v346_v25 = vperm.slane %v2019_v34, 1  ;;  %v196_v52 = vmul.f32 %v1958_v19, %v192_v61  ;;  %v194_v27 = vmul.f32 %v1958_v19, %v190_v38  ;;  %v148_v32 = vadd.f32 %v144_v14, %v96_v33  ;;  %v2087_v61 = vld [vmem:[%s2512_s5 + $0x20] sm:$0xf] }
  0xb1   :  { %v244_v7 = vperm.slane %v232_v30, 0  ;;  %v195_v24 = vmul.f32 %v1958_v19, %v191_v17  ;;  %v2531_v28 = vperm.slane %v2072_v12, 1  ;;  %v345_v11 = vperm.slane %v2019_v34, 0 }
  0xb2   :  { %v2009_v9 = vpop.permute.xlu1 %329  ;;  %v1672_v13 = vpop.permute.xlu2 %1671  ;;  %v247_v8 = vmul.f32 %v1663_v10, %v243_v41  ;;  %v368_v21 = vperm.slane %v2067_v18, 0  ;;  %v245_v62 = vmul.f32 %v1663_v10, %v241_v20  ;;  %v246_v3 = vmul.f32 %v1663_v10, %v242_v36 }
  0xb3   :  { %v2023_v15 = vpop.permute.xlu0 %327  ;;  %v198_v38 = vadd.f32 %v194_v27, %v1968_v29  ;;  %v199_v33 = vadd.f32 %v195_v24, %v1970_v31  ;;  %v399_v19 = vperm.slane %v2072_v12, 2  ;;  %v400_v14 = vperm.slane %v2072_v12, 3 }
  0xb4   :  { %v200_v30 = vadd.f32 %v196_v52, %v148_v32  ;;  %v248_v17 = vmul.f32 %v1663_v10, %v244_v7  ;;  %v284_v41 = vsel %vm281_vm3, %v1973_v35, %v1900_v40  ;;  %v283_v36 = vsel %vm281_vm3, %v1975_v49, %v1973_v35 }
  0xb5   :  { %v336_v29 = vsel %vm333_vm5, %v2009_v9, %v1937_v60  ;;  %v449_v24 = vperm.slane %v2087_v61, 0  ;;  %v335_v10 = vsel %vm333_vm5, %v2023_v15, %v2009_v9  ;;  %v450_v52 = vperm.slane %v2087_v61, 1 }
  0xb6   :  { %v451_v27 = vperm.slane %v2087_v61, 2  ;;  %v452_v35 = vperm.slane %v2087_v61, 3  ;;  %v303_v32 = vmul.f32 %v2530_v16, %v284_v41  ;;  %v302_v60 = vmul.f32 %v294_v23, %v283_v36 }
  0xb7   :  { %v250_v7 = vadd.f32 %v246_v3, %v198_v38  ;;  %v251_v55 = vadd.f32 %v247_v8, %v199_v33  ;;  %v252_v50 = vadd.f32 %v248_v17, %v200_v30  ;;  %v355_v46 = vmul.f32 %v347_v47, %v336_v29 }
  0xb8   :  { %v249_v63 = vadd.f32 %v245_v62, %v1977_v54  ;;  %v354_v48 = vmul.f32 %v346_v25, %v335_v10  ;;  %v315_v62 = vperm.slane %v303_v32, 0  ;;  %v314_v30 = vperm.slane %v302_v60, 0 }
  0xb9   :  { %v2128_v17 = vunpack.i.h.bf16 %v1672_v13  ;;  %v367_v29 = vperm.slane %v355_v46, 0 }
  0xba   :  { %v2063_v39 = vpop.permute.xlu1 %379  ;;  %v326_v9 = vpop.permute.xlu2 %325 }
  0xbb   :  { %v1667_v22 = vpop.permute.xlu0 %1666  ;;  %v387_v41 = vsel %vm385_vm6, %v2063_v39, %v1966_v26  ;;  %v334_v36 = vsel %vm333_vm5, %v326_v9, %v2023_v15 }
  0xbc   :  { %v1668_v20 = vunpack.i.l.bf16 %v1667_v22  ;;  %v1669_v16 = vunpack.i.h.bf16 %v1667_v22  ;;  %v1673_v22 = vunpack.i.l.bf16 %v1672_v13  ;;  %v353_v60 = vmul.f32 %v345_v11, %v334_v36 }
  0xbe   :  { %v266_v3 = vmul.f32 %v1668_v20, %v1806_v5  ;;  %v267_v8 = vmul.f32 %v1668_v20, %v1794_v1  ;;  %v268_v38 = vmul.f32 %v1668_v20, %v1804_v4  ;;  %v406_v5 = vmul.f32 %v2531_v28, %v387_v41 }
  0xbf   :  { %v397_v1 = vperm.slane %v2072_v12, 0  ;;  %v366_v4 = vperm.slane %v354_v48, 0  ;;  %v318_v15 = vmul.f32 %v1669_v16, %v314_v30  ;;  %v320_v28 = vmul.f32 %v1669_v16, %v316_v37 }
  0xc0   :  { %v270_v10 = vadd.f32 %v266_v3, %v250_v7  ;;  %v271_v46 = vadd.f32 %v267_v8, %v251_v55  ;;  %v272_v13 = vadd.f32 %v268_v38, %v252_v50  ;;  %v265_v50 = vmul.f32 %v1668_v20, %v1796_v2 }
  0xc1   :  { %v372_v37 = vmul.f32 %v1673_v22, %v368_v21  ;;  %v371_v20 = vmul.f32 %v1673_v22, %v367_v29 }
  0xc2   :  { %v384_v31 = vpop.permute.xlu1 %383  ;;  %v322_v8 = vadd.f32 %v318_v15, %v270_v10  ;;  %v430_v36 = vpop.permute.xlu2 %429  ;;  %v324_v2 = vadd.f32 %v320_v28, %v272_v13 }
  0xc3   :  { %v434_v40 = vpop.permute.xlu0 %433  ;;  %v388_v33 = vsel %vm385_vm6, %v1966_v26, %v384_v31  ;;  %v393_v54 = vsel %vm385_vm6, %v384_v31, 0.0 }
  0xc4   :  { %v407_v26 = vmul.f32 %v399_v19, %v388_v33  ;;  %v408_v31 = vmul.f32 %v400_v14, %v393_v54  ;;  %v439_v41 = vsel %vm437_vm7, %v1999_v6, %v434_v40  ;;  %v418_v33 = vperm.slane %v406_v5, 0 }
  0xc5   :  { %v319_v54 = vmul.f32 %v1669_v16, %v315_v62  ;;  %v370_v5 = vmul.f32 %v1673_v22, %v366_v4  ;;  %v376_v29 = vadd.f32 %v372_v37, %v324_v2 }
  0xc6   :  { %v419_v38 = vperm.slane %v407_v26, 0  ;;  %v420_v30 = vperm.slane %v408_v31, 0  ;;  %v422_v10 = vmul.f32 %v2128_v17, %v418_v33  ;;  %v365_v26 = vperm.slane %v353_v60, 0 }
  0xc8   :  { %v423_v15 = vmul.f32 %v2128_v17, %v419_v38 }
  0xca   :  { %v436_v32 = vpop.permute.xlu1 %435 }
  0xcb   :  { %v274_v9 = vpop.permute.xlu0 %273  ;;  %v440_v48 = vsel %vm437_vm7, %v434_v40, %v436_v32  ;;  %v445_v7 = vsel %vm437_vm7, %v436_v32, 0.0  ;;  %v458_v40 = vmul.f32 %v450_v52, %v439_v41  ;;  %v323_v32 = vadd.f32 %v319_v54, %v271_v46 }
  0xcc   :  { %v282_v3 = vsel %vm281_vm3, %v274_v9, %v1975_v49  ;;  %v459_v49 = vmul.f32 %v451_v27, %v440_v48  ;;  %v460_v62 = vmul.f32 %v452_v35, %v445_v7  ;;  %v438_v9 = vsel %vm437_vm7, %v430_v36, %v1999_v6 }
  0xcd   :  { %v301_v55 = vmul.f32 %v293_v53, %v282_v3  ;;  %v269_v41 = vadd.f32 %v265_v50, %v249_v63  ;;  %v374_v7 = vadd.f32 %v370_v5, %v322_v8  ;;  %v424_v3 = vmul.f32 %v2128_v17, %v420_v30 }
  0xce   :  { %v470_v18 = vperm.slane %v458_v40, 0  ;;  %v471_v21 = vperm.slane %v459_v49, 0  ;;  %v472_v4 = vperm.slane %v460_v62, 0  ;;  %v375_v28 = vadd.f32 %v371_v20, %v323_v32 }
  0xcf   :  { %v313_v0 = vperm.slane %v301_v55, 0  ;;  %v369_v6 = vmul.f32 %v1673_v22, %v365_v26  ;;  %v457_v55 = vmul.f32 %v449_v24, %v438_v9  ;;  %v428_v8 = vadd.f32 %v424_v3, %v376_v29 }
  0xd0   :  { %v427_v50 = vadd.f32 %v423_v15, %v375_v28  ;;  %v426_v30 = vadd.f32 %v422_v10, %v374_v7 }
  0xd1   :  { %v317_v31 = vmul.f32 %v1669_v16, %v313_v0  ;;  %v469_v0 = vperm.slane %v457_v55, 0 }
  0xd2   :  { %v467_v48 = vpop.permute.xlu1 %466 }
  0xd3   :  { %v378_v46 = vpop.permute.xlu0 %377  ;;  %v321_v13 = vadd.f32 %v317_v31, %v269_v41  ;;  %v474_v60 = vmul.f32 %v470_v18, %v467_v48  ;;  %v475_v33 = vmul.f32 %v471_v21, %v467_v48  ;;  %v476_v54 = vmul.f32 %v472_v4, %v467_v48  ;;  %v1345_v41 = vld [vmem:[%s2511_s4] sm:$0xff] }
  0xd4   :  { %v386_v16 = vsel %vm385_vm6, %v378_v46, %v2063_v39  ;;  %v473_v22 = vmul.f32 %v469_v0, %v467_v48 }
  0xd5   :  { %v405_v63 = vmul.f32 %v397_v1, %v386_v16  ;;  %v373_v36 = vadd.f32 %v369_v6, %v321_v13  ;;  %v478_v49 = vadd.f32 %v474_v60, %v426_v30  ;;  %v479_v62 = vadd.f32 %v475_v33, %v427_v50 }
  0xd6   :  { %v480_v39 = vadd.f32 %v476_v54, %v428_v8  ;;  %v1596_v54 = vld [vmem:[%s2510_s3 + $0x4] sm:$0xf]  ;;  %v2532_v30 = vperm.slane %v1907_v42, 1  ;;  %v2534_v42 = vperm.slane %v1917_v44, 1 }
  0xd7   :  { %v417_v38 = vperm.slane %v405_v63, 0 }
  0xd9   :  { %v421_v40 = vmul.f32 %v2128_v17, %v417_v38 }
  0xda   :  { %v485_v37 = vpop.permute.xlu1 %484 }
  0xdb   :  { %v425_v5 = vadd.f32 %v421_v40, %v373_v36  ;;  %v488_v32 = vadd.f32 %v485_v37, %v478_v49  ;;  %v489_v2 = vadd.f32 %v485_v37, %v479_v62  ;;  %v490_v20 = vadd.f32 %v485_v37, %v480_v39 }
  0xdd   :  { %v2172_v26 = vmax.f32 %v488_v32, 0.0  ;;  %v2174_v31 = vmax.f32 %v489_v2, 0.0  ;;  %v2176_v15 = vmax.f32 %v490_v20, 0.0  ;;  %v477_v10 = vadd.f32 %v473_v22, %v425_v5 }
  0xdf   :  { %530 = vrot.lane.b32.xlu2 %v2176_v15, %s1735_s6  ;;  %528 = vrot.lane.b32.xlu1 %v2174_v31, %s1735_s6  ;;  %v487_v17 = vadd.f32 %v485_v37, %v477_v10  ;;  %v2533_v37 = vperm.slane %v1917_v44, 0 }
  0xe0   :  { %526 = vrot.lane.b32.xlu0 %v2172_v26, %s1735_s6 }
  0xe1   :  { %v2184_v9 = vmax.f32 %v487_v17, 0.0 }
  0xe7   :  { %503 = vrot.lane.b32.xlu2 %v2174_v31, %s1734_s14  ;;  %501 = vrot.lane.b32.xlu1 %v2172_v26, %s1734_s14 }
  0xe8   :  { %524 = vrot.lane.b32.xlu0 %v2184_v9, %s1735_s6 }
  0xef   :  { %688 = vrot.lane.b32.xlu2 %v2172_v26, %s1737_s0  ;;  %499 = vrot.lane.b32.xlu1 %v2184_v9, %s1734_s14 }
  0xf0   :  { %505 = vrot.lane.b32.xlu0 %v2176_v15, %s1734_s14 }
  0xf7   :  { %686 = vrot.lane.b32.xlu2 %v2184_v9, %s1737_s0  ;;  %692 = vrot.lane.b32.xlu1 %v2176_v15, %s1737_s0 }
  0xf8   :  { %690 = vrot.lane.b32.xlu0 %v2174_v31, %s1737_s0 }
  0xff   :  { %789 = vrot.lane.b32.xlu2 %v2176_v15, %s1738_s19  ;;  %787 = vrot.lane.b32.xlu1 %v2174_v31, %s1738_s19 }
 0x100   :  { %785 = vrot.lane.b32.xlu0 %v2172_v26, %s1738_s19 }
 0x107   :  { %963 = vrot.lane.b32.xlu2 %v2176_v15, %s1739_s20  ;;  %961 = vrot.lane.b32.xlu1 %v2174_v31, %s1739_s20 }
 0x108   :  { %783 = vrot.lane.b32.xlu0 %v2184_v9, %s1738_s19 }
 0x10f   :  { %1058 = vrot.lane.b32.xlu2 %v2174_v31, %s1740_s23  ;;  %959 = vrot.lane.b32.xlu1 %v2172_v26, %s1739_s20 }
 0x110   :  { %957 = vrot.lane.b32.xlu0 %v2184_v9, %s1739_s20 }
 0x117   :  { %1056 = vrot.lane.b32.xlu2 %v2172_v26, %s1740_s23  ;;  %1054 = vrot.lane.b32.xlu1 %v2184_v9, %s1740_s23 }
 0x118   :  { %1060 = vrot.lane.b32.xlu0 %v2176_v15, %s1740_s23 }
 0x11f   :  { %1151 = vrot.lane.b32.xlu2 %v2184_v9, %s1741_s24  ;;  %1157 = vrot.lane.b32.xlu1 %v2176_v15, %s1741_s24 }
 0x120   :  { %1155 = vrot.lane.b32.xlu0 %v2174_v31, %s1741_s24 }
 0x127   :  { %1254 = vrot.lane.b32.xlu2 %v2176_v15, %s1742_s27  ;;  %1252 = vrot.lane.b32.xlu1 %v2174_v31, %s1742_s27 }
 0x128   :  { %1153 = vrot.lane.b32.xlu0 %v2172_v26, %s1741_s24 }
 0x12f   :  { %1348 = vperm.xlu2 %1658, %v1345_v41   ;;  %1250 = vrot.lane.b32.xlu1 %v2172_v26, %s1742_s27  ;;  %v2535_v41 = vperm.slane %v1912_v43, 0 }
 0x130   :  { %1248 = vrot.lane.b32.xlu0 %v2184_v9, %s1742_s27 }
 0x139   :  { %v531_v48 = vpop.permute.xlu2 %530 }
 0x141   :  { %v504_v7 = vpop.permute.xlu2 %503 }
 0x149   :  { %v2247_v3 = vpop.permute.xlu2 %688 }
 0x151   :  { %v529_v18 = vpop.permute.xlu1 %528  ;;  %v687_v6 = vpop.permute.xlu2 %686 }
 0x152   :  { %v534_v21 = vsel %vm105_vm0, %v529_v18, %v531_v48  ;;  %v527_v4 = vpop.permute.xlu0 %526  ;;  %v701_v40 = vsel %vm157_vm2, 0.0, %v687_v6 }
 0x153   :  { %v533_v46 = vsel %vm105_vm0, %v527_v4, %v529_v18  ;;  %v543_v28 = vmul.f32 %v534_v21, %v120_v57  ;;  %v702_v5 = vmul.f32 %v701_v40, %v2533_v37  ;;  %v2536_v18 = vperm.slane %v1912_v43, 1 }
 0x154   :  { %v542_v29 = vmul.f32 %v533_v46, %v119_v56 }
 0x155   :  { %v549_v13 = vpack.c.bf16 %v543_v28, %v543_v28  ;;  %v708_v46 = vpack.c.bf16 %v702_v5, %v702_v5  ;;  %v2537_v28 = vperm.slane %v1912_v43, 3 }
 0x156   :  { %v548_v16 = vpack.c.bf16 %v542_v29, %v542_v29 }
 0x157   :  { %v565_v60 = vsel %vm554_vm8, %v549_v13, 0 }
 0x158   :  { %v562_v33 = vsel %vm554_vm8, %v548_v16, 0  ;;  %613 = vmatpush.bf16.msra.mxu3 %v565_v60 }
 0x159   :  { %600 = vmatpush.bf16.msra.mxu2 %v562_v33  ;;  %v502_v63 = vpop.permute.xlu1 %501 }
 0x15a   :  { %v508_v57 = vsel %vm59_vm1, %v502_v63, %v504_v7  ;;  %v525_v55 = vpop.permute.xlu0 %524 }
 0x15b   :  { %v517_v56 = vmul.f32 %v508_v57, %v72_v51  ;;  %v532_v50 = vsel %vm105_vm0, %v525_v55, %v527_v4  ;;  %v539_v8 = vsel %vm105_vm0, 0.0, %v525_v55  ;;  %1600 = vmatmul.msk.bf16.vlgmr.msra.gmra.mxu3 %vm550_vm9, %v1596_v54  ;;  %v694_v51 = vsel %vm157_vm2, %v687_v6, %v2247_v3 }
 0x15c   :  { %1599 = vmatmul.msk.bf16.vlgmr.msra.gmra.mxu2 %vm550_vm9, %v1596_v54  ;;  %v540_v38 = vmul.f32 %v539_v8, %v117_v45  ;;  %v541_v36 = vmul.f32 %v532_v50, %v2532_v30  ;;  %v703_v2 = vmul.f32 %v694_v51, %v2534_v42  ;;  %v716_v57 = vsel %vm554_vm8, %v708_v46, 0 }
 0x15d   :  { %v522_v49 = vpack.c.bf16 %v517_v56, %v517_v56  ;;  %v2541_v42 = vperm.slane %v1989_v59, 2 }
 0x15e   :  { %v546_v62 = vpack.c.bf16 %v540_v38, %v540_v38  ;;  %v547_v39 = vpack.c.bf16 %v541_v36, %v541_v36  ;;  %v709_v13 = vpack.c.bf16 %v703_v2, %v703_v2  ;;  %v2538_v38 = vperm.slane %v1917_v44, 2 }
 0x15f   :  { %v629_v0 = vsel %vm554_vm8, %v522_v49, 0  ;;  %v2539_v36 = vperm.slane %v1917_v44, 3  ;;  %v2540_v44 = vperm.slane %v1989_v59, 3 }
 0x160   :  { %v556_v32 = vsel %vm554_vm8, %v546_v62, 0  ;;  %v559_v45 = vsel %vm554_vm8, %v547_v39, 0  ;;  %667 = vmatpush.bf16.msrb.mxu2 %v629_v0  ;;  %v719_v55 = vsel %vm554_vm8, %v709_v13, 0  ;;  %v790_v0 = vpop.permute.xlu2 %789 }
 0x161   :  { %574 = vmatpush.bf16.msra.mxu0 %v556_v32  ;;  %587 = vmatpush.bf16.msra.mxu1 %v559_v45  ;;  %v500_v20 = vpop.permute.xlu1 %499 }
 0x162   :  { %v507_v22 = vsel %vm59_vm1, %v500_v20, %v502_v63  ;;  %v514_v10 = vsel %vm59_vm1, 0.0, %v500_v20  ;;  %v506_v17 = vpop.permute.xlu0 %505 }
 0x163   :  { %v515_v48 = vmul.f32 %v514_v10, %v2535_v41  ;;  %v516_v21 = vmul.f32 %v507_v22, %v2536_v18  ;;  %v509_v4 = vsel %vm59_vm1, %v504_v7, %v506_v17  ;;  %v884_v41 = vpack.c.bf16 %v2174_v31, %v2174_v31  ;;  %v1605_v18 = vld [vmem:[%s2510_s3 + $0x8] sm:$0xf] }
 0x164   :  { %v518_v29 = vmul.f32 %v509_v4, %v2537_v28  ;;  %1597 = vmatmul.msk.bf16.vlgmr.msra.gmra.mxu0 %vm550_vm9, %v1596_v54  ;;  %1598 = vmatmul.msk.bf16.vlgmr.msra.gmra.mxu1 %vm550_vm9, %v1596_v54  ;;  %v519_v54 = vld [vmem:[%s2510_s3] sm:$0xf] }
 0x165   :  { %v520_v16 = vpack.c.bf16 %v515_v48, %v515_v48  ;;  %v521_v60 = vpack.c.bf16 %v516_v21, %v516_v21  ;;  %v885_v48 = vpack.c.bf16 %v2176_v15, %v2176_v15  ;;  %v896_v15 = vsel %vm554_vm8, %v884_v41, 0 }
 0x166   :  { %v523_v33 = vpack.c.bf16 %v518_v29, %v518_v29  ;;  %v2542_v29 = vperm.slane %v1989_v59, 0 }
 0x167   :  { %v623_v63 = vsel %vm554_vm8, %v520_v16, 0  ;;  %v626_v6 = vsel %vm554_vm8, %v521_v60, 0  ;;  %v2543_v16 = vperm.slane %v1989_v59, 1  ;;  %v899_v60 = vsel %vm554_vm8, %v885_v48, 0 }
 0x168   :  { %641 = vmatpush.bf16.msrb.mxu0 %v623_v63  ;;  %654 = vmatpush.bf16.msrb.mxu1 %v626_v6  ;;  %v632_v7 = vsel %vm554_vm8, %v523_v33, 0  ;;  %v964_v33 = vpop.permute.xlu2 %963  ;;  %v882_v59 = vpack.c.bf16 %v2184_v9, %v2184_v9 }
 0x169   :  { %680 = vmatpush.bf16.msrb.mxu3 %v632_v7  ;;  %v693_v43 = vpop.permute.xlu1 %692 }
 0x16a   :  { %v691_v56 = vpop.permute.xlu0 %690  ;;  %v890_v9 = vsel %vm554_vm8, %v882_v59, 0 }
 0x16b   :  { %v695_v50 = vsel %vm157_vm2, %v2247_v3, %v691_v56  ;;  %v696_v8 = vsel %vm157_vm2, %v691_v56, %v693_v43  ;;  %v883_v43 = vpack.c.bf16 %v2172_v26, %v2172_v26  ;;  %v2544_v56 = vperm.slane %v1984_v58, 3 }
 0x16c   :  { %734 = vmatpush.bf16.msra.mxu0 %v716_v57  ;;  %747 = vmatpush.bf16.msra.mxu1 %v719_v55  ;;  %v704_v30 = vmul.f32 %v695_v50, %v2538_v38  ;;  %v705_v40 = vmul.f32 %v696_v8, %v2539_v36  ;;  %v972_v55 = vsel %vm281_vm3, %v964_v33, 0.0  ;;  %v2545_v8 = vperm.slane %v1984_v58, 2 }
 0x16d   :  { %1603 = vmatmul.msk.bf16.vlgmr.msrb.gmra.mxu2 %vm550_vm9, %v519_v54  ;;  %1604 = vmatmul.msk.bf16.vlgmr.msrb.gmra.mxu3 %vm550_vm9, %v519_v54  ;;  %v976_v50 = vmul.f32 %v972_v55, %v2544_v56  ;;  %v893_v26 = vsel %vm554_vm8, %v883_v43, 0  ;;  %v2546_v58 = vperm.slane %v2019_v34, 3 }
 0x16e   :  { %v710_v49 = vpack.c.bf16 %v704_v30, %v704_v30  ;;  %v711_v51 = vpack.c.bf16 %v705_v40, %v705_v40 }
 0x16f   :  { %v982_v40 = vpack.c.bf16 %v976_v50, %v976_v50  ;;  %v2547_v50 = vperm.slane %v2072_v12, 1 }
 0x170   :  { %v722_v62 = vsel %vm554_vm8, %v710_v49, 0  ;;  %v725_v39 = vsel %vm554_vm8, %v711_v51, 0 }
 0x171   :  { %760 = vmatpush.bf16.msra.mxu2 %v722_v62  ;;  %773 = vmatpush.bf16.msra.mxu3 %v725_v39  ;;  %v788_v3 = vpop.permute.xlu1 %787  ;;  %v1610_v39 = vld [vmem:[%s2510_s3 + $0xc] sm:$0xf] }
 0x172   :  { %v793_v37 = vsel %vm209_vm4, %v788_v3, %v790_v0  ;;  %v786_v5 = vpop.permute.xlu0 %785  ;;  %v1059_v0 = vpop.permute.xlu2 %1058 }
 0x173   :  { %v802_v32 = vmul.f32 %v793_v37, %v2540_v44  ;;  %v792_v45 = vsel %vm209_vm4, %v786_v5, %v788_v3  ;;  %v996_v44 = vsel %vm554_vm8, %v982_v40, 0 }
 0x174   :  { %v801_v2 = vmul.f32 %v792_v45, %v2541_v42  ;;  %1601 = vmatmul.msk.bf16.vlgmr.msrb.gmra.mxu0 %vm550_vm9, %v519_v54  ;;  %1602 = vmatmul.msk.bf16.vlgmr.msrb.gmra.mxu1 %vm550_vm9, %v519_v54 }
 0x175   :  { %v808_v20 = vpack.c.bf16 %v802_v32, %v802_v32 }
 0x176   :  { %v807_v22 = vpack.c.bf16 %v801_v2, %v801_v2 }
 0x177   :  { %v822_v10 = vsel %vm554_vm8, %v808_v20, 0 }
 0x178   :  { %v819_v17 = vsel %vm554_vm8, %v807_v22, 0  ;;  %870 = vmatpush.bf16.msrb.mxu3 %v822_v10 }
 0x179   :  { %857 = vmatpush.bf16.msrb.mxu2 %v819_v17  ;;  %v962_v28 = vpop.permute.xlu1 %961 }
 0x17a   :  { %v784_v21 = vpop.permute.xlu0 %783  ;;  %v967_v54 = vsel %vm281_vm3, %v962_v28, %v964_v33  ;;  %v1057_v41 = vpop.permute.xlu2 %1056 }
 0x17b   :  { %v791_v4 = vsel %vm209_vm4, %v784_v21, %v786_v5  ;;  %v798_v46 = vsel %vm209_vm4, 0.0, %v784_v21  ;;  %v975_v38 = vmul.f32 %v967_v54, %v2545_v8  ;;  %v1063_v21 = vsel %vm333_vm5, %v1057_v41, %v1059_v0 }
 0x17c   :  { %v799_v13 = vmul.f32 %v798_v46, %v2542_v29  ;;  %v800_v31 = vmul.f32 %v791_v4, %v2543_v16  ;;  %v1615_v4 = vld [vmem:[%s2510_s3 + $0x10] sm:$0xf]  ;;  %v1071_v46 = vmul.f32 %v1063_v21, %v346_v25 }
 0x17d   :  { %1608 = vmatmul.msk.bf16.vlgmr.msra.gmra.mxu2 %vm550_vm9, %v1605_v18  ;;  %1609 = vmatmul.msk.bf16.vlgmr.msra.gmra.mxu3 %vm550_vm9, %v1605_v18  ;;  %v981_v49 = vpack.c.bf16 %v975_v38, %v975_v38 }
 0x17e   :  { %934 = vmatpush.bf16.msra.mxu2 %v896_v15  ;;  %947 = vmatpush.bf16.msra.mxu3 %v899_v60  ;;  %v805_v63 = vpack.c.bf16 %v799_v13, %v799_v13  ;;  %v806_v6 = vpack.c.bf16 %v800_v31, %v800_v31  ;;  %v1077_v15 = vpack.c.bf16 %v1071_v46, %v1071_v46 }
 0x17f   :  { %v993_v5 = vsel %vm554_vm8, %v981_v49, 0 }
 0x180   :  { %v813_v7 = vsel %vm554_vm8, %v805_v63, 0  ;;  %v816_v57 = vsel %vm554_vm8, %v806_v6, 0 }
 0x181   :  { %831 = vmatpush.bf16.msrb.mxu0 %v813_v7  ;;  %844 = vmatpush.bf16.msrb.mxu1 %v816_v57  ;;  %v960_v36 = vpop.permute.xlu1 %959  ;;  %v1087_v7 = vsel %vm554_vm8, %v1077_v15, 0 }
 0x182   :  { %v958_v30 = vpop.permute.xlu0 %957  ;;  %v966_v51 = vsel %vm281_vm3, %v960_v36, %v962_v28  ;;  %v1152_v34 = vpop.permute.xlu2 %1151 }
 0x183   :  { %v965_v62 = vsel %vm281_vm3, %v958_v30, %v960_v36  ;;  %v974_v3 = vmul.f32 %v966_v51, %v294_v23 }
 0x184   :  { %1606 = vmatmul.msk.bf16.vlgmr.msra.gmra.mxu0 %vm550_vm9, %v1605_v18  ;;  %1607 = vmatmul.msk.bf16.vlgmr.msra.gmra.mxu1 %vm550_vm9, %v1605_v18  ;;  %v973_v37 = vmul.f32 %v965_v62, %v293_v53 }
 0x185   :  { %908 = vmatpush.bf16.msra.mxu0 %v890_v9  ;;  %921 = vmatpush.bf16.msra.mxu1 %v893_v26  ;;  %v980_v45 = vpack.c.bf16 %v974_v3, %v974_v3 }
 0x186   :  { %v979_v42 = vpack.c.bf16 %v973_v37, %v973_v37 }
 0x187   :  { %v990_v17 = vsel %vm554_vm8, %v980_v45, 0 }
 0x188   :  { %v987_v10 = vsel %vm554_vm8, %v979_v42, 0 }
 0x189   :  { %v1055_v20 = vpop.permute.xlu1 %1054 }
 0x18a   :  { %v1061_v32 = vpop.permute.xlu0 %1060  ;;  %v1255_v9 = vpop.permute.xlu2 %1254 }
 0x18b   :  { %v1064_v2 = vsel %vm333_vm5, %v1059_v0, %v1061_v32  ;;  %v1069_v23 = vsel %vm333_vm5, %v1061_v32, 0.0  ;;  %v1263_v40 = vsel %vm437_vm7, %v1255_v9, 0.0 }
 0x18c   :  { %v1072_v53 = vmul.f32 %v1064_v2, %v347_v47  ;;  %v1073_v22 = vmul.f32 %v1069_v23, %v2546_v58  ;;  %v1062_v47 = vsel %vm333_vm5, %v1055_v20, %v1057_v41  ;;  %v1267_v12 = vmul.f32 %v1263_v40, %v452_v35  ;;  %v1635_v20 = vld [vmem:[%s2510_s3 + $0x20] sm:$0xf] }
 0x18d   :  { %1613 = vmatmul.msk.bf16.vlgmr.msrb.gmra.mxu2 %vm550_vm9, %v1610_v39  ;;  %1614 = vmatmul.msk.bf16.vlgmr.msrb.gmra.mxu3 %vm550_vm9, %v1610_v39  ;;  %v1070_v28 = vmul.f32 %v1062_v47, %v345_v11 }
 0x18e   :  { %1031 = vmatpush.bf16.msrb.mxu2 %v993_v5  ;;  %1044 = vmatpush.bf16.msrb.mxu3 %v996_v44  ;;  %v1078_v48 = vpack.c.bf16 %v1072_v53, %v1072_v53  ;;  %v1079_v18 = vpack.c.bf16 %v1073_v22, %v1073_v22  ;;  %v1273_v3 = vpack.c.bf16 %v1267_v12, %v1267_v12 }
 0x18f   :  { %v1076_v60 = vpack.c.bf16 %v1070_v28, %v1070_v28 }
 0x190   :  { %v1090_v13 = vsel %vm554_vm8, %v1078_v48, 0  ;;  %v1093_v16 = vsel %vm554_vm8, %v1079_v18, 0  ;;  %v1287_v42 = vsel %vm554_vm8, %v1273_v3, 0 }
 0x191   :  { %v1158_v31 = vpop.permute.xlu1 %1157  ;;  %v1084_v6 = vsel %vm554_vm8, %v1076_v60, 0 }
 0x192   :  { %v1156_v29 = vpop.permute.xlu0 %1155  ;;  %v1166_v33 = vsel %vm385_vm6, %v1158_v31, 0.0 }
 0x193   :  { %v1161_v25 = vsel %vm385_vm6, %v1156_v29, %v1158_v31  ;;  %v1170_v11 = vmul.f32 %v1166_v33, %v400_v14 }
 0x194   :  { %1611 = vmatmul.msk.bf16.vlgmr.msrb.gmra.mxu0 %vm550_vm9, %v1610_v39  ;;  %1612 = vmatmul.msk.bf16.vlgmr.msrb.gmra.mxu1 %vm550_vm9, %v1610_v39  ;;  %v1169_v63 = vmul.f32 %v1161_v25, %v399_v19  ;;  %v1620_v19 = vld [vmem:[%s2510_s3 + $0x14] sm:$0xf] }
 0x195   :  { %1005 = vmatpush.bf16.msrb.mxu0 %v987_v10  ;;  %1018 = vmatpush.bf16.msrb.mxu1 %v990_v17  ;;  %v1176_v59 = vpack.c.bf16 %v1170_v11, %v1170_v11 }
 0x196   :  { %v1175_v43 = vpack.c.bf16 %v1169_v63, %v1169_v63 }
 0x197   :  { %v1190_v30 = vsel %vm554_vm8, %v1176_v59, 0 }
 0x198   :  { %v1187_v38 = vsel %vm554_vm8, %v1175_v43, 0 }
 0x199   :  { %v1253_v54 = vpop.permute.xlu1 %1252 }
 0x19a   :  { %v1154_v57 = vpop.permute.xlu0 %1153 }
 0x19b   :  { %v1159_v55 = vsel %vm385_vm6, %v1152_v34, %v1154_v57  ;;  %v1160_v14 = vsel %vm385_vm6, %v1154_v57, %v1156_v29 }
 0x19c   :  { %v1167_v56 = vmul.f32 %v1159_v55, %v397_v1  ;;  %v1168_v8 = vmul.f32 %v1160_v14, %v2547_v50  ;;  %v1258_v1 = vsel %vm437_vm7, %v1253_v54, %v1255_v9 }
 0x19d   :  { %1618 = vmatmul.msk.bf16.vlgmr.msra.gmra.mxu2 %vm550_vm9, %v1615_v4  ;;  %1619 = vmatmul.msk.bf16.vlgmr.msra.gmra.mxu3 %vm550_vm9, %v1615_v4  ;;  %v1266_v49 = vmul.f32 %v1258_v1, %v451_v27  ;;  %v1625_v27 = vld [vmem:[%s2510_s3 + $0x18] sm:$0xf] }
 0x19e   :  { %1128 = vmatpush.bf16.msra.mxu2 %v1090_v13  ;;  %1141 = vmatpush.bf16.msra.mxu3 %v1093_v16  ;;  %v1173_v26 = vpack.c.bf16 %v1167_v56, %v1167_v56  ;;  %v1174_v36 = vpack.c.bf16 %v1168_v8, %v1168_v8 }
 0x19f   :  { %v1272_v37 = vpack.c.bf16 %v1266_v49, %v1266_v49 }
 0x1a0   :  { %v1181_v51 = vsel %vm554_vm8, %v1173_v26, 0  ;;  %v1184_v62 = vsel %vm554_vm8, %v1174_v36, 0 }
 0x1a1   :  { %v1251_v39 = vpop.permute.xlu1 %1250  ;;  %v1284_v45 = vsel %vm554_vm8, %v1272_v37, 0 }
 0x1a2   :  { %v1249_v0 = vpop.permute.xlu0 %1248  ;;  %v1257_v5 = vsel %vm437_vm7, %v1251_v39, %v1253_v54 }
 0x1a3   :  { %v1256_v35 = vsel %vm437_vm7, %v1249_v0, %v1251_v39  ;;  %v1265_v44 = vmul.f32 %v1257_v5, %v450_v52 }
 0x1a4   :  { %1616 = vmatmul.msk.bf16.vlgmr.msra.gmra.mxu0 %vm550_vm9, %v1615_v4  ;;  %1617 = vmatmul.msk.bf16.vlgmr.msra.gmra.mxu1 %vm550_vm9, %v1615_v4  ;;  %v1264_v32 = vmul.f32 %v1256_v35, %v449_v24  ;;  %v1630_v24 = vld [vmem:[%s2510_s3 + $0x1c] sm:$0xf] }
 0x1a5   :  { %1102 = vmatpush.bf16.msra.mxu0 %v1084_v6  ;;  %1115 = vmatpush.bf16.msra.mxu1 %v1087_v7  ;;  %v1271_v2 = vpack.c.bf16 %v1265_v44, %v1265_v44 }
 0x1a6   :  { %v1270_v23 = vpack.c.bf16 %v1264_v32, %v1264_v32 }
 0x1a7   :  { %v1281_v61 = vsel %vm554_vm8, %v1271_v2, 0 }
 0x1a8   :  { %v1278_v52 = vsel %vm554_vm8, %v1270_v23, 0 }
 0x1ad   :  { %1623 = vmatmul.msk.bf16.vlgmr.msrb.gmra.mxu2 %vm550_vm9, %v1620_v19  ;;  %1624 = vmatmul.msk.bf16.vlgmr.msrb.gmra.mxu3 %vm550_vm9, %v1620_v19 }
 0x1ae   :  { %1225 = vmatpush.bf16.msrb.mxu2 %v1187_v38  ;;  %1238 = vmatpush.bf16.msrb.mxu3 %v1190_v30 }
 0x1b4   :  { %1621 = vmatmul.msk.bf16.vlgmr.msrb.gmra.mxu0 %vm550_vm9, %v1620_v19  ;;  %1622 = vmatmul.msk.bf16.vlgmr.msrb.gmra.mxu1 %vm550_vm9, %v1620_v19 }
 0x1b5   :  { %1199 = vmatpush.bf16.msrb.mxu0 %v1181_v51  ;;  %1212 = vmatpush.bf16.msrb.mxu1 %v1184_v62 }
 0x1bd   :  { %1628 = vmatmul.msk.bf16.vlgmr.msra.gmra.mxu2 %vm550_vm9, %v1625_v27  ;;  %1629 = vmatmul.msk.bf16.vlgmr.msra.gmra.mxu3 %vm550_vm9, %v1625_v27 }
 0x1be   :  { %1322 = vmatpush.bf16.msra.mxu2 %v1284_v45  ;;  %1335 = vmatpush.bf16.msra.mxu3 %v1287_v42 }
 0x1c4   :  { %1626 = vmatmul.msk.bf16.vlgmr.msra.gmra.mxu0 %vm550_vm9, %v1625_v27  ;;  %1627 = vmatmul.msk.bf16.vlgmr.msra.gmra.mxu1 %vm550_vm9, %v1625_v27 }
 0x1c5   :  { %1296 = vmatpush.bf16.msra.mxu0 %v1278_v52  ;;  %1309 = vmatpush.bf16.msra.mxu1 %v1281_v61 }
 0x1cd   :  { %1633 = vmatmul.msk.bf16.vlgmr.msrb.gmra.mxu2 %vm550_vm9, %v1630_v24  ;;  %1634 = vmatmul.msk.bf16.vlgmr.msrb.gmra.mxu3 %vm550_vm9, %v1630_v24 }
 0x1d4   :  { %1631 = vmatmul.msk.bf16.vlgmr.msrb.gmra.mxu0 %vm550_vm9, %v1630_v24  ;;  %1632 = vmatmul.msk.bf16.vlgmr.msrb.gmra.mxu1 %vm550_vm9, %v1630_v24 }
 0x1dd   :  { %1638 = vmatmul.msk.bf16.vlgmr.msra.gmra.mxu2 %vm550_vm9, %v1635_v20  ;;  %1639 = vmatmul.msk.bf16.vlgmr.msra.gmra.mxu3 %vm550_vm9, %v1635_v20 }
 0x1de   :  { %v615_v53 = vpop.f32.mrf.mxu3 }
 0x1df   :  { %v602_v58 = vpop.f32.mrf.mxu2 }
 0x1e1   :  { %v576_v22 = vpop.f32.mrf.mxu0  ;;  %v589_v10 = vpop.f32.mrf.mxu1 }
 0x1e4   :  { %1636 = vmatmul.msk.bf16.vlgmr.msra.gmra.mxu0 %vm550_vm9, %v1635_v20  ;;  %1637 = vmatmul.msk.bf16.vlgmr.msra.gmra.mxu1 %vm550_vm9, %v1635_v20 }
 0x1e6   :  { %v617_v17 = vpop.f32.mrf.mxu3 }
 0x1e7   :  { %v604_v41 = vpop.f32.mrf.mxu2 }
 0x1e9   :  { %v578_v48 = vpop.f32.mrf.mxu0  ;;  %v591_v18 = vpop.f32.mrf.mxu1 }
 0x1f0   :  { %v669_v21 = vpop.f32.mrf.mxu2  ;;  %v682_v47 = vpop.f32.mrf.mxu3 }
 0x1f1   :  { %v670_v4 = vadd.f32 %v669_v21, %v602_v58  ;;  %v683_v46 = vadd.f32 %v682_v47, %v615_v53  ;;  %v643_v28 = vpop.f32.mrf.mxu0  ;;  %v656_v29 = vpop.f32.mrf.mxu1 }
 0x1f2   :  { %v644_v13 = vadd.f32 %v643_v28, %v576_v22  ;;  %v657_v16 = vadd.f32 %v656_v29, %v589_v10 }
 0x1f8   :  { %v671_v31 = vpop.f32.mrf.mxu2  ;;  %v684_v15 = vpop.f32.mrf.mxu3 }
 0x1f9   :  { %v645_v60 = vpop.f32.mrf.mxu0  ;;  %v658_v33 = vpop.f32.mrf.mxu1 }
 0x200   :  { %v762_v25 = vpop.f32.mrf.mxu2  ;;  %v775_v34 = vpop.f32.mrf.mxu3 }
 0x201   :  { %v781_v11 = vadd.f32 %v762_v25, %v670_v4  ;;  %v782_v63 = vadd.f32 %v775_v34, %v683_v46  ;;  %v736_v6 = vpop.f32.mrf.mxu0  ;;  %v749_v7 = vpop.f32.mrf.mxu1 }
 0x202   :  { %v779_v57 = vadd.f32 %v736_v6, %v644_v13  ;;  %v780_v59 = vadd.f32 %v749_v7, %v657_v16 }
 0x208   :  { %v764_v43 = vpop.f32.mrf.mxu2  ;;  %v777_v55 = vpop.f32.mrf.mxu3 }
 0x209   :  { %v738_v14 = vpop.f32.mrf.mxu0  ;;  %v751_v19 = vpop.f32.mrf.mxu1 }
 0x20a   :  { %v1349_v43 = vpop.permute.xlu2 %1348 }
 0x210   :  { %v859_v54 = vpop.f32.mrf.mxu2  ;;  %v872_v56 = vpop.f32.mrf.mxu3 }
 0x211   :  { %v878_v50 = vadd.f32 %v859_v54, %v781_v11  ;;  %v879_v8 = vadd.f32 %v872_v56, %v782_v63  ;;  %v833_v38 = vpop.f32.mrf.mxu0  ;;  %v846_v30 = vpop.f32.mrf.mxu1 }
 0x212   :  { %v876_v9 = vadd.f32 %v833_v38, %v779_v57  ;;  %v877_v26 = vadd.f32 %v846_v30, %v780_v59 }
 0x218   :  { %v861_v36 = vpop.f32.mrf.mxu2  ;;  %v874_v40 = vpop.f32.mrf.mxu3 }
 0x219   :  { %v835_v1 = vpop.f32.mrf.mxu0  ;;  %v848_v12 = vpop.f32.mrf.mxu1 }
 0x220   :  { %v936_v49 = vpop.f32.mrf.mxu2  ;;  %v949_v51 = vpop.f32.mrf.mxu3 }
 0x221   :  { %v910_v62 = vpop.f32.mrf.mxu0  ;;  %v923_v39 = vpop.f32.mrf.mxu1  ;;  %v955_v4 = vadd.f32 %v936_v49, %v878_v50  ;;  %v956_v46 = vadd.f32 %v949_v51, %v879_v8 }
 0x222   :  { %v953_v13 = vadd.f32 %v910_v62, %v876_v9  ;;  %v954_v16 = vadd.f32 %v923_v39, %v877_v26 }
 0x228   :  { %v938_v0 = vpop.f32.mrf.mxu2  ;;  %v951_v3 = vpop.f32.mrf.mxu3 }
 0x229   :  { %v912_v37 = vpop.f32.mrf.mxu0  ;;  %v925_v5 = vpop.f32.mrf.mxu1 }
 0x22a   :  { %v1474_v5 = vld [vmem:[#allocation2 + $0x178] sm:$0xff] }
 0x22b   :  { %1531 = vmatpush.msrb.mxu2 %v1474_v5  ;;  %v1428_v5 = vld [vmem:[#allocation2 + $0x8] sm:$0xff] }
 0x230   :  { %v1033_v35 = vpop.f32.mrf.mxu2  ;;  %v1046_v27 = vpop.f32.mrf.mxu3 }
 0x231   :  { %v1007_v44 = vpop.f32.mrf.mxu0  ;;  %v1020_v32 = vpop.f32.mrf.mxu1  ;;  %v1052_v31 = vadd.f32 %v1033_v35, %v955_v4  ;;  %v1053_v15 = vadd.f32 %v1046_v27, %v956_v46  ;;  %v1490_v35 = vld [vmem:[#allocation2 + $0x1f8] sm:$0xff]  ;;  %v1473_v27 = vld [vmem:[#allocation2 + $0x170] sm:$0xff]  ;;  %v1483_v4 = vld [vmem:[#allocation2 + $0x1c0] sm:$0xff] }
 0x232   :  { %v1050_v60 = vadd.f32 %v1007_v44, %v953_v13  ;;  %v1051_v33 = vadd.f32 %v1020_v32, %v954_v16  ;;  %1551 = vmatpush.msrb.mxu3 %v1490_v35  ;;  %v1489_v44 = vld [vmem:[#allocation2 + $0x1f0] sm:$0xff]  ;;  %v1472_v32 = vld [vmem:[#allocation2 + $0x168] sm:$0xff]  ;;  %1532 = vmatpush.msrb.mxu2 %v1473_v27  ;;  %v1438_v46 = vld [vmem:[#allocation2 + $0x58] sm:$0xff] }
 0x233   :  { %v1482_v13 = vld [vmem:[#allocation2 + $0x1b8] sm:$0xff]  ;;  %v1437_v16 = vld [vmem:[#allocation2 + $0x50] sm:$0xff]  ;;  %v1444_v35 = vld [vmem:[#allocation2 + $0x88] sm:$0xff] }
 0x234   :  { %1552 = vmatpush.msrb.mxu3 %v1489_v44  ;;  %1533 = vmatpush.msrb.mxu2 %v1472_v32  ;;  %v1427_v27 = vld [vmem:[#allocation2] sm:$0xff] }
 0x235   :  { %v1443_v44 = vld [vmem:[#allocation2 + $0x80] sm:$0xff] }
 0x238   :  { %v1035_v45 = vpop.f32.mrf.mxu2  ;;  %v1048_v42 = vpop.f32.mrf.mxu3 }
 0x239   :  { %v1009_v2 = vpop.f32.mrf.mxu0  ;;  %v1022_v23 = vpop.f32.mrf.mxu1  ;;  %v1488_v45 = vld [vmem:[#allocation2 + $0x1e8] sm:$0xff]  ;;  %v1471_v42 = vld [vmem:[#allocation2 + $0x160] sm:$0xff] }
 0x23a   :  { %v1487_v2 = vld [vmem:[#allocation2 + $0x1e0] sm:$0xff]  ;;  %1553 = vmatpush.msrb.mxu3 %v1488_v45  ;;  %1534 = vmatpush.msrb.mxu2 %v1471_v42  ;;  %v1442_v23 = vld [vmem:[#allocation2 + $0x78] sm:$0xff] }
 0x23b   :  { %1491 = vmatpush.msrb.mxu0 %v1442_v23 }
 0x23c   :  { %1554 = vmatpush.msrb.mxu3 %v1487_v2 }
 0x240   :  { %v1130_v52 = vpop.f32.mrf.mxu2  ;;  %v1143_v61 = vpop.f32.mrf.mxu3 }
 0x241   :  { %v1104_v24 = vpop.f32.mrf.mxu0  ;;  %v1117_v20 = vpop.f32.mrf.mxu1  ;;  %v1149_v25 = vadd.f32 %v1130_v52, %v1052_v31  ;;  %v1150_v34 = vadd.f32 %v1143_v61, %v1053_v15  ;;  %v1458_v52 = vld [vmem:[#allocation2 + $0xf8] sm:$0xff]  ;;  %v1453_v31 = vld [vmem:[#allocation2 + $0xd0] sm:$0xff] }
 0x242   :  { %v1147_v11 = vadd.f32 %v1104_v24, %v1050_v60  ;;  %v1148_v63 = vadd.f32 %v1117_v20, %v1051_v33  ;;  %v1470_v61 = vld [vmem:[#allocation2 + $0x158] sm:$0xff]  ;;  %1511 = vmatpush.msrb.mxu1 %v1458_v52  ;;  %v1441_v20 = vld [vmem:[#allocation2 + $0x70] sm:$0xff]  ;;  %v1436_v33 = vld [vmem:[#allocation2 + $0x48] sm:$0xff] }
 0x243   :  { %v1486_v24 = vld [vmem:[#allocation2 + $0x1d8] sm:$0xff]  ;;  %1535 = vmatpush.msrb.mxu2 %v1470_v61  ;;  %1492 = vmatpush.msrb.mxu0 %v1441_v20  ;;  %v1465_v15 = vld [vmem:[#allocation2 + $0x130] sm:$0xff] }
 0x244   :  { %1555 = vmatpush.msrb.mxu3 %v1486_v24  ;;  %v1481_v60 = vld [vmem:[#allocation2 + $0x1b0] sm:$0xff] }
 0x248   :  { %v1132_v53 = vpop.f32.mrf.mxu2  ;;  %v1145_v58 = vpop.f32.mrf.mxu3 }
 0x249   :  { %v1106_v22 = vpop.f32.mrf.mxu0  ;;  %v1119_v10 = vpop.f32.mrf.mxu1  ;;  %v1457_v53 = vld [vmem:[#allocation2 + $0xf0] sm:$0xff] }
 0x24a   :  { %v1469_v58 = vld [vmem:[#allocation2 + $0x150] sm:$0xff]  ;;  %v1440_v10 = vld [vmem:[#allocation2 + $0x68] sm:$0xff]  ;;  %1512 = vmatpush.msrb.mxu1 %v1457_v53 }
 0x24b   :  { %v1485_v22 = vld [vmem:[#allocation2 + $0x1d0] sm:$0xff]  ;;  %1536 = vmatpush.msrb.mxu2 %v1469_v58  ;;  %1493 = vmatpush.msrb.mxu0 %v1440_v10 }
 0x24c   :  { %1556 = vmatpush.msrb.mxu3 %v1485_v22 }
 0x250   :  { %v1227_v17 = vpop.f32.mrf.mxu2  ;;  %v1240_v41 = vpop.f32.mrf.mxu3 }
 0x251   :  { %v1201_v48 = vpop.f32.mrf.mxu0  ;;  %v1214_v18 = vpop.f32.mrf.mxu1  ;;  %v1246_v6 = vadd.f32 %v1227_v17, %v1149_v25  ;;  %v1247_v7 = vadd.f32 %v1240_v41, %v1150_v34  ;;  %v1456_v17 = vld [vmem:[#allocation2 + $0xe8] sm:$0xff] }
 0x252   :  { %v1244_v55 = vadd.f32 %v1201_v48, %v1147_v11  ;;  %v1245_v14 = vadd.f32 %v1214_v18, %v1148_v63  ;;  %v1468_v41 = vld [vmem:[#allocation2 + $0x148] sm:$0xff]  ;;  %v1439_v18 = vld [vmem:[#allocation2 + $0x60] sm:$0xff]  ;;  %1513 = vmatpush.msrb.mxu1 %v1456_v17 }
 0x253   :  { %v1484_v48 = vld [vmem:[#allocation2 + $0x1c8] sm:$0xff]  ;;  %1537 = vmatpush.msrb.mxu2 %v1468_v41  ;;  %1494 = vmatpush.msrb.mxu0 %v1439_v18  ;;  %v1435_v63 = vld [vmem:[#allocation2 + $0x40] sm:$0xff] }
 0x254   :  { %1557 = vmatpush.msrb.mxu3 %v1484_v48  ;;  %v1452_v25 = vld [vmem:[#allocation2 + $0xc8] sm:$0xff] }
 0x255   :  { %1495 = vmatpush.msrb.mxu0 %v1438_v46  ;;  %v1464_v34 = vld [vmem:[#allocation2 + $0x128] sm:$0xff] }
 0x256   :  { %1558 = vmatpush.msrb.mxu3 %v1483_v4  ;;  %v1480_v11 = vld [vmem:[#allocation2 + $0x1a8] sm:$0xff] }
 0x257   :  { %1496 = vmatpush.msrb.mxu0 %v1437_v16 }
 0x258   :  { %v1229_v21 = vpop.f32.mrf.mxu2  ;;  %v1242_v47 = vpop.f32.mrf.mxu3  ;;  %1559 = vmatpush.msrb.mxu3 %v1482_v13 }
 0x259   :  { %v1203_v28 = vpop.f32.mrf.mxu0  ;;  %v1216_v29 = vpop.f32.mrf.mxu1  ;;  %v1455_v21 = vld [vmem:[#allocation2 + $0xe0] sm:$0xff]  ;;  %1497 = vmatpush.msrb.mxu0 %v1436_v33 }
 0x25a   :  { %v1467_v47 = vld [vmem:[#allocation2 + $0x140] sm:$0xff]  ;;  %v1454_v28 = vld [vmem:[#allocation2 + $0xd8] sm:$0xff]  ;;  %1514 = vmatpush.msrb.mxu1 %v1455_v21  ;;  %1560 = vmatpush.msrb.mxu3 %v1481_v60 }
 0x25b   :  { %v1466_v29 = vld [vmem:[#allocation2 + $0x138] sm:$0xff]  ;;  %1538 = vmatpush.msrb.mxu2 %v1467_v47  ;;  %1498 = vmatpush.msrb.mxu0 %v1435_v63 }
 0x25c   :  { %1515 = vmatpush.msrb.mxu1 %v1454_v28  ;;  %1561 = vmatpush.msrb.mxu3 %v1480_v11 }
 0x25d   :  { %1539 = vmatpush.msrb.mxu2 %v1466_v29 }
 0x25e   :  { %1516 = vmatpush.msrb.mxu1 %v1453_v31 }
 0x25f   :  { %1540 = vmatpush.msrb.mxu2 %v1465_v15 }
 0x260   :  { %v1324_v57 = vpop.f32.mrf.mxu2  ;;  %v1337_v59 = vpop.f32.mrf.mxu3  ;;  %1517 = vmatpush.msrb.mxu1 %v1452_v25 }
 0x261   :  { %v1343_v19 = vadd.f32 %v1324_v57, %v1246_v6  ;;  %v1344_v54 = vadd.f32 %v1337_v59, %v1247_v7  ;;  %v1298_v56 = vpop.f32.mrf.mxu0  ;;  %v1311_v50 = vpop.f32.mrf.mxu1  ;;  %v1451_v6 = vld [vmem:[#allocation2 + $0xc0] sm:$0xff]  ;;  %1541 = vmatpush.msrb.mxu2 %v1464_v34  ;;  %v1434_v59 = vld [vmem:[#allocation2 + $0x38] sm:$0xff] }
 0x262   :  { %v1341_v30 = vadd.f32 %v1298_v56, %v1244_v55  ;;  %v1342_v9 = vadd.f32 %v1311_v50, %v1245_v14  ;;  %v1463_v7 = vld [vmem:[#allocation2 + $0x120] sm:$0xff]  ;;  %1518 = vmatpush.msrb.mxu1 %v1451_v6  ;;  %v1462_v55 = vld [vmem:[#allocation2 + $0x118] sm:$0xff]  ;;  %1499 = vmatpush.msrb.mxu0 %v1434_v59  ;;  %v1461_v56 = vld [vmem:[#allocation2 + $0x110] sm:$0xff] }
 0x263   :  { %v1353_v8 = vadd.f32 %v1349_v43, %v1343_v19  ;;  %v1354_v38 = vadd.f32 %v1349_v43, %v1344_v54  ;;  %v1479_v57 = vld [vmem:[#allocation2 + $0x1a0] sm:$0xff]  ;;  %1542 = vmatpush.msrb.mxu2 %v1463_v7  ;;  %v1478_v14 = vld [vmem:[#allocation2 + $0x198] sm:$0xff]  ;;  %v1433_v19 = vld [vmem:[#allocation2 + $0x30] sm:$0xff] }
 0x264   :  { %v1351_v40 = vadd.f32 %v1349_v43, %v1341_v30  ;;  %v1352_v1 = vadd.f32 %v1349_v43, %v1342_v9  ;;  %1562 = vmatpush.msrb.mxu3 %v1479_v57  ;;  %v1450_v43 = vld [vmem:[#allocation2 + $0xb8] sm:$0xff]  ;;  %v1449_v54 = vld [vmem:[#allocation2 + $0xb0] sm:$0xff]  ;;  %1500 = vmatpush.msrb.mxu0 %v1433_v19  ;;  %v1460_v30 = vld [vmem:[#allocation2 + $0x108] sm:$0xff] }
 0x265   :  { %v2454_v26 = vmax.f32 %v1353_v8, 0.0  ;;  %v2456_v36 = vmax.f32 %v1354_v38, 0.0  ;;  %1519 = vmatpush.msrb.mxu1 %v1450_v43  ;;  %1543 = vmatpush.msrb.mxu2 %v1462_v55  ;;  %v1477_v50 = vld [vmem:[#allocation2 + $0x190] sm:$0xff]  ;;  %v1432_v8 = vld [vmem:[#allocation2 + $0x28] sm:$0xff] }
 0x266   :  { %v2462_v12 = vmax.f32 %v1351_v40, 0.0  ;;  %v2464_v49 = vmax.f32 %v1352_v1, 0.0  ;;  %1563 = vmatpush.msrb.mxu3 %v1478_v14  ;;  %v1448_v38 = vld [vmem:[#allocation2 + $0xa8] sm:$0xff]  ;;  %1501 = vmatpush.msrb.mxu0 %v1432_v8  ;;  %v1431_v40 = vld [vmem:[#allocation2 + $0x20] sm:$0xff] }
 0x267   :  { %1361 = vst [vmem:[%s2514_s7 + $0x10] sm:$0xff] %v2454_v26  ;;  %v1685_v51 = vpack.i.bf16 %v2456_v36, %v2454_v26  ;;  %1520 = vmatpush.msrb.mxu1 %v1449_v54  ;;  %1544 = vmatpush.msrb.mxu2 %v1461_v56  ;;  %v1476_v9 = vld [vmem:[#allocation2 + $0x188] sm:$0xff]  ;;  %v1447_v1 = vld [vmem:[#allocation2 + $0xa0] sm:$0xff] }
 0x268   :  { %1362 = vst [vmem:[%s2514_s7 + $0x18] sm:$0xff] %v2456_v36  ;;  %v1326_v62 = vpop.f32.mrf.mxu2  ;;  %v1339_v39 = vpop.f32.mrf.mxu3  ;;  %v1700_v37 = vpack.i.bf16 %v2464_v49, %v2462_v12  ;;  %1564 = vmatpush.msrb.mxu3 %v1477_v50  ;;  %1502 = vmatpush.msrb.mxu0 %v1431_v40 }
 0x269   :  { %1359 = vst [vmem:[%s2514_s7] sm:$0xff] %v2462_v12  ;;  %1686 = vrot.lane.b32.xlu2 %v1685_v51, %s1742_s27  ;;  %1681 = vrot.lane.b32.xlu1 %v1685_v51, %s1741_s24  ;;  %v1300_v0 = vpop.f32.mrf.mxu0  ;;  %v1313_v3 = vpop.f32.mrf.mxu1  ;;  %v1475_v62 = vld [vmem:[#allocation2 + $0x180] sm:$0xff]  ;;  %v1430_v39 = vld [vmem:[#allocation2 + $0x18] sm:$0xff] }
 0x26a   :  { %1360 = vst [vmem:[%s2514_s7 + $0x8] sm:$0xff] %v2464_v49  ;;  %1676 = vrot.lane.b32.xlu0 %v1685_v51, %s1739_s20  ;;  %1521 = vmatpush.msrb.mxu1 %v1448_v38  ;;  %v1459_v51 = vld [vmem:[#allocation2 + $0x100] sm:$0xff]  ;;  %v1446_v0 = vld [vmem:[#allocation2 + $0x98] sm:$0xff]  ;;  %v1429_v3 = vld [vmem:[#allocation2 + $0x10] sm:$0xff] }
 0x26b   :  { %1545 = vmatpush.msrb.mxu2 %v1460_v30  ;;  %1565 = vmatpush.msrb.mxu3 %v1476_v9 }
 0x26c   :  { %1522 = vmatpush.msrb.mxu1 %v1447_v1  ;;  %1503 = vmatpush.msrb.mxu0 %v1430_v39 }
 0x26d   :  { %1546 = vmatpush.msrb.mxu2 %v1459_v51  ;;  %1566 = vmatpush.msrb.mxu3 %v1475_v62 }
 0x26e   :  { %1523 = vmatpush.msrb.mxu1 %v1446_v0  ;;  %1504 = vmatpush.msrb.mxu0 %v1429_v3 }
 0x270   :  { %1505 = vmatpush.msrb.mxu0 %v1428_v5 }
 0x271   :  { %1701 = vrot.lane.b32.xlu2 %v1700_v37, %s1742_s27  ;;  %1696 = vrot.lane.b32.xlu1 %v1700_v37, %s1741_s24 }
 0x272   :  { %1691 = vrot.lane.b32.xlu0 %v1700_v37, %s1739_s20  ;;  %v1445_v37 = vld [vmem:[#allocation2 + $0x90] sm:$0xff]  ;;  %1506 = vmatpush.msrb.mxu0 %v1427_v27 }
 0x273   :  { %1524 = vmatpush.msrb.mxu1 %v1445_v37 }
 0x275   :  { %1525 = vmatpush.msrb.mxu1 %v1444_v35 }
 0x277   :  { %1526 = vmatpush.msrb.mxu1 %v1443_v44 }
 0x2c3   :  { %v1687_v32 = vpop.permute.xlu2 %1686 }
 0x2c4   :  { %v1689_v45 = vunpack.i.h.bf16 %v1687_v32  ;;  %v1688_v42 = vunpack.i.l.bf16 %v1687_v32 }
 0x2c6   :  { %v1418_v53 = vsel %vm437_vm7, %v1689_v45, 0.0  ;;  %v1413_v58 = vsel %vm437_vm7, %v1688_v42, %v1689_v45 }
 0x2cb   :  { %v1702_v17 = vpop.permute.xlu2 %1701 }
 0x2cc   :  { %v1704_v46 = vunpack.i.h.bf16 %v1702_v17  ;;  %v1703_v28 = vunpack.i.l.bf16 %v1702_v17 }
 0x2ce   :  { %v1412_v34 = vsel %vm437_vm7, %v1704_v46, %v1688_v42  ;;  %v1411_v11 = vsel %vm437_vm7, %v1703_v28, %v1704_v46 }
 0x2db   :  { %v1682_v2 = vpop.permute.xlu1 %1681 }
 0x2dc   :  { %v1684_v23 = vunpack.i.h.bf16 %v1682_v2  ;;  %v1683_v52 = vunpack.i.l.bf16 %v1682_v2  ;;  %v1677_v61 = vpop.permute.xlu0 %1676 }
 0x2dd   :  { %v1679_v24 = vunpack.i.h.bf16 %v1677_v61  ;;  %v1678_v20 = vunpack.i.l.bf16 %v1677_v61 }
 0x2de   :  { %v1402_v22 = vsel %vm385_vm6, %v1684_v23, 0.0  ;;  %v1397_v10 = vsel %vm385_vm6, %v1683_v52, %v1684_v23 }
 0x2df   :  { %v1422_v41 = vmax.f32 %v1402_v22, %v1418_v53  ;;  %v1421_v48 = vmax.f32 %v1397_v10, %v1413_v58  ;;  %v1382_v18 = vsel %vm281_vm3, %v1679_v24, 0.0  ;;  %v1377_v21 = vsel %vm281_vm3, %v1678_v20, %v1679_v24 }
 0x2e0   :  { %v1386_v47 = vmax.f32 %v2456_v36, %v1382_v18  ;;  %v1385_v4 = vmax.f32 %v2454_v26, %v1377_v21 }
 0x2e2   :  { %v1426_v29 = vmax.f32 %v1386_v47, %v1422_v41  ;;  %v1425_v13 = vmax.f32 %v1385_v4, %v1421_v48 }
 0x2e3   :  { %v1697_v16 = vpop.permute.xlu1 %1696 }
 0x2e4   :  { %1547 = vmatmul.f32.vlgmr.msrb.gmra.mxu2 %v1425_v13  ;;  %1567 = vmatmul.f32.vlgmr.msrb.gmra.mxu3 %v1426_v29  ;;  %v1699_v31 = vunpack.i.h.bf16 %v1697_v16  ;;  %v1698_v15 = vunpack.i.l.bf16 %v1697_v16  ;;  %v1692_v60 = vpop.permute.xlu0 %1691 }
 0x2e5   :  { %v1694_v33 = vunpack.i.h.bf16 %v1692_v60  ;;  %v1693_v25 = vunpack.i.l.bf16 %v1692_v60 }
 0x2e6   :  { %v1396_v36 = vsel %vm385_vm6, %v1699_v31, %v1683_v52  ;;  %v1395_v26 = vsel %vm385_vm6, %v1698_v15, %v1699_v31 }
 0x2e7   :  { %v1420_v63 = vmax.f32 %v1396_v36, %v1412_v34  ;;  %v1419_v6 = vmax.f32 %v1395_v26, %v1411_v11  ;;  %v1376_v7 = vsel %vm281_vm3, %v1694_v33, %v1678_v20  ;;  %v1375_v57 = vsel %vm281_vm3, %v1693_v25, %v1694_v33 }
 0x2e8   :  { %v1384_v59 = vmax.f32 %v2464_v49, %v1376_v7  ;;  %v1383_v43 = vmax.f32 %v2462_v12, %v1375_v57 }
 0x2ea   :  { %v1423_v55 = vmax.f32 %v1383_v43, %v1419_v6  ;;  %v1424_v14 = vmax.f32 %v1384_v59, %v1420_v63 }
 0x2ec   :  { %1507 = vmatmul.f32.vlgmr.msrb.gmra.mxu0 %v1423_v55  ;;  %1527 = vmatmul.f32.vlgmr.msrb.gmra.mxu1 %v1424_v14 }
 0x367   :  { %v1548_v50 = vpop.f32.mrf.mxu2  ;;  %v1568_v38 = vpop.f32.mrf.mxu3 }
 0x369   :  { %v1508_v19 = vpop.f32.mrf.mxu0  ;;  %v1528_v54 = vpop.f32.mrf.mxu1 }
 0x36a   :  { %v1529_v56 = vadd.f32 %v1528_v54, %v1508_v19 }
 0x36c   :  { %v1549_v8 = vadd.f32 %v1548_v50, %v1529_v56 }
 0x36e   :  { %v1569_v30 = vadd.f32 %v1568_v38, %v1549_v8 }
 0x370   :  { %1571 = vst [vmem:[%s2515_s8] sm:$0xff] %v1569_v30 }
 0x371   :  { %1580 = vsyncpa [#allocation3], 1 }

// kernel: unet_forward.8
= control target key start
LH: loop header
LB: loop body
LE: loop exit
PB: predicated region body
PF: predicated region fallthrough
CT: control target
= control target key end

     0   :  { %15 = vsyncpa [#allocation3], 0  ;;  %s1851_s0 = inlined_call_operand.vmem [shape: f32[32,32], index: 0, kind: input, shape index: {}]   ;;  %s1852_s1 = inlined_call_operand.vmem [shape: f32[16,128], index: 1, kind: input, shape index: {}]   ;;  %s1853_s2 = inlined_call_operand.vmem [shape: bf16[4,16,32], index: 2, kind: input, shape index: {}]   ;;  %s1854_s3 = inlined_call_operand.vmem [shape: f32[16,1], index: 3, kind: input, shape index: {}]   ;;  %s1855_s4 = inlined_call_operand.hbm [shape: f32[4,32,128], index: 4, kind: input, shape index: {}]   ;;  %s1856_s5 = inlined_call_operand.vmem [shape: bf16[9,16,32], index: 5, kind: input, shape index: {}]   ;;  %s1857_s6 = inlined_call_operand.vmem [shape: f32[16,1], index: 6, kind: input, shape index: {}]   ;;  %s1858_s7 = inlined_call_operand.hbm [shape: bf16[9,16,16], index: 7, kind: input, shape index: {}]   ;;  %s1859_s8 = inlined_call_operand.vmem [shape: f32[16,1], index: 8, kind: input, shape index: {}]   ;;  %s1860_s9 = inlined_call_operand.vmem [shape: f32[9,1,128], index: 9, kind: input, shape index: {}]   ;;  %s1861_s10 = inlined_call_operand.vmem [shape: f32[16,128], index: 10, kind: output, shape index: {}]  }
   0x1   :  { %s29_s15 = sshll.u32 %s1855_s4, 4  ;;  %s30_s15 = int_to_ptr.hbm [resolvable:$true] %s29_s15 }
   0x2   :  { %16 = vsyncpa [#allocation5], 0  ;;  %s1412_s16 = smov [#allocation2]   ;;  %s46_s20 = sshll.u32 %s1858_s7, 4  ;;  %s47_s20 = int_to_ptr.hbm [resolvable:$true] %s46_s20 }
   0x3   :  { %s31_s17 = sshll.u32 %s1412_s16, 4  ;;  %s1413_s21 = smov 128   ;;  %s32_s17 = int_to_ptr.vmem [resolvable:$true] %s31_s17 }
   0x4   :  { %s1414_s22 = smov 8   ;;  %s1415_s23 = smov [#allocation4]  }
   0x5   :  { %37 = dma.hbm_to_vmem [thread:$0]  %s30_s15, 2048, %s32_s17, [#allocation3], %s1413_s21, %s1413_s21, %s1414_s22  }
   0x6   :  { %s48_s24 = sshll.u32 %s1415_s23, 4  ;;  %s1416_s25 = smov 64   ;;  %s49_s24 = int_to_ptr.vmem [resolvable:$true] %s48_s24 }
   0x7   :  { %s1417_s26 = smov 4  }
   0x8   :  { %54 = dma.hbm_to_vmem [thread:$0]  %s47_s20, 1152, %s49_s24, [#allocation5], %s1416_s25, %s1416_s25, %s1417_s26  }
   0x9   :  { %1408 = dma.done.wait [#allocation3], 2048  }
   0xa   :  { %1409 = vsyncadd [#allocation3], 4294965248 }
   0xb   :  { %1410 = dma.done.wait [#allocation5], 1152  }
   0xc   :  { %1411 = vsyncadd [#allocation5], 4294966144  ;;  %v70_v0 = vld [vmem:[%s1851_s0 + $0x10] sm:$0xff]  ;;  %v71_v1 = vld [vmem:[%s1851_s0 + $0x18] sm:$0xff]  ;;  %vm81_vm0 = vcmask 261120   ;;  %v1418_v34 = vmov 0  }
   0xd   :  { %v68_v2 = vld [vmem:[%s1851_s0] sm:$0xff]  ;;  %v73_v3 = vpack.c.bf16 %v71_v1, %v70_v0  ;;  %v69_v4 = vld [vmem:[%s1851_s0 + $0x8] sm:$0xff]  ;;  %v132_v5 = vld [vmem:[#allocation2 + $0x38] sm:$0xff]  ;;  %1349 = vset.pattern.permute.xlu0 %v1418_v34  ;;  %s1419_s26 = smov 7   ;;  %1350 = vset.pattern.permute.xlu1 %v1418_v34  ;;  %s1420_s7 = smov 9   ;;  %vm374_vm1 = vcmask 64512  }
   0xe   :  { %v102_v6 = vld [vmem:[#allocation2 + $0x18] sm:$0xff]  ;;  %v72_v7 = vpack.c.bf16 %v69_v4, %v68_v2  ;;  %v131_v8 = vld [vmem:[#allocation2 + $0x30] sm:$0xff]  ;;  %v130_v10 = vld [vmem:[#allocation2 + $0x28] sm:$0xff]  ;;  %151 = vmatpush.msra.mxu2 %v132_v5  ;;  %1351 = vset.pattern.permute.xlu2 %v1418_v34  ;;  %s1423_s28 = smov 120   ;;  %s1424_s29 = smov 127   ;;  %vm345_vm2 = vcmask 72704  }
   0xf   :  { %91 = vmatpush.bf16.msra.mxu0 %v73_v3  ;;  %120 = vmatpush.bf16.msra.mxu1 %v73_v3  ;;  %v101_v9 = vld [vmem:[#allocation2 + $0x10] sm:$0xff]  ;;  %v1313_v11 = vld [vmem:[%s1853_s2] sm:$0xff]  ;;  %v1314_v12 = vld [vmem:[%s1853_s2 + $0x8] sm:$0xff]  ;;  %s1425_s12 = smov 119   ;;  %vm504_vm3 = vcmask 7168   ;;  %vm588_vm4 = vcmask 1039360  }
  0x10   :  { %180 = vmatpush.msra.mxu3 %v102_v6  ;;  %v100_v13 = vld [vmem:[#allocation2 + $0x8] sm:$0xff]  ;;  %152 = vmatpush.msra.mxu2 %v131_v8  ;;  %v1315_v14 = vld [vmem:[%s1853_s2 + $0x10] sm:$0xff]  ;;  %v129_v15 = vld [vmem:[#allocation2 + $0x20] sm:$0xff]  ;;  %vm698_vm5 = vcmask 982016   ;;  %vm449_vm6 = vcmask 56320   ;;  %vm643_vm7 = vcmask 990208  }
  0x11   :  { %v99_v16 = vld [vmem:[#allocation2] sm:$0xff]  ;;  %v220_v17 = vld [vmem:[#allocation2 + $0x58] sm:$0xff]  ;;  %v219_v18 = vld [vmem:[#allocation2 + $0x50] sm:$0xff]  ;;  %vm753_vm8 = vcmask 973824   ;;  %vm846_vm9 = vcmask 130048  }
  0x12   :  { %181 = vmatpush.msra.mxu3 %v101_v9  ;;  %153 = vmatpush.msra.mxu2 %v130_v10  ;;  %v218_v19 = vld [vmem:[#allocation2 + $0x48] sm:$0xff]  ;;  %v217_v20 = vld [vmem:[#allocation2 + $0x40] sm:$0xff]  ;;  %v1316_v25 = vld [vmem:[%s1853_s2 + $0x18] sm:$0xff] }
  0x13   :  { %92 = vmatpush.bf16.msra.mxu0 %v72_v7  ;;  %121 = vmatpush.bf16.msra.mxu1 %v72_v7  ;;  %v281_v28 = vld [vmem:[#allocation2 + $0x78] sm:$0xff]  ;;  %v280_v29 = vld [vmem:[#allocation2 + $0x70] sm:$0xff]  ;;  %v279_v30 = vld [vmem:[#allocation2 + $0x68] sm:$0xff] }
  0x14   :  { %182 = vmatpush.msra.mxu3 %v100_v13  ;;  %154 = vmatpush.msra.mxu2 %v129_v15  ;;  %v278_v31 = vld [vmem:[#allocation2 + $0x60] sm:$0xff]  ;;  %v1535_v35 = vld [vmem:[%s1852_s1 + $0x8] sm:$0xff] }
  0x15   :  { %v313_v32 = vld [vmem:[%s1854_s3] sm:$0xff]  ;;  %439 = vrot.lane.b32.xlu1 %v1535_v35, %s1419_s26  ;;  %v314_v37 = vld [vmem:[%s1854_s3 + $0x8] sm:$0xff]  ;;  %s1422_s3 = smov 121  }
  0x16   :  { %1170 = vmatmul.msk.bf16.vlgmr.msra.gmra.mxu0 %vm81_vm0, %v1313_v11  ;;  %1177 = vmatmul.msk.bf16.vlgmr.msra.gmra.mxu1 %vm81_vm0, %v1314_v12  ;;  %v1528_v33 = vld [vmem:[%s1852_s1] sm:$0xff]  ;;  %s1421_s1 = smov 1  }
  0x17   :  { %208 = vmatpush.bf16.msrb.mxu0 %v73_v3  ;;  %183 = vmatpush.msra.mxu3 %v99_v16  ;;  %v1591_v59 = vld [vmem:[%s1860_s9 + $0x1] ss:$0 sm:$0xff]  ;;  %v1634_v15 = vld [vmem:[%s1860_s9] ss:$0 sm:$0xff] }
  0x18   :  { %269 = vmatpush.bf16.msrb.mxu2 %v73_v3  ;;  %239 = vmatpush.msrb.mxu1 %v220_v17 }
  0x19   :  { %300 = vmatpush.msrb.mxu3 %v281_v28  ;;  %362 = vrot.lane.b32.xlu2 %v1528_v33, %s1414_s22  ;;  %v1649_v28 = vld [vmem:[%s1860_s9 + $0x3] ss:$0 sm:$0xff] }
  0x1a   :  { %240 = vmatpush.msrb.mxu1 %v219_v18  ;;  %317 = vperm.xlu0 %1349, %v313_v32  }
  0x1b   :  { %209 = vmatpush.bf16.msrb.mxu0 %v72_v7  ;;  %301 = vmatpush.msrb.mxu3 %v280_v29 }
  0x1c   :  { %270 = vmatpush.bf16.msrb.mxu2 %v72_v7  ;;  %241 = vmatpush.msrb.mxu1 %v218_v19 }
  0x1d   :  { %302 = vmatpush.msrb.mxu3 %v279_v30  ;;  %333 = vrot.lane.b32.xlu1 %v1528_v33, %s1420_s7  ;;  %v1655_v30 = vld [vmem:[%s1860_s9 + $0x5] ss:$0 sm:$0xff] }
  0x1e   :  { %242 = vmatpush.msrb.mxu1 %v217_v20 }
  0x1f   :  { %303 = vmatpush.msrb.mxu3 %v278_v31 }
  0x21   :  { %364 = vrot.lane.b32.xlu2 %v1535_v35, %s1414_s22 }
  0x22   :  { %322 = vperm.xlu0 %1349, %v314_v37  }
  0x26   :  { %1188 = vmatmul.msk.bf16.vlgmr.msrb.gmra.mxu0 %vm81_vm0, %v1315_v14 }
  0x29   :  { %492 = vrot.lane.b32.xlu2 %v1528_v33, %s1421_s1 }
  0x2a   :  { %437 = vrot.lane.b32.xlu0 %v1528_v33, %s1419_s26 }
  0x31   :  { %335 = vrot.lane.b32.xlu2 %v1535_v35, %s1420_s7 }
  0x32   :  { %494 = vrot.lane.b32.xlu0 %v1535_v35, %s1421_s1 }
  0x3a   :  { %631 = vrot.lane.b32.xlu0 %v1528_v33, %s1422_s3 }
  0x73   :  { %v363_v58 = vpop.permute.xlu2 %362 }
  0x74   :  { %v375_v60 = vsel %vm374_vm1, 0.0, %v363_v58 }
  0x75   :  { %v1601_v61 = vmul.f32 %v1591_v59, %v375_v60 }
  0x7b   :  { %v365_v62 = vpop.permute.xlu2 %364 }
  0x7c   :  { %v376_v63 = vsel %vm374_vm1, 0.0, %v365_v62 }
  0x7d   :  { %v1605_v0 = vmul.f32 %v1591_v59, %v376_v63  ;;  %v1682_v63 = vld [vmem:[%s1860_s9 + $0x7] ss:$0 sm:$0xff] }
  0x7f   :  { %v391_v1 = vpack.c.bf16 %v1605_v0, %v1601_v61 }
  0x83   :  { %v493_v2 = vpop.permute.xlu2 %492 }
  0x84   :  { %v505_v34 = vsel %vm504_vm3, 0.0, %v493_v2 }
  0x87   :  { %v1627_v7 = vpop.permute.xlu1 %439 }
  0x8b   :  { %v336_v3 = vpop.permute.xlu2 %335 }
  0x8c   :  { %v318_v46 = vpop.permute.xlu0 %317  ;;  %v347_v19 = vsel %vm345_vm2, 0.0, %v336_v3 }
  0x8f   :  { %v334_v10 = vpop.permute.xlu1 %333 }
  0x90   :  { %v346_v20 = vsel %vm345_vm2, 0.0, %v334_v10 }
  0x93   :  { %v94_v21 = vpop.f32.mrf.mxu0  ;;  %v123_v22 = vpop.f32.mrf.mxu1 }
  0x94   :  { %1178 = vmatmul.msk.f32.vlgmr.msra.gmra.mxu2 %vm81_vm0, %v123_v22  ;;  %1180 = vmatmul.msk.f32.vlgmr.msra.gmra.mxu3 %vm81_vm0, %v94_v21  ;;  %v323_v55 = vpop.permute.xlu0 %322 }
  0x9b   :  { %v96_v23 = vpop.f32.mrf.mxu0  ;;  %v125_v24 = vpop.f32.mrf.mxu1 }
  0x9c   :  { %1179 = vmatmul.msk.f32.gmra.mxu2 %vm81_vm0, %v125_v24  ;;  %1181 = vmatmul.msk.f32.gmra.mxu3 %vm81_vm0, %v96_v23  ;;  %v1625_v4 = vpop.permute.xlu0 %437  ;;  %v355_v24 = vmul.f32 %v1634_v15, %v347_v19 }
  0xa3   :  { %v211_v26 = vpop.f32.mrf.mxu0 }
  0xa4   :  { %1189 = vmatmul.msk.f32.vlgmr.msrb.gmra.mxu1 %vm81_vm0, %v211_v26  ;;  %1197 = vmatmul.msk.bf16.vlgmr.msrb.gmra.mxu2 %vm81_vm0, %v1316_v25  ;;  %v495_v6 = vpop.permute.xlu0 %494  ;;  %v354_v25 = vmul.f32 %v1634_v15, %v346_v20 }
  0xa6   :  { %v360_v37 = vpack.c.bf16 %v355_v24, %v354_v25  ;;  %v550_v25 = vpack.c.bf16 %v1535_v35, %v1528_v33 }
  0xab   :  { %v213_v27 = vpop.f32.mrf.mxu0 }
  0xac   :  { %1190 = vmatmul.msk.f32.gmra.mxu1 %vm81_vm0, %v213_v27  ;;  %v1629_v9 = vpop.permute.xlu0 %631 }
 0x117   :  { %v156_v36 = vpop.f32.mrf.mxu2  ;;  %v185_v41 = vpop.f32.mrf.mxu3 }
 0x118   :  { %v186_v44 = vadd.f32 %v185_v41, %v156_v36  ;;  %v506_v36 = vsel %vm504_vm3, 0.0, %v495_v6 }
 0x11f   :  { %v159_v38 = vpop.f32.mrf.mxu2  ;;  %v188_v42 = vpop.f32.mrf.mxu3 }
 0x120   :  { %v189_v51 = vadd.f32 %v188_v42, %v159_v38 }
 0x121   :  { %v244_v43 = vpop.f32.mrf.mxu1 }
 0x122   :  { %v250_v45 = vadd.f32 %v244_v43, %v186_v44  ;;  %v1317_v43 = vld [vmem:[%s1856_s5] sm:$0xff] }
 0x127   :  { %v272_v39 = vpop.f32.mrf.mxu2 }
 0x128   :  { %1198 = vmatmul.msk.f32.vlgmr.msrb.gmra.mxu3 %vm81_vm0, %v272_v39 }
 0x129   :  { %v247_v50 = vpop.f32.mrf.mxu1 }
 0x12a   :  { %v251_v52 = vadd.f32 %v247_v50, %v189_v51 }
 0x12f   :  { %v274_v40 = vpop.f32.mrf.mxu2 }
 0x130   :  { %1199 = vmatmul.msk.f32.gmra.mxu3 %vm81_vm0, %v274_v40 }
 0x1ab   :  { %v305_v47 = vpop.f32.mrf.mxu3 }
 0x1ac   :  { %v311_v48 = vadd.f32 %v305_v47, %v250_v45  ;;  %v515_v47 = vmul.f32 %v1649_v28, %v506_v36 }
 0x1ae   :  { %v1558_v49 = vadd.f32 %v318_v46, %v311_v48  ;;  %v514_v46 = vmul.f32 %v1649_v28, %v505_v34 }
 0x1b0   :  { %496 = vrot.lane.b32.xlu2 %v1558_v49, %s1421_s1  ;;  %441 = vrot.lane.b32.xlu0 %v1558_v49, %s1419_s26  ;;  %v521_v51 = vpack.c.bf16 %v515_v47, %v514_v46 }
 0x1b1   :  { %366 = vrot.lane.b32.xlu1 %v1558_v49, %s1414_s22 }
 0x1b3   :  { %v308_v53 = vpop.f32.mrf.mxu3 }
 0x1b4   :  { %v312_v54 = vadd.f32 %v308_v53, %v251_v52 }
 0x1b6   :  { %v1566_v56 = vadd.f32 %v323_v55, %v312_v54  ;;  %v1320_v55 = vld [vmem:[%s1856_s5 + $0x18] sm:$0xff] }
 0x1b8   :  { %690 = vrot.lane.b32.xlu2 %v1558_v49, %s1423_s28  ;;  %635 = vrot.lane.b32.xlu0 %v1558_v49, %s1422_s3  ;;  %v551_v57 = vpack.c.bf16 %v1566_v56, %v1558_v49 }
 0x1b9   :  { %337 = vrot.lane.b32.xlu1 %v1558_v49, %s1420_s7 }
 0x1c0   :  { %339 = vrot.lane.b32.xlu2 %v1566_v56, %s1420_s7  ;;  %498 = vrot.lane.b32.xlu0 %v1566_v56, %s1421_s1 }
 0x1c1   :  { %580 = vrot.lane.b32.xlu1 %v1558_v49, %s1424_s29 }
 0x1c8   :  { %686 = vrot.lane.b32.xlu2 %v1528_v33, %s1423_s28  ;;  %688 = vrot.lane.b32.xlu0 %v1535_v35, %s1423_s28 }
 0x1c9   :  { %368 = vrot.lane.b32.xlu1 %v1566_v56, %s1414_s22 }
 0x1d0   :  { %582 = vrot.lane.b32.xlu2 %v1566_v56, %s1424_s29  ;;  %692 = vrot.lane.b32.xlu0 %v1566_v56, %s1423_s28 }
 0x1d1   :  { %443 = vrot.lane.b32.xlu1 %v1566_v56, %s1419_s26 }
 0x1d8   :  { %745 = vrot.lane.b32.xlu0 %v1558_v49, %s1425_s12  ;;  %578 = vrot.lane.b32.xlu2 %v1535_v35, %s1424_s29  ;;  %v1324_v49 = vld [vmem:[%s1856_s5 + $0x38] sm:$0xff] }
 0x1d9   :  { %633 = vrot.lane.b32.xlu1 %v1535_v35, %s1422_s3 }
 0x1e0   :  { %743 = vrot.lane.b32.xlu0 %v1535_v35, %s1425_s12  ;;  %741 = vrot.lane.b32.xlu2 %v1528_v33, %s1425_s12  ;;  %v796_v35 = vld [vmem:[%s1857_s6] sm:$0xff] }
 0x1e1   :  { %637 = vrot.lane.b32.xlu1 %v1566_v56, %s1422_s3 }
 0x1e9   :  { %576 = vrot.lane.b32.xlu1 %v1528_v33, %s1424_s29  ;;  %v1319_v33 = vld [vmem:[%s1856_s5 + $0x10] sm:$0xff] }
 0x1f1   :  { %747 = vrot.lane.b32.xlu1 %v1566_v56, %s1425_s12  ;;  %v797_v56 = vld [vmem:[%s1857_s6 + $0x8] sm:$0xff] }
 0x1f2   :  { %805 = vperm.xlu2 %1351, %v797_v56  }
 0x1f9   :  { %800 = vperm.xlu1 %1350, %v796_v35  }
 0x20a   :  { %v497_v5 = vpop.permute.xlu2 %496 }
 0x20b   :  { %v507_v29 = vsel %vm504_vm3, 0.0, %v497_v5 }
 0x20c   :  { %v516_v40 = vmul.f32 %v1649_v28, %v507_v29 }
 0x212   :  { %v691_v8 = vpop.permute.xlu2 %690 }
 0x213   :  { %v701_v3 = vsel %vm698_vm5, %v691_v8, 0.0 }
 0x214   :  { %v710_v8 = vmul.f32 %v1682_v63, %v701_v3 }
 0x21a   :  { %v340_v11 = vpop.permute.xlu2 %339 }
 0x21b   :  { %v349_v16 = vsel %vm345_vm2, 0.0, %v340_v11 }
 0x21c   :  { %v357_v22 = vmul.f32 %v1634_v15, %v349_v16  ;;  %v450_v16 = vsel %vm449_vm6, 0.0, %v1625_v4  ;;  %v1318_v4 = vld [vmem:[%s1856_s5 + $0x8] sm:$0xff] }
 0x222   :  { %v442_v12 = vpop.permute.xlu0 %441  ;;  %v687_v14 = vpop.permute.xlu2 %686 }
 0x223   :  { %v367_v13 = vpop.permute.xlu1 %366  ;;  %v699_v5 = vsel %vm698_vm5, %v687_v14, 0.0  ;;  %v452_v10 = vsel %vm449_vm6, 0.0, %v442_v12 }
 0x224   :  { %v377_v52 = vsel %vm374_vm1, 0.0, %v367_v13  ;;  %v1692_v13 = vld [vmem:[%s1860_s9 + $0x2] ss:$0 sm:$0xff]  ;;  %v708_v20 = vmul.f32 %v1682_v63, %v699_v5 }
 0x225   :  { %v386_v60 = vmul.f32 %v1591_v59, %v377_v52 }
 0x22a   :  { %v1637_v17 = vpop.permute.xlu0 %635  ;;  %v583_v27 = vpop.permute.xlu2 %582 }
 0x22b   :  { %v338_v18 = vpop.permute.xlu1 %337  ;;  %v592_v31 = vsel %vm588_vm4, %v583_v27, 0.0 }
 0x22c   :  { %v348_v21 = vsel %vm345_vm2, 0.0, %v338_v18  ;;  %v601_v44 = vmul.f32 %v1655_v30, %v592_v31  ;;  %v451_v18 = vsel %vm449_vm6, 0.0, %v1627_v7 }
 0x22d   :  { %v356_v23 = vmul.f32 %v1634_v15, %v348_v21  ;;  %v460_v27 = vmul.f32 %v1692_v13, %v451_v18 }
 0x22f   :  { %v361_v26 = vpack.c.bf16 %v357_v22, %v356_v23  ;;  %v461_v23 = vmul.f32 %v1692_v13, %v452_v10 }
 0x231   :  { %429 = vmatpush.bf16.msra.mxu1 %v361_v26  ;;  %v459_v26 = vmul.f32 %v1692_v13, %v450_v16 }
 0x232   :  { %v499_v32 = vpop.permute.xlu0 %498 }
 0x233   :  { %v581_v38 = vpop.permute.xlu1 %580  ;;  %v508_v39 = vsel %vm504_vm3, 0.0, %v499_v32  ;;  %v466_v61 = vpack.c.bf16 %v460_v27, %v459_v26 }
 0x234   :  { %v591_v41 = vsel %vm588_vm4, %v581_v38, 0.0  ;;  %v517_v42 = vmul.f32 %v1649_v28, %v508_v39 }
 0x235   :  { %v600_v45 = vmul.f32 %v1655_v30, %v591_v41  ;;  %430 = vmatpush.bf16.msra.mxu1 %v360_v37  ;;  %v1321_v37 = vld [vmem:[%s1856_s5 + $0x20] sm:$0xff]  ;;  %v644_v41 = vsel %vm643_vm7, %v1629_v9, 0.0  ;;  %v1323_v9 = vld [vmem:[%s1856_s5 + $0x30] sm:$0xff] }
 0x236   :  { %v522_v48 = vpack.c.bf16 %v517_v42, %v516_v40  ;;  %v579_v40 = vpop.permute.xlu2 %578 }
 0x237   :  { %v606_v50 = vpack.c.bf16 %v601_v44, %v600_v45  ;;  %v590_v44 = vsel %vm588_vm4, %v579_v40, 0.0 }
 0x238   :  { %537 = vmatpush.bf16.msra.mxu3 %v522_v48  ;;  %1212 = vmatmul.msk.bf16.vlgmr.msra.gmra.mxu1 %vm81_vm0, %v1317_v43  ;;  %v599_v47 = vmul.f32 %v1655_v30, %v590_v44 }
 0x239   :  { %621 = vmatpush.bf16.msrb.mxu1 %v606_v50 }
 0x23a   :  { %v689_v53 = vpop.permute.xlu0 %688 }
 0x23b   :  { %v369_v54 = vpop.permute.xlu1 %368  ;;  %v700_v6 = vsel %vm698_vm5, %v689_v53, 0.0 }
 0x23c   :  { %v378_v58 = vsel %vm374_vm1, 0.0, %v369_v54  ;;  %538 = vmatpush.bf16.msra.mxu3 %v521_v51  ;;  %v709_v12 = vmul.f32 %v1682_v63, %v700_v6 }
 0x23d   :  { %v387_v62 = vmul.f32 %v1591_v59, %v378_v58  ;;  %v1767_v58 = vld [vmem:[%s1860_s9 + $0x8] ss:$0 sm:$0xff] }
 0x23e   :  { %v715_v31 = vpack.c.bf16 %v709_v12, %v708_v20  ;;  %v742_v53 = vpop.permute.xlu2 %741 }
 0x23f   :  { %v392_v2 = vpack.c.bf16 %v387_v62, %v386_v60  ;;  %1228 = vmatmul.msk.bf16.vlgmr.msra.gmra.mxu3 %vm81_vm0, %v1320_v55  ;;  %v1322_v55 = vld [vmem:[%s1856_s5 + $0x28] sm:$0xff]  ;;  %v754_v62 = vsel %vm753_vm8, %v742_v53, 0.0 }
 0x240   :  { %v1143_v53 = vld [vmem:[%s1859_s8 + $0x8] sm:$0xff] }
 0x241   :  { %407 = vmatpush.bf16.msra.mxu0 %v392_v2 }
 0x242   :  { %v693_v11 = vpop.permute.xlu0 %692 }
 0x243   :  { %v702_v14 = vsel %vm698_vm5, %v693_v11, 0.0  ;;  %v444_v19 = vpop.permute.xlu1 %443  ;;  %v763_v11 = vmul.f32 %v1767_v58, %v754_v62 }
 0x244   :  { %v711_v21 = vmul.f32 %v1682_v63, %v702_v14  ;;  %v453_v22 = vsel %vm449_vm6, 0.0, %v444_v19  ;;  %v1325_v14 = vld [vmem:[%s1856_s5 + $0x40] sm:$0xff] }
 0x245   :  { %v462_v7 = vmul.f32 %v1692_v13, %v453_v22  ;;  %408 = vmatpush.bf16.msra.mxu0 %v391_v1  ;;  %v646_v1 = vsel %vm643_vm7, %v1637_v17, 0.0 }
 0x246   :  { %v716_v24 = vpack.c.bf16 %v711_v21, %v710_v8 }
 0x247   :  { %v467_v29 = vpack.c.bf16 %v462_v7, %v461_v23 }
 0x248   :  { %1207 = vmatmul.msk.bf16.vlgmr.msra.gmra.mxu0 %vm81_vm0, %v1318_v4  ;;  %731 = vmatpush.bf16.msrb.mxu3 %v716_v24 }
 0x249   :  { %566 = vmatpush.bf16.msrb.mxu0 %v551_v57  ;;  %482 = vmatpush.bf16.msra.mxu2 %v467_v29  ;;  %v1737_v57 = vld [vmem:[%s1860_s9 + $0x6] ss:$0 sm:$0xff] }
 0x24a   :  { %v655_v38 = vmul.f32 %v1737_v57, %v646_v1  ;;  %v746_v42 = vpop.permute.xlu0 %745  ;;  %v653_v45 = vmul.f32 %v1737_v57, %v644_v41 }
 0x24b   :  { %v634_v0 = vpop.permute.xlu1 %633  ;;  %v756_v60 = vsel %vm753_vm8, %v746_v42, 0.0 }
 0x24c   :  { %732 = vmatpush.bf16.msrb.mxu3 %v715_v31  ;;  %v645_v34 = vsel %vm643_vm7, %v634_v0, 0.0  ;;  %v765_v6 = vmul.f32 %v1767_v58, %v756_v60 }
 0x24d   :  { %567 = vmatpush.bf16.msrb.mxu0 %v550_v25  ;;  %483 = vmatpush.bf16.msra.mxu2 %v466_v61  ;;  %v654_v17 = vmul.f32 %v1737_v57, %v645_v34 }
 0x24f   :  { %1259 = vmatmul.msk.bf16.vlgmr.msrb.gmra.mxu3 %vm81_vm0, %v1324_v49  ;;  %v660_v46 = vpack.c.bf16 %v654_v17, %v653_v45 }
 0x250   :  { %1220 = vmatmul.msk.bf16.vlgmr.msra.gmra.mxu2 %vm81_vm0, %v1319_v33 }
 0x252   :  { %v744_v54 = vpop.permute.xlu0 %743 }
 0x253   :  { %v638_v32 = vpop.permute.xlu1 %637  ;;  %v755_v2 = vsel %vm753_vm8, %v744_v54, 0.0  ;;  %v1142_v54 = vld [vmem:[%s1859_s8] sm:$0xff] }
 0x254   :  { %v647_v36 = vsel %vm643_vm7, %v638_v32, 0.0  ;;  %v764_v16 = vmul.f32 %v1767_v58, %v755_v2 }
 0x255   :  { %v656_v39 = vmul.f32 %v1737_v57, %v647_v36 }
 0x256   :  { %v770_v8 = vpack.c.bf16 %v764_v16, %v763_v11 }
 0x257   :  { %v661_v43 = vpack.c.bf16 %v656_v39, %v655_v38 }
 0x258   :  { %1235 = vmatmul.msk.bf16.vlgmr.msrb.gmra.mxu0 %vm81_vm0, %v1321_v37 }
 0x259   :  { %676 = vmatpush.bf16.msrb.mxu2 %v661_v43 }
 0x25b   :  { %v577_v48 = vpop.permute.xlu1 %576 }
 0x25c   :  { %v589_v50 = vsel %vm588_vm4, %v577_v48, 0.0  ;;  %v806_v48 = vpop.permute.xlu2 %805 }
 0x25d   :  { %v598_v51 = vmul.f32 %v1655_v30, %v589_v50  ;;  %677 = vmatpush.bf16.msrb.mxu2 %v660_v46 }
 0x25f   :  { %v605_v52 = vpack.c.bf16 %v599_v47, %v598_v51 }
 0x260   :  { %1251 = vmatmul.msk.bf16.vlgmr.msrb.gmra.mxu2 %vm81_vm0, %v1323_v9 }
 0x261   :  { %622 = vmatpush.bf16.msrb.mxu1 %v605_v52 }
 0x263   :  { %v748_v3 = vpop.permute.xlu1 %747 }
 0x264   :  { %v757_v5 = vsel %vm753_vm8, %v748_v3, 0.0  ;;  %1243 = vmatmul.msk.bf16.vlgmr.msrb.gmra.mxu1 %vm81_vm0, %v1322_v55 }
 0x265   :  { %v766_v10 = vmul.f32 %v1767_v58, %v757_v5 }
 0x267   :  { %v771_v18 = vpack.c.bf16 %v766_v10, %v765_v6 }
 0x269   :  { %786 = vmatpush.bf16.msra.mxu0 %v771_v18 }
 0x26b   :  { %v801_v39 = vpop.permute.xlu1 %800 }
 0x26d   :  { %787 = vmatpush.bf16.msra.mxu0 %v770_v8 }
 0x270   :  { %1267 = vmatmul.msk.bf16.vlgmr.msra.gmra.mxu0 %vm81_vm0, %v1325_v14 }
 0x2b5   :  { %v432_v20 = vpop.f32.mrf.mxu1 }
 0x2bd   :  { %v434_v23 = vpop.f32.mrf.mxu1 }
 0x2c2   :  { %v540_v22 = vpop.f32.mrf.mxu3 }
 0x2c5   :  { %v410_v19 = vpop.f32.mrf.mxu0 }
 0x2c6   :  { %v433_v4 = vadd.f32 %v432_v20, %v410_v19 }
 0x2ca   :  { %v542_v27 = vpop.f32.mrf.mxu3 }
 0x2cd   :  { %v412_v12 = vpop.f32.mrf.mxu0 }
 0x2ce   :  { %v435_v29 = vadd.f32 %v434_v23, %v412_v12  ;;  %v1326_v12 = vld [vmem:[#allocation4] sm:$0xff] }
 0x2d2   :  { %v734_v32 = vpop.f32.mrf.mxu3 }
 0x2d3   :  { %v485_v21 = vpop.f32.mrf.mxu2 }
 0x2d4   :  { %v490_v7 = vadd.f32 %v485_v21, %v433_v4  ;;  %v1327_v21 = vld [vmem:[#allocation4 + $0x8] sm:$0xff] }
 0x2d5   :  { %v569_v24 = vpop.f32.mrf.mxu0 }
 0x2d6   :  { %v545_v26 = vadd.f32 %v540_v22, %v490_v7 }
 0x2d8   :  { %v574_v61 = vadd.f32 %v569_v24, %v545_v26  ;;  %v1328_v26 = vld [vmem:[#allocation4 + $0x10] sm:$0xff] }
 0x2da   :  { %v736_v45 = vpop.f32.mrf.mxu3 }
 0x2db   :  { %v487_v25 = vpop.f32.mrf.mxu2 }
 0x2dc   :  { %v491_v0 = vadd.f32 %v487_v25, %v435_v29 }
 0x2dd   :  { %v571_v35 = vpop.f32.mrf.mxu0 }
 0x2de   :  { %v546_v56 = vadd.f32 %v542_v27, %v491_v0 }
 0x2e0   :  { %v575_v36 = vadd.f32 %v571_v35, %v546_v56 }
 0x2e1   :  { %v624_v31 = vpop.f32.mrf.mxu1 }
 0x2e2   :  { %v629_v33 = vadd.f32 %v624_v31, %v574_v61 }
 0x2e3   :  { %v679_v49 = vpop.f32.mrf.mxu2 }
 0x2e4   :  { %v684_v1 = vadd.f32 %v679_v49, %v629_v33 }
 0x2e6   :  { %v739_v37 = vadd.f32 %v734_v32, %v684_v1 }
 0x2e9   :  { %v626_v34 = vpop.f32.mrf.mxu1 }
 0x2ea   :  { %v630_v38 = vadd.f32 %v626_v34, %v575_v36  ;;  %v1331_v36 = vld [vmem:[#allocation4 + $0x28] sm:$0xff] }
 0x2eb   :  { %v681_v40 = vpop.f32.mrf.mxu2 }
 0x2ec   :  { %v685_v17 = vadd.f32 %v681_v40, %v630_v38  ;;  %v1330_v38 = vld [vmem:[#allocation4 + $0x20] sm:$0xff] }
 0x2ed   :  { %v789_v41 = vpop.f32.mrf.mxu0 }
 0x2ee   :  { %v794_v42 = vadd.f32 %v789_v41, %v739_v37  ;;  %v740_v46 = vadd.f32 %v736_v45, %v685_v17  ;;  %v1329_v37 = vld [vmem:[#allocation4 + $0x18] sm:$0xff] }
 0x2f0   :  { %v808_v43 = vadd.f32 %v801_v39, %v794_v42 }
 0x2f2   :  { %v810_v44 = vmax.f32 %v808_v43, 0.0 }
 0x2f4   :  { %814 = vrot.lane.b32.xlu2 %v810_v44, %s1420_s7  ;;  %827 = vrot.lane.b32.xlu0 %v810_v44, %s1414_s22 }
 0x2f5   :  { %v791_v47 = vpop.f32.mrf.mxu0 }
 0x2f6   :  { %v795_v50 = vadd.f32 %v791_v47, %v740_v46 }
 0x2f8   :  { %v809_v9 = vadd.f32 %v806_v48, %v795_v50 }
 0x2fa   :  { %v811_v51 = vmax.f32 %v809_v9, 0.0 }
 0x2fc   :  { %888 = vrot.lane.b32.xlu2 %v811_v51, %s1419_s26  ;;  %816 = vrot.lane.b32.xlu0 %v811_v51, %s1420_s7  ;;  %v965_v52 = vpack.c.bf16 %v811_v51, %v810_v44 }
 0x2fd   :  { %829 = vrot.lane.b32.xlu1 %v811_v51, %s1414_s22 }
 0x304   :  { %990 = vrot.lane.b32.xlu2 %v810_v44, %s1424_s29  ;;  %924 = vrot.lane.b32.xlu0 %v810_v44, %s1421_s1 }
 0x305   :  { %886 = vrot.lane.b32.xlu1 %v810_v44, %s1419_s26 }
 0x30c   :  { %1030 = vrot.lane.b32.xlu2 %v811_v51, %s1422_s3  ;;  %992 = vrot.lane.b32.xlu0 %v811_v51, %s1424_s29 }
 0x30d   :  { %926 = vrot.lane.b32.xlu1 %v811_v51, %s1421_s1 }
 0x314   :  { %1104 = vrot.lane.b32.xlu2 %v810_v44, %s1425_s12  ;;  %1066 = vrot.lane.b32.xlu0 %v810_v44, %s1423_s28 }
 0x315   :  { %1028 = vrot.lane.b32.xlu1 %v810_v44, %s1422_s3  ;;  %v1332_v44 = vld [vmem:[#allocation4 + $0x30] sm:$0xff] }
 0x31c   :  { %1151 = vperm.xlu2 %1351, %v1143_v53   ;;  %1106 = vrot.lane.b32.xlu0 %v811_v51, %s1425_s12 }
 0x31d   :  { %1068 = vrot.lane.b32.xlu1 %v811_v51, %s1423_s28 }
 0x325   :  { %1146 = vperm.xlu1 %1350, %v1142_v54  }
 0x34e   :  { %v815_v55 = vpop.permute.xlu2 %814 }
 0x34f   :  { %v820_v2 = vsel %vm345_vm2, 0.0, %v815_v55 }
 0x350   :  { %v822_v11 = vmul.f32 %v1634_v15, %v820_v2 }
 0x356   :  { %v889_v62 = vpop.permute.xlu2 %888 }
 0x357   :  { %v893_v22 = vsel %vm449_vm6, 0.0, %v889_v62  ;;  %v1334_v62 = vld [vmem:[#allocation4 + $0x40] sm:$0xff] }
 0x35e   :  { %v991_v4 = vpop.permute.xlu2 %990 }
 0x35f   :  { %v996_v27 = vsel %vm588_vm4, %v991_v4, 0.0 }
 0x360   :  { %v998_v49 = vmul.f32 %v1655_v30, %v996_v27 }
 0x366   :  { %v828_v60 = vpop.permute.xlu0 %827  ;;  %v1031_v33 = vpop.permute.xlu2 %1030 }
 0x367   :  { %v833_v3 = vsel %vm374_vm1, 0.0, %v828_v60  ;;  %v1035_v39 = vsel %vm643_vm7, %v1031_v33, 0.0  ;;  %v1333_v60 = vld [vmem:[#allocation4 + $0x38] sm:$0xff] }
 0x368   :  { %v835_v8 = vmul.f32 %v1591_v59, %v833_v3 }
 0x36e   :  { %v817_v5 = vpop.permute.xlu0 %816  ;;  %v1105_v17 = vpop.permute.xlu2 %1104 }
 0x36f   :  { %v821_v6 = vsel %vm345_vm2, 0.0, %v817_v5  ;;  %v830_v10 = vpop.permute.xlu1 %829  ;;  %v1110_v45 = vsel %vm753_vm8, %v1105_v17, 0.0 }
 0x370   :  { %v823_v16 = vmul.f32 %v1634_v15, %v821_v6  ;;  %v834_v18 = vsel %vm374_vm1, 0.0, %v830_v10  ;;  %v1112_v9 = vmul.f32 %v1767_v58, %v1110_v45 }
 0x371   :  { %v836_v14 = vmul.f32 %v1591_v59, %v834_v18  ;;  %v895_v59 = vmul.f32 %v1692_v13, %v893_v22 }
 0x372   :  { %v826_v19 = vpack.c.bf16 %v823_v16, %v822_v11 }
 0x373   :  { %v840_v20 = vpack.c.bf16 %v836_v14, %v835_v8 }
 0x374   :  { %879 = vmatpush.bf16.msra.mxu2 %v826_v19 }
 0x375   :  { %857 = vmatpush.bf16.msra.mxu1 %v840_v20 }
 0x376   :  { %v925_v23 = vpop.permute.xlu0 %924 }
 0x377   :  { %v887_v7 = vpop.permute.xlu1 %886  ;;  %1277 = vmatmul.msk.bf16.vlgmr.msra.gmra.mxu2 %vm846_vm9, %v1326_v12  ;;  %v930_v29 = vsel %vm504_vm3, 0.0, %v925_v23 }
 0x378   :  { %v892_v15 = vsel %vm449_vm6, 0.0, %v887_v7  ;;  %1272 = vmatmul.msk.bf16.vlgmr.msra.gmra.mxu1 %vm846_vm9, %v1327_v21 }
 0x379   :  { %981 = vmatpush.bf16.msrb.mxu1 %v965_v52  ;;  %v894_v24 = vmul.f32 %v1692_v13, %v892_v15  ;;  %v932_v13 = vmul.f32 %v1649_v28, %v930_v29 }
 0x37b   :  { %v899_v25 = vpack.c.bf16 %v895_v59, %v894_v24 }
 0x37d   :  { %915 = vmatpush.bf16.msra.mxu3 %v899_v25 }
 0x37e   :  { %v993_v31 = vpop.permute.xlu0 %992 }
 0x37f   :  { %v997_v61 = vsel %vm588_vm4, %v993_v31, 0.0  ;;  %v927_v0 = vpop.permute.xlu1 %926 }
 0x380   :  { %v999_v35 = vmul.f32 %v1655_v30, %v997_v61  ;;  %v931_v56 = vsel %vm504_vm3, 0.0, %v927_v0  ;;  %1282 = vmatmul.msk.bf16.vlgmr.msra.gmra.mxu3 %vm846_vm9, %v1328_v26 }
 0x381   :  { %v933_v1 = vmul.f32 %v1649_v28, %v931_v56  ;;  %v1037_v28 = vmul.f32 %v1737_v57, %v1035_v39 }
 0x382   :  { %v1003_v32 = vpack.c.bf16 %v999_v35, %v998_v49 }
 0x383   :  { %v937_v34 = vpack.c.bf16 %v933_v1, %v932_v13 }
 0x384   :  { %1019 = vmatpush.bf16.msrb.mxu2 %v1003_v32 }
 0x385   :  { %953 = vmatpush.bf16.msrb.mxu0 %v937_v34  ;;  %v1152_v34 = vpop.permute.xlu2 %1151 }
 0x386   :  { %v1067_v40 = vpop.permute.xlu0 %1066 }
 0x387   :  { %v1029_v41 = vpop.permute.xlu1 %1028  ;;  %1297 = vmatmul.msk.bf16.vlgmr.msrb.gmra.mxu2 %vm846_vm9, %v1331_v36  ;;  %v1072_v46 = vsel %vm698_vm5, %v1067_v40, 0.0 }
 0x388   :  { %v1034_v30 = vsel %vm643_vm7, %v1029_v41, 0.0  ;;  %1287 = vmatmul.msk.bf16.vlgmr.msrb.gmra.mxu0 %vm846_vm9, %v1329_v37  ;;  %1292 = vmatmul.msk.bf16.vlgmr.msrb.gmra.mxu1 %vm846_vm9, %v1330_v38 }
 0x389   :  { %v1036_v42 = vmul.f32 %v1737_v57, %v1034_v30  ;;  %v1074_v57 = vmul.f32 %v1682_v63, %v1072_v46 }
 0x38b   :  { %v1041_v43 = vpack.c.bf16 %v1037_v28, %v1036_v42 }
 0x38d   :  { %1057 = vmatpush.bf16.msrb.mxu3 %v1041_v43 }
 0x38e   :  { %v1107_v47 = vpop.permute.xlu0 %1106 }
 0x38f   :  { %v1111_v48 = vsel %vm753_vm8, %v1107_v47, 0.0  ;;  %v1069_v50 = vpop.permute.xlu1 %1068 }
 0x390   :  { %v1113_v51 = vmul.f32 %v1767_v58, %v1111_v48  ;;  %v1073_v52 = vsel %vm698_vm5, %v1069_v50, 0.0  ;;  %1302 = vmatmul.msk.bf16.vlgmr.msrb.gmra.mxu3 %vm846_vm9, %v1332_v44 }
 0x391   :  { %v1075_v53 = vmul.f32 %v1682_v63, %v1073_v52 }
 0x392   :  { %v1117_v54 = vpack.c.bf16 %v1113_v51, %v1112_v9 }
 0x393   :  { %v1079_v55 = vpack.c.bf16 %v1075_v53, %v1074_v57 }
 0x394   :  { %1133 = vmatpush.bf16.msra.mxu1 %v1117_v54 }
 0x395   :  { %1095 = vmatpush.bf16.msra.mxu0 %v1079_v55 }
 0x397   :  { %v1147_v31 = vpop.permute.xlu1 %1146 }
 0x398   :  { %1307 = vmatmul.msk.bf16.vlgmr.msra.gmra.mxu0 %vm846_vm9, %v1333_v60  ;;  %1312 = vmatmul.msk.bf16.vlgmr.msra.gmra.mxu1 %vm846_vm9, %v1334_v62 }
 0x3f5   :  { %v859_v2 = vpop.f32.mrf.mxu1 }
 0x3fa   :  { %v881_v58 = vpop.f32.mrf.mxu2 }
 0x3fb   :  { %v882_v16 = vadd.f32 %v881_v58, %v859_v2 }
 0x3fd   :  { %v861_v3 = vpop.f32.mrf.mxu1 }
 0x402   :  { %v883_v5 = vpop.f32.mrf.mxu2 }
 0x403   :  { %v917_v6 = vpop.f32.mrf.mxu3  ;;  %v884_v12 = vadd.f32 %v883_v5, %v861_v3 }
 0x404   :  { %v922_v18 = vadd.f32 %v917_v6, %v882_v16 }
 0x405   :  { %v955_v10 = vpop.f32.mrf.mxu0  ;;  %v983_v11 = vpop.f32.mrf.mxu1 }
 0x406   :  { %v960_v8 = vadd.f32 %v955_v10, %v922_v18 }
 0x408   :  { %v988_v21 = vadd.f32 %v983_v11, %v960_v8 }
 0x40a   :  { %v1021_v14 = vpop.f32.mrf.mxu2 }
 0x40b   :  { %v919_v63 = vpop.f32.mrf.mxu3  ;;  %v1026_v4 = vadd.f32 %v1021_v14, %v988_v21 }
 0x40c   :  { %v923_v22 = vadd.f32 %v919_v63, %v884_v12 }
 0x40d   :  { %v957_v19 = vpop.f32.mrf.mxu0  ;;  %v985_v20 = vpop.f32.mrf.mxu1 }
 0x40e   :  { %v961_v7 = vadd.f32 %v957_v19, %v923_v22 }
 0x410   :  { %v989_v27 = vadd.f32 %v985_v20, %v961_v7 }
 0x412   :  { %v1023_v26 = vpop.f32.mrf.mxu2 }
 0x413   :  { %v1059_v23 = vpop.f32.mrf.mxu3  ;;  %v1027_v61 = vadd.f32 %v1023_v26, %v989_v27 }
 0x414   :  { %v1064_v15 = vadd.f32 %v1059_v23, %v1026_v4 }
 0x415   :  { %v1097_v59 = vpop.f32.mrf.mxu0  ;;  %v1135_v24 = vpop.f32.mrf.mxu1 }
 0x416   :  { %v1102_v25 = vadd.f32 %v1097_v59, %v1064_v15 }
 0x418   :  { %v1140_v29 = vadd.f32 %v1135_v24, %v1102_v25 }
 0x41a   :  { %v1154_v0 = vadd.f32 %v1147_v31, %v1140_v29 }
 0x41b   :  { %v1061_v49 = vpop.f32.mrf.mxu3 }
 0x41c   :  { %v1156_v33 = vmax.f32 %v1154_v0, 0.0  ;;  %v1065_v35 = vadd.f32 %v1061_v49, %v1027_v61 }
 0x41d   :  { %v1099_v56 = vpop.f32.mrf.mxu0  ;;  %v1137_v1 = vpop.f32.mrf.mxu1 }
 0x41e   :  { %1158 = vst [vmem:[%s1861_s10] sm:$0xff] %v1156_v33  ;;  %v1103_v13 = vadd.f32 %v1099_v56, %v1065_v35 }
 0x420   :  { %v1141_v32 = vadd.f32 %v1137_v1, %v1103_v13 }
 0x422   :  { %v1155_v36 = vadd.f32 %v1152_v34, %v1141_v32 }
 0x424   :  { %v1157_v37 = vmax.f32 %v1155_v36, 0.0 }
 0x426   :  { %1159 = vst [vmem:[%s1861_s10 + $0x8] sm:$0xff] %v1157_v37 }
 0x427   :  { %1164 = vsyncpa [#allocation3], 1 }
 0x428   :  { %1165 = vsyncpa [#allocation5], 1 }

// kernel: unet_forward.9
= control target key start
LH: loop header
LB: loop body
LE: loop exit
PB: predicated region body
PF: predicated region fallthrough
CT: control target
= control target key end

     0   :  { %s3719_s0 = inlined_call_operand.vmem [shape: f32[16,128], index: 0, kind: input, shape index: {}]   ;;  %s3720_s1 = inlined_call_operand.vmem [shape: f32[8,512], index: 1, kind: input, shape index: {}]   ;;  %s3721_s2 = inlined_call_operand.vmem [shape: bf16[4,8,16], index: 2, kind: input, shape index: {}]   ;;  %s3722_s3 = inlined_call_operand.vmem [shape: f32[8,1], index: 3, kind: input, shape index: {}]   ;;  %s3723_s4 = inlined_call_operand.hbm [shape: f32[4,128,512], index: 4, kind: input, shape index: {}]   ;;  %s3724_s5 = inlined_call_operand.vmem [shape: bf16[9,8,16], index: 5, kind: input, shape index: {}]   ;;  %s3725_s6 = inlined_call_operand.vmem [shape: f32[8,1], index: 6, kind: input, shape index: {}]   ;;  %s3726_s7 = inlined_call_operand.vmem [shape: bf16[9,8,8], index: 7, kind: input, shape index: {}]   ;;  %s3727_s8 = inlined_call_operand.vmem [shape: f32[8,1], index: 8, kind: input, shape index: {}]   ;;  %s3728_s9 = inlined_call_operand.vmem [shape: f32[9,1,512], index: 9, kind: input, shape index: {}]   ;;  %s3729_s10 = inlined_call_operand.vmem [shape: bf16[1,8], index: 10, kind: input, shape index: {}]   ;;  %s3730_s11 = inlined_call_operand.<no memory space> [shape: f32[1,1], index: 11, kind: input, shape index: {}]   ;;  %s3731_s12 = inlined_call_operand.vmem [shape: f32[1,512], index: 12, kind: output, shape index: {}]  }
   0x1   :  { %v17_v0 = vstv %s3730_s11 }
   0x2   :  { %18 = vst [vmem:[#allocation2] sm:$0x1] %v17_v0 }
   0x3   :  { %19 = vsyncpa [#allocation4], 0  ;;  %s32_s25 = sshll.u32 %s3723_s4, 4  ;;  %s2861_s26 = smov [#allocation3]   ;;  %s33_s25 = int_to_ptr.hbm [resolvable:$true] %s32_s25 }
   0x4   :  { %s34_s27 = sshll.u32 %s2861_s26, 4  ;;  %s2862_s28 = smov 512   ;;  %s35_s27 = int_to_ptr.vmem [resolvable:$true] %s34_s27 }
   0x5   :  { %s2863_s29 = smov 32  }
   0x6   :  { %40 = dma.hbm_to_vmem [thread:$0]  %s33_s25, 32768, %s35_s27, [#allocation4], %s2862_s28, %s2862_s28, %s2863_s29  }
   0x7   :  { %2859 = dma.done.wait [#allocation4], 32768  }
   0x8   :  { %2860 = vsyncadd [#allocation4], 4294934528  ;;  %v60_v1 = vld [vmem:[%s3719_s0] sm:$0xff]  ;;  %v61_v2 = vld [vmem:[%s3719_s0 + $0x8] sm:$0xff]  ;;  %vm64_vm0 = vcmask 130048   ;;  %s2865_s24 = smov 16  }
   0x9   :  { %v2950_v3 = vpack.c.bf16 %v61_v2, %v60_v1  ;;  %v224_v4 = vld [vmem:[#allocation3 + $0x3e0] sm:$0xff]  ;;  %v225_v5 = vld [vmem:[#allocation3 + $0x3e8] sm:$0xff]  ;;  %v226_v6 = vld [vmem:[#allocation3 + $0x3f0] sm:$0xff]  ;;  %s2866_s27 = smov 17   ;;  %s2868_s13 = smov 1   ;;  %vm760_vm1 = vcmask 138240  }
   0xa   :  { %228 = vmatpush.msra.mxu2 %v224_v4  ;;  %248 = vmatpush.msra.mxu3 %v225_v5  ;;  %v227_v7 = vld [vmem:[#allocation3 + $0x3f8] sm:$0xff]  ;;  %v220_v8 = vld [vmem:[#allocation3 + $0x3c0] sm:$0xff]  ;;  %v221_v11 = vld [vmem:[#allocation3 + $0x3c8] sm:$0xff]  ;;  %s2869_s11 = smov 127   ;;  %s2870_s14 = smov 113   ;;  %vm983_vm2 = vcmask 121856  }
   0xb   :  { %75 = vmatpush.bf16.msra.mxu0 %v2950_v3  ;;  %157 = vmatpush.bf16.msra.mxu1 %v2950_v3  ;;  %v63_v9 = vld [vmem:[%s3721_s2] sm:$0xf]  ;;  %v2716_v10 = vld [vmem:[%s3721_s2 + $0x4] sm:$0xf]  ;;  %v222_v12 = vld [vmem:[#allocation3 + $0x3d0] sm:$0xff]  ;;  %s2871_s16 = smov 112  }
   0xc   :  { %v223_v13 = vld [vmem:[#allocation3 + $0x3d8] sm:$0xff]  ;;  %229 = vmatpush.msra.mxu2 %v220_v8  ;;  %249 = vmatpush.msra.mxu3 %v221_v11  ;;  %v216_v14 = vld [vmem:[#allocation3 + $0x3a0] sm:$0xff]  ;;  %v217_v15 = vld [vmem:[#allocation3 + $0x3a8] sm:$0xff]  ;;  %s2872_s18 = smov 111   ;;  %vm1100_vm3 = vcmask 7168   ;;  %vm1282_vm4 = vcmask 1039360  }
   0xd   :  { %v218_v16 = vld [vmem:[#allocation3 + $0x3b0] sm:$0xff]  ;;  %v219_v17 = vld [vmem:[#allocation3 + $0x3b8] sm:$0xff]  ;;  %v212_v18 = vld [vmem:[#allocation3 + $0x380] sm:$0xff]  ;;  %vm1399_vm5 = vcmask 924672   ;;  %vm1516_vm6 = vcmask 916480   ;;  %vm1633_vm7 = vcmask 908288  }
   0xe   :  { %2715 = vmatmul.msk.bf16.vlgmr.msra.gmra.mxu0 %vm64_vm0, %v63_v9  ;;  %2717 = vmatmul.msk.bf16.vlgmr.msra.gmra.mxu1 %vm64_vm0, %v2716_v10  ;;  %v213_v19 = vld [vmem:[#allocation3 + $0x388] sm:$0xff]  ;;  %v214_v20 = vld [vmem:[#allocation3 + $0x390] sm:$0xff]  ;;  %v215_v21 = vld [vmem:[#allocation3 + $0x398] sm:$0xff]  ;;  %vm1807_vm8 = vcmask 1043456   ;;  %vm1803_vm9 = vcmask 64512   ;;  %vm2698_vm10 = vcmask 1040384  }
   0xf   :  { %268 = vmatpush.msrb.mxu0 %v226_v6  ;;  %288 = vmatpush.msrb.mxu1 %v227_v7  ;;  %v208_v22 = vld [vmem:[#allocation3 + $0x360] sm:$0xff]  ;;  %v209_v23 = vld [vmem:[#allocation3 + $0x368] sm:$0xff]  ;;  %v210_v24 = vld [vmem:[#allocation3 + $0x370] sm:$0xff]  ;;  %vm2700_vm11 = vcmask 1042434   ;;  %vm2702_vm12 = vcmask 1041408  }
  0x10   :  { %230 = vmatpush.msra.mxu2 %v216_v14  ;;  %250 = vmatpush.msra.mxu3 %v217_v15  ;;  %v211_v25 = vld [vmem:[#allocation3 + $0x378] sm:$0xff]  ;;  %v204_v26 = vld [vmem:[#allocation3 + $0x340] sm:$0xff]  ;;  %v205_v27 = vld [vmem:[#allocation3 + $0x348] sm:$0xff] }
  0x11   :  { %269 = vmatpush.msrb.mxu0 %v222_v12  ;;  %289 = vmatpush.msrb.mxu1 %v223_v13  ;;  %v206_v28 = vld [vmem:[#allocation3 + $0x350] sm:$0xff]  ;;  %v207_v29 = vld [vmem:[#allocation3 + $0x358] sm:$0xff]  ;;  %v200_v30 = vld [vmem:[#allocation3 + $0x320] sm:$0xff] }
  0x12   :  { %231 = vmatpush.msra.mxu2 %v212_v18  ;;  %251 = vmatpush.msra.mxu3 %v213_v19  ;;  %v201_v31 = vld [vmem:[#allocation3 + $0x328] sm:$0xff]  ;;  %v202_v32 = vld [vmem:[#allocation3 + $0x330] sm:$0xff]  ;;  %v203_v33 = vld [vmem:[#allocation3 + $0x338] sm:$0xff] }
  0x13   :  { %270 = vmatpush.msrb.mxu0 %v218_v16  ;;  %290 = vmatpush.msrb.mxu1 %v219_v17  ;;  %v196_v34 = vld [vmem:[#allocation3 + $0x300] sm:$0xff]  ;;  %v197_v35 = vld [vmem:[#allocation3 + $0x308] sm:$0xff]  ;;  %v198_v36 = vld [vmem:[#allocation3 + $0x310] sm:$0xff] }
  0x14   :  { %232 = vmatpush.msra.mxu2 %v208_v22  ;;  %252 = vmatpush.msra.mxu3 %v209_v23  ;;  %v199_v37 = vld [vmem:[#allocation3 + $0x318] sm:$0xff]  ;;  %v192_v38 = vld [vmem:[#allocation3 + $0x2e0] sm:$0xff]  ;;  %v193_v39 = vld [vmem:[#allocation3 + $0x2e8] sm:$0xff] }
  0x15   :  { %271 = vmatpush.msrb.mxu0 %v214_v20  ;;  %291 = vmatpush.msrb.mxu1 %v215_v21  ;;  %v194_v40 = vld [vmem:[#allocation3 + $0x2f0] sm:$0xff]  ;;  %v195_v41 = vld [vmem:[#allocation3 + $0x2f8] sm:$0xff]  ;;  %v188_v42 = vld [vmem:[#allocation3 + $0x2c0] sm:$0xff] }
  0x16   :  { %233 = vmatpush.msra.mxu2 %v204_v26  ;;  %253 = vmatpush.msra.mxu3 %v205_v27  ;;  %v189_v43 = vld [vmem:[#allocation3 + $0x2c8] sm:$0xff]  ;;  %v190_v44 = vld [vmem:[#allocation3 + $0x2d0] sm:$0xff]  ;;  %v191_v45 = vld [vmem:[#allocation3 + $0x2d8] sm:$0xff] }
  0x17   :  { %272 = vmatpush.msrb.mxu0 %v210_v24  ;;  %292 = vmatpush.msrb.mxu1 %v211_v25  ;;  %v184_v46 = vld [vmem:[#allocation3 + $0x2a0] sm:$0xff]  ;;  %v185_v47 = vld [vmem:[#allocation3 + $0x2a8] sm:$0xff]  ;;  %v186_v48 = vld [vmem:[#allocation3 + $0x2b0] sm:$0xff] }
  0x18   :  { %234 = vmatpush.msra.mxu2 %v200_v30  ;;  %254 = vmatpush.msra.mxu3 %v201_v31  ;;  %v187_v49 = vld [vmem:[#allocation3 + $0x2b8] sm:$0xff]  ;;  %v180_v50 = vld [vmem:[#allocation3 + $0x280] sm:$0xff]  ;;  %v181_v51 = vld [vmem:[#allocation3 + $0x288] sm:$0xff] }
  0x19   :  { %273 = vmatpush.msrb.mxu0 %v206_v28  ;;  %293 = vmatpush.msrb.mxu1 %v207_v29  ;;  %v182_v52 = vld [vmem:[#allocation3 + $0x290] sm:$0xff]  ;;  %v183_v53 = vld [vmem:[#allocation3 + $0x298] sm:$0xff]  ;;  %v176_v54 = vld [vmem:[#allocation3 + $0x260] sm:$0xff] }
  0x1a   :  { %235 = vmatpush.msra.mxu2 %v196_v34  ;;  %255 = vmatpush.msra.mxu3 %v197_v35  ;;  %v177_v55 = vld [vmem:[#allocation3 + $0x268] sm:$0xff]  ;;  %v178_v56 = vld [vmem:[#allocation3 + $0x270] sm:$0xff]  ;;  %v179_v57 = vld [vmem:[#allocation3 + $0x278] sm:$0xff] }
  0x1b   :  { %274 = vmatpush.msrb.mxu0 %v202_v32  ;;  %294 = vmatpush.msrb.mxu1 %v203_v33  ;;  %v172_v58 = vld [vmem:[#allocation3 + $0x240] sm:$0xff]  ;;  %v173_v59 = vld [vmem:[#allocation3 + $0x248] sm:$0xff]  ;;  %v174_v60 = vld [vmem:[#allocation3 + $0x250] sm:$0xff] }
  0x1c   :  { %236 = vmatpush.msra.mxu2 %v192_v38  ;;  %256 = vmatpush.msra.mxu3 %v193_v39  ;;  %v175_v61 = vld [vmem:[#allocation3 + $0x258] sm:$0xff]  ;;  %v168_v62 = vld [vmem:[#allocation3 + $0x220] sm:$0xff]  ;;  %v169_v63 = vld [vmem:[#allocation3 + $0x228] sm:$0xff] }
  0x1d   :  { %275 = vmatpush.msrb.mxu0 %v198_v36  ;;  %295 = vmatpush.msrb.mxu1 %v199_v37  ;;  %v170_v0 = vld [vmem:[#allocation3 + $0x230] sm:$0xff]  ;;  %v171_v1 = vld [vmem:[#allocation3 + $0x238] sm:$0xff]  ;;  %v164_v2 = vld [vmem:[#allocation3 + $0x200] sm:$0xff] }
  0x1e   :  { %237 = vmatpush.msra.mxu2 %v188_v42  ;;  %257 = vmatpush.msra.mxu3 %v189_v43  ;;  %v165_v4 = vld [vmem:[#allocation3 + $0x208] sm:$0xff]  ;;  %v166_v5 = vld [vmem:[#allocation3 + $0x210] sm:$0xff]  ;;  %v167_v6 = vld [vmem:[#allocation3 + $0x218] sm:$0xff] }
  0x1f   :  { %276 = vmatpush.msrb.mxu0 %v194_v40  ;;  %296 = vmatpush.msrb.mxu1 %v195_v41  ;;  %v141_v7 = vld [vmem:[#allocation3 + $0x1e0] sm:$0xff]  ;;  %v142_v8 = vld [vmem:[#allocation3 + $0x1e8] sm:$0xff]  ;;  %v143_v9 = vld [vmem:[#allocation3 + $0x1f0] sm:$0xff] }
  0x20   :  { %238 = vmatpush.msra.mxu2 %v184_v46  ;;  %258 = vmatpush.msra.mxu3 %v185_v47  ;;  %v144_v10 = vld [vmem:[#allocation3 + $0x1f8] sm:$0xff]  ;;  %v137_v11 = vld [vmem:[#allocation3 + $0x1c0] sm:$0xff]  ;;  %v138_v12 = vld [vmem:[#allocation3 + $0x1c8] sm:$0xff] }
  0x21   :  { %277 = vmatpush.msrb.mxu0 %v190_v44  ;;  %297 = vmatpush.msrb.mxu1 %v191_v45  ;;  %v139_v13 = vld [vmem:[#allocation3 + $0x1d0] sm:$0xff]  ;;  %v140_v14 = vld [vmem:[#allocation3 + $0x1d8] sm:$0xff]  ;;  %v133_v15 = vld [vmem:[#allocation3 + $0x1a0] sm:$0xff] }
  0x22   :  { %239 = vmatpush.msra.mxu2 %v180_v50  ;;  %259 = vmatpush.msra.mxu3 %v181_v51  ;;  %v134_v16 = vld [vmem:[#allocation3 + $0x1a8] sm:$0xff]  ;;  %v135_v17 = vld [vmem:[#allocation3 + $0x1b0] sm:$0xff]  ;;  %v136_v18 = vld [vmem:[#allocation3 + $0x1b8] sm:$0xff] }
  0x23   :  { %278 = vmatpush.msrb.mxu0 %v186_v48  ;;  %298 = vmatpush.msrb.mxu1 %v187_v49  ;;  %v129_v19 = vld [vmem:[#allocation3 + $0x180] sm:$0xff]  ;;  %v130_v20 = vld [vmem:[#allocation3 + $0x188] sm:$0xff]  ;;  %v131_v21 = vld [vmem:[#allocation3 + $0x190] sm:$0xff] }
  0x24   :  { %240 = vmatpush.msra.mxu2 %v176_v54  ;;  %260 = vmatpush.msra.mxu3 %v177_v55  ;;  %v132_v22 = vld [vmem:[#allocation3 + $0x198] sm:$0xff]  ;;  %v125_v23 = vld [vmem:[#allocation3 + $0x160] sm:$0xff]  ;;  %v126_v24 = vld [vmem:[#allocation3 + $0x168] sm:$0xff] }
  0x25   :  { %279 = vmatpush.msrb.mxu0 %v182_v52  ;;  %299 = vmatpush.msrb.mxu1 %v183_v53  ;;  %v127_v25 = vld [vmem:[#allocation3 + $0x170] sm:$0xff]  ;;  %v128_v26 = vld [vmem:[#allocation3 + $0x178] sm:$0xff]  ;;  %v121_v27 = vld [vmem:[#allocation3 + $0x140] sm:$0xff] }
  0x26   :  { %241 = vmatpush.msra.mxu2 %v172_v58  ;;  %261 = vmatpush.msra.mxu3 %v173_v59  ;;  %v122_v28 = vld [vmem:[#allocation3 + $0x148] sm:$0xff]  ;;  %v123_v29 = vld [vmem:[#allocation3 + $0x150] sm:$0xff]  ;;  %v124_v30 = vld [vmem:[#allocation3 + $0x158] sm:$0xff] }
  0x27   :  { %280 = vmatpush.msrb.mxu0 %v178_v56  ;;  %300 = vmatpush.msrb.mxu1 %v179_v57  ;;  %v117_v31 = vld [vmem:[#allocation3 + $0x120] sm:$0xff]  ;;  %v118_v32 = vld [vmem:[#allocation3 + $0x128] sm:$0xff]  ;;  %v119_v33 = vld [vmem:[#allocation3 + $0x130] sm:$0xff] }
  0x28   :  { %242 = vmatpush.msra.mxu2 %v168_v62  ;;  %262 = vmatpush.msra.mxu3 %v169_v63  ;;  %v120_v34 = vld [vmem:[#allocation3 + $0x138] sm:$0xff]  ;;  %v113_v35 = vld [vmem:[#allocation3 + $0x100] sm:$0xff]  ;;  %v114_v36 = vld [vmem:[#allocation3 + $0x108] sm:$0xff] }
  0x29   :  { %281 = vmatpush.msrb.mxu0 %v174_v60  ;;  %301 = vmatpush.msrb.mxu1 %v175_v61  ;;  %v115_v37 = vld [vmem:[#allocation3 + $0x110] sm:$0xff]  ;;  %v116_v38 = vld [vmem:[#allocation3 + $0x118] sm:$0xff]  ;;  %v109_v39 = vld [vmem:[#allocation3 + $0xe0] sm:$0xff] }
  0x2a   :  { %243 = vmatpush.msra.mxu2 %v164_v2  ;;  %263 = vmatpush.msra.mxu3 %v165_v4  ;;  %v110_v40 = vld [vmem:[#allocation3 + $0xe8] sm:$0xff]  ;;  %v111_v41 = vld [vmem:[#allocation3 + $0xf0] sm:$0xff]  ;;  %v112_v42 = vld [vmem:[#allocation3 + $0xf8] sm:$0xff] }
  0x2b   :  { %282 = vmatpush.msrb.mxu0 %v170_v0  ;;  %302 = vmatpush.msrb.mxu1 %v171_v1  ;;  %v105_v43 = vld [vmem:[#allocation3 + $0xc0] sm:$0xff]  ;;  %v106_v44 = vld [vmem:[#allocation3 + $0xc8] sm:$0xff]  ;;  %v107_v45 = vld [vmem:[#allocation3 + $0xd0] sm:$0xff] }
  0x2c   :  { %308 = vmatpush.msrb.mxu2 %v141_v7  ;;  %328 = vmatpush.msrb.mxu3 %v142_v8  ;;  %v108_v46 = vld [vmem:[#allocation3 + $0xd8] sm:$0xff]  ;;  %v101_v47 = vld [vmem:[#allocation3 + $0xa0] sm:$0xff]  ;;  %v102_v48 = vld [vmem:[#allocation3 + $0xa8] sm:$0xff] }
  0x2d   :  { %283 = vmatpush.msrb.mxu0 %v166_v5  ;;  %303 = vmatpush.msrb.mxu1 %v167_v6  ;;  %v103_v49 = vld [vmem:[#allocation3 + $0xb0] sm:$0xff]  ;;  %v104_v50 = vld [vmem:[#allocation3 + $0xb8] sm:$0xff]  ;;  %v97_v51 = vld [vmem:[#allocation3 + $0x80] sm:$0xff] }
  0x2e   :  { %309 = vmatpush.msrb.mxu2 %v137_v11  ;;  %329 = vmatpush.msrb.mxu3 %v138_v12  ;;  %v98_v52 = vld [vmem:[#allocation3 + $0x88] sm:$0xff]  ;;  %v99_v53 = vld [vmem:[#allocation3 + $0x90] sm:$0xff]  ;;  %v100_v54 = vld [vmem:[#allocation3 + $0x98] sm:$0xff] }
  0x2f   :  { %348 = vmatpush.msra.mxu0 %v143_v9  ;;  %368 = vmatpush.msra.mxu1 %v144_v10  ;;  %v93_v55 = vld [vmem:[#allocation3 + $0x60] sm:$0xff]  ;;  %v94_v56 = vld [vmem:[#allocation3 + $0x68] sm:$0xff]  ;;  %v95_v57 = vld [vmem:[#allocation3 + $0x70] sm:$0xff] }
  0x30   :  { %310 = vmatpush.msrb.mxu2 %v133_v15  ;;  %330 = vmatpush.msrb.mxu3 %v134_v16  ;;  %v96_v58 = vld [vmem:[#allocation3 + $0x78] sm:$0xff]  ;;  %v89_v59 = vld [vmem:[#allocation3 + $0x40] sm:$0xff]  ;;  %v90_v60 = vld [vmem:[#allocation3 + $0x48] sm:$0xff] }
  0x31   :  { %349 = vmatpush.msra.mxu0 %v139_v13  ;;  %369 = vmatpush.msra.mxu1 %v140_v14  ;;  %v91_v61 = vld [vmem:[#allocation3 + $0x50] sm:$0xff]  ;;  %v92_v62 = vld [vmem:[#allocation3 + $0x58] sm:$0xff]  ;;  %v85_v63 = vld [vmem:[#allocation3 + $0x20] sm:$0xff] }
  0x32   :  { %311 = vmatpush.msrb.mxu2 %v129_v19  ;;  %331 = vmatpush.msrb.mxu3 %v130_v20  ;;  %v86_v0 = vld [vmem:[#allocation3 + $0x28] sm:$0xff]  ;;  %v87_v1 = vld [vmem:[#allocation3 + $0x30] sm:$0xff]  ;;  %v88_v2 = vld [vmem:[#allocation3 + $0x38] sm:$0xff] }
  0x33   :  { %350 = vmatpush.msra.mxu0 %v135_v17  ;;  %370 = vmatpush.msra.mxu1 %v136_v18  ;;  %v81_v4 = vld [vmem:[#allocation3] sm:$0xff]  ;;  %v82_v5 = vld [vmem:[#allocation3 + $0x8] sm:$0xff]  ;;  %v83_v6 = vld [vmem:[#allocation3 + $0x10] sm:$0xff] }
  0x34   :  { %312 = vmatpush.msrb.mxu2 %v125_v23  ;;  %332 = vmatpush.msrb.mxu3 %v126_v24  ;;  %v84_v7 = vld [vmem:[#allocation3 + $0x18] sm:$0xff]  ;;  %v467_v10 = vld [vmem:[#allocation3 + $0x5e0] sm:$0xff]  ;;  %v468_v11 = vld [vmem:[#allocation3 + $0x5e8] sm:$0xff] }
  0x35   :  { %351 = vmatpush.msra.mxu0 %v131_v21  ;;  %371 = vmatpush.msra.mxu1 %v132_v22  ;;  %v469_v12 = vld [vmem:[#allocation3 + $0x5f0] sm:$0xff]  ;;  %v463_v13 = vld [vmem:[#allocation3 + $0x5c0] sm:$0xff]  ;;  %v464_v14 = vld [vmem:[#allocation3 + $0x5c8] sm:$0xff] }
  0x36   :  { %313 = vmatpush.msrb.mxu2 %v121_v27  ;;  %333 = vmatpush.msrb.mxu3 %v122_v28  ;;  %v465_v15 = vld [vmem:[#allocation3 + $0x5d0] sm:$0xff]  ;;  %v459_v16 = vld [vmem:[#allocation3 + $0x5a0] sm:$0xff]  ;;  %v460_v17 = vld [vmem:[#allocation3 + $0x5a8] sm:$0xff] }
  0x37   :  { %352 = vmatpush.msra.mxu0 %v127_v25  ;;  %372 = vmatpush.msra.mxu1 %v128_v26  ;;  %v461_v18 = vld [vmem:[#allocation3 + $0x5b0] sm:$0xff]  ;;  %v470_v21 = vld [vmem:[#allocation3 + $0x5f8] sm:$0xff]  ;;  %v455_v22 = vld [vmem:[#allocation3 + $0x580] sm:$0xff] }
  0x38   :  { %314 = vmatpush.msrb.mxu2 %v117_v31  ;;  %334 = vmatpush.msrb.mxu3 %v118_v32  ;;  %v456_v23 = vld [vmem:[#allocation3 + $0x588] sm:$0xff]  ;;  %v457_v24 = vld [vmem:[#allocation3 + $0x590] sm:$0xff]  ;;  %v466_v25 = vld [vmem:[#allocation3 + $0x5d8] sm:$0xff] }
  0x39   :  { %353 = vmatpush.msra.mxu0 %v123_v29  ;;  %373 = vmatpush.msra.mxu1 %v124_v30  ;;  %v462_v26 = vld [vmem:[#allocation3 + $0x5b8] sm:$0xff]  ;;  %v2718_v27 = vld [vmem:[%s3721_s2 + $0x8] sm:$0xf]  ;;  %v453_v31 = vld [vmem:[#allocation3 + $0x570] sm:$0xff] }
  0x3a   :  { %315 = vmatpush.msrb.mxu2 %v113_v35  ;;  %335 = vmatpush.msrb.mxu3 %v114_v36  ;;  %v458_v28 = vld [vmem:[#allocation3 + $0x598] sm:$0xff]  ;;  %v451_v29 = vld [vmem:[#allocation3 + $0x560] sm:$0xff]  ;;  %v452_v30 = vld [vmem:[#allocation3 + $0x568] sm:$0xff] }
  0x3b   :  { %354 = vmatpush.msra.mxu0 %v119_v33  ;;  %374 = vmatpush.msra.mxu1 %v120_v34  ;;  %v454_v32 = vld [vmem:[#allocation3 + $0x578] sm:$0xff]  ;;  %v447_v33 = vld [vmem:[#allocation3 + $0x540] sm:$0xff]  ;;  %v448_v34 = vld [vmem:[#allocation3 + $0x548] sm:$0xff] }
  0x3c   :  { %316 = vmatpush.msrb.mxu2 %v109_v39  ;;  %336 = vmatpush.msrb.mxu3 %v110_v40  ;;  %v449_v35 = vld [vmem:[#allocation3 + $0x550] sm:$0xff]  ;;  %v450_v36 = vld [vmem:[#allocation3 + $0x558] sm:$0xff] }
  0x3d   :  { %355 = vmatpush.msra.mxu0 %v115_v37  ;;  %375 = vmatpush.msra.mxu1 %v116_v38  ;;  %v443_v37 = vld [vmem:[#allocation3 + $0x520] sm:$0xff]  ;;  %v444_v38 = vld [vmem:[#allocation3 + $0x528] sm:$0xff]  ;;  %v445_v39 = vld [vmem:[#allocation3 + $0x530] sm:$0xff] }
  0x3e   :  { %317 = vmatpush.msrb.mxu2 %v105_v43  ;;  %337 = vmatpush.msrb.mxu3 %v106_v44  ;;  %v446_v40 = vld [vmem:[#allocation3 + $0x538] sm:$0xff]  ;;  %v441_v43 = vld [vmem:[#allocation3 + $0x510] sm:$0xff] }
  0x3f   :  { %356 = vmatpush.msra.mxu0 %v111_v41  ;;  %376 = vmatpush.msra.mxu1 %v112_v42  ;;  %v439_v41 = vld [vmem:[#allocation3 + $0x500] sm:$0xff]  ;;  %v440_v42 = vld [vmem:[#allocation3 + $0x508] sm:$0xff]  ;;  %v442_v44 = vld [vmem:[#allocation3 + $0x518] sm:$0xff] }
  0x40   :  { %318 = vmatpush.msrb.mxu2 %v101_v47  ;;  %338 = vmatpush.msrb.mxu3 %v102_v48  ;;  %v437_v47 = vld [vmem:[#allocation3 + $0x4f0] sm:$0xff]  ;;  %v438_v48 = vld [vmem:[#allocation3 + $0x4f8] sm:$0xff] }
  0x41   :  { %357 = vmatpush.msra.mxu0 %v107_v45  ;;  %377 = vmatpush.msra.mxu1 %v108_v46  ;;  %v435_v45 = vld [vmem:[#allocation3 + $0x4e0] sm:$0xff]  ;;  %v436_v46 = vld [vmem:[#allocation3 + $0x4e8] sm:$0xff] }
  0x42   :  { %319 = vmatpush.msrb.mxu2 %v97_v51  ;;  %339 = vmatpush.msrb.mxu3 %v98_v52  ;;  %v433_v51 = vld [vmem:[#allocation3 + $0x4d0] sm:$0xff]  ;;  %v434_v52 = vld [vmem:[#allocation3 + $0x4d8] sm:$0xff] }
  0x43   :  { %358 = vmatpush.msra.mxu0 %v103_v49  ;;  %378 = vmatpush.msra.mxu1 %v104_v50  ;;  %v431_v49 = vld [vmem:[#allocation3 + $0x4c0] sm:$0xff]  ;;  %v432_v50 = vld [vmem:[#allocation3 + $0x4c8] sm:$0xff] }
  0x44   :  { %320 = vmatpush.msrb.mxu2 %v93_v55  ;;  %340 = vmatpush.msrb.mxu3 %v94_v56  ;;  %v429_v55 = vld [vmem:[#allocation3 + $0x4b0] sm:$0xff]  ;;  %v430_v56 = vld [vmem:[#allocation3 + $0x4b8] sm:$0xff] }
  0x45   :  { %359 = vmatpush.msra.mxu0 %v99_v53  ;;  %379 = vmatpush.msra.mxu1 %v100_v54  ;;  %v427_v53 = vld [vmem:[#allocation3 + $0x4a0] sm:$0xff]  ;;  %v428_v54 = vld [vmem:[#allocation3 + $0x4a8] sm:$0xff] }
  0x46   :  { %321 = vmatpush.msrb.mxu2 %v89_v59  ;;  %341 = vmatpush.msrb.mxu3 %v90_v60  ;;  %v425_v59 = vld [vmem:[#allocation3 + $0x490] sm:$0xff]  ;;  %v426_v60 = vld [vmem:[#allocation3 + $0x498] sm:$0xff] }
  0x47   :  { %360 = vmatpush.msra.mxu0 %v95_v57  ;;  %380 = vmatpush.msra.mxu1 %v96_v58  ;;  %v423_v57 = vld [vmem:[#allocation3 + $0x480] sm:$0xff]  ;;  %v424_v58 = vld [vmem:[#allocation3 + $0x488] sm:$0xff] }
  0x48   :  { %322 = vmatpush.msrb.mxu2 %v85_v63  ;;  %342 = vmatpush.msrb.mxu3 %v86_v0  ;;  %v421_v63 = vld [vmem:[#allocation3 + $0x470] sm:$0xff]  ;;  %v422_v0 = vld [vmem:[#allocation3 + $0x478] sm:$0xff] }
  0x49   :  { %361 = vmatpush.msra.mxu0 %v91_v61  ;;  %381 = vmatpush.msra.mxu1 %v92_v62  ;;  %v419_v61 = vld [vmem:[#allocation3 + $0x460] sm:$0xff]  ;;  %v420_v62 = vld [vmem:[#allocation3 + $0x468] sm:$0xff] }
  0x4a   :  { %323 = vmatpush.msrb.mxu2 %v81_v4  ;;  %343 = vmatpush.msrb.mxu3 %v82_v5  ;;  %v417_v4 = vld [vmem:[#allocation3 + $0x450] sm:$0xff]  ;;  %v418_v5 = vld [vmem:[#allocation3 + $0x458] sm:$0xff] }
  0x4b   :  { %362 = vmatpush.msra.mxu0 %v87_v1  ;;  %382 = vmatpush.msra.mxu1 %v88_v2  ;;  %v415_v1 = vld [vmem:[#allocation3 + $0x440] sm:$0xff]  ;;  %v416_v2 = vld [vmem:[#allocation3 + $0x448] sm:$0xff] }
  0x4d   :  { %363 = vmatpush.msra.mxu0 %v83_v6  ;;  %383 = vmatpush.msra.mxu1 %v84_v7  ;;  %v411_v6 = vld [vmem:[#allocation3 + $0x420] sm:$0xff]  ;;  %v412_v7 = vld [vmem:[#allocation3 + $0x428] sm:$0xff] }
  0x8b   :  { %v77_v8 = vpop.f32.mrf.mxu0  ;;  %v159_v9 = vpop.f32.mrf.mxu1 }
  0x8c   :  { %244 = vmatmul.f32.vlgmr.msra.gmra.mxu2 %v159_v9  ;;  %264 = vmatmul.f32.vlgmr.msra.gmra.mxu3 %v159_v9 }
  0x8d   :  { %284 = vmatmul.f32.vlgmr.msrb.gmra.mxu0 %v159_v9  ;;  %304 = vmatmul.f32.vlgmr.msrb.gmra.mxu1 %v159_v9  ;;  %v414_v9 = vld [vmem:[#allocation3 + $0x438] sm:$0xff] }
  0x8e   :  { %400 = vmatpush.bf16.msra.mxu2 %v2950_v3  ;;  %471 = vmatpush.msra.mxu3 %v467_v10  ;;  %v407_v10 = vld [vmem:[#allocation3 + $0x400] sm:$0xff] }
  0x8f   :  { %491 = vmatpush.msrb.mxu0 %v468_v11  ;;  %511 = vmatpush.msrb.mxu1 %v469_v12  ;;  %v408_v11 = vld [vmem:[#allocation3 + $0x408] sm:$0xff]  ;;  %v409_v12 = vld [vmem:[#allocation3 + $0x410] sm:$0xff] }
  0x90   :  { %472 = vmatpush.msra.mxu3 %v463_v13  ;;  %v410_v13 = vld [vmem:[#allocation3 + $0x418] sm:$0xff] }
  0x91   :  { %492 = vmatpush.msrb.mxu0 %v464_v14  ;;  %512 = vmatpush.msrb.mxu1 %v465_v15  ;;  %v634_v14 = vld [vmem:[#allocation3 + $0x7e0] sm:$0xff]  ;;  %v635_v15 = vld [vmem:[#allocation3 + $0x7e8] sm:$0xff] }
  0x92   :  { %473 = vmatpush.msra.mxu3 %v459_v16  ;;  %v636_v16 = vld [vmem:[#allocation3 + $0x7f0] sm:$0xff] }
  0x93   :  { %v79_v19 = vpop.f32.mrf.mxu0  ;;  %v161_v20 = vpop.f32.mrf.mxu1  ;;  %493 = vmatpush.msrb.mxu0 %v460_v17  ;;  %513 = vmatpush.msrb.mxu1 %v461_v18  ;;  %v630_v17 = vld [vmem:[#allocation3 + $0x7c0] sm:$0xff]  ;;  %v631_v18 = vld [vmem:[#allocation3 + $0x7c8] sm:$0xff] }
  0x94   :  { %324 = vmatmul.f32.vlgmr.msrb.gmra.mxu2 %v77_v8  ;;  %344 = vmatmul.f32.vlgmr.msrb.gmra.mxu3 %v77_v8  ;;  %v632_v19 = vld [vmem:[#allocation3 + $0x7d0] sm:$0xff]  ;;  %v626_v20 = vld [vmem:[#allocation3 + $0x7a0] sm:$0xff] }
  0x95   :  { %364 = vmatmul.f32.vlgmr.msra.gmra.mxu0 %v77_v8  ;;  %384 = vmatmul.f32.vlgmr.msra.gmra.mxu1 %v77_v8  ;;  %v413_v8 = vld [vmem:[#allocation3 + $0x430] sm:$0xff] }
  0x96   :  { %531 = vmatpush.msrb.mxu2 %v470_v21  ;;  %474 = vmatpush.msra.mxu3 %v455_v22  ;;  %v627_v21 = vld [vmem:[#allocation3 + $0x7a8] sm:$0xff]  ;;  %v628_v22 = vld [vmem:[#allocation3 + $0x7b0] sm:$0xff] }
  0x97   :  { %494 = vmatpush.msrb.mxu0 %v456_v23  ;;  %514 = vmatpush.msrb.mxu1 %v457_v24  ;;  %v622_v23 = vld [vmem:[#allocation3 + $0x780] sm:$0xff]  ;;  %v623_v24 = vld [vmem:[#allocation3 + $0x788] sm:$0xff] }
  0x98   :  { %532 = vmatpush.msrb.mxu2 %v466_v25  ;;  %475 = vmatpush.msra.mxu3 %v451_v29  ;;  %v618_v25 = vld [vmem:[#allocation3 + $0x760] sm:$0xff] }
  0x99   :  { %495 = vmatpush.msrb.mxu0 %v452_v30  ;;  %515 = vmatpush.msrb.mxu1 %v453_v31  ;;  %v614_v29 = vld [vmem:[#allocation3 + $0x740] sm:$0xff]  ;;  %v615_v30 = vld [vmem:[#allocation3 + $0x748] sm:$0xff]  ;;  %v616_v31 = vld [vmem:[#allocation3 + $0x750] sm:$0xff] }
  0x9a   :  { %533 = vmatpush.msrb.mxu2 %v462_v26  ;;  %476 = vmatpush.msra.mxu3 %v447_v33  ;;  %v619_v26 = vld [vmem:[#allocation3 + $0x768] sm:$0xff] }
  0x9b   :  { %496 = vmatpush.msrb.mxu0 %v448_v34  ;;  %516 = vmatpush.msrb.mxu1 %v449_v35  ;;  %v611_v33 = vld [vmem:[#allocation3 + $0x728] sm:$0xff]  ;;  %v612_v34 = vld [vmem:[#allocation3 + $0x730] sm:$0xff]  ;;  %v606_v35 = vld [vmem:[#allocation3 + $0x700] sm:$0xff] }
  0x9c   :  { %2719 = vmatmul.msk.bf16.vlgmr.msra.gmra.mxu2 %vm64_vm0, %v2718_v27  ;;  %477 = vmatpush.msra.mxu3 %v443_v37  ;;  %v608_v37 = vld [vmem:[#allocation3 + $0x710] sm:$0xff] }
  0x9d   :  { %534 = vmatpush.msrb.mxu2 %v458_v28  ;;  %497 = vmatpush.msrb.mxu0 %v444_v38  ;;  %v620_v28 = vld [vmem:[#allocation3 + $0x770] sm:$0xff] }
  0x9e   :  { %517 = vmatpush.msrb.mxu1 %v445_v39  ;;  %478 = vmatpush.msra.mxu3 %v439_v41  ;;  %v633_v41 = vld [vmem:[#allocation3 + $0x7d8] sm:$0xff] }
  0x9f   :  { %535 = vmatpush.msrb.mxu2 %v454_v32  ;;  %498 = vmatpush.msrb.mxu0 %v440_v42  ;;  %v610_v32 = vld [vmem:[#allocation3 + $0x720] sm:$0xff]  ;;  %v629_v42 = vld [vmem:[#allocation3 + $0x7b8] sm:$0xff] }
  0xa0   :  { %518 = vmatpush.msrb.mxu1 %v441_v43  ;;  %479 = vmatpush.msra.mxu3 %v435_v45  ;;  %v2720_v43 = vld [vmem:[%s3721_s2 + $0xc] sm:$0xf] }
  0xa1   :  { %536 = vmatpush.msrb.mxu2 %v450_v36  ;;  %499 = vmatpush.msrb.mxu0 %v436_v46  ;;  %v607_v36 = vld [vmem:[#allocation3 + $0x708] sm:$0xff]  ;;  %v621_v46 = vld [vmem:[#allocation3 + $0x778] sm:$0xff] }
  0xa2   :  { %519 = vmatpush.msrb.mxu1 %v437_v47  ;;  %480 = vmatpush.msra.mxu3 %v431_v49  ;;  %v617_v47 = vld [vmem:[#allocation3 + $0x758] sm:$0xff] }
  0xa3   :  { %537 = vmatpush.msrb.mxu2 %v446_v40  ;;  %500 = vmatpush.msrb.mxu0 %v432_v50  ;;  %v637_v40 = vld [vmem:[#allocation3 + $0x7f8] sm:$0xff]  ;;  %v602_v50 = vld [vmem:[#allocation3 + $0x6e0] sm:$0xff] }
  0xa4   :  { %520 = vmatpush.msrb.mxu1 %v433_v51  ;;  %481 = vmatpush.msra.mxu3 %v427_v53  ;;  %v609_v49 = vld [vmem:[#allocation3 + $0x718] sm:$0xff]  ;;  %v603_v51 = vld [vmem:[#allocation3 + $0x6e8] sm:$0xff] }
  0xa5   :  { %538 = vmatpush.msrb.mxu2 %v442_v44  ;;  %501 = vmatpush.msrb.mxu0 %v428_v54  ;;  %v625_v44 = vld [vmem:[#allocation3 + $0x798] sm:$0xff]  ;;  %v598_v54 = vld [vmem:[#allocation3 + $0x6c0] sm:$0xff] }
  0xa6   :  { %521 = vmatpush.msrb.mxu1 %v429_v55  ;;  %482 = vmatpush.msra.mxu3 %v423_v57  ;;  %v605_v53 = vld [vmem:[#allocation3 + $0x6f8] sm:$0xff]  ;;  %v599_v55 = vld [vmem:[#allocation3 + $0x6c8] sm:$0xff] }
  0xa7   :  { %539 = vmatpush.msrb.mxu2 %v438_v48  ;;  %502 = vmatpush.msrb.mxu0 %v424_v58  ;;  %v613_v48 = vld [vmem:[#allocation3 + $0x738] sm:$0xff]  ;;  %v594_v58 = vld [vmem:[#allocation3 + $0x6a0] sm:$0xff] }
  0xa8   :  { %522 = vmatpush.msrb.mxu1 %v425_v59  ;;  %483 = vmatpush.msra.mxu3 %v419_v61  ;;  %v601_v57 = vld [vmem:[#allocation3 + $0x6d8] sm:$0xff]  ;;  %v595_v59 = vld [vmem:[#allocation3 + $0x6a8] sm:$0xff] }
  0xa9   :  { %540 = vmatpush.msrb.mxu2 %v434_v52  ;;  %503 = vmatpush.msrb.mxu0 %v420_v62  ;;  %v604_v52 = vld [vmem:[#allocation3 + $0x6f0] sm:$0xff]  ;;  %v597_v61 = vld [vmem:[#allocation3 + $0x6b8] sm:$0xff]  ;;  %v590_v62 = vld [vmem:[#allocation3 + $0x680] sm:$0xff] }
  0xaa   :  { %523 = vmatpush.msrb.mxu1 %v421_v63  ;;  %484 = vmatpush.msra.mxu3 %v415_v1  ;;  %v591_v63 = vld [vmem:[#allocation3 + $0x688] sm:$0xff]  ;;  %v593_v1 = vld [vmem:[#allocation3 + $0x698] sm:$0xff] }
  0xab   :  { %541 = vmatpush.msrb.mxu2 %v430_v56  ;;  %504 = vmatpush.msrb.mxu0 %v416_v2  ;;  %v600_v56 = vld [vmem:[#allocation3 + $0x6d0] sm:$0xff]  ;;  %v586_v2 = vld [vmem:[#allocation3 + $0x660] sm:$0xff] }
  0xac   :  { %524 = vmatpush.msrb.mxu1 %v417_v4  ;;  %485 = vmatpush.msra.mxu3 %v411_v6  ;;  %v587_v4 = vld [vmem:[#allocation3 + $0x668] sm:$0xff]  ;;  %v589_v6 = vld [vmem:[#allocation3 + $0x678] sm:$0xff] }
  0xad   :  { %542 = vmatpush.msrb.mxu2 %v426_v60  ;;  %505 = vmatpush.msrb.mxu0 %v412_v7  ;;  %v596_v60 = vld [vmem:[#allocation3 + $0x6b0] sm:$0xff]  ;;  %v582_v7 = vld [vmem:[#allocation3 + $0x640] sm:$0xff] }
  0xae   :  { %525 = vmatpush.msrb.mxu1 %v413_v8  ;;  %486 = vmatpush.msra.mxu3 %v407_v10  ;;  %v583_v8 = vld [vmem:[#allocation3 + $0x648] sm:$0xff]  ;;  %v585_v10 = vld [vmem:[#allocation3 + $0x658] sm:$0xff] }
  0xaf   :  { %543 = vmatpush.msrb.mxu2 %v422_v0  ;;  %506 = vmatpush.msrb.mxu0 %v408_v11  ;;  %v592_v0 = vld [vmem:[#allocation3 + $0x690] sm:$0xff]  ;;  %v578_v11 = vld [vmem:[#allocation3 + $0x620] sm:$0xff] }
  0xb0   :  { %526 = vmatpush.msrb.mxu1 %v409_v12  ;;  %567 = vmatpush.bf16.msrb.mxu3 %v2950_v3  ;;  %v624_v3 = vld [vmem:[#allocation3 + $0x790] sm:$0xff]  ;;  %v579_v12 = vld [vmem:[#allocation3 + $0x628] sm:$0xff] }
  0xb1   :  { %544 = vmatpush.msrb.mxu2 %v418_v5  ;;  %638 = vmatpush.msra.mxu0 %v634_v14  ;;  %v588_v5 = vld [vmem:[#allocation3 + $0x670] sm:$0xff]  ;;  %v581_v14 = vld [vmem:[#allocation3 + $0x638] sm:$0xff] }
  0xb2   :  { %658 = vmatpush.msra.mxu1 %v635_v15  ;;  %v574_v15 = vld [vmem:[#allocation3 + $0x600] sm:$0xff] }
  0xb3   :  { %545 = vmatpush.msrb.mxu2 %v414_v9  ;;  %639 = vmatpush.msra.mxu0 %v630_v17  ;;  %v584_v9 = vld [vmem:[#allocation3 + $0x650] sm:$0xff] }
  0xb4   :  { %659 = vmatpush.msra.mxu1 %v631_v18  ;;  %v576_v17 = vld [vmem:[#allocation3 + $0x610] sm:$0xff]  ;;  %v577_v18 = vld [vmem:[#allocation3 + $0x618] sm:$0xff] }
  0xb5   :  { %546 = vmatpush.msrb.mxu2 %v410_v13  ;;  %640 = vmatpush.msra.mxu0 %v626_v20  ;;  %v580_v13 = vld [vmem:[#allocation3 + $0x630] sm:$0xff]  ;;  %v722_v20 = vld [vmem:[%s3722_s3] sm:$0xff] }
  0xb6   :  { %660 = vmatpush.msra.mxu1 %v627_v21  ;;  %v2982_v21 = vld [vmem:[%s3720_s1 + $0x10] sm:$0xff] }
  0xb7   :  { %678 = vmatpush.msra.mxu2 %v636_v16  ;;  %641 = vmatpush.msra.mxu0 %v622_v23  ;;  %v575_v16 = vld [vmem:[#allocation3 + $0x608] sm:$0xff]  ;;  %v2989_v23 = vld [vmem:[%s3720_s1 + $0x18] sm:$0xff] }
  0xb8   :  { %661 = vmatpush.msra.mxu1 %v623_v24  ;;  %804 = vrot.lane.b32.xlu1 %v2982_v21, %s2865_s24  ;;  %v2996_v24 = vld [vmem:[%s3720_s1 + $0x8] sm:$0xff] }
  0xb9   :  { %679 = vmatpush.msra.mxu2 %v632_v19  ;;  %642 = vmatpush.msra.mxu0 %v618_v25  ;;  %v3005_v25 = vld [vmem:[%s3720_s1] sm:$0xff]  ;;  %s2867_s1 = smov 15  }
  0xba   :  { %662 = vmatpush.msra.mxu1 %v619_v26  ;;  %750 = vrot.lane.b32.xlu2 %v2989_v23, %s2866_s27 }
  0xbb   :  { %680 = vmatpush.msra.mxu2 %v628_v22  ;;  %643 = vmatpush.msra.mxu0 %v614_v29  ;;  %v2864_v22 = vmov 0  }
  0xbc   :  { %663 = vmatpush.msra.mxu1 %v615_v30  ;;  %2833 = vset.pattern.permute.xlu0 %v2864_v22 }
  0xbd   :  { %681 = vmatpush.msra.mxu2 %v624_v3  ;;  %644 = vmatpush.msra.mxu0 %v610_v32 }
  0xbe   :  { %664 = vmatpush.msra.mxu1 %v611_v33  ;;  %725 = vperm.xlu0 %2833, %v722_v20  }
  0xbf   :  { %682 = vmatpush.msra.mxu2 %v620_v28  ;;  %645 = vmatpush.msra.mxu0 %v606_v35 }
  0xc0   :  { %665 = vmatpush.msra.mxu1 %v607_v36  ;;  %2834 = vset.pattern.permute.xlu2 %v2864_v22 }
  0xc1   :  { %683 = vmatpush.msra.mxu2 %v616_v31  ;;  %646 = vmatpush.msra.mxu0 %v602_v50 }
  0xc2   :  { %666 = vmatpush.msra.mxu1 %v603_v51  ;;  %806 = vrot.lane.b32.xlu1 %v2989_v23, %s2865_s24 }
  0xc3   :  { %684 = vmatpush.msra.mxu2 %v612_v34  ;;  %647 = vmatpush.msra.mxu0 %v598_v54 }
  0xc4   :  { %667 = vmatpush.msra.mxu1 %v599_v55 }
  0xc5   :  { %685 = vmatpush.msra.mxu2 %v608_v37  ;;  %648 = vmatpush.msra.mxu0 %v594_v58 }
  0xc6   :  { %668 = vmatpush.msra.mxu1 %v595_v59  ;;  %802 = vrot.lane.b32.xlu0 %v2996_v24, %s2865_s24 }
  0xc7   :  { %686 = vmatpush.msra.mxu2 %v604_v52  ;;  %649 = vmatpush.msra.mxu0 %v590_v62 }
  0xc8   :  { %669 = vmatpush.msra.mxu1 %v591_v63 }
  0xc9   :  { %687 = vmatpush.msra.mxu2 %v600_v56  ;;  %650 = vmatpush.msra.mxu0 %v586_v2 }
  0xca   :  { %670 = vmatpush.msra.mxu1 %v587_v4  ;;  %800 = vrot.lane.b32.xlu1 %v3005_v25, %s2865_s24 }
  0xcb   :  { %688 = vmatpush.msra.mxu2 %v596_v60  ;;  %651 = vmatpush.msra.mxu0 %v582_v7 }
  0xcc   :  { %671 = vmatpush.msra.mxu1 %v583_v8 }
  0xcd   :  { %689 = vmatpush.msra.mxu2 %v592_v0  ;;  %652 = vmatpush.msra.mxu0 %v578_v11 }
  0xce   :  { %672 = vmatpush.msra.mxu1 %v579_v12  ;;  %746 = vrot.lane.b32.xlu0 %v2996_v24, %s2866_s27 }
  0xcf   :  { %690 = vmatpush.msra.mxu2 %v588_v5  ;;  %653 = vmatpush.msra.mxu0 %v574_v15 }
  0xd0   :  { %673 = vmatpush.msra.mxu1 %v575_v16 }
  0xd1   :  { %691 = vmatpush.msra.mxu2 %v584_v9 }
  0xd2   :  { %748 = vrot.lane.b32.xlu1 %v2982_v21, %s2866_s27 }
  0xd3   :  { %692 = vmatpush.msra.mxu2 %v580_v13 }
  0xd5   :  { %693 = vmatpush.msra.mxu2 %v576_v17 }
 0x10a   :  { %v285_v32 = vpop.f32.mrf.mxu0  ;;  %v305_v33 = vpop.f32.mrf.mxu1 }
 0x10f   :  { %v2968_v27 = vpop.f32.mrf.mxu2  ;;  %v265_v19 = vpop.f32.mrf.mxu3 }
 0x112   :  { %v385_v34 = vpop.f32.mrf.mxu1 }
 0x114   :  { %v751_v58 = vpop.permute.xlu2 %750 }
 0x117   :  { %v2970_v38 = vpop.f32.mrf.mxu2  ;;  %v345_v3 = vpop.f32.mrf.mxu3 }
 0x118   :  { %v326_v26 = vadd.f32 %v2970_v38, %v2968_v27  ;;  %v365_v27 = vpop.f32.mrf.mxu0  ;;  %v346_v37 = vadd.f32 %v345_v3, %v265_v19  ;;  %v2723_v19 = vld [vmem:[%s3724_s5 + $0x4] sm:$0xf] }
 0x11f   :  { %v402_v39 = vpop.f32.mrf.mxu2 }
 0x120   :  { %487 = vmatmul.f32.vlgmr.msra.gmra.mxu3 %v402_v39  ;;  %507 = vmatmul.f32.vlgmr.msrb.gmra.mxu0 %v402_v39 }
 0x121   :  { %527 = vmatmul.f32.vlgmr.msrb.gmra.mxu1 %v402_v39  ;;  %547 = vmatmul.f32.vlgmr.msrb.gmra.mxu2 %v402_v39 }
 0x122   :  { %698 = vmatpush.msra.mxu3 %v637_v40 }
 0x124   :  { %699 = vmatpush.msra.mxu3 %v633_v41 }
 0x126   :  { %700 = vmatpush.msra.mxu3 %v629_v42 }
 0x127   :  { %v404_v45 = vpop.f32.mrf.mxu2 }
 0x128   :  { %2721 = vmatmul.msk.bf16.vlgmr.msrb.gmra.mxu3 %vm64_vm0, %v2720_v43 }
 0x129   :  { %701 = vmatpush.msra.mxu3 %v625_v44 }
 0x12b   :  { %702 = vmatpush.msra.mxu3 %v621_v46 }
 0x12d   :  { %703 = vmatpush.msra.mxu3 %v617_v47  ;;  %v366_v47 = vadd.f32 %v365_v27, %v285_v32 }
 0x12f   :  { %704 = vmatpush.msra.mxu3 %v613_v48  ;;  %v386_v48 = vadd.f32 %v385_v34, %v305_v33 }
 0x130   :  { %v726_v40 = vpop.permute.xlu0 %725 }
 0x131   :  { %705 = vmatpush.msra.mxu3 %v609_v49 }
 0x133   :  { %706 = vmatpush.msra.mxu3 %v605_v53 }
 0x135   :  { %707 = vmatpush.msra.mxu3 %v601_v57  ;;  %v805_v57 = vpop.permute.xlu1 %804 }
 0x137   :  { %708 = vmatpush.msra.mxu3 %v597_v61  ;;  %v2722_v61 = vld [vmem:[%s3728_s9 + $0x4] sm:$0xf] }
 0x138   :  { %v803_v62 = vpop.permute.xlu0 %802  ;;  %v3098_v63 = vperm.slane %v2722_v61, 0  ;;  %v3122_v15 = vperm.slane %v2722_v61, 2  ;;  %v3147_v32 = vperm.slane %v2722_v61, 3 }
 0x139   :  { %709 = vmatpush.msra.mxu3 %v593_v1  ;;  %v3100_v1 = vperm.slane %v2722_v61, 1  ;;  %v817_v17 = vsel %vm64_vm0, %v803_v62, %v805_v57 }
 0x13a   :  { %v845_v22 = vmul.f32 %v3122_v15, %v817_v17 }
 0x13b   :  { %710 = vmatpush.msra.mxu3 %v589_v6 }
 0x13d   :  { %711 = vmatpush.msra.mxu3 %v585_v10  ;;  %v807_v59 = vpop.permute.xlu1 %806 }
 0x13e   :  { %v818_v33 = vsel %vm64_vm0, %v805_v57, %v807_v59 }
 0x13f   :  { %712 = vmatpush.msra.mxu3 %v581_v14 }
 0x140   :  { %v3120_v14 = vpop.permute.xlu0 %746 }
 0x141   :  { %713 = vmatpush.msra.mxu3 %v577_v18 }
 0x145   :  { %v801_v0 = vpop.permute.xlu1 %800 }
 0x146   :  { %v830_v2 = vsel %vm64_vm0, 0.0, %v801_v0  ;;  %v816_v4 = vsel %vm64_vm0, %v801_v0, %v803_v62 }
 0x147   :  { %v843_v5 = vmul.f32 %v3098_v63, %v830_v2  ;;  %v844_v6 = vmul.f32 %v3100_v1, %v816_v4 }
 0x14d   :  { %v749_v16 = vpop.permute.xlu1 %748 }
 0x19d   :  { %v508_v35 = vpop.f32.mrf.mxu0 }
 0x19e   :  { %v528_v36 = vpop.f32.mrf.mxu1  ;;  %v552_v38 = vadd.f32 %v508_v35, %v346_v37  ;;  %v762_v35 = vsel %vm760_vm1, %v3120_v14, %v749_v16 }
 0x19f   :  { %v553_v49 = vadd.f32 %v528_v36, %v366_v47  ;;  %v763_v36 = vsel %vm760_vm1, %v749_v16, %v751_v58 }
 0x1a3   :  { %v488_v28 = vpop.f32.mrf.mxu3 }
 0x1a4   :  { %v551_v29 = vadd.f32 %v488_v28, %v326_v26  ;;  %v548_v39 = vpop.f32.mrf.mxu2 }
 0x1a5   :  { %v554_v50 = vadd.f32 %v548_v39, %v386_v48  ;;  %v846_v39 = vmul.f32 %v3147_v32, %v818_v33 }
 0x1ab   :  { %v569_v30 = vpop.f32.mrf.mxu3 }
 0x1ac   :  { %654 = vmatmul.f32.vlgmr.msra.gmra.mxu0 %v569_v30  ;;  %674 = vmatmul.f32.vlgmr.msra.gmra.mxu1 %v569_v30 }
 0x1ad   :  { %694 = vmatmul.f32.vlgmr.msra.gmra.mxu2 %v569_v30  ;;  %714 = vmatmul.f32.vlgmr.msra.gmra.mxu3 %v569_v30 }
 0x1b3   :  { %v571_v31 = vpop.f32.mrf.mxu3 }
 0x1b4   :  { %v777_v31 = vld [vmem:[%s3728_s9] sm:$0xf] }
 0x1b5   :  { %v3150_v27 = vperm.slane %v777_v31, 2  ;;  %v3156_v34 = vperm.slane %v777_v31, 3  ;;  %v3175_v58 = vperm.slane %v777_v31, 1 }
 0x229   :  { %v655_v41 = vpop.f32.mrf.mxu0  ;;  %v675_v42 = vpop.f32.mrf.mxu1 }
 0x22a   :  { %v718_v43 = vadd.f32 %v655_v41, %v551_v29  ;;  %v719_v44 = vadd.f32 %v675_v42, %v552_v38 }
 0x22c   :  { %v3015_v45 = vadd.f32 %v726_v40, %v718_v43  ;;  %v3017_v46 = vadd.f32 %v726_v40, %v719_v44  ;;  %v789_v43 = vmul.f32 %v3150_v27, %v762_v35 }
 0x22e   :  { %752 = vrot.lane.b32.xlu1 %v3015_v45, %s2866_s27  ;;  %754 = vrot.lane.b32.xlu0 %v3017_v46, %s2866_s27 }
 0x22f   :  { %810 = vrot.lane.b32.xlu2 %v3017_v46, %s2865_s24 }
 0x230   :  { %v695_v51 = vpop.f32.mrf.mxu2  ;;  %v715_v52 = vpop.f32.mrf.mxu3 }
 0x231   :  { %v720_v53 = vadd.f32 %v695_v51, %v553_v49  ;;  %v721_v54 = vadd.f32 %v715_v52, %v554_v50  ;;  %v790_v49 = vmul.f32 %v3156_v34, %v763_v36  ;;  %v2738_v36 = vld [vmem:[%s3728_s9 + $0xc] sm:$0xf] }
 0x233   :  { %v3025_v55 = vadd.f32 %v726_v40, %v720_v53  ;;  %v3027_v56 = vadd.f32 %v726_v40, %v721_v54  ;;  %v3172_v53 = vperm.slane %v777_v31, 0 }
 0x236   :  { %814 = vrot.lane.b32.xlu0 %v3027_v56, %s2865_s24  ;;  %756 = vrot.lane.b32.xlu1 %v3025_v55, %s2866_s27 }
 0x237   :  { %808 = vrot.lane.b32.xlu2 %v3015_v45, %s2865_s24 }
 0x23e   :  { %744 = vrot.lane.b32.xlu0 %v3005_v25, %s2866_s27  ;;  %973 = vrot.lane.b32.xlu1 %v2989_v23, %s2867_s1 }
 0x23f   :  { %812 = vrot.lane.b32.xlu2 %v3025_v55, %s2865_s24 }
 0x246   :  { %971 = vrot.lane.b32.xlu0 %v2982_v21, %s2867_s1  ;;  %981 = vrot.lane.b32.xlu1 %v3027_v56, %s2867_s1 }
 0x247   :  { %969 = vrot.lane.b32.xlu2 %v2996_v24, %s2867_s1 }
 0x24e   :  { %975 = vrot.lane.b32.xlu0 %v3015_v45, %s2867_s1  ;;  %1086 = vrot.lane.b32.xlu1 %v2996_v24, %s2868_s13 }
 0x24f   :  { %758 = vrot.lane.b32.xlu2 %v3027_v56, %s2866_s27 }
 0x256   :  { %979 = vrot.lane.b32.xlu0 %v3025_v55, %s2867_s1  ;;  %1094 = vrot.lane.b32.xlu1 %v3017_v46, %s2868_s13 }
 0x257   :  { %977 = vrot.lane.b32.xlu2 %v3017_v46, %s2867_s1 }
 0x25e   :  { %1090 = vrot.lane.b32.xlu0 %v2989_v23, %s2868_s13  ;;  %1084 = vrot.lane.b32.xlu1 %v3005_v25, %s2868_s13 }
 0x25f   :  { %967 = vrot.lane.b32.xlu2 %v3005_v25, %s2867_s1 }
 0x266   :  { %1098 = vrot.lane.b32.xlu0 %v3027_v56, %s2868_s13  ;;  %1272 = vrot.lane.b32.xlu1 %v2989_v23, %s2869_s11 }
 0x267   :  { %1088 = vrot.lane.b32.xlu2 %v2982_v21, %s2868_s13 }
 0x26e   :  { %1270 = vrot.lane.b32.xlu0 %v2982_v21, %s2869_s11  ;;  %1268 = vrot.lane.b32.xlu1 %v2996_v24, %s2869_s11 }
 0x26f   :  { %1096 = vrot.lane.b32.xlu2 %v3025_v55, %s2868_s13 }
 0x276   :  { %1387 = vrot.lane.b32.xlu0 %v2982_v21, %s2870_s14  ;;  %1389 = vrot.lane.b32.xlu1 %v2989_v23, %s2870_s14 }
 0x277   :  { %1092 = vrot.lane.b32.xlu2 %v3015_v45, %s2868_s13 }
 0x27e   :  { %1280 = vrot.lane.b32.xlu0 %v3027_v56, %s2869_s11  ;;  %1266 = vrot.lane.b32.xlu1 %v3005_v25, %s2869_s11 }
 0x27f   :  { %1276 = vrot.lane.b32.xlu2 %v3017_v46, %s2869_s11 }
 0x286   :  { %1385 = vrot.lane.b32.xlu0 %v2996_v24, %s2870_s14  ;;  %1393 = vrot.lane.b32.xlu1 %v3017_v46, %s2870_s14 }
 0x287   :  { %1274 = vrot.lane.b32.xlu2 %v3015_v45, %s2869_s11 }
 0x289   :  { %v811_v60 = vpop.permute.xlu2 %810 }
 0x28e   :  { %1397 = vrot.lane.b32.xlu0 %v3027_v56, %s2870_s14  ;;  %1391 = vrot.lane.b32.xlu1 %v3015_v45, %s2870_s14 }
 0x28f   :  { %1278 = vrot.lane.b32.xlu2 %v3025_v55, %s2869_s11 }
 0x291   :  { %v809_v7 = vpop.permute.xlu2 %808 }
 0x292   :  { %v819_v8 = vsel %vm64_vm0, %v809_v7, %v811_v60  ;;  %v831_v9 = vsel %vm64_vm0, 0.0, %v809_v7 }
 0x293   :  { %v847_v10 = vmul.f32 %v3098_v63, %v831_v9  ;;  %v848_v11 = vmul.f32 %v3100_v1, %v819_v8 }
 0x295   :  { %v853_v12 = vpack.c.bf16 %v847_v10, %v843_v5  ;;  %v854_v13 = vpack.c.bf16 %v848_v11, %v844_v6 }
 0x296   :  { %1506 = vrot.lane.b32.xlu0 %v2989_v23, %s2871_s16  ;;  %1512 = vrot.lane.b32.xlu1 %v3025_v55, %s2871_s16 }
 0x297   :  { %867 = vmatpush.bf16.msrb.mxu0 %v853_v12  ;;  %880 = vmatpush.bf16.msrb.mxu1 %v854_v13 }
 0x298   :  { %1504 = vrot.lane.b32.xlu2 %v2982_v21, %s2871_s16 }
 0x299   :  { %v813_v18 = vpop.permute.xlu2 %812 }
 0x29a   :  { %v820_v20 = vsel %vm64_vm0, %v811_v60, %v813_v18  ;;  %2724 = vmatmul.msk.bf16.vlgmr.msrb.gmra.mxu0 %vm64_vm0, %v2723_v19  ;;  %2725 = vmatmul.msk.bf16.vlgmr.msrb.gmra.mxu1 %vm64_vm0, %v2723_v19  ;;  %v795_v60 = vld [vmem:[%s3724_s5] sm:$0xf] }
 0x29b   :  { %v849_v3 = vmul.f32 %v3122_v15, %v820_v20 }
 0x29d   :  { %v855_v26 = vpack.c.bf16 %v849_v3, %v845_v22 }
 0x29e   :  { %1383 = vrot.lane.b32.xlu0 %v3005_v25, %s2870_s14  ;;  %1621 = vrot.lane.b32.xlu1 %v2982_v21, %s2872_s18 }
 0x29f   :  { %893 = vmatpush.bf16.msrb.mxu2 %v855_v26 }
 0x2a0   :  { %1395 = vrot.lane.b32.xlu2 %v3025_v55, %s2870_s14  ;;  %v753_v28 = vpop.permute.xlu1 %752  ;;  %v755_v29 = vpop.permute.xlu0 %754 }
 0x2a1   :  { %v3141_v30 = vpop.permute.xlu2 %969  ;;  %v776_v57 = vsel %vm760_vm1, 0.0, %v753_v28  ;;  %v764_v59 = vsel %vm760_vm1, %v753_v28, %v755_v29 }
 0x2a2   :  { %2726 = vmatmul.msk.bf16.vlgmr.msrb.gmra.mxu2 %vm64_vm0, %v2723_v19  ;;  %v791_v0 = vmul.f32 %v3172_v53, %v776_v57  ;;  %v792_v6 = vmul.f32 %v3175_v58, %v764_v59 }
 0x2a6   :  { %1510 = vrot.lane.b32.xlu0 %v3017_v46, %s2871_s16  ;;  %1631 = vrot.lane.b32.xlu1 %v3027_v56, %s2872_s18 }
 0x2a8   :  { %1502 = vrot.lane.b32.xlu2 %v2996_v24, %s2871_s16  ;;  %v815_v37 = vpop.permute.xlu0 %814  ;;  %v757_v38 = vpop.permute.xlu1 %756 }
 0x2a9   :  { %v821_v40 = vsel %vm64_vm0, %v813_v18, %v815_v37  ;;  %v765_v41 = vsel %vm760_vm1, %v755_v29, %v757_v38  ;;  %v759_v42 = vpop.permute.xlu2 %758 }
 0x2aa   :  { %v850_v44 = vmul.f32 %v3147_v32, %v821_v40  ;;  %v793_v47 = vmul.f32 %v3150_v27, %v765_v41  ;;  %v766_v48 = vsel %vm760_vm1, %v757_v38, %v759_v42  ;;  %v3232_v41 = vperm.slane %v2738_v36, 2 }
 0x2ab   :  { %v794_v50 = vmul.f32 %v3156_v34, %v766_v48 }
 0x2ac   :  { %v856_v51 = vpack.c.bf16 %v850_v44, %v846_v39  ;;  %v798_v52 = vpack.c.bf16 %v793_v47, %v789_v43  ;;  %v2733_v44 = vld [vmem:[%s3724_s5 + $0x8] sm:$0xf] }
 0x2ad   :  { %v799_v54 = vpack.c.bf16 %v794_v50, %v790_v49 }
 0x2ae   :  { %1629 = vrot.lane.b32.xlu0 %v3025_v55, %s2872_s18  ;;  %1619 = vrot.lane.b32.xlu1 %v2996_v24, %s2872_s18 }
 0x2af   :  { %906 = vmatpush.bf16.msrb.mxu3 %v856_v51  ;;  %948 = vmatpush.bf16.msra.mxu2 %v798_v52 }
 0x2b0   :  { %1514 = vrot.lane.b32.xlu2 %v3027_v56, %s2871_s16  ;;  %v745_v61 = vpop.permute.xlu0 %744  ;;  %v974_v62 = vpop.permute.xlu1 %973 }
 0x2b1   :  { %v761_v2 = vsel %vm760_vm1, %v745_v61, %v3120_v14  ;;  %v775_v4 = vsel %vm760_vm1, 0.0, %v745_v61  ;;  %v978_v5 = vpop.permute.xlu2 %977  ;;  %v2732_v14 = vld [vmem:[%s3728_s9 + $0x8] sm:$0xf] }
 0x2b2   :  { %v787_v7 = vmul.f32 %v3172_v53, %v775_v4  ;;  %v788_v8 = vmul.f32 %v3175_v58, %v761_v2  ;;  %2727 = vmatmul.msk.bf16.vlgmr.msrb.gmra.mxu3 %vm64_vm0, %v2723_v19  ;;  %2730 = vmatmul.msk.bf16.vlgmr.msra.gmra.mxu2 %vm64_vm0, %v795_v60  ;;  %v3207_v16 = vperm.slane %v2732_v14, 0  ;;  %v3210_v18 = vperm.slane %v2732_v14, 1 }
 0x2b3   :  { %961 = vmatpush.bf16.msra.mxu3 %v799_v54  ;;  %v3228_v37 = vperm.slane %v2732_v14, 2  ;;  %v3234_v42 = vperm.slane %v2732_v14, 3 }
 0x2b4   :  { %v796_v9 = vpack.c.bf16 %v791_v0, %v787_v7  ;;  %v797_v10 = vpack.c.bf16 %v792_v6, %v788_v8  ;;  %v3256_v6 = vperm.slane %v2738_v36, 1 }
 0x2b6   :  { %922 = vmatpush.bf16.msra.mxu0 %v796_v9  ;;  %935 = vmatpush.bf16.msra.mxu1 %v797_v10 }
 0x2b7   :  { %1508 = vrot.lane.b32.xlu0 %v3015_v45, %s2871_s16  ;;  %1625 = vrot.lane.b32.xlu1 %v3015_v45, %s2872_s18 }
 0x2b8   :  { %1623 = vrot.lane.b32.xlu2 %v2989_v23, %s2872_s18  ;;  %v972_v11 = vpop.permute.xlu0 %971  ;;  %v982_v12 = vpop.permute.xlu1 %981 }
 0x2b9   :  { %v968_v13 = vpop.permute.xlu2 %967  ;;  %2728 = vmatmul.msk.bf16.vlgmr.msra.gmra.mxu0 %vm64_vm0, %v795_v60  ;;  %2729 = vmatmul.msk.bf16.vlgmr.msra.gmra.mxu1 %vm64_vm0, %v795_v60  ;;  %v985_v40 = vsel %vm983_vm2, %v3141_v30, %v972_v11  ;;  %v986_v47 = vsel %vm983_vm2, %v972_v11, %v974_v62 }
 0x2ba   :  { %v998_v17 = vsel %vm983_vm2, 0.0, %v968_v13  ;;  %v984_v19 = vsel %vm983_vm2, %v968_v13, %v3141_v30  ;;  %v1013_v48 = vmul.f32 %v3228_v37, %v985_v40  ;;  %v1014_v57 = vmul.f32 %v3234_v42, %v986_v47 }
 0x2bb   :  { %v1011_v20 = vmul.f32 %v3207_v16, %v998_v17  ;;  %v1012_v31 = vmul.f32 %v3210_v18, %v984_v19 }
 0x2bf   :  { %1617 = vrot.lane.b32.xlu0 %v3005_v25, %s2872_s18 }
 0x2c0   :  { %1500 = vrot.lane.b32.xlu2 %v3005_v25, %s2871_s16  ;;  %v976_v22 = vpop.permute.xlu0 %975  ;;  %v1087_v3 = vpop.permute.xlu1 %1086 }
 0x2c1   :  { %v987_v26 = vsel %vm983_vm2, %v976_v22, %v978_v5  ;;  %v999_v28 = vsel %vm983_vm2, 0.0, %v976_v22  ;;  %v1089_v29 = vpop.permute.xlu2 %1088 }
 0x2c2   :  { %v1015_v33 = vmul.f32 %v3207_v16, %v999_v28  ;;  %v1016_v35 = vmul.f32 %v3210_v18, %v987_v26  ;;  %2731 = vmatmul.msk.bf16.vlgmr.msra.gmra.mxu3 %vm64_vm0, %v795_v60  ;;  %v1102_v43 = vsel %vm1100_vm3, %v1087_v3, %v1089_v29  ;;  %v3270_v26 = vperm.slane %v2738_v36, 3 }
 0x2c3   :  { %v1130_v50 = vmul.f32 %v3232_v41, %v1102_v43 }
 0x2c4   :  { %v1021_v38 = vpack.c.bf16 %v1015_v33, %v1011_v20  ;;  %v1022_v39 = vpack.c.bf16 %v1016_v35, %v1012_v31  ;;  %v1203_v31 = vpack.c.bf16 %v3015_v45, %v3005_v25  ;;  %v2739_v33 = vld [vmem:[%s3724_s5 + $0xc] sm:$0xf]  ;;  %v1206_v45 = vpack.c.bf16 %v3027_v56, %v2989_v23  ;;  %v2744_v23 = vld [vmem:[%s3724_s5 + $0x10] sm:$0xf] }
 0x2c6   :  { %1035 = vmatpush.bf16.msrb.mxu0 %v1021_v38  ;;  %1048 = vmatpush.bf16.msrb.mxu1 %v1022_v39 }
 0x2c8   :  { %1627 = vrot.lane.b32.xlu2 %v3017_v46, %s2872_s18  ;;  %v980_v30 = vpop.permute.xlu0 %979  ;;  %v1095_v49 = vpop.permute.xlu1 %1094 }
 0x2c9   :  { %v988_v51 = vsel %vm983_vm2, %v978_v5, %v980_v30  ;;  %v989_v52 = vsel %vm983_vm2, %v980_v30, %v982_v12  ;;  %v1097_v54 = vpop.permute.xlu2 %1096  ;;  %2734 = vmatmul.msk.bf16.vlgmr.msrb.gmra.mxu0 %vm64_vm0, %v2733_v44  ;;  %2735 = vmatmul.msk.bf16.vlgmr.msrb.gmra.mxu1 %vm64_vm0, %v2733_v44  ;;  %v3254_v5 = vperm.slane %v2738_v36, 0  ;;  %v1205_v12 = vpack.c.bf16 %v3025_v55, %v2982_v21 }
 0x2ca   :  { %v1017_v59 = vmul.f32 %v3228_v37, %v988_v51  ;;  %v1018_v60 = vmul.f32 %v3234_v42, %v989_v52  ;;  %v1105_v61 = vsel %vm1100_vm3, %v1095_v49, %v1097_v54  ;;  %v1204_v21 = vpack.c.bf16 %v3017_v46, %v2996_v24 }
 0x2cb   :  { %v1134_v62 = vmul.f32 %v3232_v41, %v1105_v61 }
 0x2cc   :  { %v1023_v0 = vpack.c.bf16 %v1017_v59, %v1013_v48  ;;  %v1024_v2 = vpack.c.bf16 %v1018_v60, %v1014_v57 }
 0x2cd   :  { %v1140_v4 = vpack.c.bf16 %v1134_v62, %v1130_v50 }
 0x2ce   :  { %1061 = vmatpush.bf16.msrb.mxu2 %v1023_v0  ;;  %1074 = vmatpush.bf16.msrb.mxu3 %v1024_v2 }
 0x2d0   :  { %v1091_v7 = vpop.permute.xlu0 %1090  ;;  %v1085_v8 = vpop.permute.xlu1 %1084 }
 0x2d1   :  { %v1101_v9 = vsel %vm1100_vm3, %v1085_v8, %v1087_v3  ;;  %v1115_v10 = vsel %vm1100_vm3, 0.0, %v1085_v8  ;;  %v1093_v11 = vpop.permute.xlu2 %1092  ;;  %2736 = vmatmul.msk.bf16.vlgmr.msrb.gmra.mxu2 %vm64_vm0, %v2733_v44  ;;  %v1103_v55 = vsel %vm1100_vm3, %v1089_v29, %v1091_v7 }
 0x2d2   :  { %1178 = vmatpush.bf16.msra.mxu2 %v1140_v4  ;;  %v1128_v13 = vmul.f32 %v3254_v5, %v1115_v10  ;;  %v1129_v14 = vmul.f32 %v3256_v6, %v1101_v9  ;;  %v1104_v17 = vsel %vm1100_vm3, %v1093_v11, %v1095_v49  ;;  %2737 = vmatmul.msk.bf16.vlgmr.msrb.gmra.mxu3 %vm64_vm0, %v2733_v44  ;;  %v1116_v19 = vsel %vm1100_vm3, 0.0, %v1093_v11  ;;  %v2749_v44 = vld [vmem:[%s3728_s9 + $0x14] sm:$0xf] }
 0x2d3   :  { %v1133_v20 = vmul.f32 %v3256_v6, %v1104_v17  ;;  %v1132_v22 = vmul.f32 %v3254_v5, %v1116_v19  ;;  %v1131_v24 = vmul.f32 %v3270_v26, %v1103_v55  ;;  %v3292_v47 = vperm.slane %v2749_v44, 1  ;;  %v2750_v55 = vld [vmem:[%s3724_s5 + $0x14] sm:$0xf] }
 0x2d4   :  { %v3306_v59 = vperm.slane %v2749_v44, 2  ;;  %v3309_v62 = vperm.slane %v2749_v44, 0 }
 0x2d5   :  { %v1139_v3 = vpack.c.bf16 %v1133_v20, %v1129_v14  ;;  %v1138_v28 = vpack.c.bf16 %v1132_v22, %v1128_v13 }
 0x2d6   :  { %1243 = vmatpush.bf16.msrb.mxu2 %v1205_v12 }
 0x2d7   :  { %1165 = vmatpush.bf16.msra.mxu1 %v1139_v3  ;;  %1152 = vmatpush.bf16.msra.mxu0 %v1138_v28  ;;  %v2755_v28 = vld [vmem:[%s3728_s9 + $0x18] sm:$0xf] }
 0x2d8   :  { %v1099_v35 = vpop.permute.xlu0 %1098  ;;  %v1273_v38 = vpop.permute.xlu1 %1272 }
 0x2d9   :  { %v1106_v36 = vsel %vm1100_vm3, %v1097_v54, %v1099_v35  ;;  %v1277_v39 = vpop.permute.xlu2 %1276  ;;  %v3303_v54 = vperm.slane %v2749_v44, 3  ;;  %v1297_v57 = vsel %vm1282_vm4, %v1273_v38, 0.0 }
 0x2da   :  { %v1135_v46 = vmul.f32 %v3270_v26, %v1106_v36  ;;  %2741 = vmatmul.msk.bf16.vlgmr.msra.gmra.mxu1 %vm64_vm0, %v2739_v33  ;;  %2740 = vmatmul.msk.bf16.vlgmr.msra.gmra.mxu0 %vm64_vm0, %v2739_v33 }
 0x2db   :  { %1230 = vmatpush.bf16.msrb.mxu1 %v1204_v21  ;;  %1217 = vmatpush.bf16.msrb.mxu0 %v1203_v31  ;;  %v1313_v2 = vmul.f32 %v3303_v54, %v1297_v57  ;;  %v3328_v21 = vperm.slane %v2755_v28, 1 }
 0x2dc   :  { %v1141_v25 = vpack.c.bf16 %v1135_v46, %v1131_v24  ;;  %v3339_v46 = vperm.slane %v2755_v28, 2 }
 0x2de   :  { %1191 = vmatpush.bf16.msra.mxu3 %v1141_v25  ;;  %v3341_v25 = vperm.slane %v2755_v28, 3 }
 0x2e0   :  { %v1271_v29 = vpop.permute.xlu0 %1270  ;;  %v1269_v40 = vpop.permute.xlu1 %1268 }
 0x2e1   :  { %v1275_v43 = vpop.permute.xlu2 %1274  ;;  %2742 = vmatmul.msk.bf16.vlgmr.msra.gmra.mxu2 %vm64_vm0, %v2739_v33  ;;  %v1284_v56 = vsel %vm1282_vm4, %v1269_v40, %v1271_v29  ;;  %v1285_v61 = vsel %vm1282_vm4, %v1271_v29, %v1273_v38 }
 0x2e2   :  { %1256 = vmatpush.bf16.msrb.mxu3 %v1206_v45  ;;  %v1311_v51 = vmul.f32 %v3292_v47, %v1284_v56  ;;  %v1286_v0 = vsel %vm1282_vm4, %v1275_v43, %v1277_v39  ;;  %v1312_v8 = vmul.f32 %v3306_v59, %v1285_v61 }
 0x2e3   :  { %2743 = vmatmul.msk.bf16.vlgmr.msra.gmra.mxu3 %vm64_vm0, %v2739_v33  ;;  %v1314_v12 = vmul.f32 %v3309_v62, %v1286_v0 }
 0x2e8   :  { %v1388_v48 = vpop.permute.xlu0 %1387  ;;  %v1390_v30 = vpop.permute.xlu1 %1389 }
 0x2e9   :  { %v1279_v49 = vpop.permute.xlu2 %1278  ;;  %v1402_v29 = vsel %vm1399_vm5, %v1388_v48, %v1390_v30 }
 0x2ea   :  { %v1287_v50 = vsel %vm1282_vm4, %v1277_v39, %v1279_v49  ;;  %2746 = vmatmul.msk.bf16.vlgmr.msrb.gmra.mxu1 %vm64_vm0, %v2744_v23  ;;  %2745 = vmatmul.msk.bf16.vlgmr.msrb.gmra.mxu0 %vm64_vm0, %v2744_v23 }
 0x2eb   :  { %v1315_v52 = vmul.f32 %v3292_v47, %v1287_v50 }
 0x2ed   :  { %v1321_v60 = vpack.c.bf16 %v1315_v52, %v1311_v51 }
 0x2ef   :  { %1347 = vmatpush.bf16.msra.mxu1 %v1321_v60  ;;  %v3358_v60 = vld [vmem:[%s3728_s9 + $0x1c] sm:$0xf] }
 0x2f0   :  { %v1281_v4 = vpop.permute.xlu0 %1280  ;;  %v1267_v7 = vpop.permute.xlu1 %1266  ;;  %v3361_v61 = vperm.slane %v3358_v60, 2  ;;  %v3364_v0 = vperm.slane %v3358_v60, 3 }
 0x2f1   :  { %v1288_v9 = vsel %vm1282_vm4, %v1279_v49, %v1281_v4  ;;  %v1298_v10 = vsel %vm1282_vm4, %v1281_v4, 0.0  ;;  %v1283_v11 = vsel %vm1282_vm4, %v1267_v7, %v1269_v40  ;;  %2747 = vmatmul.msk.bf16.vlgmr.msrb.gmra.mxu2 %vm64_vm0, %v2744_v23  ;;  %v1414_v40 = vsel %vm1399_vm5, %v1390_v30, 0.0 }
 0x2f2   :  { %v1316_v13 = vmul.f32 %v3306_v59, %v1288_v9  ;;  %v1317_v14 = vmul.f32 %v3303_v54, %v1298_v10  ;;  %v1310_v17 = vmul.f32 %v3309_v62, %v1283_v11  ;;  %v3322_v19 = vpop.permute.xlu2 %1504  ;;  %v1429_v49 = vmul.f32 %v3339_v46, %v1402_v29 }
 0x2f3   :  { %2748 = vmatmul.msk.bf16.vlgmr.msrb.gmra.mxu3 %vm64_vm0, %v2744_v23  ;;  %v1430_v50 = vmul.f32 %v3341_v25, %v1414_v40 }
 0x2f4   :  { %v1322_v20 = vpack.c.bf16 %v1316_v13, %v1312_v8  ;;  %v1323_v22 = vpack.c.bf16 %v1317_v14, %v1313_v2  ;;  %v1320_v3 = vpack.c.bf16 %v1314_v12, %v1310_v17  ;;  %v2756_v2 = vld [vmem:[%s3724_s5 + $0x18] sm:$0xf] }
 0x2f6   :  { %1334 = vmatpush.bf16.msra.mxu0 %v1320_v3  ;;  %1360 = vmatpush.bf16.msra.mxu2 %v1322_v20 }
 0x2f7   :  { %1373 = vmatpush.bf16.msra.mxu3 %v1323_v22  ;;  %v3379_v22 = vperm.slane %v2755_v28, 0 }
 0x2f8   :  { %v1386_v31 = vpop.permute.xlu0 %1385  ;;  %v1394_v33 = vpop.permute.xlu1 %1393 }
 0x2f9   :  { %v1401_v35 = vsel %vm1399_vm5, %v1386_v31, %v1388_v48 }
 0x2fa   :  { %v1428_v38 = vmul.f32 %v3328_v21, %v1401_v35  ;;  %v1396_v36 = vpop.permute.xlu2 %1395  ;;  %2752 = vmatmul.msk.bf16.vlgmr.msra.gmra.mxu1 %vm64_vm0, %v2750_v55  ;;  %2751 = vmatmul.msk.bf16.vlgmr.msra.gmra.mxu0 %vm64_vm0, %v2750_v55 }
 0x2fb   :  { %v1404_v39 = vsel %vm1399_vm5, %v1394_v33, %v1396_v36 }
 0x2fc   :  { %v1432_v24 = vmul.f32 %v3328_v21, %v1404_v39 }
 0x2fe   :  { %v1438_v45 = vpack.c.bf16 %v1432_v24, %v1428_v38  ;;  %v2767_v24 = vld [vmem:[%s3728_s9 + $0x20] sm:$0xf] }
 0x2ff   :  { %v3390_v40 = vperm.slane %v2767_v24, 3 }
 0x300   :  { %1464 = vmatpush.bf16.msrb.mxu1 %v1438_v45  ;;  %v1398_v43 = vpop.permute.xlu0 %1397  ;;  %v1392_v44 = vpop.permute.xlu1 %1391 }
 0x301   :  { %v1405_v23 = vsel %vm1399_vm5, %v1396_v36, %v1398_v43  ;;  %v1415_v56 = vsel %vm1399_vm5, %v1398_v43, 0.0  ;;  %2753 = vmatmul.msk.bf16.vlgmr.msra.gmra.mxu2 %vm64_vm0, %v2750_v55  ;;  %v1403_v35 = vsel %vm1399_vm5, %v1392_v44, %v1394_v33  ;;  %3737 = vst [vmem:[#allocation6_spill] sm:$0xff] %v3390_v40 }
 0x302   :  { %v1433_v51 = vmul.f32 %v3339_v46, %v1405_v23  ;;  %v1434_v52 = vmul.f32 %v3341_v25, %v1415_v56  ;;  %v3352_v48 = vpop.permute.xlu2 %1502  ;;  %v1431_v45 = vmul.f32 %v3379_v22, %v1403_v35 }
 0x303   :  { %2754 = vmatmul.msk.bf16.vlgmr.msra.gmra.mxu3 %vm64_vm0, %v2750_v55  ;;  %v1518_v44 = vsel %vm1516_vm6, %v3352_v48, %v3322_v19 }
 0x304   :  { %v1439_v30 = vpack.c.bf16 %v1433_v51, %v1429_v49  ;;  %v1440_v57 = vpack.c.bf16 %v1434_v52, %v1430_v50 }
 0x306   :  { %1477 = vmatpush.bf16.msrb.mxu2 %v1439_v30  ;;  %1490 = vmatpush.bf16.msrb.mxu3 %v1440_v57 }
 0x308   :  { %v1507_v4 = vpop.permute.xlu0 %1506  ;;  %v1513_v7 = vpop.permute.xlu1 %1512 }
 0x309   :  { %v1519_v8 = vsel %vm1516_vm6, %v3322_v19, %v1507_v4  ;;  %v1531_v9 = vsel %vm1516_vm6, %v1507_v4, 0.0 }
 0x30a   :  { %v1546_v10 = vmul.f32 %v3361_v61, %v1519_v8  ;;  %v1547_v11 = vmul.f32 %v3364_v0, %v1531_v9  ;;  %v1515_v12 = vpop.permute.xlu2 %1514  ;;  %2758 = vmatmul.msk.bf16.vlgmr.msrb.gmra.mxu1 %vm64_vm0, %v2756_v2  ;;  %v3410_v9 = vperm.slane %v2767_v24, 2 }
 0x30b   :  { %v1522_v13 = vsel %vm1516_vm6, %v1513_v7, %v1515_v12  ;;  %v1532_v14 = vsel %vm1516_vm6, %v1515_v12, 0.0 }
 0x30c   :  { %v1550_v17 = vmul.f32 %v3361_v61, %v1522_v13  ;;  %v1551_v20 = vmul.f32 %v3364_v0, %v1532_v14  ;;  %3739 = vst [vmem:[#allocation8_spill] sm:$0xff] %v3410_v9 }
 0x30e   :  { %v1556_v3 = vpack.c.bf16 %v1550_v17, %v1546_v10  ;;  %v1557_v55 = vpack.c.bf16 %v1551_v20, %v1547_v11 }
 0x310   :  { %1594 = vmatpush.bf16.msra.mxu2 %v1556_v3  ;;  %1607 = vmatpush.bf16.msra.mxu3 %v1557_v55  ;;  %v1384_v38 = vpop.permute.xlu0 %1383  ;;  %v1622_v36 = vpop.permute.xlu1 %1621 }
 0x311   :  { %v1400_v39 = vsel %vm1399_vm5, %v1384_v38, %v1386_v31  ;;  %2759 = vmatmul.msk.bf16.vlgmr.msrb.gmra.mxu2 %vm64_vm0, %v2756_v2  ;;  %v3394_v31 = vperm.slane %v3358_v60, 1 }
 0x312   :  { %v1427_v28 = vmul.f32 %v3379_v22, %v1400_v39  ;;  %v1624_v29 = vpop.permute.xlu2 %1623 }
 0x313   :  { %2760 = vmatmul.msk.bf16.vlgmr.msrb.gmra.mxu3 %vm64_vm0, %v2756_v2  ;;  %v1648_v43 = vsel %vm1633_vm7, %v1624_v29, 0.0  ;;  %3738 = vst [vmem:[#allocation7_spill] sm:$0xff] %v3394_v31  ;;  %v1545_v57 = vmul.f32 %v3394_v31, %v1518_v44  ;;  %v1636_v12 = vsel %vm1633_vm7, %v1622_v36, %v1624_v29 }
 0x314   :  { %v1437_v33 = vpack.c.bf16 %v1431_v45, %v1427_v28  ;;  %v1664_v49 = vmul.f32 %v3390_v40, %v1648_v43  ;;  %v1663_v17 = vmul.f32 %v3410_v9, %v1636_v12 }
 0x316   :  { %1451 = vmatpush.bf16.msrb.mxu0 %v1437_v33 }
 0x317   :  { %v3399_v23 = vpop.f32.mrf.mxu0  ;;  %v3401_v56 = vpop.f32.mrf.mxu1 }
 0x318   :  { %v1511_v50 = vpop.permute.xlu0 %1510  ;;  %v1632_v51 = vpop.permute.xlu1 %1631 }
 0x319   :  { %v1521_v52 = vsel %vm1516_vm6, %v1511_v50, %v1513_v7  ;;  %v1649_v30 = vsel %vm1633_vm7, %v1632_v51, 0.0  ;;  %2757 = vmatmul.msk.bf16.vlgmr.msrb.gmra.mxu0 %vm64_vm0, %v2756_v2  ;;  %v3413_v7 = vperm.slane %v2767_v24, 1  ;;  %v2762_v2 = vld [vmem:[%s3724_s5 + $0x1c] sm:$0xf] }
 0x31a   :  { %v1549_v4 = vmul.f32 %v3394_v31, %v1521_v52  ;;  %v1668_v19 = vmul.f32 %v3390_v40, %v1649_v30  ;;  %v1501_v8 = vpop.permute.xlu2 %1500 }
 0x31b   :  { %3740 = vst [vmem:[#allocation9_spill] sm:$0xff] %v3413_v7 }
 0x31c   :  { %v1555_v10 = vpack.c.bf16 %v1549_v4, %v1545_v57  ;;  %v1674_v11 = vpack.c.bf16 %v1668_v19, %v1664_v49  ;;  %v1517_v49 = vsel %vm1516_vm6, %v1501_v8, %v3352_v48 }
 0x31e   :  { %1581 = vmatpush.bf16.msra.mxu1 %v1555_v10  ;;  %1724 = vmatpush.bf16.msrb.mxu3 %v1674_v11  ;;  %v2768_v11 = vld [vmem:[%s3724_s5 + $0x20] sm:$0xf] }
 0x31f   :  { %v871_v13 = vpop.f32.mrf.mxu0  ;;  %v884_v14 = vpop.f32.mrf.mxu1 }
 0x320   :  { %v1630_v20 = vpop.permute.xlu0 %1629  ;;  %v1620_v3 = vpop.permute.xlu1 %1619 }
 0x321   :  { %v1639_v55 = vsel %vm1633_vm7, %v1630_v20, %v1632_v51  ;;  %v1635_v35 = vsel %vm1633_vm7, %v1620_v3, %v1622_v36  ;;  %2764 = vmatmul.msk.bf16.vlgmr.msra.gmra.mxu1 %vm64_vm0, %v2762_v2  ;;  %2765 = vmatmul.msk.bf16.vlgmr.msra.gmra.mxu2 %vm64_vm0, %v2762_v2  ;;  %v3429_v36 = vperm.slane %v3358_v60, 0  ;;  %v3439_v60 = vperm.slane %v2767_v24, 0 }
 0x322   :  { %v1667_v38 = vmul.f32 %v3410_v9, %v1639_v55  ;;  %v1662_v39 = vmul.f32 %v3413_v7, %v1635_v35  ;;  %v1628_v45 = vpop.permute.xlu2 %1627 }
 0x323   :  { %2766 = vmatmul.msk.bf16.vlgmr.msra.gmra.mxu3 %vm64_vm0, %v2762_v2  ;;  %v1638_v28 = vsel %vm1633_vm7, %v1628_v45, %v1630_v20  ;;  %v1544_v30 = vmul.f32 %v3429_v36, %v1517_v49  ;;  %3741 = vst [vmem:[#allocation10_spill] sm:$0xff] %v3439_v60 }
 0x324   :  { %v1673_v29 = vpack.c.bf16 %v1667_v38, %v1663_v17  ;;  %v1666_v33 = vmul.f32 %v3413_v7, %v1638_v28  ;;  %v1734_v38 = vld [vmem:[%s3725_s6] sm:$0xff] }
 0x325   :  { %v895_v43 = vpop.f32.mrf.mxu2  ;;  %1737 = vperm.xlu2 %2834, %v1734_v38  }
 0x326   :  { %v1672_v44 = vpack.c.bf16 %v1666_v33, %v1662_v39  ;;  %1711 = vmatpush.bf16.msrb.mxu2 %v1673_v29 }
 0x328   :  { %1698 = vmatpush.bf16.msrb.mxu1 %v1672_v44 }
 0x329   :  { %v1509_v51 = vpop.permute.xlu0 %1508  ;;  %v1626_v19 = vpop.permute.xlu1 %1625 }
 0x32a   :  { %v1520_v52 = vsel %vm1516_vm6, %v1509_v51, %v1511_v50  ;;  %v1637_v48 = vsel %vm1633_vm7, %v1626_v19, %v1628_v45 }
 0x32b   :  { %v1548_v57 = vmul.f32 %v3429_v36, %v1520_v52  ;;  %v1665_v12 = vmul.f32 %v3439_v60, %v1637_v48 }
 0x32d   :  { %v1554_v4 = vpack.c.bf16 %v1548_v57, %v1544_v30  ;;  %v897_v10 = vpop.f32.mrf.mxu2 }
 0x32f   :  { %1568 = vmatpush.bf16.msra.mxu0 %v1554_v4 }
 0x331   :  { %v1618_v8 = vpop.permute.xlu0 %1617  ;;  %2770 = vmatmul.msk.bf16.vlgmr.msrb.gmra.mxu1 %vm64_vm0, %v2768_v11  ;;  %2771 = vmatmul.msk.bf16.vlgmr.msrb.gmra.mxu2 %vm64_vm0, %v2768_v11 }
 0x332   :  { %v1634_v50 = vsel %vm1633_vm7, %v1618_v8, %v1620_v3  ;;  %2763 = vmatmul.msk.bf16.vlgmr.msra.gmra.mxu0 %vm64_vm0, %v2762_v2 }
 0x333   :  { %2772 = vmatmul.msk.bf16.vlgmr.msrb.gmra.mxu3 %vm64_vm0, %v2768_v11  ;;  %v1661_v13 = vmul.f32 %v3439_v60, %v1634_v50 }
 0x335   :  { %v1671_v24 = vpack.c.bf16 %v1665_v12, %v1661_v13  ;;  %v908_v14 = vpop.f32.mrf.mxu3  ;;  %v950_v17 = vpop.f32.mrf.mxu2 }
 0x336   :  { %v924_v20 = vpop.f32.mrf.mxu0  ;;  %v937_v55 = vpop.f32.mrf.mxu1  ;;  %v951_v35 = vadd.f32 %v950_v17, %v895_v43 }
 0x337   :  { %v925_v3 = vadd.f32 %v924_v20, %v3399_v23  ;;  %v938_v2 = vadd.f32 %v937_v55, %v3401_v56  ;;  %1685 = vmatpush.bf16.msrb.mxu0 %v1671_v24 }
 0x33d   :  { %v910_v39 = vpop.f32.mrf.mxu3  ;;  %v952_v45 = vpop.f32.mrf.mxu2 }
 0x33e   :  { %v926_v28 = vpop.f32.mrf.mxu0  ;;  %v939_v29 = vpop.f32.mrf.mxu1 }
 0x342   :  { %2769 = vmatmul.msk.bf16.vlgmr.msrb.gmra.mxu0 %vm64_vm0, %v2768_v11 }
 0x345   :  { %v963_v33 = vpop.f32.mrf.mxu3 }
 0x346   :  { %v964_v44 = vadd.f32 %v963_v33, %v908_v14  ;;  %v1037_v49 = vpop.f32.mrf.mxu0  ;;  %v1050_v43 = vpop.f32.mrf.mxu1 }
 0x347   :  { %v1080_v51 = vadd.f32 %v1037_v49, %v925_v3  ;;  %v1081_v52 = vadd.f32 %v1050_v43, %v938_v2 }
 0x34d   :  { %v965_v30 = vpop.f32.mrf.mxu3 }
 0x34e   :  { %v1039_v57 = vpop.f32.mrf.mxu0  ;;  %v1052_v4 = vpop.f32.mrf.mxu1 }
 0x354   :  { %v1063_v23 = vpop.f32.mrf.mxu2 }
 0x355   :  { %v1082_v19 = vadd.f32 %v1063_v23, %v951_v35  ;;  %v1076_v56 = vpop.f32.mrf.mxu3 }
 0x356   :  { %v1083_v10 = vadd.f32 %v1076_v56, %v964_v44 }
 0x357   :  { %v1167_v48 = vpop.f32.mrf.mxu1  ;;  %v1154_v8 = vpop.f32.mrf.mxu0 }
 0x358   :  { %v1198_v50 = vadd.f32 %v1167_v48, %v1081_v52  ;;  %v1197_v12 = vadd.f32 %v1154_v8, %v1080_v51 }
 0x35c   :  { %v1065_v13 = vpop.f32.mrf.mxu2 }
 0x35d   :  { %v1078_v24 = vpop.f32.mrf.mxu3 }
 0x35f   :  { %v1169_v11 = vpop.f32.mrf.mxu1  ;;  %v1156_v17 = vpop.f32.mrf.mxu0 }
 0x364   :  { %v1180_v14 = vpop.f32.mrf.mxu2 }
 0x365   :  { %v1199_v20 = vadd.f32 %v1180_v14, %v1082_v19 }
 0x366   :  { %v1193_v55 = vpop.f32.mrf.mxu3 }
 0x367   :  { %v1200_v38 = vadd.f32 %v1193_v55, %v1083_v10  ;;  %v1232_v3 = vpop.f32.mrf.mxu1  ;;  %v1219_v2 = vpop.f32.mrf.mxu0 }
 0x368   :  { %v1262_v39 = vadd.f32 %v1219_v2, %v1197_v12 }
 0x36c   :  { %v1182_v45 = vpop.f32.mrf.mxu2 }
 0x36e   :  { %v1195_v28 = vpop.f32.mrf.mxu3 }
 0x36f   :  { %v1234_v35 = vpop.f32.mrf.mxu1  ;;  %v1221_v29 = vpop.f32.mrf.mxu0  ;;  %v1263_v28 = vadd.f32 %v1232_v3, %v1198_v50 }
 0x374   :  { %v1245_v33 = vpop.f32.mrf.mxu2 }
 0x376   :  { %v1258_v44 = vpop.f32.mrf.mxu3 }
 0x377   :  { %v1349_v49 = vpop.f32.mrf.mxu1  ;;  %v1336_v43 = vpop.f32.mrf.mxu0 }
 0x378   :  { %v1379_v51 = vadd.f32 %v1336_v43, %v1262_v39  ;;  %v1380_v35 = vadd.f32 %v1349_v49, %v1263_v28 }
 0x37c   :  { %v1247_v52 = vpop.f32.mrf.mxu2 }
 0x37d   :  { %v1264_v52 = vadd.f32 %v1245_v33, %v1199_v20 }
 0x37e   :  { %v1260_v30 = vpop.f32.mrf.mxu3 }
 0x37f   :  { %v1351_v57 = vpop.f32.mrf.mxu1  ;;  %v1338_v4 = vpop.f32.mrf.mxu0 }
 0x380   :  { %v1265_v4 = vadd.f32 %v1258_v44, %v1200_v38 }
 0x384   :  { %v1362_v23 = vpop.f32.mrf.mxu2 }
 0x386   :  { %v1375_v19 = vpop.f32.mrf.mxu3 }
 0x387   :  { %v1466_v56 = vpop.f32.mrf.mxu1 }
 0x388   :  { %v1497_v29 = vadd.f32 %v1466_v56, %v1380_v35 }
 0x38c   :  { %v1364_v10 = vpop.f32.mrf.mxu2 }
 0x38e   :  { %v1377_v48 = vpop.f32.mrf.mxu3 }
 0x38f   :  { %v1468_v8 = vpop.f32.mrf.mxu1  ;;  %v1738_v48 = vpop.permute.xlu2 %1737 }
 0x390   :  { %v1381_v8 = vadd.f32 %v1362_v23, %v1264_v52 }
 0x394   :  { %v1479_v12 = vpop.f32.mrf.mxu2 }
 0x396   :  { %v1492_v13 = vpop.f32.mrf.mxu3  ;;  %v1453_v24 = vpop.f32.mrf.mxu0 }
 0x39c   :  { %v1481_v11 = vpop.f32.mrf.mxu2 }
 0x39d   :  { %v1382_v11 = vadd.f32 %v1375_v19, %v1265_v4 }
 0x39e   :  { %v1494_v17 = vpop.f32.mrf.mxu3  ;;  %v1455_v14 = vpop.f32.mrf.mxu0 }
 0x39f   :  { %v1583_v55 = vpop.f32.mrf.mxu1  ;;  %v1498_v17 = vadd.f32 %v1479_v12, %v1381_v8  ;;  %v1499_v40 = vadd.f32 %v1492_v13, %v1382_v11 }
 0x3a0   :  { %v1614_v30 = vadd.f32 %v1583_v55, %v1497_v29 }
 0x3a4   :  { %v1596_v2 = vpop.f32.mrf.mxu2 }
 0x3a5   :  { %v1615_v9 = vadd.f32 %v1596_v2, %v1498_v17 }
 0x3a6   :  { %v1609_v45 = vpop.f32.mrf.mxu3 }
 0x3a7   :  { %v1585_v39 = vpop.f32.mrf.mxu1  ;;  %v1616_v50 = vadd.f32 %v1609_v45, %v1499_v40 }
 0x3ac   :  { %v1598_v43 = vpop.f32.mrf.mxu2 }
 0x3ae   :  { %v1611_v57 = vpop.f32.mrf.mxu3 }
 0x3af   :  { %v1700_v10 = vpop.f32.mrf.mxu1  ;;  %v1570_v60 = vpop.f32.mrf.mxu0 }
 0x3b0   :  { %v1731_v7 = vadd.f32 %v1700_v10, %v1614_v30 }
 0x3b2   :  { %v1741_v14 = vadd.f32 %v1738_v48, %v1731_v7  ;;  %v1496_v7 = vadd.f32 %v1453_v24, %v1379_v51  ;;  %v2617_v24 = vld [vmem:[#allocation2] sm:$0x1] }
 0x3b4   :  { %v3455_v31 = vmax.f32 %v1741_v14, 0.0  ;;  %v1713_v3 = vpop.f32.mrf.mxu2  ;;  %v1613_v12 = vadd.f32 %v1570_v60, %v1496_v7  ;;  %v2598_v60 = vld [vmem:[%s3727_s8] sm:$0xff] }
 0x3b5   :  { %v1732_v49 = vadd.f32 %v1713_v3, %v1615_v9  ;;  %v2773_v14 = vld [vmem:[%s3726_s7 + $0x4] sm:$0xf] }
 0x3b6   :  { %v1726_v56 = vpop.f32.mrf.mxu3  ;;  %1779 = vrot.lane.b32.xlu0 %v3455_v31, %s2865_s24 }
 0x3b7   :  { %v1733_v20 = vadd.f32 %v1726_v56, %v1616_v50  ;;  %v1702_v38 = vpop.f32.mrf.mxu1  ;;  %v1742_v33 = vadd.f32 %v1738_v48, %v1732_v49  ;;  %v1572_v44 = vpop.f32.mrf.mxu0 }
 0x3b9   :  { %v1743_v23 = vadd.f32 %v1738_v48, %v1733_v20  ;;  %v3459_v55 = vmax.f32 %v1742_v33, 0.0 }
 0x3bb   :  { %v3461_v19 = vmax.f32 %v1743_v23, 0.0  ;;  %1781 = vrot.lane.b32.xlu1 %v3459_v55, %s2865_s24 }
 0x3bc   :  { %v1715_v40 = vpop.f32.mrf.mxu2 }
 0x3bd   :  { %1783 = vrot.lane.b32.xlu2 %v3461_v19, %s2865_s24 }
 0x3be   :  { %v1728_v9 = vpop.f32.mrf.mxu3 }
 0x3bf   :  { %v1687_v13 = vpop.f32.mrf.mxu0 }
 0x3c0   :  { %v1730_v2 = vadd.f32 %v1687_v13, %v1613_v12 }
 0x3c2   :  { %v1740_v45 = vadd.f32 %v1738_v48, %v1730_v2 }
 0x3c3   :  { %1754 = vrot.lane.b32.xlu1 %v3455_v31, %s2866_s27 }
 0x3c4   :  { %v3469_v39 = vmax.f32 %v1740_v45, 0.0 }
 0x3c5   :  { %1756 = vrot.lane.b32.xlu2 %v3459_v55, %s2866_s27 }
 0x3c6   :  { %1777 = vrot.lane.b32.xlu0 %v3469_v39, %s2865_s24 }
 0x3c7   :  { %v1689_v51 = vpop.f32.mrf.mxu0 }
 0x3cb   :  { %1752 = vrot.lane.b32.xlu1 %v3469_v39, %s2866_s27 }
 0x3cd   :  { %1941 = vrot.lane.b32.xlu2 %v3455_v31, %s2867_s1 }
 0x3ce   :  { %1758 = vrot.lane.b32.xlu0 %v3461_v19, %s2866_s27 }
 0x3d3   :  { %1945 = vrot.lane.b32.xlu1 %v3461_v19, %s2867_s1 }
 0x3d5   :  { %1939 = vrot.lane.b32.xlu2 %v3469_v39, %s2867_s1 }
 0x3d6   :  { %1943 = vrot.lane.b32.xlu0 %v3459_v55, %s2867_s1 }
 0x3db   :  { %2040 = vrot.lane.b32.xlu1 %v3459_v55, %s2868_s13 }
 0x3dd   :  { %2042 = vrot.lane.b32.xlu2 %v3461_v19, %s2868_s13 }
 0x3de   :  { %2038 = vrot.lane.b32.xlu0 %v3455_v31, %s2868_s13 }
 0x3e3   :  { %2214 = vrot.lane.b32.xlu1 %v3459_v55, %s2869_s11 }
 0x3e5   :  { %2216 = vrot.lane.b32.xlu2 %v3461_v19, %s2869_s11 }
 0x3e6   :  { %2036 = vrot.lane.b32.xlu0 %v3469_v39, %s2868_s13 }
 0x3eb   :  { %2212 = vrot.lane.b32.xlu1 %v3455_v31, %s2869_s11 }
 0x3ed   :  { %2311 = vrot.lane.b32.xlu2 %v3459_v55, %s2870_s14 }
 0x3ee   :  { %2210 = vrot.lane.b32.xlu0 %v3469_v39, %s2869_s11 }
 0x3f3   :  { %2307 = vrot.lane.b32.xlu1 %v3469_v39, %s2870_s14 }
 0x3f5   :  { %2309 = vrot.lane.b32.xlu2 %v3455_v31, %s2870_s14 }
 0x3f6   :  { %2313 = vrot.lane.b32.xlu0 %v3461_v19, %s2870_s14 }
 0x3fb   :  { %2410 = vrot.lane.b32.xlu1 %v3461_v19, %s2871_s16 }
 0x3fd   :  { %2404 = vrot.lane.b32.xlu2 %v3469_v39, %s2871_s16 }
 0x3fe   :  { %2408 = vrot.lane.b32.xlu0 %v3459_v55, %s2871_s16 }
 0x403   :  { %2505 = vrot.lane.b32.xlu1 %v3459_v55, %s2872_s18 }
 0x405   :  { %2507 = vrot.lane.b32.xlu2 %v3461_v19, %s2872_s18 }
 0x406   :  { %2406 = vrot.lane.b32.xlu0 %v3455_v31, %s2871_s16 }
 0x40b   :  { %2503 = vrot.lane.b32.xlu1 %v3455_v31, %s2872_s18 }
 0x40d   :  { %2601 = vperm.xlu2 %2834, %v2598_v60  }
 0x40e   :  { %2501 = vrot.lane.b32.xlu0 %v3469_v39, %s2872_s18 }
 0x416   :  { %2620 = vperm.xlu0 %2833, %v2617_v24  }
 0x417   :  { %v1784_v28 = vpop.permute.xlu2 %1783 }
 0x41f   :  { %v1757_v35 = vpop.permute.xlu2 %1756 }
 0x427   :  { %v3530_v29 = vpop.permute.xlu2 %1941 }
 0x428   :  { %v1780_v43 = vpop.permute.xlu0 %1779 }
 0x42d   :  { %v1782_v52 = vpop.permute.xlu1 %1781 }
 0x42e   :  { %v1786_v30 = vsel %vm64_vm0, %v1780_v43, %v1782_v52  ;;  %v1787_v57 = vsel %vm64_vm0, %v1782_v52, %v1784_v28 }
 0x42f   :  { %v1795_v4 = vmul.f32 %v1786_v30, %v3122_v15  ;;  %v1796_v10 = vmul.f32 %v1787_v57, %v3147_v32  ;;  %v1940_v50 = vpop.permute.xlu2 %1939 }
 0x430   :  { %v1947_v49 = vsel %vm983_vm2, %v1940_v50, %v3530_v29  ;;  %v1954_v20 = vsel %vm983_vm2, 0.0, %v1940_v50 }
 0x431   :  { %v1801_v48 = vpack.c.bf16 %v1795_v4, %v1795_v4  ;;  %v1802_v8 = vpack.c.bf16 %v1796_v10, %v1796_v10  ;;  %v1955_v40 = vmul.f32 %v1954_v20, %v3207_v16  ;;  %v1956_v9 = vmul.f32 %v1947_v49, %v3210_v18 }
 0x433   :  { %v1815_v11 = vsel %vm1807_vm8, %v1801_v48, 0  ;;  %v1818_v17 = vsel %vm1807_vm8, %v1802_v8, 0  ;;  %v1961_v16 = vpack.c.bf16 %v1955_v40, %v1955_v40  ;;  %v1962_v18 = vpack.c.bf16 %v1956_v9, %v1956_v9 }
 0x434   :  { %1853 = vmatpush.bf16.msra.mxu2 %v1815_v11  ;;  %1866 = vmatpush.bf16.msra.mxu3 %v1818_v17  ;;  %v2137_v40 = vpack.c.bf16 %v3459_v55, %v3459_v55 }
 0x435   :  { %v1755_v3 = vpop.permute.xlu1 %1754  ;;  %v1969_v10 = vsel %vm1807_vm8, %v1961_v16, 0  ;;  %v1972_v48 = vsel %vm1807_vm8, %v1962_v18, 0 }
 0x436   :  { %v1761_v15 = vsel %vm760_vm1, %v1755_v3, %v1757_v35 }
 0x437   :  { %v1770_v32 = vmul.f32 %v1761_v15, %v3150_v27  ;;  %2776 = vmatmul.msk.bf16.vlgmr.msra.gmra.mxu2 %vm1803_vm9, %v2773_v14  ;;  %2777 = vmatmul.msk.bf16.vlgmr.msra.gmra.mxu3 %vm1803_vm9, %v2773_v14  ;;  %v2043_v49 = vpop.permute.xlu2 %2042 }
 0x438   :  { %v1778_v56 = vpop.permute.xlu0 %1777 }
 0x439   :  { %v1775_v38 = vpack.c.bf16 %v1770_v32, %v1770_v32  ;;  %v1785_v33 = vsel %vm64_vm0, %v1778_v56, %v1780_v43  ;;  %v1792_v44 = vsel %vm64_vm0, 0.0, %v1778_v56 }
 0x43a   :  { %v1793_v23 = vmul.f32 %v1792_v44, %v3098_v63  ;;  %v1794_v7 = vmul.f32 %v1785_v33, %v3100_v1 }
 0x43b   :  { %v1882_v27 = vsel %vm1807_vm8, %v1775_v38, 0 }
 0x43c   :  { %v1799_v12 = vpack.c.bf16 %v1793_v23, %v1793_v23  ;;  %v1800_v13 = vpack.c.bf16 %v1794_v7, %v1794_v7  ;;  %1920 = vmatpush.bf16.msrb.mxu2 %v1882_v27 }
 0x43d   :  { %v1753_v2 = vpop.permute.xlu1 %1752 }
 0x43e   :  { %v1760_v45 = vsel %vm760_vm1, %v1753_v2, %v1755_v3  ;;  %v1767_v51 = vsel %vm760_vm1, 0.0, %v1753_v2  ;;  %v1809_v60 = vsel %vm1807_vm8, %v1799_v12, 0  ;;  %v1812_v63 = vsel %vm1807_vm8, %v1800_v13, 0 }
 0x43f   :  { %v1768_v1 = vmul.f32 %v1767_v51, %v3172_v53  ;;  %v1769_v24 = vmul.f32 %v1760_v45, %v3175_v58  ;;  %1827 = vmatpush.bf16.msra.mxu0 %v1809_v60  ;;  %1840 = vmatpush.bf16.msra.mxu1 %v1812_v63  ;;  %v2149_v13 = vsel %vm1807_vm8, %v2137_v40, 0  ;;  %v2217_v63 = vpop.permute.xlu2 %2216 }
 0x440   :  { %v1759_v28 = vpop.permute.xlu0 %1758 }
 0x441   :  { %v1773_v43 = vpack.c.bf16 %v1768_v1, %v1768_v1  ;;  %v1774_v52 = vpack.c.bf16 %v1769_v24, %v1769_v24  ;;  %v1762_v30 = vsel %vm760_vm1, %v1757_v35, %v1759_v28  ;;  %v1772_v35 = vld [vmem:[%s3726_s7] sm:$0xf] }
 0x442   :  { %v1771_v57 = vmul.f32 %v1762_v30, %v3156_v34  ;;  %2774 = vmatmul.msk.bf16.vlgmr.msra.gmra.mxu0 %vm1803_vm9, %v2773_v14  ;;  %2775 = vmatmul.msk.bf16.vlgmr.msra.gmra.mxu1 %vm1803_vm9, %v2773_v14 }
 0x443   :  { %v1876_v4 = vsel %vm1807_vm8, %v1773_v43, 0  ;;  %v1879_v53 = vsel %vm1807_vm8, %v1774_v52, 0  ;;  %v2135_v43 = vpack.c.bf16 %v3469_v39, %v3469_v39 }
 0x444   :  { %v1776_v58 = vpack.c.bf16 %v1771_v57, %v1771_v57  ;;  %1894 = vmatpush.bf16.msrb.mxu0 %v1876_v4  ;;  %1907 = vmatpush.bf16.msrb.mxu1 %v1879_v53 }
 0x445   :  { %v1946_v34 = vpop.permute.xlu1 %1945  ;;  %v2143_v4 = vsel %vm1807_vm8, %v2135_v43, 0 }
 0x446   :  { %v1885_v8 = vsel %vm1807_vm8, %v1776_v58, 0  ;;  %v2787_v58 = vld [vmem:[%s3726_s7 + $0xc] sm:$0xf] }
 0x447   :  { %1933 = vmatpush.bf16.msrb.mxu3 %v1885_v8  ;;  %2780 = vmatmul.msk.bf16.vlgmr.msrb.gmra.mxu2 %vm1803_vm9, %v1772_v35 }
 0x448   :  { %1987 = vmatpush.bf16.msra.mxu0 %v1969_v10  ;;  %2000 = vmatpush.bf16.msra.mxu1 %v1972_v48  ;;  %v1944_v11 = vpop.permute.xlu0 %1943 }
 0x449   :  { %v1948_v17 = vsel %vm983_vm2, %v3530_v29, %v1944_v11  ;;  %v1949_v14 = vsel %vm983_vm2, %v1944_v11, %v1946_v34 }
 0x44a   :  { %v1957_v50 = vmul.f32 %v1948_v17, %v3228_v37  ;;  %v1958_v3 = vmul.f32 %v1949_v14, %v3234_v42  ;;  %2781 = vmatmul.msk.bf16.vlgmr.msrb.gmra.mxu3 %vm1803_vm9, %v1772_v35 }
 0x44c   :  { %v1963_v15 = vpack.c.bf16 %v1957_v50, %v1957_v50  ;;  %v1964_v32 = vpack.c.bf16 %v1958_v3, %v1958_v3 }
 0x44d   :  { %v2041_v56 = vpop.permute.xlu1 %2040 }
 0x44e   :  { %v2046_v20 = vsel %vm1100_vm3, %v2041_v56, %v2043_v49  ;;  %v1975_v38 = vsel %vm1807_vm8, %v1963_v15, 0  ;;  %v1978_v33 = vsel %vm1807_vm8, %v1964_v32, 0 }
 0x44f   :  { %v2055_v29 = vmul.f32 %v2046_v20, %v3270_v26  ;;  %2013 = vmatpush.bf16.msra.mxu2 %v1975_v38  ;;  %2026 = vmatpush.bf16.msra.mxu3 %v1978_v33  ;;  %v2782_v26 = vld [vmem:[%s3726_s7 + $0x8] sm:$0xf]  ;;  %v2792_v33 = vld [vmem:[%s3726_s7 + $0x10] sm:$0xf] }
 0x450   :  { %v2039_v44 = vpop.permute.xlu0 %2038 }
 0x451   :  { %v2061_v37 = vpack.c.bf16 %v2055_v29, %v2055_v29  ;;  %v2045_v42 = vsel %vm1100_vm3, %v2039_v44, %v2041_v56 }
 0x452   :  { %v2054_v23 = vmul.f32 %v2045_v42, %v3232_v41  ;;  %2778 = vmatmul.msk.bf16.vlgmr.msrb.gmra.mxu0 %vm1803_vm9, %v1772_v35  ;;  %2779 = vmatmul.msk.bf16.vlgmr.msrb.gmra.mxu1 %vm1803_vm9, %v1772_v35  ;;  %v2138_v41 = vpack.c.bf16 %v3461_v19, %v3461_v19  ;;  %v2312_v35 = vpop.permute.xlu2 %2311 }
 0x453   :  { %v2075_v7 = vsel %vm1807_vm8, %v2061_v37, 0 }
 0x454   :  { %v2060_v27 = vpack.c.bf16 %v2054_v23, %v2054_v23  ;;  %2123 = vmatpush.bf16.msrb.mxu3 %v2075_v7  ;;  %v2152_v19 = vsel %vm1807_vm8, %v2138_v41, 0 }
 0x455   :  { %v2215_v55 = vpop.permute.xlu1 %2214 }
 0x456   :  { %v2072_v9 = vsel %vm1807_vm8, %v2060_v27, 0  ;;  %v2220_v16 = vsel %vm1282_vm4, %v2215_v55, %v2217_v63 }
 0x457   :  { %2110 = vmatpush.bf16.msrb.mxu2 %v2072_v9  ;;  %v2228_v52 = vmul.f32 %v2220_v16, %v3306_v59 }
 0x458   :  { %v2037_v12 = vpop.permute.xlu0 %2036  ;;  %2785 = vmatmul.msk.bf16.vlgmr.msra.gmra.mxu2 %vm1803_vm9, %v2782_v26 }
 0x459   :  { %v2044_v2 = vsel %vm1100_vm3, %v2037_v12, %v2039_v44  ;;  %v2051_v45 = vsel %vm1100_vm3, 0.0, %v2037_v12 }
 0x45a   :  { %v2052_v51 = vmul.f32 %v2051_v45, %v3254_v5  ;;  %v2053_v60 = vmul.f32 %v2044_v2, %v3256_v6  ;;  %2786 = vmatmul.msk.bf16.vlgmr.msra.gmra.mxu3 %vm1803_vm9, %v2782_v26  ;;  %v2136_v5 = vpack.c.bf16 %v3455_v31, %v3455_v31  ;;  %v2225_v6 = vsel %vm1282_vm4, %v2217_v63, 0.0  ;;  %v2310_v20 = vpop.permute.xlu2 %2309 }
 0x45b   :  { %2187 = vmatpush.bf16.msra.mxu2 %v2149_v13  ;;  %2200 = vmatpush.bf16.msra.mxu3 %v2152_v19  ;;  %v2229_v57 = vmul.f32 %v2225_v6, %v3303_v54  ;;  %v2234_v31 = vpack.c.bf16 %v2228_v52, %v2228_v52  ;;  %v2316_v29 = vsel %vm1399_vm5, %v2310_v20, %v2312_v35 }
 0x45c   :  { %v2058_v1 = vpack.c.bf16 %v2052_v51, %v2052_v51  ;;  %v2059_v24 = vpack.c.bf16 %v2053_v60, %v2053_v60  ;;  %v2146_v39 = vsel %vm1807_vm8, %v2136_v5, 0  ;;  %v2324_v37 = vmul.f32 %v2316_v29, %v3328_v21  ;;  %v2797_v51 = vld [vmem:[%s3726_s7 + $0x14] sm:$0xf] }
 0x45d   :  { %v2213_v53 = vpop.permute.xlu1 %2212  ;;  %v2235_v59 = vpack.c.bf16 %v2229_v57, %v2229_v57  ;;  %v2246_v48 = vsel %vm1807_vm8, %v2234_v31, 0 }
 0x45e   :  { %v2066_v18 = vsel %vm1807_vm8, %v2058_v1, 0  ;;  %v2069_v28 = vsel %vm1807_vm8, %v2059_v24, 0  ;;  %v2219_v10 = vsel %vm1282_vm4, %v2213_v53, %v2215_v55  ;;  %v3742_v24 = vld [vmem:[#allocation7_spill] sm:$0xff] }
 0x45f   :  { %2084 = vmatpush.bf16.msrb.mxu0 %v2066_v18  ;;  %2097 = vmatpush.bf16.msrb.mxu1 %v2069_v28  ;;  %v2227_v34 = vmul.f32 %v2219_v10, %v3292_v47  ;;  %v2249_v17 = vsel %vm1807_vm8, %v2235_v59, 0  ;;  %v2802_v10 = vld [vmem:[%s3726_s7 + $0x18] sm:$0xf] }
 0x460   :  { %v2211_v30 = vpop.permute.xlu0 %2210 }
 0x461   :  { %v2218_v54 = vsel %vm1282_vm4, %v2211_v30, %v2213_v53  ;;  %v2233_v50 = vpack.c.bf16 %v2227_v34, %v2227_v34  ;;  %v3743_v30 = vld [vmem:[#allocation8_spill] sm:$0xff] }
 0x462   :  { %2783 = vmatmul.msk.bf16.vlgmr.msra.gmra.mxu0 %vm1803_vm9, %v2782_v26  ;;  %2784 = vmatmul.msk.bf16.vlgmr.msra.gmra.mxu1 %vm1803_vm9, %v2782_v26  ;;  %v2226_v8 = vmul.f32 %v2218_v54, %v3309_v62  ;;  %v2330_v26 = vpack.c.bf16 %v2324_v37, %v2324_v37  ;;  %v2405_v13 = vpop.permute.xlu2 %2404 }
 0x463   :  { %2161 = vmatpush.bf16.msra.mxu0 %v2143_v4  ;;  %2174 = vmatpush.bf16.msra.mxu1 %v2146_v39  ;;  %v2243_v62 = vsel %vm1807_vm8, %v2233_v50, 0  ;;  %v3744_v4 = vld [vmem:[#allocation6_spill] sm:$0xff] }
 0x464   :  { %v2232_v3 = vpack.c.bf16 %v2226_v8, %v2226_v8  ;;  %v2340_v2 = vsel %vm1807_vm8, %v2330_v26, 0  ;;  %v3745_v8 = vld [vmem:[#allocation9_spill] sm:$0xff] }
 0x465   :  { %v2308_v49 = vpop.permute.xlu1 %2307 }
 0x466   :  { %v2240_v47 = vsel %vm1807_vm8, %v2232_v3, 0 }
 0x468   :  { %2790 = vmatmul.msk.bf16.vlgmr.msrb.gmra.mxu2 %vm1803_vm9, %v2787_v58  ;;  %v2314_v11 = vpop.permute.xlu0 %2313 }
 0x469   :  { %2284 = vmatpush.bf16.msrb.mxu2 %v2246_v48  ;;  %v2317_v14 = vsel %vm1399_vm5, %v2312_v35, %v2314_v11  ;;  %v2322_v15 = vsel %vm1399_vm5, %v2314_v11, 0.0 }
 0x46a   :  { %2791 = vmatmul.msk.bf16.vlgmr.msrb.gmra.mxu3 %vm1803_vm9, %v2787_v58  ;;  %v2325_v32 = vmul.f32 %v2317_v14, %v3339_v46  ;;  %v2326_v56 = vmul.f32 %v2322_v15, %v3341_v25  ;;  %v2315_v25 = vsel %vm1399_vm5, %v2308_v49, %v2310_v20  ;;  %v2508_v28 = vpop.permute.xlu2 %2507 }
 0x46b   :  { %2297 = vmatpush.bf16.msrb.mxu3 %v2249_v17  ;;  %v2323_v42 = vmul.f32 %v2315_v25, %v3379_v22  ;;  %v2516_v52 = vsel %vm1633_vm7, %v2508_v28, 0.0  ;;  %v3746_v17 = vld [vmem:[#allocation10_spill] sm:$0xff] }
 0x46c   :  { %v2331_v38 = vpack.c.bf16 %v2325_v32, %v2325_v32  ;;  %v2332_v46 = vpack.c.bf16 %v2326_v56, %v2326_v56  ;;  %v2520_v39 = vmul.f32 %v2516_v52, %v3744_v4  ;;  %v2807_v56 = vld [vmem:[%s3726_s7 + $0x1c] sm:$0xf] }
 0x46d   :  { %v2411_v27 = vpop.permute.xlu1 %2410  ;;  %v2329_v9 = vpack.c.bf16 %v2323_v42, %v2323_v42 }
 0x46e   :  { %v2343_v44 = vsel %vm1807_vm8, %v2331_v38, 0  ;;  %v2346_v7 = vsel %vm1807_vm8, %v2332_v46, 0  ;;  %v2419_v41 = vsel %vm1516_vm6, %v2411_v27, 0.0  ;;  %v2526_v54 = vpack.c.bf16 %v2520_v39, %v2520_v39 }
 0x46f   :  { %v2423_v21 = vmul.f32 %v2419_v41, %v3364_v0  ;;  %v2337_v22 = vsel %vm1807_vm8, %v2329_v9, 0 }
 0x470   :  { %v2409_v23 = vpop.permute.xlu0 %2408  ;;  %v2540_v50 = vsel %vm1807_vm8, %v2526_v54, 0 }
 0x471   :  { %v2414_v40 = vsel %vm1516_vm6, %v2409_v23, %v2411_v27 }
 0x472   :  { %2788 = vmatmul.msk.bf16.vlgmr.msrb.gmra.mxu0 %vm1803_vm9, %v2787_v58  ;;  %2789 = vmatmul.msk.bf16.vlgmr.msrb.gmra.mxu1 %vm1803_vm9, %v2787_v58  ;;  %v2422_v12 = vmul.f32 %v2414_v40, %v3361_v61  ;;  %v2429_v61 = vpack.c.bf16 %v2423_v21, %v2423_v21 }
 0x473   :  { %2258 = vmatpush.bf16.msrb.mxu0 %v2240_v47  ;;  %2271 = vmatpush.bf16.msrb.mxu1 %v2243_v62  ;;  %v2812_v47 = vld [vmem:[%s3726_s7 + $0x20] sm:$0xf] }
 0x474   :  { %v2428_v45 = vpack.c.bf16 %v2422_v12, %v2422_v12  ;;  %v2443_v18 = vsel %vm1807_vm8, %v2429_v61, 0 }
 0x475   :  { %v2506_v63 = vpop.permute.xlu1 %2505 }
 0x476   :  { %v2440_v19 = vsel %vm1807_vm8, %v2428_v45, 0  ;;  %v2511_v43 = vsel %vm1633_vm7, %v2506_v63, %v2508_v28 }
 0x477   :  { %v2519_v57 = vmul.f32 %v2511_v43, %v3743_v30 }
 0x478   :  { %2795 = vmatmul.msk.bf16.vlgmr.msra.gmra.mxu2 %vm1803_vm9, %v2792_v33  ;;  %v2407_v55 = vpop.permute.xlu0 %2406 }
 0x479   :  { %2381 = vmatpush.bf16.msra.mxu2 %v2343_v44  ;;  %v2412_v60 = vsel %vm1516_vm6, %v2405_v13, %v2407_v55  ;;  %v2413_v0 = vsel %vm1516_vm6, %v2407_v55, %v2409_v23  ;;  %v2525_v53 = vpack.c.bf16 %v2519_v57, %v2519_v57 }
 0x47a   :  { %2796 = vmatmul.msk.bf16.vlgmr.msra.gmra.mxu3 %vm1803_vm9, %v2792_v33  ;;  %v2420_v1 = vmul.f32 %v2412_v60, %v3429_v36  ;;  %v2421_v16 = vmul.f32 %v2413_v0, %v3742_v24 }
 0x47b   :  { %2394 = vmatpush.bf16.msra.mxu3 %v2346_v7  ;;  %v2537_v34 = vsel %vm1807_vm8, %v2525_v53, 0 }
 0x47c   :  { %v2426_v5 = vpack.c.bf16 %v2420_v1, %v2420_v1  ;;  %v2427_v6 = vpack.c.bf16 %v2421_v16, %v2421_v16 }
 0x47d   :  { %v2504_v58 = vpop.permute.xlu1 %2503 }
 0x47e   :  { %v2434_v36 = vsel %vm1807_vm8, %v2426_v5, 0  ;;  %v2437_v31 = vsel %vm1807_vm8, %v2427_v6, 0  ;;  %v2510_v48 = vsel %vm1633_vm7, %v2504_v58, %v2506_v63 }
 0x47f   :  { %v2518_v11 = vmul.f32 %v2510_v48, %v3745_v8 }
 0x480   :  { %v2502_v59 = vpop.permute.xlu0 %2501 }
 0x481   :  { %v2509_v35 = vsel %vm1633_vm7, %v2502_v59, %v2504_v58  ;;  %v2524_v3 = vpack.c.bf16 %v2518_v11, %v2518_v11 }
 0x482   :  { %2793 = vmatmul.msk.bf16.vlgmr.msra.gmra.mxu0 %vm1803_vm9, %v2792_v33  ;;  %2794 = vmatmul.msk.bf16.vlgmr.msra.gmra.mxu1 %vm1803_vm9, %v2792_v33  ;;  %v2517_v14 = vmul.f32 %v2509_v35, %v3746_v17 }
 0x483   :  { %2355 = vmatpush.bf16.msra.mxu0 %v2337_v22  ;;  %2368 = vmatpush.bf16.msra.mxu1 %v2340_v2  ;;  %v2534_v49 = vsel %vm1807_vm8, %v2524_v3, 0 }
 0x484   :  { %v2523_v15 = vpack.c.bf16 %v2517_v14, %v2517_v14 }
 0x486   :  { %v2531_v32 = vsel %vm1807_vm8, %v2523_v15, 0 }
 0x488   :  { %2800 = vmatmul.msk.bf16.vlgmr.msrb.gmra.mxu2 %vm1803_vm9, %v2797_v51 }
 0x489   :  { %2478 = vmatpush.bf16.msrb.mxu2 %v2440_v19 }
 0x48a   :  { %2801 = vmatmul.msk.bf16.vlgmr.msrb.gmra.mxu3 %vm1803_vm9, %v2797_v51 }
 0x48b   :  { %2491 = vmatpush.bf16.msrb.mxu3 %v2443_v18 }
 0x492   :  { %2798 = vmatmul.msk.bf16.vlgmr.msrb.gmra.mxu0 %vm1803_vm9, %v2797_v51  ;;  %2799 = vmatmul.msk.bf16.vlgmr.msrb.gmra.mxu1 %vm1803_vm9, %v2797_v51 }
 0x493   :  { %2452 = vmatpush.bf16.msrb.mxu0 %v2434_v36  ;;  %2465 = vmatpush.bf16.msrb.mxu1 %v2437_v31 }
 0x498   :  { %2805 = vmatmul.msk.bf16.vlgmr.msra.gmra.mxu2 %vm1803_vm9, %v2802_v10 }
 0x499   :  { %2575 = vmatpush.bf16.msra.mxu2 %v2537_v34 }
 0x49a   :  { %2806 = vmatmul.msk.bf16.vlgmr.msra.gmra.mxu3 %vm1803_vm9, %v2802_v10 }
 0x49b   :  { %2588 = vmatpush.bf16.msra.mxu3 %v2540_v50 }
 0x4a2   :  { %2803 = vmatmul.msk.bf16.vlgmr.msra.gmra.mxu0 %vm1803_vm9, %v2802_v10  ;;  %2804 = vmatmul.msk.bf16.vlgmr.msra.gmra.mxu1 %vm1803_vm9, %v2802_v10 }
 0x4a3   :  { %2549 = vmatpush.bf16.msra.mxu0 %v2531_v32  ;;  %2562 = vmatpush.bf16.msra.mxu1 %v2534_v49 }
 0x4a8   :  { %2810 = vmatmul.msk.bf16.vlgmr.msrb.gmra.mxu2 %vm1803_vm9, %v2807_v56 }
 0x4aa   :  { %2811 = vmatmul.msk.bf16.vlgmr.msrb.gmra.mxu3 %vm1803_vm9, %v2807_v56 }
 0x4b2   :  { %2808 = vmatmul.msk.bf16.vlgmr.msrb.gmra.mxu0 %vm1803_vm9, %v2807_v56  ;;  %2809 = vmatmul.msk.bf16.vlgmr.msrb.gmra.mxu1 %vm1803_vm9, %v2807_v56 }
 0x4b8   :  { %2815 = vmatmul.msk.bf16.vlgmr.msra.gmra.mxu2 %vm1803_vm9, %v2812_v47 }
 0x4ba   :  { %2816 = vmatmul.msk.bf16.vlgmr.msra.gmra.mxu3 %vm1803_vm9, %v2812_v47  ;;  %v1855_v62 = vpop.f32.mrf.mxu2  ;;  %v1868_v20 = vpop.f32.mrf.mxu3 }
 0x4bf   :  { %v1829_v38 = vpop.f32.mrf.mxu0  ;;  %v1842_v33 = vpop.f32.mrf.mxu1 }
 0x4c2   :  { %2813 = vmatmul.msk.bf16.vlgmr.msra.gmra.mxu0 %vm1803_vm9, %v2812_v47  ;;  %2814 = vmatmul.msk.bf16.vlgmr.msra.gmra.mxu1 %vm1803_vm9, %v2812_v47  ;;  %v1857_v46 = vpop.f32.mrf.mxu2  ;;  %v1870_v29 = vpop.f32.mrf.mxu3 }
 0x4c7   :  { %v1831_v25 = vpop.f32.mrf.mxu0  ;;  %v1844_v44 = vpop.f32.mrf.mxu1 }
 0x4ca   :  { %v1922_v37 = vpop.f32.mrf.mxu2 }
 0x4cb   :  { %v1923_v42 = vadd.f32 %v1922_v37, %v1855_v62 }
 0x4cd   :  { %v1935_v23 = vpop.f32.mrf.mxu3 }
 0x4ce   :  { %v1936_v7 = vadd.f32 %v1935_v23, %v1868_v20 }
 0x4cf   :  { %v1896_v27 = vpop.f32.mrf.mxu0  ;;  %v1909_v40 = vpop.f32.mrf.mxu1 }
 0x4d0   :  { %v1897_v26 = vadd.f32 %v1896_v27, %v1829_v38  ;;  %v1910_v9 = vadd.f32 %v1909_v40, %v1842_v33 }
 0x4d2   :  { %v1924_v41 = vpop.f32.mrf.mxu2 }
 0x4d5   :  { %v1937_v12 = vpop.f32.mrf.mxu3 }
 0x4d7   :  { %v1898_v13 = vpop.f32.mrf.mxu0  ;;  %v1911_v21 = vpop.f32.mrf.mxu1 }
 0x4db   :  { %v2015_v22 = vpop.f32.mrf.mxu2 }
 0x4dc   :  { %v2034_v2 = vadd.f32 %v2015_v22, %v1923_v42 }
 0x4dd   :  { %v2028_v45 = vpop.f32.mrf.mxu3 }
 0x4de   :  { %v2035_v55 = vadd.f32 %v2028_v45, %v1936_v7 }
 0x4df   :  { %v1989_v51 = vpop.f32.mrf.mxu0  ;;  %v2002_v61 = vpop.f32.mrf.mxu1 }
 0x4e0   :  { %v2032_v60 = vadd.f32 %v1989_v51, %v1897_v26  ;;  %v2033_v0 = vadd.f32 %v2002_v61, %v1910_v9 }
 0x4e3   :  { %v2017_v19 = vpop.f32.mrf.mxu2 }
 0x4e4   :  { %v2602_v19 = vpop.permute.xlu2 %2601 }
 0x4e5   :  { %v2030_v63 = vpop.f32.mrf.mxu3 }
 0x4e7   :  { %v1991_v1 = vpop.f32.mrf.mxu0  ;;  %v2004_v24 = vpop.f32.mrf.mxu1 }
 0x4eb   :  { %v2112_v16 = vpop.f32.mrf.mxu2 }
 0x4ec   :  { %v2131_v18 = vadd.f32 %v2112_v16, %v2034_v2 }
 0x4ed   :  { %v2125_v28 = vpop.f32.mrf.mxu3 }
 0x4ee   :  { %v2132_v43 = vadd.f32 %v2125_v28, %v2035_v55 }
 0x4ef   :  { %v2086_v5 = vpop.f32.mrf.mxu0  ;;  %v2099_v6 = vpop.f32.mrf.mxu1 }
 0x4f0   :  { %v2129_v52 = vadd.f32 %v2086_v5, %v2032_v60  ;;  %v2130_v30 = vadd.f32 %v2099_v6, %v2033_v0 }
 0x4f3   :  { %v2114_v57 = vpop.f32.mrf.mxu2 }
 0x4f5   :  { %v2127_v4 = vpop.f32.mrf.mxu3 }
 0x4f7   :  { %v2088_v39 = vpop.f32.mrf.mxu0  ;;  %v2101_v36 = vpop.f32.mrf.mxu1 }
 0x4fb   :  { %v2189_v31 = vpop.f32.mrf.mxu2 }
 0x4fc   :  { %v2208_v42 = vadd.f32 %v2189_v31, %v2131_v18 }
 0x4fd   :  { %v2202_v53 = vpop.f32.mrf.mxu3 }
 0x4fe   :  { %v2209_v7 = vadd.f32 %v2202_v53, %v2132_v43 }
 0x4ff   :  { %v2163_v58 = vpop.f32.mrf.mxu0  ;;  %v2176_v59 = vpop.f32.mrf.mxu1 }
 0x500   :  { %v2206_v9 = vadd.f32 %v2163_v58, %v2129_v52  ;;  %v2207_v41 = vadd.f32 %v2176_v59, %v2130_v30 }
 0x503   :  { %v2191_v10 = vpop.f32.mrf.mxu2 }
 0x505   :  { %v2204_v54 = vpop.f32.mrf.mxu3 }
 0x507   :  { %v2165_v48 = vpop.f32.mrf.mxu0  ;;  %v2178_v35 = vpop.f32.mrf.mxu1 }
 0x508   :  { %v2612_v48 = vld [vmem:[%s3729_s10] sm:$0x1] }
 0x50b   :  { %v2286_v34 = vpop.f32.mrf.mxu2 }
 0x50c   :  { %v2305_v27 = vadd.f32 %v2286_v34, %v2208_v42 }
 0x50d   :  { %v2299_v8 = vpop.f32.mrf.mxu3 }
 0x50e   :  { %v2306_v12 = vadd.f32 %v2299_v8, %v2209_v7 }
 0x50f   :  { %v2260_v11 = vpop.f32.mrf.mxu0  ;;  %v2273_v17 = vpop.f32.mrf.mxu1 }
 0x510   :  { %v2303_v21 = vadd.f32 %v2260_v11, %v2206_v9  ;;  %v2304_v22 = vadd.f32 %v2273_v17, %v2207_v41 }
 0x513   :  { %v2288_v14 = vpop.f32.mrf.mxu2 }
 0x515   :  { %v2301_v50 = vpop.f32.mrf.mxu3 }
 0x517   :  { %v2262_v3 = vpop.f32.mrf.mxu0  ;;  %v2275_v15 = vpop.f32.mrf.mxu1 }
 0x518   :  { %v2621_v3 = vpop.permute.xlu0 %2620 }
 0x519   :  { %v2623_v15 = vperm.slane %v2621_v3, 0 }
 0x51b   :  { %v2383_v32 = vpop.f32.mrf.mxu2 }
 0x51c   :  { %v2402_v13 = vadd.f32 %v2383_v32, %v2305_v27 }
 0x51d   :  { %v2396_v49 = vpop.f32.mrf.mxu3 }
 0x51e   :  { %v2403_v2 = vadd.f32 %v2396_v49, %v2306_v12 }
 0x51f   :  { %v2357_v56 = vpop.f32.mrf.mxu0  ;;  %v2370_v47 = vpop.f32.mrf.mxu1 }
 0x520   :  { %v2400_v51 = vadd.f32 %v2357_v56, %v2303_v21  ;;  %v2401_v61 = vadd.f32 %v2370_v47, %v2304_v22 }
 0x523   :  { %v2385_v62 = vpop.f32.mrf.mxu2 }
 0x525   :  { %v2398_v20 = vpop.f32.mrf.mxu3 }
 0x527   :  { %v2359_v38 = vpop.f32.mrf.mxu0  ;;  %v2372_v33 = vpop.f32.mrf.mxu1 }
 0x528   :  { %v2705_v38 = vlaneseq }
 0x52a   :  { %vm2707_vm13 = vcmp.lt.s32.totalorder %v2705_v38, 512 }
 0x52b   :  { %v2480_v46 = vpop.f32.mrf.mxu2 }
 0x52c   :  { %v2499_v45 = vadd.f32 %v2480_v46, %v2402_v13 }
 0x52d   :  { %v2493_v29 = vpop.f32.mrf.mxu3 }
 0x52e   :  { %v2500_v60 = vadd.f32 %v2493_v29, %v2403_v2 }
 0x52f   :  { %v2454_v25 = vpop.f32.mrf.mxu0  ;;  %v2467_v44 = vpop.f32.mrf.mxu1 }
 0x530   :  { %v2497_v1 = vadd.f32 %v2454_v25, %v2400_v51  ;;  %v2498_v24 = vadd.f32 %v2467_v44, %v2401_v61 }
 0x533   :  { %v2482_v37 = vpop.f32.mrf.mxu2 }
 0x535   :  { %v2495_v23 = vpop.f32.mrf.mxu3 }
 0x537   :  { %v2456_v40 = vpop.f32.mrf.mxu0  ;;  %v2469_v26 = vpop.f32.mrf.mxu1 }
 0x53b   :  { %v2577_v55 = vpop.f32.mrf.mxu2 }
 0x53c   :  { %v2596_v0 = vadd.f32 %v2577_v55, %v2499_v45 }
 0x53d   :  { %v2590_v63 = vpop.f32.mrf.mxu3 }
 0x53e   :  { %v2606_v16 = vadd.f32 %v2602_v19, %v2596_v0  ;;  %v2597_v18 = vadd.f32 %v2590_v63, %v2500_v60 }
 0x53f   :  { %v2551_v28 = vpop.f32.mrf.mxu0  ;;  %v2564_v43 = vpop.f32.mrf.mxu1 }
 0x540   :  { %v2610_v5 = vmax.f32 %v2606_v16, 0.0  ;;  %v2607_v6 = vadd.f32 %v2602_v19, %v2597_v18  ;;  %v2594_v52 = vadd.f32 %v2551_v28, %v2497_v1  ;;  %v2595_v30 = vadd.f32 %v2564_v43, %v2498_v24 }
 0x542   :  { %v2615_v57 = vpack.c.bf16 %v2610_v5, %v2610_v5  ;;  %v2611_v4 = vmax.f32 %v2607_v6, 0.0  ;;  %v2604_v39 = vadd.f32 %v2602_v19, %v2594_v52  ;;  %v2605_v36 = vadd.f32 %v2602_v19, %v2595_v30 }
 0x543   :  { %v2579_v31 = vpop.f32.mrf.mxu2 }
 0x544   :  { %v2616_v53 = vpack.c.bf16 %v2611_v4, %v2611_v4  ;;  %v2608_v58 = vmax.f32 %v2604_v39, 0.0  ;;  %v2609_v59 = vmax.f32 %v2605_v36, 0.0  ;;  %v2634_v10 = vsel %vm1807_vm8, %v2615_v57, 0 }
 0x545   :  { %v2592_v54 = vpop.f32.mrf.mxu3  ;;  %2672 = vmatpush.bf16.msrb.mxu2 %v2634_v10 }
 0x546   :  { %v2613_v35 = vpack.c.bf16 %v2608_v58, %v2608_v58  ;;  %v2614_v34 = vpack.c.bf16 %v2609_v59, %v2609_v59  ;;  %v2637_v8 = vsel %vm1807_vm8, %v2616_v53, 0 }
 0x547   :  { %v2553_v11 = vpop.f32.mrf.mxu0  ;;  %v2566_v17 = vpop.f32.mrf.mxu1  ;;  %2685 = vmatpush.bf16.msrb.mxu3 %v2637_v8 }
 0x548   :  { %2819 = vmatmul.msk.bf16.vlgmr.msrb.gmra.mxu2 %vm1803_vm9, %v2612_v48  ;;  %v2628_v14 = vsel %vm1807_vm8, %v2613_v35, 0  ;;  %v2631_v50 = vsel %vm1807_vm8, %v2614_v34, 0 }
 0x549   :  { %2646 = vmatpush.bf16.msrb.mxu0 %v2628_v14  ;;  %2659 = vmatpush.bf16.msrb.mxu1 %v2631_v50 }
 0x54a   :  { %2820 = vmatmul.msk.bf16.vlgmr.msrb.gmra.mxu3 %vm1803_vm9, %v2612_v48 }
 0x54c   :  { %2817 = vmatmul.msk.bf16.vlgmr.msrb.gmra.mxu0 %vm1803_vm9, %v2612_v48  ;;  %2818 = vmatmul.msk.bf16.vlgmr.msrb.gmra.mxu1 %vm1803_vm9, %v2612_v48 }
 0x5c9   :  { %v2648_v32 = vpop.f32.mrf.mxu0  ;;  %v2661_v49 = vpop.f32.mrf.mxu1 }
 0x5ca   :  { %v2662_v56 = vadd.f32 %v2661_v49, %v2623_v15  ;;  %v2649_v29 = vadd.f32 %v2648_v32, %v2623_v15 }
 0x5cb   :  { %v2674_v47 = vpop.f32.mrf.mxu2 }
 0x5cc   :  { %v2675_v62 = vadd.f32 %v2674_v47, %v2623_v15  ;;  %v2695_v33 = vrot.slane %v2662_v56, 7 }
 0x5cd   :  { %v2687_v20 = vpop.f32.mrf.mxu3 }
 0x5ce   :  { %v2688_v46 = vadd.f32 %v2687_v20, %v2623_v15  ;;  %v2696_v25 = vrot.slane %v2675_v62, 6  ;;  %v2699_v23 = vsel %vm2698_vm10, %v2649_v29, %v2695_v33 }
 0x5d0   :  { %v2697_v44 = vrot.slane %v2688_v46, 5 }
 0x5d1   :  { %v2650_v37 = vpop.f32.mrf.mxu0  ;;  %v2663_v42 = vpop.f32.mrf.mxu1 }
 0x5d2   :  { %v2701_v7 = vsel %vm2700_vm11, %v2696_v25, %v2697_v44 }
 0x5d3   :  { %v2703_v27 = vsel %vm2702_vm12, %v2699_v23, %v2701_v7  ;;  %v2676_v40 = vpop.f32.mrf.mxu2 }
 0x5d4   :  { %2709 = vst.msk [vmem:[%s3731_s12] sm:$0xf] %vm2707_vm13, %v2703_v27 }
 0x5d5   :  { %v2689_v26 = vpop.f32.mrf.mxu3 }
 0x5d6   :  { %2714 = vsyncpa [#allocation4], 1 }

</bundles_post_ra>
